<compile_context>
chip_gen: v7x
topology: tpu7x:2x2x1
jax: 0.10.0
libtpu: 0.0.40
codegen_flags: <defaults>
</compile_context>

<pallas_src>
import math

import numpy as np
import jax
import jax.numpy as jnp
from jax.experimental import pallas as pl
from jax.experimental.pallas import tpu as pltpu


# ----------------------------------------------------------------------------
# Fused Pallas kernel: reparameterize + fc_decode + 5 transposed-conv layers.
# Activations live in VMEM/vregs as (B*H, W*C) f32 tiles the whole time.
# ----------------------------------------------------------------------------

def _vae_fused_kernel(mu_ref, logvar_ref, eps_ref, wfc_ref, bfc_ref,
                      g1_ref, p1_ref, c1_ref,
                      g2_ref, p2_ref, c2_ref,
                      g3_ref, p3_ref, c3_ref,
                      g4_ref, p4_ref, c4_ref,
                      g5_ref, p5_ref, c5_ref,
                      out_ref):
    # z = mu + exp(0.5*logvar)*eps ; h = z @ Wfc + bfc   (rows = batch)
    z = mu_ref[...] + jnp.exp(0.5 * logvar_ref[...]) * eps_ref[...]
    a = jnp.dot(z, wfc_ref[...], preferred_element_type=jnp.float32) + bfc_ref[...]

    def deconv(a, g_ref, p_ref, b_ref, relu):
        # a:     (B*H_in, W_in*Cin)
        # g_ref: (kH, W_in*Cin, W_out*Cout)  width-lowered ConvTranspose weights
        # p_ref: (kH, B*H_out, B*H_in)       0/1 height scatter / assembly
        # b_ref: (1, W_out*Cout)
        taps = g_ref.shape[0]
        acc = None
        for k in range(taps):  # static trip count -> fully unrolled
            y = jnp.dot(a, g_ref[k], preferred_element_type=jnp.float32)
            t = jnp.dot(p_ref[k], y, preferred_element_type=jnp.float32)
            acc = t if acc is None else acc + t
        acc = acc + b_ref[...]
        return jnp.maximum(acc, 0.0) if relu else acc

    a = deconv(a, g1_ref, p1_ref, c1_ref, True)    # (B*2,  2*128)
    a = deconv(a, g2_ref, p2_ref, c2_ref, True)    # (B*4,  4*128)
    a = deconv(a, g3_ref, p3_ref, c3_ref, True)    # (B*7,  7*64)
    a = deconv(a, g4_ref, p4_ref, c4_ref, True)    # (B*14, 14*32)
    a = deconv(a, g5_ref, p5_ref, c5_ref, False)   # (B*28, 28)
    out_ref[...] = a


# ----------------------------------------------------------------------------
# One-time weight lowering (hoisted out of the per-step forward)
# ----------------------------------------------------------------------------

_DECODER_CFG = [
    # (w_key, b_key, stride, pad, out_pad, H_in(=W_in))
    ("w1", "b1", 1, 0, 0, 1),
    ("w2", "b2", 2, 1, 1, 2),
    ("w3", "b3", 2, 1, 0, 4),
    ("w4", "b4", 2, 1, 1, 7),
    ("w5", "b5", 2, 1, 1, 14),
]


def _lower_conv_transpose(w, b, stride, pad, out_pad, hw_in, batch):
    """Lower a torch-layout ConvTranspose2d weight (Cin, Cout, kH, kW) to
    (G, P, bias_row) with   out = sum_k P[k] @ (A @ G[k]) + bias_row,
    where A is the (B*H_in, W_in*Cin) input tile."""
    w = np.asarray(w, np.float32)
    b = np.asarray(b, np.float32)
    cin, cout, kh, kw = w.shape
    h_in = w_in = hw_in
    h_out = (h_in - 1) * stride - 2 * pad + kh + out_pad
    w_out = (w_in - 1) * stride - 2 * pad + kw + out_pad

    # Width direction folded into the GEMM weight (handles padding + cropping).
    G = np.zeros((kh, w_in * cin, w_out * cout), np.float32)
    for k in range(kh):
        for j in range(w_in):
            for q in range(kw):
                ow = stride * j - pad + q
                if 0 <= ow < w_out:
                    G[k, j * cin:(j + 1) * cin,
                      ow * cout:(ow + 1) * cout] = w[:, :, k, q]

    # Height direction: tiny 0/1 row-assembly matrices (scatter + crop + pad).
    P = np.zeros((kh, batch * h_out, batch * h_in), np.float32)
    for k in range(kh):
        for bb in range(batch):
            for ih in range(h_in):
                oh = stride * ih - pad + k
                if 0 <= oh < h_out:
                    P[k, bb * h_out + oh, bb * h_in + ih] = 1.0

    bias_row = np.tile(b, w_out)[None, :]  # column layout (ow, co) matches G
    return jnp.asarray(G), jnp.asarray(P), jnp.asarray(bias_row), h_out, w_out


def prepare_decoder(params, image_per_batch):
    prep = {
        "wfc": jnp.asarray(params["fc_decode_w"], jnp.float32),
        "bfc": jnp.asarray(params["fc_decode_b"], jnp.float32)[None, :],
        "layers": [],
    }
    h_out = w_out = 1
    for (wk, bk, stride, pad, out_pad, hw_in) in _DECODER_CFG:
        G, P, c, h_out, w_out = _lower_conv_transpose(
            params[wk], params[bk], stride, pad, out_pad, hw_in, image_per_batch)
        prep["layers"].append((G, P, c))
    prep["out_hw"] = (h_out, w_out)  # final spatial size (28, 28)
    return prep


# ----------------------------------------------------------------------------
# Module forward (NCHW output, like PyTorch)
# ----------------------------------------------------------------------------

def vae_forward(prep, mu_full, logvar_full, eps, start, end, image_per_batch,
                latent_dim):
    B = image_per_batch
    mu = mu_full[start:end].reshape(B, latent_dim)
    logvar = logvar_full[start:end].reshape(B, latent_dim)
    eps2 = eps.reshape(B, latent_dim)

    h_out, w_out = prep["out_hw"]
    flat = []
    for (G, P, c) in prep["layers"]:
        flat += [G, P, c]

    out = pl.pallas_call(
        _vae_fused_kernel,
        out_shape=jax.ShapeDtypeStruct((B * h_out, w_out), jnp.float32),
        compiler_params=pltpu.CompilerParams(
            vmem_limit_bytes=32 * 1024 * 1024),
    )(mu, logvar, eps2, prep["wfc"], prep["bfc"], *flat)

    return out.reshape(B, 1, h_out, w_out)  # NCHW, Cout = 1


# ----------------------------------------------------------------------------
# Pure-JAX reference (independent formulation, for numerical verification)
# ----------------------------------------------------------------------------

def _ref_conv_transpose2d(x_nhwc, w_t, b, stride, pad, out_pad):
    kH = w_t.shape[2]
    wf = jnp.transpose(jnp.flip(w_t, axis=(2, 3)), (2, 3, 0, 1))  # HWIO
    lo, hi = kH - 1 - pad, kH - 1 - pad + out_pad
    y = jax.lax.conv_general_dilated(
        x_nhwc, wf, window_strides=(1, 1),
        padding=((lo, hi), (lo, hi)), lhs_dilation=(stride, stride),
        dimension_numbers=("NHWC", "HWIO", "NHWC"))
    return y + b


def ref_forward(params, start, end, image_per_batch, eps):
    latent_dim = params["latent_dim"]
    mu = params["mu"][start:end].reshape(image_per_batch, latent_dim)
    logvar = params["logvar"][start:end].reshape(image_per_batch, latent_dim)
    eps2 = eps.reshape(image_per_batch, latent_dim)
    z = mu + jnp.exp(0.5 * logvar) * eps2
    h = z @ params["fc_decode_w"] + params["fc_decode_b"]
    x = h.reshape(image_per_batch, 1, 1, 128)
    x = jax.nn.relu(_ref_conv_transpose2d(x, params["w1"], params["b1"], 1, 0, 0))
    x = jax.nn.relu(_ref_conv_transpose2d(x, params["w2"], params["b2"], 2, 1, 1))
    x = jax.nn.relu(_ref_conv_transpose2d(x, params["w3"], params["b3"], 2, 1, 0))
    x = jax.nn.relu(_ref_conv_transpose2d(x, params["w4"], params["b4"], 2, 1, 1))
    x = _ref_conv_transpose2d(x, params["w5"], params["b5"], 2, 1, 1)
    return jnp.transpose(x, (0, 3, 1, 2))


# ----------------------------------------------------------------------------
# Deterministic parameter init (shapes from the module's __init__)
# ----------------------------------------------------------------------------

def init_params(key, latent_dim=200, num_samples=4):
    def uinit(k, shape, fan_in):
        bound = 1.0 / math.sqrt(fan_in)
        return jax.random.uniform(k, shape, jnp.float32, -bound, bound)

    ks = jax.random.split(key, 16)
    p = {"latent_dim": latent_dim}
    p["mu"] = jax.random.normal(ks[0], (num_samples * latent_dim,), jnp.float32)
    p["logvar"] = jax.random.normal(ks[1], (num_samples * latent_dim,), jnp.float32)
    # fc_decode: Linear(latent_dim, 128) stored as (latent_dim, 128)
    p["fc_decode_w"] = uinit(ks[2], (latent_dim, 128), latent_dim)
    p["fc_decode_b"] = uinit(ks[3], (128,), latent_dim)
    # ConvTranspose2d weights in torch layout (Cin, Cout, kH, kW)
    # NOTE: fc_mu / fc_logvar from __init__ are unused in forward() -> omitted.
    p["w1"] = uinit(ks[4], (128, 128, 2, 2), 128 * 2 * 2); p["b1"] = uinit(ks[5], (128,), 128 * 2 * 2)
    p["w2"] = uinit(ks[6], (128, 128, 3, 3), 128 * 3 * 3); p["b2"] = uinit(ks[7], (128,), 128 * 3 * 3)
    p["w3"] = uinit(ks[8], (128, 64, 3, 3), 128 * 3 * 3);  p["b3"] = uinit(ks[9], (64,), 128 * 3 * 3)
    p["w4"] = uinit(ks[10], (64, 32, 3, 3), 64 * 3 * 3);   p["b4"] = uinit(ks[11], (32,), 64 * 3 * 3)
    p["w5"] = uinit(ks[12], (32, 1, 3, 3), 32 * 3 * 3);    p["b5"] = uinit(ks[13], (1,), 32 * 3 * 3)
    return p


if __name__ == "__main__":
    key = jax.random.PRNGKey(0)
    k_param, k_eps = jax.random.split(key)

    latent_dim = 200
    num_samples = 4
    image_per_batch = 2
    start, end = 0, image_per_batch * latent_dim  # slice of mu/logvar

    params = init_params(k_param, latent_dim=latent_dim, num_samples=num_samples)
    prep = prepare_decoder(params, image_per_batch)  # one-time weight lowering

    # TODO(synk): torch.normal epsilon has no in-kernel equivalent here; it is
    # replaced by a deterministic jax.random.normal draw fed to the kernel.
    eps = jax.random.normal(k_eps, (end - start,), jnp.float32)

    fwd = jax.jit(lambda e: vae_forward(prep, params["mu"], params["logvar"], e,
                                        start, end, image_per_batch, latent_dim))
    recon = jax.block_until_ready(fwd(eps))

    assert recon.shape == (image_per_batch, 1, 28, 28), recon.shape

    ref = jax.block_until_ready(ref_forward(params, start, end, image_per_batch, eps))
    err = float(jnp.max(jnp.abs(recon - ref)))
    if not (err < 1e-3):
        raise AssertionError(f"Pallas output mismatch vs reference, max abs err = {err}")

    print("KERNEL_OK")
</pallas_src>

<mosaic_0001>
module attributes {stable_mosaic.version = 11 : i64} {
  func.func @_vae_fused_kernel(%arg0: memref<2x200xf32, #tpu.memory_space<vmem>>, %arg1: memref<2x200xf32, #tpu.memory_space<vmem>>, %arg2: memref<2x200xf32, #tpu.memory_space<vmem>>, %arg3: memref<200x128xf32, #tpu.memory_space<vmem>>, %arg4: memref<1x128xf32, #tpu.memory_space<vmem>>, %arg5: memref<2x128x256xf32, #tpu.memory_space<vmem>>, %arg6: memref<2x4x2xf32, #tpu.memory_space<vmem>>, %arg7: memref<1x256xf32, #tpu.memory_space<vmem>>, %arg8: memref<3x256x512xf32, #tpu.memory_space<vmem>>, %arg9: memref<3x8x4xf32, #tpu.memory_space<vmem>>, %arg10: memref<1x512xf32, #tpu.memory_space<vmem>>, %arg11: memref<3x512x448xf32, #tpu.memory_space<vmem>>, %arg12: memref<3x14x8xf32, #tpu.memory_space<vmem>>, %arg13: memref<1x448xf32, #tpu.memory_space<vmem>>, %arg14: memref<3x448x448xf32, #tpu.memory_space<vmem>>, %arg15: memref<3x28x14xf32, #tpu.memory_space<vmem>>, %arg16: memref<1x448xf32, #tpu.memory_space<vmem>>, %arg17: memref<3x448x28xf32, #tpu.memory_space<vmem>>, %arg18: memref<3x56x28xf32, #tpu.memory_space<vmem>>, %arg19: memref<1x28xf32, #tpu.memory_space<vmem>>, %arg20: memref<56x28xf32, #tpu.memory_space<vmem>>) attributes {dimension_semantics = [], scalar_prefetch = 0 : i64, scratch_operands = 0 : i64, tpu.core_type = #tpu.core_type<tc>} {
    %c0 = arith.constant 0 : index
    %c0_0 = arith.constant 0 : index
    %0 = vector.load %arg0[%c0, %c0_0] : memref<2x200xf32, #tpu.memory_space<vmem>>, vector<2x200xf32>
    %c0_1 = arith.constant 0 : index
    %c0_2 = arith.constant 0 : index
    %1 = vector.load %arg1[%c0_1, %c0_2] : memref<2x200xf32, #tpu.memory_space<vmem>>, vector<2x200xf32>
    %cst = arith.constant 5.000000e-01 : f32
    %2 = vector.broadcast %cst : f32 to vector<2x200xf32>
    %3 = arith.mulf %2, %1 : vector<2x200xf32>
    %4 = math.exp %3 : vector<2x200xf32>
    %c0_3 = arith.constant 0 : index
    %c0_4 = arith.constant 0 : index
    %5 = vector.load %arg2[%c0_3, %c0_4] : memref<2x200xf32, #tpu.memory_space<vmem>>, vector<2x200xf32>
    %6 = arith.mulf %4, %5 : vector<2x200xf32>
    %7 = arith.addf %0, %6 : vector<2x200xf32>
    %c0_5 = arith.constant 0 : index
    %c0_6 = arith.constant 0 : index
    %8 = vector.load %arg3[%c0_5, %c0_6] : memref<200x128xf32, #tpu.memory_space<vmem>>, vector<200x128xf32>
    %cst_7 = arith.constant dense<0.000000e+00> : vector<2x128xf32>
    %9 = tpu.matmul %7, %8, %cst_7 {dimension_numbers = #tpu.dot_dimension_numbers<[1], [0], [0], [1], [0, 0, 1, 1], [], []>} : vector<2x200xf32>, vector<200x128xf32>, vector<2x128xf32> -> vector<2x128xf32>
    %c0_8 = arith.constant 0 : index
    %c0_9 = arith.constant 0 : index
    %10 = vector.load %arg4[%c0_8, %c0_9] : memref<1x128xf32, #tpu.memory_space<vmem>>, vector<1x128xf32>
    %11 = vector.broadcast %10 : vector<1x128xf32> to vector<2x128xf32>
    %12 = arith.addf %9, %11 : vector<2x128xf32>
    %c0_10 = arith.constant 0 : index
    %c0_11 = arith.constant 0 : index
    %c0_12 = arith.constant 0 : index
    %13 = vector.load %arg5[%c0_10, %c0_11, %c0_12] : memref<2x128x256xf32, #tpu.memory_space<vmem>>, vector<1x128x256xf32>
    %14 = vector.shape_cast %13 : vector<1x128x256xf32> to vector<128x256xf32>
    %cst_13 = arith.constant dense<0.000000e+00> : vector<2x256xf32>
    %15 = tpu.matmul %12, %14, %cst_13 {dimension_numbers = #tpu.dot_dimension_numbers<[1], [0], [0], [1], [0, 0, 1, 1], [], []>} : vector<2x128xf32>, vector<128x256xf32>, vector<2x256xf32> -> vector<2x256xf32>
    %c0_14 = arith.constant 0 : index
    %c0_15 = arith.constant 0 : index
    %c0_16 = arith.constant 0 : index
    %16 = vector.load %arg6[%c0_14, %c0_15, %c0_16] : memref<2x4x2xf32, #tpu.memory_space<vmem>>, vector<1x4x2xf32>
    %17 = vector.shape_cast %16 : vector<1x4x2xf32> to vector<4x2xf32>
    %cst_17 = arith.constant dense<0.000000e+00> : vector<4x256xf32>
    %18 = tpu.matmul %17, %15, %cst_17 {dimension_numbers = #tpu.dot_dimension_numbers<[1], [0], [0], [1], [0, 0, 1, 1], [], []>} : vector<4x2xf32>, vector<2x256xf32>, vector<4x256xf32> -> vector<4x256xf32>
    %c1 = arith.constant 1 : index
    %c0_18 = arith.constant 0 : index
    %c0_19 = arith.constant 0 : index
    %19 = vector.load %arg5[%c1, %c0_18, %c0_19] : memref<2x128x256xf32, #tpu.memory_space<vmem>>, vector<1x128x256xf32>
    %20 = vector.shape_cast %19 : vector<1x128x256xf32> to vector<128x256xf32>
    %cst_20 = arith.constant dense<0.000000e+00> : vector<2x256xf32>
    %21 = tpu.matmul %12, %20, %cst_20 {dimension_numbers = #tpu.dot_dimension_numbers<[1], [0], [0], [1], [0, 0, 1, 1], [], []>} : vector<2x128xf32>, vector<128x256xf32>, vector<2x256xf32> -> vector<2x256xf32>
    %c1_21 = arith.constant 1 : index
    %c0_22 = arith.constant 0 : index
    %c0_23 = arith.constant 0 : index
    %22 = vector.load %arg6[%c1_21, %c0_22, %c0_23] : memref<2x4x2xf32, #tpu.memory_space<vmem>>, vector<1x4x2xf32>
    %23 = vector.shape_cast %22 : vector<1x4x2xf32> to vector<4x2xf32>
    %cst_24 = arith.constant dense<0.000000e+00> : vector<4x256xf32>
    %24 = tpu.matmul %23, %21, %cst_24 {dimension_numbers = #tpu.dot_dimension_numbers<[1], [0], [0], [1], [0, 0, 1, 1], [], []>} : vector<4x2xf32>, vector<2x256xf32>, vector<4x256xf32> -> vector<4x256xf32>
    %25 = arith.addf %18, %24 : vector<4x256xf32>
    %c0_25 = arith.constant 0 : index
    %c0_26 = arith.constant 0 : index
    %26 = vector.load %arg7[%c0_25, %c0_26] : memref<1x256xf32, #tpu.memory_space<vmem>>, vector<1x256xf32>
    %27 = vector.broadcast %26 : vector<1x256xf32> to vector<4x256xf32>
    %28 = arith.addf %25, %27 : vector<4x256xf32>
    %cst_27 = arith.constant 0.000000e+00 : f32
    %29 = vector.broadcast %cst_27 : f32 to vector<4x256xf32>
    %30 = arith.maximumf %28, %29 : vector<4x256xf32>
    %c0_28 = arith.constant 0 : index
    %c0_29 = arith.constant 0 : index
    %c0_30 = arith.constant 0 : index
    %31 = vector.load %arg8[%c0_28, %c0_29, %c0_30] : memref<3x256x512xf32, #tpu.memory_space<vmem>>, vector<1x256x512xf32>
    %32 = vector.shape_cast %31 : vector<1x256x512xf32> to vector<256x512xf32>
    %cst_31 = arith.constant dense<0.000000e+00> : vector<4x512xf32>
    %33 = tpu.matmul %30, %32, %cst_31 {dimension_numbers = #tpu.dot_dimension_numbers<[1], [0], [0], [1], [0, 0, 1, 1], [], []>} : vector<4x256xf32>, vector<256x512xf32>, vector<4x512xf32> -> vector<4x512xf32>
    %c0_32 = arith.constant 0 : index
    %c0_33 = arith.constant 0 : index
    %c0_34 = arith.constant 0 : index
    %34 = vector.load %arg9[%c0_32, %c0_33, %c0_34] : memref<3x8x4xf32, #tpu.memory_space<vmem>>, vector<1x8x4xf32>
    %35 = vector.shape_cast %34 : vector<1x8x4xf32> to vector<8x4xf32>
    %cst_35 = arith.constant dense<0.000000e+00> : vector<8x512xf32>
    %36 = tpu.matmul %35, %33, %cst_35 {dimension_numbers = #tpu.dot_dimension_numbers<[1], [0], [0], [1], [0, 0, 1, 1], [], []>} : vector<8x4xf32>, vector<4x512xf32>, vector<8x512xf32> -> vector<8x512xf32>
    %c1_36 = arith.constant 1 : index
    %c0_37 = arith.constant 0 : index
    %c0_38 = arith.constant 0 : index
    %37 = vector.load %arg8[%c1_36, %c0_37, %c0_38] : memref<3x256x512xf32, #tpu.memory_space<vmem>>, vector<1x256x512xf32>
    %38 = vector.shape_cast %37 : vector<1x256x512xf32> to vector<256x512xf32>
    %cst_39 = arith.constant dense<0.000000e+00> : vector<4x512xf32>
    %39 = tpu.matmul %30, %38, %cst_39 {dimension_numbers = #tpu.dot_dimension_numbers<[1], [0], [0], [1], [0, 0, 1, 1], [], []>} : vector<4x256xf32>, vector<256x512xf32>, vector<4x512xf32> -> vector<4x512xf32>
    %c1_40 = arith.constant 1 : index
    %c0_41 = arith.constant 0 : index
    %c0_42 = arith.constant 0 : index
    %40 = vector.load %arg9[%c1_40, %c0_41, %c0_42] : memref<3x8x4xf32, #tpu.memory_space<vmem>>, vector<1x8x4xf32>
    %41 = vector.shape_cast %40 : vector<1x8x4xf32> to vector<8x4xf32>
    %cst_43 = arith.constant dense<0.000000e+00> : vector<8x512xf32>
    %42 = tpu.matmul %41, %39, %cst_43 {dimension_numbers = #tpu.dot_dimension_numbers<[1], [0], [0], [1], [0, 0, 1, 1], [], []>} : vector<8x4xf32>, vector<4x512xf32>, vector<8x512xf32> -> vector<8x512xf32>
    %43 = arith.addf %36, %42 : vector<8x512xf32>
    %c2 = arith.constant 2 : index
    %c0_44 = arith.constant 0 : index
    %c0_45 = arith.constant 0 : index
    %44 = vector.load %arg8[%c2, %c0_44, %c0_45] : memref<3x256x512xf32, #tpu.memory_space<vmem>>, vector<1x256x512xf32>
    %45 = vector.shape_cast %44 : vector<1x256x512xf32> to vector<256x512xf32>
    %cst_46 = arith.constant dense<0.000000e+00> : vector<4x512xf32>
    %46 = tpu.matmul %30, %45, %cst_46 {dimension_numbers = #tpu.dot_dimension_numbers<[1], [0], [0], [1], [0, 0, 1, 1], [], []>} : vector<4x256xf32>, vector<256x512xf32>, vector<4x512xf32> -> vector<4x512xf32>
    %c2_47 = arith.constant 2 : index
    %c0_48 = arith.constant 0 : index
    %c0_49 = arith.constant 0 : index
    %47 = vector.load %arg9[%c2_47, %c0_48, %c0_49] : memref<3x8x4xf32, #tpu.memory_space<vmem>>, vector<1x8x4xf32>
    %48 = vector.shape_cast %47 : vector<1x8x4xf32> to vector<8x4xf32>
    %cst_50 = arith.constant dense<0.000000e+00> : vector<8x512xf32>
    %49 = tpu.matmul %48, %46, %cst_50 {dimension_numbers = #tpu.dot_dimension_numbers<[1], [0], [0], [1], [0, 0, 1, 1], [], []>} : vector<8x4xf32>, vector<4x512xf32>, vector<8x512xf32> -> vector<8x512xf32>
    %50 = arith.addf %43, %49 : vector<8x512xf32>
    %c0_51 = arith.constant 0 : index
    %c0_52 = arith.constant 0 : index
    %51 = vector.load %arg10[%c0_51, %c0_52] : memref<1x512xf32, #tpu.memory_space<vmem>>, vector<1x512xf32>
    %52 = vector.broadcast %51 : vector<1x512xf32> to vector<8x512xf32>
    %53 = arith.addf %50, %52 : vector<8x512xf32>
    %cst_53 = arith.constant 0.000000e+00 : f32
    %54 = vector.broadcast %cst_53 : f32 to vector<8x512xf32>
    %55 = arith.maximumf %53, %54 : vector<8x512xf32>
    %c0_54 = arith.constant 0 : index
    %c0_55 = arith.constant 0 : index
    %c0_56 = arith.constant 0 : index
    %56 = vector.load %arg11[%c0_54, %c0_55, %c0_56] : memref<3x512x448xf32, #tpu.memory_space<vmem>>, vector<1x512x448xf32>
    %57 = vector.shape_cast %56 : vector<1x512x448xf32> to vector<512x448xf32>
    %cst_57 = arith.constant dense<0.000000e+00> : vector<8x448xf32>
    %58 = tpu.matmul %55, %57, %cst_57 {dimension_numbers = #tpu.dot_dimension_numbers<[1], [0], [0], [1], [0, 0, 1, 1], [], []>} : vector<8x512xf32>, vector<512x448xf32>, vector<8x448xf32> -> vector<8x448xf32>
    %c0_58 = arith.constant 0 : index
    %c0_59 = arith.constant 0 : index
    %c0_60 = arith.constant 0 : index
    %59 = vector.load %arg12[%c0_58, %c0_59, %c0_60] : memref<3x14x8xf32, #tpu.memory_space<vmem>>, vector<1x14x8xf32>
    %60 = vector.shape_cast %59 : vector<1x14x8xf32> to vector<14x8xf32>
    %cst_61 = arith.constant dense<0.000000e+00> : vector<14x448xf32>
    %61 = tpu.matmul %60, %58, %cst_61 {dimension_numbers = #tpu.dot_dimension_numbers<[1], [0], [0], [1], [0, 0, 1, 1], [], []>} : vector<14x8xf32>, vector<8x448xf32>, vector<14x448xf32> -> vector<14x448xf32>
    %c1_62 = arith.constant 1 : index
    %c0_63 = arith.constant 0 : index
    %c0_64 = arith.constant 0 : index
    %62 = vector.load %arg11[%c1_62, %c0_63, %c0_64] : memref<3x512x448xf32, #tpu.memory_space<vmem>>, vector<1x512x448xf32>
    %63 = vector.shape_cast %62 : vector<1x512x448xf32> to vector<512x448xf32>
    %cst_65 = arith.constant dense<0.000000e+00> : vector<8x448xf32>
    %64 = tpu.matmul %55, %63, %cst_65 {dimension_numbers = #tpu.dot_dimension_numbers<[1], [0], [0], [1], [0, 0, 1, 1], [], []>} : vector<8x512xf32>, vector<512x448xf32>, vector<8x448xf32> -> vector<8x448xf32>
    %c1_66 = arith.constant 1 : index
    %c0_67 = arith.constant 0 : index
    %c0_68 = arith.constant 0 : index
    %65 = vector.load %arg12[%c1_66, %c0_67, %c0_68] : memref<3x14x8xf32, #tpu.memory_space<vmem>>, vector<1x14x8xf32>
    %66 = vector.shape_cast %65 : vector<1x14x8xf32> to vector<14x8xf32>
    %cst_69 = arith.constant dense<0.000000e+00> : vector<14x448xf32>
    %67 = tpu.matmul %66, %64, %cst_69 {dimension_numbers = #tpu.dot_dimension_numbers<[1], [0], [0], [1], [0, 0, 1, 1], [], []>} : vector<14x8xf32>, vector<8x448xf32>, vector<14x448xf32> -> vector<14x448xf32>
    %68 = arith.addf %61, %67 : vector<14x448xf32>
    %c2_70 = arith.constant 2 : index
    %c0_71 = arith.constant 0 : index
    %c0_72 = arith.constant 0 : index
    %69 = vector.load %arg11[%c2_70, %c0_71, %c0_72] : memref<3x512x448xf32, #tpu.memory_space<vmem>>, vector<1x512x448xf32>
    %70 = vector.shape_cast %69 : vector<1x512x448xf32> to vector<512x448xf32>
    %cst_73 = arith.constant dense<0.000000e+00> : vector<8x448xf32>
    %71 = tpu.matmul %55, %70, %cst_73 {dimension_numbers = #tpu.dot_dimension_numbers<[1], [0], [0], [1], [0, 0, 1, 1], [], []>} : vector<8x512xf32>, vector<512x448xf32>, vector<8x448xf32> -> vector<8x448xf32>
    %c2_74 = arith.constant 2 : index
    %c0_75 = arith.constant 0 : index
    %c0_76 = arith.constant 0 : index
    %72 = vector.load %arg12[%c2_74, %c0_75, %c0_76] : memref<3x14x8xf32, #tpu.memory_space<vmem>>, vector<1x14x8xf32>
    %73 = vector.shape_cast %72 : vector<1x14x8xf32> to vector<14x8xf32>
    %cst_77 = arith.constant dense<0.000000e+00> : vector<14x448xf32>
    %74 = tpu.matmul %73, %71, %cst_77 {dimension_numbers = #tpu.dot_dimension_numbers<[1], [0], [0], [1], [0, 0, 1, 1], [], []>} : vector<14x8xf32>, vector<8x448xf32>, vector<14x448xf32> -> vector<14x448xf32>
    %75 = arith.addf %68, %74 : vector<14x448xf32>
    %c0_78 = arith.constant 0 : index
    %c0_79 = arith.constant 0 : index
    %76 = vector.load %arg13[%c0_78, %c0_79] : memref<1x448xf32, #tpu.memory_space<vmem>>, vector<1x448xf32>
    %77 = vector.broadcast %76 : vector<1x448xf32> to vector<14x448xf32>
    %78 = arith.addf %75, %77 : vector<14x448xf32>
    %cst_80 = arith.constant 0.000000e+00 : f32
    %79 = vector.broadcast %cst_80 : f32 to vector<14x448xf32>
    %80 = arith.maximumf %78, %79 : vector<14x448xf32>
    %c0_81 = arith.constant 0 : index
    %c0_82 = arith.constant 0 : index
    %c0_83 = arith.constant 0 : index
    %81 = vector.load %arg14[%c0_81, %c0_82, %c0_83] : memref<3x448x448xf32, #tpu.memory_space<vmem>>, vector<1x448x448xf32>
    %82 = vector.shape_cast %81 : vector<1x448x448xf32> to vector<448x448xf32>
    %cst_84 = arith.constant dense<0.000000e+00> : vector<14x448xf32>
    %83 = tpu.matmul %80, %82, %cst_84 {dimension_numbers = #tpu.dot_dimension_numbers<[1], [0], [0], [1], [0, 0, 1, 1], [], []>} : vector<14x448xf32>, vector<448x448xf32>, vector<14x448xf32> -> vector<14x448xf32>
    %c0_85 = arith.constant 0 : index
    %c0_86 = arith.constant 0 : index
    %c0_87 = arith.constant 0 : index
    %84 = vector.load %arg15[%c0_85, %c0_86, %c0_87] : memref<3x28x14xf32, #tpu.memory_space<vmem>>, vector<1x28x14xf32>
    %85 = vector.shape_cast %84 : vector<1x28x14xf32> to vector<28x14xf32>
    %cst_88 = arith.constant dense<0.000000e+00> : vector<28x448xf32>
    %86 = tpu.matmul %85, %83, %cst_88 {dimension_numbers = #tpu.dot_dimension_numbers<[1], [0], [0], [1], [0, 0, 1, 1], [], []>} : vector<28x14xf32>, vector<14x448xf32>, vector<28x448xf32> -> vector<28x448xf32>
    %c1_89 = arith.constant 1 : index
    %c0_90 = arith.constant 0 : index
    %c0_91 = arith.constant 0 : index
    %87 = vector.load %arg14[%c1_89, %c0_90, %c0_91] : memref<3x448x448xf32, #tpu.memory_space<vmem>>, vector<1x448x448xf32>
    %88 = vector.shape_cast %87 : vector<1x448x448xf32> to vector<448x448xf32>
    %cst_92 = arith.constant dense<0.000000e+00> : vector<14x448xf32>
    %89 = tpu.matmul %80, %88, %cst_92 {dimension_numbers = #tpu.dot_dimension_numbers<[1], [0], [0], [1], [0, 0, 1, 1], [], []>} : vector<14x448xf32>, vector<448x448xf32>, vector<14x448xf32> -> vector<14x448xf32>
    %c1_93 = arith.constant 1 : index
    %c0_94 = arith.constant 0 : index
    %c0_95 = arith.constant 0 : index
    %90 = vector.load %arg15[%c1_93, %c0_94, %c0_95] : memref<3x28x14xf32, #tpu.memory_space<vmem>>, vector<1x28x14xf32>
    %91 = vector.shape_cast %90 : vector<1x28x14xf32> to vector<28x14xf32>
    %cst_96 = arith.constant dense<0.000000e+00> : vector<28x448xf32>
    %92 = tpu.matmul %91, %89, %cst_96 {dimension_numbers = #tpu.dot_dimension_numbers<[1], [0], [0], [1], [0, 0, 1, 1], [], []>} : vector<28x14xf32>, vector<14x448xf32>, vector<28x448xf32> -> vector<28x448xf32>
    %93 = arith.addf %86, %92 : vector<28x448xf32>
    %c2_97 = arith.constant 2 : index
    %c0_98 = arith.constant 0 : index
    %c0_99 = arith.constant 0 : index
    %94 = vector.load %arg14[%c2_97, %c0_98, %c0_99] : memref<3x448x448xf32, #tpu.memory_space<vmem>>, vector<1x448x448xf32>
    %95 = vector.shape_cast %94 : vector<1x448x448xf32> to vector<448x448xf32>
    %cst_100 = arith.constant dense<0.000000e+00> : vector<14x448xf32>
    %96 = tpu.matmul %80, %95, %cst_100 {dimension_numbers = #tpu.dot_dimension_numbers<[1], [0], [0], [1], [0, 0, 1, 1], [], []>} : vector<14x448xf32>, vector<448x448xf32>, vector<14x448xf32> -> vector<14x448xf32>
    %c2_101 = arith.constant 2 : index
    %c0_102 = arith.constant 0 : index
    %c0_103 = arith.constant 0 : index
    %97 = vector.load %arg15[%c2_101, %c0_102, %c0_103] : memref<3x28x14xf32, #tpu.memory_space<vmem>>, vector<1x28x14xf32>
    %98 = vector.shape_cast %97 : vector<1x28x14xf32> to vector<28x14xf32>
    %cst_104 = arith.constant dense<0.000000e+00> : vector<28x448xf32>
    %99 = tpu.matmul %98, %96, %cst_104 {dimension_numbers = #tpu.dot_dimension_numbers<[1], [0], [0], [1], [0, 0, 1, 1], [], []>} : vector<28x14xf32>, vector<14x448xf32>, vector<28x448xf32> -> vector<28x448xf32>
    %100 = arith.addf %93, %99 : vector<28x448xf32>
    %c0_105 = arith.constant 0 : index
    %c0_106 = arith.constant 0 : index
    %101 = vector.load %arg16[%c0_105, %c0_106] : memref<1x448xf32, #tpu.memory_space<vmem>>, vector<1x448xf32>
    %102 = vector.broadcast %101 : vector<1x448xf32> to vector<28x448xf32>
    %103 = arith.addf %100, %102 : vector<28x448xf32>
    %cst_107 = arith.constant 0.000000e+00 : f32
    %104 = vector.broadcast %cst_107 : f32 to vector<28x448xf32>
    %105 = arith.maximumf %103, %104 : vector<28x448xf32>
    %c0_108 = arith.constant 0 : index
    %c0_109 = arith.constant 0 : index
    %c0_110 = arith.constant 0 : index
    %106 = vector.load %arg17[%c0_108, %c0_109, %c0_110] : memref<3x448x28xf32, #tpu.memory_space<vmem>>, vector<1x448x28xf32>
    %107 = vector.shape_cast %106 : vector<1x448x28xf32> to vector<448x28xf32>
    %cst_111 = arith.constant dense<0.000000e+00> : vector<28x28xf32>
    %108 = tpu.matmul %105, %107, %cst_111 {dimension_numbers = #tpu.dot_dimension_numbers<[1], [0], [0], [1], [0, 0, 1, 1], [], []>} : vector<28x448xf32>, vector<448x28xf32>, vector<28x28xf32> -> vector<28x28xf32>
    %c0_112 = arith.constant 0 : index
    %c0_113 = arith.constant 0 : index
    %c0_114 = arith.constant 0 : index
    %109 = vector.load %arg18[%c0_112, %c0_113, %c0_114] : memref<3x56x28xf32, #tpu.memory_space<vmem>>, vector<1x56x28xf32>
    %110 = vector.shape_cast %109 : vector<1x56x28xf32> to vector<56x28xf32>
    %cst_115 = arith.constant dense<0.000000e+00> : vector<56x28xf32>
    %111 = tpu.matmul %110, %108, %cst_115 {dimension_numbers = #tpu.dot_dimension_numbers<[1], [0], [0], [1], [0, 0, 1, 1], [], []>} : vector<56x28xf32>, vector<28x28xf32>, vector<56x28xf32> -> vector<56x28xf32>
    %c1_116 = arith.constant 1 : index
    %c0_117 = arith.constant 0 : index
    %c0_118 = arith.constant 0 : index
    %112 = vector.load %arg17[%c1_116, %c0_117, %c0_118] : memref<3x448x28xf32, #tpu.memory_space<vmem>>, vector<1x448x28xf32>
    %113 = vector.shape_cast %112 : vector<1x448x28xf32> to vector<448x28xf32>
    %cst_119 = arith.constant dense<0.000000e+00> : vector<28x28xf32>
    %114 = tpu.matmul %105, %113, %cst_119 {dimension_numbers = #tpu.dot_dimension_numbers<[1], [0], [0], [1], [0, 0, 1, 1], [], []>} : vector<28x448xf32>, vector<448x28xf32>, vector<28x28xf32> -> vector<28x28xf32>
    %c1_120 = arith.constant 1 : index
    %c0_121 = arith.constant 0 : index
    %c0_122 = arith.constant 0 : index
    %115 = vector.load %arg18[%c1_120, %c0_121, %c0_122] : memref<3x56x28xf32, #tpu.memory_space<vmem>>, vector<1x56x28xf32>
    %116 = vector.shape_cast %115 : vector<1x56x28xf32> to vector<56x28xf32>
    %cst_123 = arith.constant dense<0.000000e+00> : vector<56x28xf32>
    %117 = tpu.matmul %116, %114, %cst_123 {dimension_numbers = #tpu.dot_dimension_numbers<[1], [0], [0], [1], [0, 0, 1, 1], [], []>} : vector<56x28xf32>, vector<28x28xf32>, vector<56x28xf32> -> vector<56x28xf32>
    %118 = arith.addf %111, %117 : vector<56x28xf32>
    %c2_124 = arith.constant 2 : index
    %c0_125 = arith.constant 0 : index
    %c0_126 = arith.constant 0 : index
    %119 = vector.load %arg17[%c2_124, %c0_125, %c0_126] : memref<3x448x28xf32, #tpu.memory_space<vmem>>, vector<1x448x28xf32>
    %120 = vector.shape_cast %119 : vector<1x448x28xf32> to vector<448x28xf32>
    %cst_127 = arith.constant dense<0.000000e+00> : vector<28x28xf32>
    %121 = tpu.matmul %105, %120, %cst_127 {dimension_numbers = #tpu.dot_dimension_numbers<[1], [0], [0], [1], [0, 0, 1, 1], [], []>} : vector<28x448xf32>, vector<448x28xf32>, vector<28x28xf32> -> vector<28x28xf32>
    %c2_128 = arith.constant 2 : index
    %c0_129 = arith.constant 0 : index
    %c0_130 = arith.constant 0 : index
    %122 = vector.load %arg18[%c2_128, %c0_129, %c0_130] : memref<3x56x28xf32, #tpu.memory_space<vmem>>, vector<1x56x28xf32>
    %123 = vector.shape_cast %122 : vector<1x56x28xf32> to vector<56x28xf32>
    %cst_131 = arith.constant dense<0.000000e+00> : vector<56x28xf32>
    %124 = tpu.matmul %123, %121, %cst_131 {dimension_numbers = #tpu.dot_dimension_numbers<[1], [0], [0], [1], [0, 0, 1, 1], [], []>} : vector<56x28xf32>, vector<28x28xf32>, vector<56x28xf32> -> vector<56x28xf32>
    %125 = arith.addf %118, %124 : vector<56x28xf32>
    %c0_132 = arith.constant 0 : index
    %c0_133 = arith.constant 0 : index
    %126 = vector.load %arg19[%c0_132, %c0_133] : memref<1x28xf32, #tpu.memory_space<vmem>>, vector<1x28xf32>
    %127 = vector.broadcast %126 : vector<1x28xf32> to vector<56x28xf32>
    %128 = arith.addf %125, %127 : vector<56x28xf32>
    %c0_134 = arith.constant 0 : index
    %c0_135 = arith.constant 0 : index
    %129 = vector.load %arg20[%c0_134, %c0_135] : memref<56x28xf32, #tpu.memory_space<vmem>>, vector<56x28xf32>
    tpu.vector_store %arg20[%c0_134, %c0_135], %128 {strides = array<i32>} : memref<56x28xf32, #tpu.memory_space<vmem>>, vector<56x28xf32>,
    return
  }
}

</mosaic_0001>

<bundles_post_ra>
// kernel: _lambda_.1
= control target key start
LH: loop header
LB: loop body
LE: loop exit
PB: predicated region body
PF: predicated region fallthrough
CT: control target
= control target key end

     0   :  { %s11944_s0 = inlined_call_operand.hbm [shape: f32[2,200], index: 0, kind: input, shape index: {}]   ;;  %s11945_s1 = inlined_call_operand.hbm [shape: f32[2,200], index: 1, kind: input, shape index: {}]   ;;  %s11946_s2 = inlined_call_operand.vmem [shape: f32[2,200], index: 2, kind: input, shape index: {}]   ;;  %s11947_s3 = inlined_call_operand.hbm [shape: f32[200,128], index: 3, kind: input, shape index: {}]   ;;  %s11948_s4 = inlined_call_operand.hbm [shape: f32[1,128], index: 4, kind: input, shape index: {}]   ;;  %s11949_s5 = inlined_call_operand.hbm [shape: f32[2,128,256], index: 5, kind: input, shape index: {}]   ;;  %s11950_s6 = inlined_call_operand.hbm [shape: f32[2,4,2], index: 6, kind: input, shape index: {}]   ;;  %s11951_s7 = inlined_call_operand.hbm [shape: f32[1,256], index: 7, kind: input, shape index: {}]   ;;  %s11952_s8 = inlined_call_operand.hbm [shape: f32[3,256,512], index: 8, kind: input, shape index: {}]   ;;  %s11953_s9 = inlined_call_operand.hbm [shape: f32[3,8,4], index: 9, kind: input, shape index: {}]   ;;  %s11954_s10 = inlined_call_operand.hbm [shape: f32[1,512], index: 10, kind: input, shape index: {}]   ;;  %s11955_s11 = inlined_call_operand.hbm [shape: f32[3,512,448], index: 11, kind: input, shape index: {}]   ;;  %s11956_s12 = inlined_call_operand.hbm [shape: f32[3,14,8], index: 12, kind: input, shape index: {}]   ;;  %s11957_s13 = inlined_call_operand.hbm [shape: f32[1,448], index: 13, kind: input, shape index: {}]   ;;  %s11958_s14 = inlined_call_operand.hbm [shape: f32[3,448,448], index: 14, kind: input, shape index: {}]   ;;  %s11959_s15 = inlined_call_operand.hbm [shape: f32[3,28,14], index: 15, kind: input, shape index: {}]   ;;  %s11960_s16 = inlined_call_operand.hbm [shape: f32[1,448], index: 16, kind: input, shape index: {}]   ;;  %s11961_s17 = inlined_call_operand.hbm [shape: f32[3,448,28], index: 17, kind: input, shape index: {}]   ;;  %s11962_s18 = inlined_call_operand.hbm [shape: f32[3,56,28], index: 18, kind: input, shape index: {}]   ;;  %s11963_s19 = inlined_call_operand.vmem [shape: f32[1,28], index: 19, kind: input, shape index: {}]   ;;  %s11964_s20 = inlined_call_operand.hbm [shape: f32[56,28], index: 20, kind: output, shape index: {}]  }
   0x1   :  { %11969 = sst [smem:[#allocation43_spill]] %s11944_s0 }
   0x2   :  { %11970 = sst [smem:[#allocation44_spill]] %s11945_s1 }
   0x3   :  { %11971 = sst [smem:[#allocation45_spill]] %s11946_s2 }
   0x4   :  { %11972 = sst [smem:[#allocation46_spill]] %s11947_s3 }
   0x5   :  { %11973 = sst [smem:[#allocation47_spill]] %s11948_s4 }
   0x6   :  { %25 = vsyncpa [#allocation3], 0 }
   0x7   :  { %26 = vsyncpa [#allocation6], 0 }
   0x8   :  { %27 = vsyncpa [#allocation9], 0 }
   0x9   :  { %28 = vsyncpa [#allocation12], 0 }
   0xa   :  { %29 = vsyncpa [#allocation15], 0 }
   0xb   :  { %30 = vsyncpa [#allocation18], 0 }
   0xc   :  { %31 = vsyncpa [#allocation21], 0 }
   0xd   :  { %32 = vsyncpa [#allocation24], 0 }
   0xe   :  { %33 = vsyncpa [#allocation27], 0 }
   0xf   :  { %34 = vsyncpa [#allocation30], 0 }
  0x10   :  { %35 = vsyncpa [#allocation4], 0  ;;  %s10855_s1 = smov [#allocation5]   ;;  %s10856_s23 = smov [#allocation8]  }
  0x11   :  { %s52_s22 = sshll.u32 %s10855_s1, 4  ;;  %s76_s24 = sshll.u32 %s10856_s23, 4  ;;  %s53_s22 = int_to_ptr.vmem [resolvable:$true] %s52_s22  ;;  %s77_s24 = int_to_ptr.vmem [resolvable:$true] %s76_s24 }
  0x12   :  { %s11974_s3 = sld [smem:[#allocation44_spill]] }
  0x18   :  { %s10415_s26 = scalar_lea.hbm %s11974_s3, 64 }
  0x19   :  { %p10416_p0 = scmp.ne.s32.totalorder %s11974_s3, %s10415_s26  ;;  %p10419_p1 = scmp.lt.u32.totalorder %s10415_s26, %s11974_s3 }
  0x1b   :  { %p10421_p2 = pnand %p10419_p1, %p10416_p0 }
  0x1d   :  { %10424 = shalt.err (!%p10421_p2)
}
  0x1e   :  { %s10425_s30 = scalar_lea.vmem %s53_s22, 64  ;;  %p10430_p4 = scmp.lt.s32.totalorder %s53_s22, %s53_s22 }
  0x1f   :  { %p10426_p3 = scmp.ne.s32.totalorder %s53_s22, %s10425_s30  ;;  %p10431_p5 = scmp.lt.s32.totalorder %s10425_s30, %s10425_s30 }
  0x21   :  { %p10432_p6 = por %p10431_p5, %p10430_p4 }
  0x23   :  { %p10433_p7 = pnand %p10432_p6, %p10426_p3 }
  0x25   :  { %10436 = shalt.err (!%p10433_p7)
}
  0x26   :  { %55 = dma.hbm_to_vmem [thread:$0]  %s11974_s3, 64, %s53_s22, [#allocation6]  }
  0x27   :  { %s11975_s2 = sld [smem:[#allocation47_spill]] }
  0x2d   :  { %s10437_s25 = scalar_lea.hbm %s11975_s2, 16 }
  0x2e   :  { %p10438_p8 = scmp.ne.s32.totalorder %s11975_s2, %s10437_s25  ;;  %p10441_p9 = scmp.lt.u32.totalorder %s10437_s25, %s11975_s2 }
  0x30   :  { %p10443_p10 = pnand %p10441_p9, %p10438_p8 }
  0x32   :  { %10446 = shalt.err (!%p10443_p10)
}
  0x33   :  { %s10447_s29 = scalar_lea.vmem %s77_s24, 16  ;;  %s10451_s30 = scalar_lea.vmem %s77_s24, 32 }
  0x34   :  { %p10448_p11 = scmp.ne.s32.totalorder %s77_s24, %s10447_s29  ;;  %p10452_p12 = scmp.lt.s32.totalorder %s77_s24, %s77_s24 }
  0x35   :  { %p10453_p13 = scmp.lt.s32.totalorder %s10451_s30, %s10447_s29 }
  0x37   :  { %p10454_p0 = por %p10453_p13, %p10452_p12 }
  0x39   :  { %p10455_p1 = pnand %p10454_p0, %p10448_p11 }
  0x3b   :  { %10458 = shalt.err (!%p10455_p1)
}
  0x3c   :  { %79 = dma.hbm_to_vmem [thread:$0]  %s11975_s2, 16, %s77_s24, [#allocation9]  }
  0x3d   :  { %s10857_s0 = smov [#allocation11]   ;;  %s10459_s25 = scalar_lea.hbm %s11950_s6, 128 }
  0x3e   :  { %s97_s21 = sshll.u32 %s10857_s0, 4  ;;  %p10460_p2 = scmp.ne.s32.totalorder %s11950_s6, %s10459_s25  ;;  %s98_s21 = int_to_ptr.vmem [resolvable:$true] %s97_s21 }
  0x3f   :  { %p10463_p3 = scmp.lt.u32.totalorder %s10459_s25, %s11950_s6 }
  0x41   :  { %p10465_p4 = pnand %p10463_p3, %p10460_p2 }
  0x43   :  { %10468 = shalt.err (!%p10465_p4)
}
  0x44   :  { %s10469_s29 = scalar_lea.vmem %s98_s21, 128  ;;  %p10474_p6 = scmp.lt.s32.totalorder %s98_s21, %s98_s21 }
  0x45   :  { %p10470_p5 = scmp.ne.s32.totalorder %s98_s21, %s10469_s29  ;;  %p10475_p7 = scmp.lt.s32.totalorder %s10469_s29, %s10469_s29 }
  0x47   :  { %p10476_p8 = por %p10475_p7, %p10474_p6 }
  0x49   :  { %p10477_p9 = pnand %p10476_p8, %p10470_p5 }
  0x4b   :  { %10480 = shalt.err (!%p10477_p9)
}
  0x4c   :  { %s10858_s24 = smov 64   ;;  %s10859_s2 = smov 4  }
  0x4d   :  { %103 = dma.hbm_to_vmem [thread:$0]  %s11950_s6, 128, %s98_s21, [#allocation12], %s10858_s24, %s10858_s24, %s10859_s2  }
  0x4e   :  { %s10860_s3 = smov [#allocation14]   ;;  %s10481_s25 = scalar_lea.hbm %s11952_s8, 49152 }
  0x4f   :  { %s119_s0 = sshll.u32 %s10860_s3, 4  ;;  %p10482_p10 = scmp.ne.s32.totalorder %s11952_s8, %s10481_s25  ;;  %s120_s0 = int_to_ptr.vmem [resolvable:$true] %s119_s0 }
  0x50   :  { %p10485_p11 = scmp.lt.u32.totalorder %s10481_s25, %s11952_s8 }
  0x52   :  { %p10487_p12 = pnand %p10485_p11, %p10482_p10 }
  0x54   :  { %10490 = shalt.err (!%p10487_p12)
}
  0x55   :  { %s10491_s29 = scalar_lea.vmem %s120_s0, 49152  ;;  %p10496_p0 = scmp.lt.s32.totalorder %s120_s0, %s120_s0 }
  0x56   :  { %p10492_p13 = scmp.ne.s32.totalorder %s120_s0, %s10491_s29  ;;  %p10497_p1 = scmp.lt.s32.totalorder %s10491_s29, %s10491_s29 }
  0x58   :  { %p10498_p2 = por %p10497_p1, %p10496_p0 }
  0x5a   :  { %p10499_p3 = pnand %p10498_p2, %p10492_p13 }
  0x5c   :  { %10502 = shalt.err (!%p10499_p3)
}
  0x5d   :  { %s10861_s6 = smov 512   ;;  %s10862_s21 = smov 32  }
  0x5e   :  { %125 = dma.hbm_to_vmem [thread:$0]  %s11952_s8, 49152, %s120_s0, [#allocation15], %s10861_s6, %s10861_s6, %s10862_s21  }
  0x5f   :  { %s10863_s30 = smov [#allocation17]   ;;  %s10503_s23 = scalar_lea.hbm %s11954_s10, 64 }
  0x60   :  { %s144_s22 = sshll.u32 %s10863_s30, 4  ;;  %p10504_p4 = scmp.ne.s32.totalorder %s11954_s10, %s10503_s23  ;;  %s145_s22 = int_to_ptr.vmem [resolvable:$true] %s144_s22 }
  0x61   :  { %p10507_p5 = scmp.lt.u32.totalorder %s10503_s23, %s11954_s10 }
  0x63   :  { %p10509_p6 = pnand %p10507_p5, %p10504_p4 }
  0x65   :  { %10512 = shalt.err (!%p10509_p6)
}
  0x66   :  { %s10513_s4 = scalar_lea.vmem %s145_s22, 64  ;;  %p10518_p8 = scmp.lt.s32.totalorder %s145_s22, %s145_s22 }
  0x67   :  { %p10514_p7 = scmp.ne.s32.totalorder %s145_s22, %s10513_s4  ;;  %p10519_p9 = scmp.lt.s32.totalorder %s10513_s4, %s10513_s4 }
  0x69   :  { %p10520_p10 = por %p10519_p9, %p10518_p8 }
  0x6b   :  { %p10521_p11 = pnand %p10520_p10, %p10514_p7 }
  0x6d   :  { %10524 = shalt.err (!%p10521_p11)
}
  0x6e   :  { %147 = dma.hbm_to_vmem [thread:$0]  %s11954_s10, 64, %s145_s22, [#allocation18]  }
  0x6f   :  { %s10864_s29 = smov [#allocation20]   ;;  %s10865_s2 = smov [#allocation23]  }
  0x70   :  { %s165_s24 = sshll.u32 %s10864_s29, 4  ;;  %s187_s30 = sshll.u32 %s10865_s2, 4  ;;  %s166_s24 = int_to_ptr.vmem [resolvable:$true] %s165_s24  ;;  %s188_s30 = int_to_ptr.vmem [resolvable:$true] %s187_s30 }
  0x71   :  { %s10525_s23 = scalar_lea.hbm %s11956_s12, 768 }
  0x72   :  { %p10526_p12 = scmp.ne.s32.totalorder %s11956_s12, %s10525_s23  ;;  %p10529_p13 = scmp.lt.u32.totalorder %s10525_s23, %s11956_s12 }
  0x74   :  { %p10531_p0 = pnand %p10529_p13, %p10526_p12 }
  0x76   :  { %10534 = shalt.err (!%p10531_p0)
}
  0x77   :  { %s10535_s10 = scalar_lea.vmem %s166_s24, 768  ;;  %p10540_p2 = scmp.lt.s32.totalorder %s166_s24, %s166_s24 }
  0x78   :  { %p10536_p1 = scmp.ne.s32.totalorder %s166_s24, %s10535_s10  ;;  %p10541_p3 = scmp.lt.s32.totalorder %s10535_s10, %s10535_s10 }
  0x7a   :  { %p10542_p4 = por %p10541_p3, %p10540_p2 }
  0x7c   :  { %p10543_p5 = pnand %p10542_p4, %p10536_p1 }
  0x7e   :  { %10546 = shalt.err (!%p10543_p5)
}
  0x7f   :  { %s10866_s22 = smov 128   ;;  %s10867_s4 = smov 8  }
  0x80   :  { %171 = dma.hbm_to_vmem [thread:$0]  %s11956_s12, 768, %s166_s24, [#allocation21], %s10866_s22, %s10866_s22, %s10867_s4  }
  0x81   :  { %s10547_s3 = scalar_lea.hbm %s11958_s14, 86016 }
  0x82   :  { %p10548_p6 = scmp.ne.s32.totalorder %s11958_s14, %s10547_s3  ;;  %p10551_p7 = scmp.lt.u32.totalorder %s10547_s3, %s11958_s14 }
  0x84   :  { %p10553_p8 = pnand %p10551_p7, %p10548_p6 }
  0x86   :  { %10556 = shalt.err (!%p10553_p8)
}
  0x87   :  { %s10557_s28 = scalar_lea.vmem %s188_s30, 86016  ;;  %p10562_p10 = scmp.lt.s32.totalorder %s188_s30, %s188_s30 }
  0x88   :  { %p10558_p9 = scmp.ne.s32.totalorder %s188_s30, %s10557_s28  ;;  %p10563_p11 = scmp.lt.s32.totalorder %s10557_s28, %s10557_s28 }
  0x8a   :  { %p10564_p12 = por %p10563_p11, %p10562_p10 }
  0x8c   :  { %p10565_p13 = pnand %p10564_p12, %p10558_p9 }
  0x8e   :  { %10568 = shalt.err (!%p10565_p13)
}
  0x8f   :  { %193 = dma.hbm_to_vmem [thread:$0]  %s11958_s14, 86016, %s188_s30, [#allocation24], %s10861_s6, %s10861_s6, %s10862_s21  }
  0x90   :  { %s10868_s26 = smov [#allocation26]   ;;  %s10869_s8 = smov [#allocation2]  }
  0x91   :  { %s212_s10 = sshll.u32 %s10868_s26, 4  ;;  %s42_s0 = sshll.u32 %s10869_s8, 4  ;;  %s213_s10 = int_to_ptr.vmem [resolvable:$true] %s212_s10  ;;  %s43_s0 = int_to_ptr.vmem [resolvable:$true] %s42_s0 }
  0x92   :  { %s10569_s3 = scalar_lea.hbm %s11960_s16, 64 }
  0x93   :  { %p10570_p0 = scmp.ne.s32.totalorder %s11960_s16, %s10569_s3  ;;  %p10573_p1 = scmp.lt.u32.totalorder %s10569_s3, %s11960_s16 }
  0x95   :  { %p10575_p2 = pnand %p10573_p1, %p10570_p0 }
  0x97   :  { %10578 = shalt.err (!%p10575_p2)
}
  0x98   :  { %s10579_s14 = scalar_lea.vmem %s213_s10, 64  ;;  %p10584_p4 = scmp.lt.s32.totalorder %s213_s10, %s213_s10 }
  0x99   :  { %p10580_p3 = scmp.ne.s32.totalorder %s213_s10, %s10579_s14  ;;  %p10585_p5 = scmp.lt.s32.totalorder %s10579_s14, %s10579_s14 }
  0x9b   :  { %p10586_p6 = por %p10585_p5, %p10584_p4 }
  0x9d   :  { %p10587_p7 = pnand %p10586_p6, %p10580_p3 }
  0x9f   :  { %10590 = shalt.err (!%p10587_p7)
}
  0xa0   :  { %215 = dma.hbm_to_vmem [thread:$0]  %s11960_s16, 64, %s213_s10, [#allocation27]  }
  0xa1   :  { %s11976_s26 = sld [smem:[#allocation43_spill]] }
  0xa7   :  { %s10591_s8 = scalar_lea.hbm %s11976_s26, 64 }
  0xa8   :  { %p10592_p8 = scmp.ne.s32.totalorder %s11976_s26, %s10591_s8  ;;  %p10595_p9 = scmp.lt.u32.totalorder %s10591_s8, %s11976_s26 }
  0xaa   :  { %p10597_p10 = pnand %p10595_p9, %p10592_p8 }
  0xac   :  { %10600 = shalt.err (!%p10597_p10)
}
  0xad   :  { %s10601_s23 = scalar_lea.vmem %s43_s0, 64  ;;  %p10606_p12 = scmp.lt.s32.totalorder %s43_s0, %s43_s0 }
  0xae   :  { %p10602_p11 = scmp.ne.s32.totalorder %s43_s0, %s10601_s23  ;;  %p10607_p13 = scmp.lt.s32.totalorder %s10601_s23, %s10601_s23 }
  0xb0   :  { %p10608_p0 = por %p10607_p13, %p10606_p12 }
  0xb2   :  { %p10609_p1 = pnand %p10608_p0, %p10602_p11 }
  0xb4   :  { %10612 = shalt.err (!%p10609_p1)
}
  0xb5   :  { %45 = dma.hbm_to_vmem [thread:$0]  %s11976_s26, 64, %s43_s0, [#allocation3]  }
  0xb6   :  { %s10870_s25 = smov [#allocation7]   ;;  %s10871_s14 = smov [#allocation10]  }
  0xb7   :  { %s63_s27 = sshll.u32 %s10870_s25, 4  ;;  %s85_s30 = sshll.u32 %s10871_s14, 4  ;;  %s64_s27 = int_to_ptr.vmem [resolvable:$true] %s63_s27  ;;  %s86_s30 = int_to_ptr.vmem [resolvable:$true] %s85_s30 }
  0xb8   :  { %s11977_s24 = sld [smem:[#allocation46_spill]] }
  0xbe   :  { %s10613_s8 = scalar_lea.hbm %s11977_s24, 3200 }
  0xbf   :  { %p10614_p2 = scmp.ne.s32.totalorder %s11977_s24, %s10613_s8  ;;  %p10617_p3 = scmp.lt.u32.totalorder %s10613_s8, %s11977_s24 }
  0xc1   :  { %p10619_p4 = pnand %p10617_p3, %p10614_p2 }
  0xc3   :  { %10622 = shalt.err (!%p10619_p4)
}
  0xc4   :  { %s10623_s0 = scalar_lea.vmem %s64_s27, 3200  ;;  %p10628_p6 = scmp.lt.s32.totalorder %s64_s27, %s64_s27 }
  0xc5   :  { %p10624_p5 = scmp.ne.s32.totalorder %s64_s27, %s10623_s0  ;;  %p10629_p7 = scmp.lt.s32.totalorder %s10623_s0, %s10623_s0 }
  0xc7   :  { %p10630_p8 = por %p10629_p7, %p10628_p6 }
  0xc9   :  { %p10631_p9 = pnand %p10630_p8, %p10624_p5 }
  0xcb   :  { %10634 = shalt.err (!%p10631_p9)
}
  0xcc   :  { %69 = dma.hbm_to_vmem [thread:$0]  %s11977_s24, 3200, %s64_s27, [#allocation6], %s10866_s22, %s10866_s22, %s10867_s4  }
  0xcd   :  { %s10635_s25 = scalar_lea.hbm %s11949_s5, 8192 }
  0xce   :  { %p10636_p10 = scmp.ne.s32.totalorder %s11949_s5, %s10635_s25  ;;  %p10639_p11 = scmp.lt.u32.totalorder %s10635_s25, %s11949_s5 }
  0xd0   :  { %p10641_p12 = pnand %p10639_p11, %p10636_p10 }
  0xd2   :  { %10644 = shalt.err (!%p10641_p12)
}
  0xd3   :  { %s10645_s29 = scalar_lea.vmem %s86_s30, 8192  ;;  %p10650_p0 = scmp.lt.s32.totalorder %s86_s30, %s86_s30 }
  0xd4   :  { %p10646_p13 = scmp.ne.s32.totalorder %s86_s30, %s10645_s29  ;;  %p10651_p1 = scmp.lt.s32.totalorder %s10645_s29, %s10645_s29 }
  0xd6   :  { %p10652_p2 = por %p10651_p1, %p10650_p0 }
  0xd8   :  { %p10653_p3 = pnand %p10652_p2, %p10646_p13 }
  0xda   :  { %10656 = shalt.err (!%p10653_p3)
}
  0xdb   :  { %s10872_s27 = smov 256   ;;  %s10873_s24 = smov 16  }
  0xdc   :  { %91 = dma.hbm_to_vmem [thread:$0]  %s11949_s5, 8192, %s86_s30, [#allocation9], %s10872_s27, %s10872_s27, %s10873_s24  }
  0xdd   :  { %s10874_s1 = smov [#allocation13]   ;;  %s10875_s26 = smov [#allocation16]  }
  0xde   :  { %s110_s0 = sshll.u32 %s10874_s1, 4  ;;  %s131_s23 = sshll.u32 %s10875_s26, 4  ;;  %s111_s0 = int_to_ptr.vmem [resolvable:$true] %s110_s0  ;;  %s132_s23 = int_to_ptr.vmem [resolvable:$true] %s131_s23 }
  0xdf   :  { %s10657_s25 = scalar_lea.hbm %s11951_s7, 32 }
  0xe0   :  { %p10658_p4 = scmp.ne.s32.totalorder %s11951_s7, %s10657_s25  ;;  %p10661_p5 = scmp.lt.u32.totalorder %s10657_s25, %s11951_s7 }
  0xe2   :  { %p10663_p6 = pnand %p10661_p5, %p10658_p4 }
  0xe4   :  { %10666 = shalt.err (!%p10663_p6)
}
  0xe5   :  { %s10667_s5 = scalar_lea.vmem %s111_s0, 32  ;;  %p10672_p8 = scmp.lt.s32.totalorder %s111_s0, %s111_s0 }
  0xe6   :  { %p10668_p7 = scmp.ne.s32.totalorder %s111_s0, %s10667_s5  ;;  %p10673_p9 = scmp.lt.s32.totalorder %s10667_s5, %s10667_s5 }
  0xe8   :  { %p10674_p10 = por %p10673_p9, %p10672_p8 }
  0xea   :  { %p10675_p11 = pnand %p10674_p10, %p10668_p7 }
  0xec   :  { %10678 = shalt.err (!%p10675_p11)
}
  0xed   :  { %113 = dma.hbm_to_vmem [thread:$0]  %s11951_s7, 32, %s111_s0, [#allocation12]  }
  0xee   :  { %s10679_s2 = scalar_lea.hbm %s11953_s9, 384 }
  0xef   :  { %p10680_p12 = scmp.ne.s32.totalorder %s11953_s9, %s10679_s2  ;;  %p10683_p13 = scmp.lt.u32.totalorder %s10679_s2, %s11953_s9 }
  0xf1   :  { %p10685_p0 = pnand %p10683_p13, %p10680_p12 }
  0xf3   :  { %10688 = shalt.err (!%p10685_p0)
}
  0xf4   :  { %s10689_s10 = scalar_lea.vmem %s132_s23, 384  ;;  %p10694_p2 = scmp.lt.s32.totalorder %s132_s23, %s132_s23 }
  0xf5   :  { %p10690_p1 = scmp.ne.s32.totalorder %s132_s23, %s10689_s10  ;;  %p10695_p3 = scmp.lt.s32.totalorder %s10689_s10, %s10689_s10 }
  0xf7   :  { %p10696_p4 = por %p10695_p3, %p10694_p2 }
  0xf9   :  { %p10697_p5 = pnand %p10696_p4, %p10690_p1 }
  0xfb   :  { %10700 = shalt.err (!%p10697_p5)
}
  0xfc   :  { %137 = dma.hbm_to_vmem [thread:$0]  %s11953_s9, 384, %s132_s23, [#allocation15], %s10866_s22, %s10866_s22, %s10867_s4  }
  0xfd   :  { %s10876_s25 = smov [#allocation19]   ;;  %s10877_s28 = smov [#allocation22]  }
  0xfe   :  { %s153_s14 = sshll.u32 %s10876_s25, 4  ;;  %s178_s12 = sshll.u32 %s10877_s28, 4  ;;  %s154_s14 = int_to_ptr.vmem [resolvable:$true] %s153_s14  ;;  %s179_s12 = int_to_ptr.vmem [resolvable:$true] %s178_s12 }
  0xff   :  { %s10701_s30 = scalar_lea.hbm %s11955_s11, 98304 }
 0x100   :  { %p10702_p6 = scmp.ne.s32.totalorder %s11955_s11, %s10701_s30  ;;  %p10705_p7 = scmp.lt.u32.totalorder %s10701_s30, %s11955_s11 }
 0x102   :  { %p10707_p8 = pnand %p10705_p7, %p10702_p6 }
 0x104   :  { %10710 = shalt.err (!%p10707_p8)
}
 0x105   :  { %s10711_s9 = scalar_lea.vmem %s154_s14, 98304  ;;  %p10716_p10 = scmp.lt.s32.totalorder %s154_s14, %s154_s14 }
 0x106   :  { %p10712_p9 = scmp.ne.s32.totalorder %s154_s14, %s10711_s9  ;;  %p10717_p11 = scmp.lt.s32.totalorder %s10711_s9, %s10711_s9 }
 0x108   :  { %p10718_p12 = por %p10717_p11, %p10716_p10 }
 0x10a   :  { %p10719_p13 = pnand %p10718_p12, %p10712_p9 }
 0x10c   :  { %10722 = shalt.err (!%p10719_p13)
}
 0x10d   :  { %159 = dma.hbm_to_vmem [thread:$0]  %s11955_s11, 98304, %s154_s14, [#allocation18], %s10861_s6, %s10861_s6, %s10862_s21  }
 0x10e   :  { %s10723_s16 = scalar_lea.hbm %s11957_s13, 64 }
 0x10f   :  { %p10724_p0 = scmp.ne.s32.totalorder %s11957_s13, %s10723_s16  ;;  %p10727_p1 = scmp.lt.u32.totalorder %s10723_s16, %s11957_s13 }
 0x111   :  { %p10729_p2 = pnand %p10727_p1, %p10724_p0 }
 0x113   :  { %10732 = shalt.err (!%p10729_p2)
}
 0x114   :  { %s10733_s28 = scalar_lea.vmem %s179_s12, 64  ;;  %p10738_p4 = scmp.lt.s32.totalorder %s179_s12, %s179_s12 }
 0x115   :  { %p10734_p3 = scmp.ne.s32.totalorder %s179_s12, %s10733_s28  ;;  %p10739_p5 = scmp.lt.s32.totalorder %s10733_s28, %s10733_s28 }
 0x117   :  { %p10740_p6 = por %p10739_p5, %p10738_p4 }
 0x119   :  { %p10741_p7 = pnand %p10740_p6, %p10734_p3 }
 0x11b   :  { %10744 = shalt.err (!%p10741_p7)
}
 0x11c   :  { %181 = dma.hbm_to_vmem [thread:$0]  %s11957_s13, 64, %s179_s12, [#allocation21]  }
 0x11d   :  { %s10878_s21 = smov [#allocation25]   ;;  %s10879_s8 = smov [#allocation28]  }
 0x11e   :  { %s199_s14 = sshll.u32 %s10878_s21, 4  ;;  %s221_s5 = sshll.u32 %s10879_s8, 4  ;;  %s200_s14 = int_to_ptr.vmem [resolvable:$true] %s199_s14  ;;  %s222_s5 = int_to_ptr.vmem [resolvable:$true] %s221_s5 }
 0x11f   :  { %s10745_s27 = scalar_lea.hbm %s11959_s15, 1536 }
 0x120   :  { %p10746_p8 = scmp.ne.s32.totalorder %s11959_s15, %s10745_s27  ;;  %p10749_p9 = scmp.lt.u32.totalorder %s10745_s27, %s11959_s15 }
 0x122   :  { %p10751_p10 = pnand %p10749_p9, %p10746_p8 }
 0x124   :  { %10754 = shalt.err (!%p10751_p10)
}
 0x125   :  { %s10755_s13 = scalar_lea.vmem %s200_s14, 1536  ;;  %p10760_p12 = scmp.lt.s32.totalorder %s200_s14, %s200_s14 }
 0x126   :  { %p10756_p11 = scmp.ne.s32.totalorder %s200_s14, %s10755_s13  ;;  %p10761_p13 = scmp.lt.s32.totalorder %s10755_s13, %s10755_s13 }
 0x128   :  { %p10762_p0 = por %p10761_p13, %p10760_p12 }
 0x12a   :  { %p10763_p1 = pnand %p10762_p0, %p10756_p11 }
 0x12c   :  { %10766 = shalt.err (!%p10763_p1)
}
 0x12d   :  { %205 = dma.hbm_to_vmem [thread:$0]  %s11959_s15, 1536, %s200_s14, [#allocation24], %s10866_s22, %s10866_s22, %s10867_s4  }
 0x12e   :  { %s10767_s16 = scalar_lea.hbm %s11961_s17, 21504 }
 0x12f   :  { %p10768_p2 = scmp.ne.s32.totalorder %s11961_s17, %s10767_s16  ;;  %p10771_p3 = scmp.lt.u32.totalorder %s10767_s16, %s11961_s17 }
 0x131   :  { %p10773_p4 = pnand %p10771_p3, %p10768_p2 }
 0x133   :  { %10776 = shalt.err (!%p10773_p4)
}
 0x134   :  { %s10777_s28 = scalar_lea.vmem %s222_s5, 21504  ;;  %p10782_p6 = scmp.lt.s32.totalorder %s222_s5, %s222_s5 }
 0x135   :  { %p10778_p5 = scmp.ne.s32.totalorder %s222_s5, %s10777_s28  ;;  %p10783_p7 = scmp.lt.s32.totalorder %s10777_s28, %s10777_s28 }
 0x137   :  { %p10784_p8 = por %p10783_p7, %p10782_p6 }
 0x139   :  { %p10785_p9 = pnand %p10784_p8, %p10778_p5 }
 0x13b   :  { %10788 = shalt.err (!%p10785_p9)
}
 0x13c   :  { %227 = dma.hbm_to_vmem [thread:$0]  %s11961_s17, 21504, %s222_s5, [#allocation27], %s10866_s22, %s10866_s22, %s10867_s4  }
 0x13d   :  { %s10880_s6 = smov [#allocation29]   ;;  %s10789_s30 = scalar_lea.hbm %s11962_s18, 2688 }
 0x13e   :  { %s233_s21 = sshll.u32 %s10880_s6, 4  ;;  %p10790_p10 = scmp.ne.s32.totalorder %s11962_s18, %s10789_s30  ;;  %s234_s21 = int_to_ptr.vmem [resolvable:$true] %s233_s21 }
 0x13f   :  { %p10793_p11 = scmp.lt.u32.totalorder %s10789_s30, %s11962_s18 }
 0x141   :  { %p10795_p12 = pnand %p10793_p11, %p10790_p10 }
 0x143   :  { %10798 = shalt.err (!%p10795_p12)
}
 0x144   :  { %s10799_s9 = scalar_lea.vmem %s234_s21, 2688  ;;  %p10804_p0 = scmp.lt.s32.totalorder %s234_s21, %s234_s21 }
 0x145   :  { %p10800_p13 = scmp.ne.s32.totalorder %s234_s21, %s10799_s9  ;;  %p10805_p1 = scmp.lt.s32.totalorder %s10799_s9, %s10799_s9 }
 0x147   :  { %p10806_p2 = por %p10805_p1, %p10804_p0 }
 0x149   :  { %p10807_p3 = pnand %p10806_p2, %p10800_p13 }
 0x14b   :  { %10810 = shalt.err (!%p10807_p3)
}
 0x14c   :  { %239 = dma.hbm_to_vmem [thread:$0]  %s11962_s18, 2688, %s234_s21, [#allocation30], %s10866_s22, %s10866_s22, %s10867_s4  }
 0x14d   :  { %10833 = dma.done.wait [#allocation3], 64  }
 0x14e   :  { %10834 = vsyncadd [#allocation3], 4294967232 }
 0x14f   :  { %10835 = dma.done.wait [#allocation6], 3264  }
 0x150   :  { %10836 = vsyncadd [#allocation6], 4294964032 }
 0x151   :  { %10837 = dma.done.wait [#allocation9], 8208  }
 0x152   :  { %10838 = vsyncadd [#allocation9], 4294959088 }
 0x153   :  { %10839 = dma.done.wait [#allocation12], 160  }
 0x154   :  { %10840 = vsyncadd [#allocation12], 4294967136 }
 0x155   :  { %10841 = dma.done.wait [#allocation15], 49536  }
 0x156   :  { %10842 = vsyncadd [#allocation15], 4294917760 }
 0x157   :  { %10843 = dma.done.wait [#allocation18], 98368  }
 0x158   :  { %10844 = vsyncadd [#allocation18], 4294868928 }
 0x159   :  { %10845 = dma.done.wait [#allocation21], 832  }
 0x15a   :  { %10846 = vsyncadd [#allocation21], 4294966464 }
 0x15b   :  { %10847 = dma.done.wait [#allocation24], 87552  }
 0x15c   :  { %10848 = vsyncadd [#allocation24], 4294879744 }
 0x15d   :  { %10849 = dma.done.wait [#allocation27], 21568  }
 0x15e   :  { %10850 = vsyncadd [#allocation27], 4294945728 }
 0x15f   :  { %10851 = dma.done.wait [#allocation30], 2688  }
 0x160   :  { %10852 = vsyncadd [#allocation30], 4294964608  ;;  %v10881_v0 = vmov 0.0|0.0   ;;  %v10882_v1 = vmov 0.0   ;;  %v304_v2 = vld [vmem:[#allocation7] sm:$0xff]  ;;  %v305_v3 = vld [vmem:[#allocation7 + $0x8] sm:$0xff]  ;;  %v340_v43 = vlaneseq }
 0x161   :  { %8102 = vmatprep.subr.bf16.mxu0 %v10881_v0  ;;  %515 = vmatprep.mubr.f32.mxu1 %v10882_v1  ;;  %v306_v4 = vld [vmem:[#allocation7 + $0x10] sm:$0xff]  ;;  %v8103_v5 = vpack.c.bf16 %v305_v3, %v304_v2  ;;  %v307_v6 = vld [vmem:[#allocation7 + $0x18] sm:$0xff]  ;;  %v308_v8 = vld [vmem:[#allocation7 + $0x20] sm:$0xff]  ;;  %v10883_v41 = vmov 1983009808   ;;  %s11978_s13 = sld [smem:[#allocation45_spill]] }
 0x162   :  { %v8106_v7 = vpack.c.bf16 %v307_v6, %v306_v4  ;;  %v309_v9 = vld [vmem:[#allocation7 + $0x28] sm:$0xff]  ;;  %v310_v11 = vld [vmem:[#allocation7 + $0x30] sm:$0xff]  ;;  %v311_v12 = vld [vmem:[#allocation7 + $0x38] sm:$0xff]  ;;  %v338_v42 = vunpack.c.l.s4 %v10883_v41  ;;  %v11242_v54 = vshrl.u32 %v340_v43, 7  ;;  %vm346_vm0 = vcmask 588800  }
 0x163   :  { %8104 = vmatpush1.bf16.msra.mxu0 %v8103_v5  ;;  %v8109_v10 = vpack.c.bf16 %v309_v9, %v308_v8  ;;  %v297_v13 = vld [vmem:[#allocation5] sm:$0xf]  ;;  %v420_v15 = vld [vmem:[#allocation10 + $0x8] sm:$0xff]  ;;  %v422_v16 = vld [vmem:[#allocation10 + $0x18] sm:$0xff]  ;;  %v8112_v22 = vpack.c.bf16 %v311_v12, %v310_v11  ;;  %vm633_vm1 = vcmask 1041408   ;;  %vm629_vm2 = vcmask 15360  }
 0x164   :  { %8105 = vmatprep.subr.bf16.mxu0 %v10881_v0  ;;  %v298_v14 = vmul.f32 0.5, %v297_v13  ;;  %v312_v17 = vld [vmem:[#allocation7 + $0x40] sm:$0xff]  ;;  %v8138_v18 = vpack.c.bf16 %v422_v16, %v420_v15  ;;  %v419_v19 = vld [vmem:[#allocation10] sm:$0xff]  ;;  %v424_v21 = vld [vmem:[#allocation10 + $0x28] sm:$0xff]  ;;  %v339_v53 = vunpack.c.0.s8 %v338_v42  ;;  %vm1355_vm3 = vcmask 1043456  }
 0x165   :  { %v421_v20 = vld [vmem:[#allocation10 + $0x10] sm:$0xff]  ;;  %v426_v25 = vld [vmem:[#allocation10 + $0x38] sm:$0xff]  ;;  %v423_v26 = vld [vmem:[#allocation10 + $0x20] sm:$0xff]  ;;  %vm1351_vm4 = vcmask 31744   ;;  %vm3217_vm5 = vcmask 64512   ;;  %vm4512_vm6 = vcmask 523264  }
 0x166   :  { %v299_v23 = vmul.f32 1.442695, %v298_v14  ;;  %v8140_v24 = vpack.c.bf16 %v421_v20, %v419_v19  ;;  %v425_v27 = vld [vmem:[#allocation10 + $0x30] sm:$0xff]  ;;  %v313_v28 = vld [vmem:[#allocation7 + $0x48] sm:$0xff]  ;;  %8139 = vmatprep.subr.bf16.mxu1 %v8138_v18  ;;  %v8142_v29 = vpack.c.bf16 %v426_v25, %v424_v21  ;;  %v428_v30 = vld [vmem:[#allocation10 + $0x48] sm:$0xff]  ;;  %v342_v6 = vsub.s32 %v339_v53, %v11242_v54 }
 0x167   :  { %8107 = vmatpush1.bf16.msra.mxu0 %v8106_v7  ;;  %v430_v31 = vld [vmem:[#allocation10 + $0x58] sm:$0xff]  ;;  %v8144_v32 = vpack.c.bf16 %v425_v27, %v423_v26  ;;  %v427_v34 = vld [vmem:[#allocation10 + $0x40] sm:$0xff]  ;;  %v429_v35 = vld [vmem:[#allocation10 + $0x50] sm:$0xff]  ;;  %v8115_v36 = vpack.c.bf16 %v313_v28, %v312_v17  ;;  %vm5382_vm7 = vcmask 1045504   ;;  %vm10884_vm8 = vmmov 1  }
 0x168   :  { %8108 = vmatprep.subr.bf16.mxu0 %v10881_v0  ;;  %10413 = vpow2.f32 %v299_v23  ;;  %8141 = vmatpush1.bf16.msra.mxu1 %v8140_v24  ;;  %v8146_v33 = vpack.c.bf16 %v430_v31, %v428_v30  ;;  %v432_v37 = vld [vmem:[#allocation10 + $0x68] sm:$0xff]  ;;  %v434_v38 = vld [vmem:[#allocation10 + $0x78] sm:$0xff]  ;;  %v8148_v44 = vpack.c.bf16 %v429_v35, %v427_v34  ;;  %v431_v46 = vld [vmem:[#allocation10 + $0x60] sm:$0xff]  ;;  %vm5369_vm10 = vcmask 113664  }
 0x169   :  { %8143 = vmatprep.subr.bf16.mxu1 %v8142_v29  ;;  %v314_v39 = vld [vmem:[#allocation7 + $0x50] sm:$0xff]  ;;  %v315_v40 = vld [vmem:[#allocation7 + $0x58] sm:$0xff]  ;;  %v8150_v45 = vpack.c.bf16 %v434_v38, %v432_v37  ;;  %v438_v50 = vld [vmem:[#allocation10 + $0x98] sm:$0xff]  ;;  %vm10885_vm11 = vmmov 0   ;;  %vm7065_vm13 = vcmask 228352  }
 0x16a   :  { %v433_v47 = vld [vmem:[#allocation10 + $0x70] sm:$0xff]  ;;  %v8118_v48 = vpack.c.bf16 %v315_v40, %v314_v39  ;;  %v436_v49 = vld [vmem:[#allocation10 + $0x88] sm:$0xff]  ;;  %v317_v52 = vld [vmem:[#allocation7 + $0x68] sm:$0xff] }
 0x16b   :  { %8110 = vmatpush1.bf16.msra.mxu0 %v8109_v10  ;;  %v316_v51 = vld [vmem:[#allocation7 + $0x60] sm:$0xff]  ;;  %v301_v55 = vld [vmem:[%s11978_s13] sm:$0xf]  ;;  %v8152_v56 = vpack.c.bf16 %v433_v47, %v431_v46  ;;  %v8154_v57 = vpack.c.bf16 %v438_v50, %v436_v49  ;;  %v296_v62 = vld [vmem:[#allocation2] sm:$0xf] }
 0x16c   :  { %8111 = vmatprep.subr.bf16.mxu0 %v10881_v0  ;;  %8145 = vmatpush1.bf16.msra.mxu1 %v8144_v32  ;;  %v435_v58 = vld [vmem:[#allocation10 + $0x80] sm:$0xff]  ;;  %v437_v59 = vld [vmem:[#allocation10 + $0x90] sm:$0xff]  ;;  %v8121_v61 = vpack.c.bf16 %v317_v52, %v316_v51  ;;  %v440_v63 = vld [vmem:[#allocation10 + $0xa8] sm:$0xff] }
 0x16d   :  { %8147 = vmatprep.subr.bf16.mxu1 %v8146_v33  ;;  %v442_v2 = vld [vmem:[#allocation10 + $0xb8] sm:$0xff]  ;;  %v318_v3 = vld [vmem:[#allocation7 + $0x70] sm:$0xff]  ;;  %v319_v4 = vld [vmem:[#allocation7 + $0x78] sm:$0xff]  ;;  %v8156_v7 = vpack.c.bf16 %v437_v59, %v435_v58 }
 0x16e   :  { %v8158_v9 = vpack.c.bf16 %v442_v2, %v440_v63  ;;  %v439_v10 = vld [vmem:[#allocation10 + $0xa0] sm:$0xff]  ;;  %v441_v11 = vld [vmem:[#allocation10 + $0xb0] sm:$0xff]  ;;  %v8124_v12 = vpack.c.bf16 %v319_v4, %v318_v3  ;;  %v444_v13 = vld [vmem:[#allocation10 + $0xc8] sm:$0xff] }
 0x16f   :  { %8113 = vmatpush1.bf16.msra.mxu0 %v8112_v22  ;;  %v446_v14 = vld [vmem:[#allocation10 + $0xd8] sm:$0xff]  ;;  %v8160_v18 = vpack.c.bf16 %v441_v11, %v439_v10  ;;  %v443_v21 = vld [vmem:[#allocation10 + $0xc0] sm:$0xff]  ;;  %v445_v22 = vld [vmem:[#allocation10 + $0xd0] sm:$0xff] }
 0x170   :  { %8114 = vmatprep.subr.bf16.mxu0 %v10881_v0  ;;  %8149 = vmatpush1.bf16.msra.mxu1 %v8148_v44  ;;  %v320_v15 = vld [vmem:[#allocation7 + $0x80] sm:$0xff]  ;;  %v321_v16 = vld [vmem:[#allocation7 + $0x88] sm:$0xff]  ;;  %v8162_v20 = vpack.c.bf16 %v446_v14, %v444_v13  ;;  %v448_v24 = vld [vmem:[#allocation10 + $0xe8] sm:$0xff]  ;;  %v8164_v28 = vpack.c.bf16 %v445_v22, %v443_v21 }
 0x171   :  { %8151 = vmatprep.subr.bf16.mxu1 %v8150_v45  ;;  %v8127_v23 = vpack.c.bf16 %v321_v16, %v320_v15  ;;  %v450_v25 = vld [vmem:[#allocation10 + $0xf8] sm:$0xff]  ;;  %v322_v26 = vld [vmem:[#allocation7 + $0x90] sm:$0xff]  ;;  %v323_v27 = vld [vmem:[#allocation7 + $0x98] sm:$0xff] }
 0x172   :  { %v10414_v60 = vpop.eup %10413  ;;  %v8166_v29 = vpack.c.bf16 %v450_v25, %v448_v24  ;;  %v447_v30 = vld [vmem:[#allocation10 + $0xe0] sm:$0xff]  ;;  %v449_v31 = vld [vmem:[#allocation10 + $0xf0] sm:$0xff]  ;;  %v8130_v32 = vpack.c.bf16 %v323_v27, %v322_v26  ;;  %v525_v41 = vld [vmem:[#allocation10 + $0x108] sm:$0xff] }
 0x173   :  { %8116 = vmatpush1.bf16.msra.mxu0 %v8115_v36  ;;  %v302_v5 = vmul.f32 %v10414_v60, %v301_v55  ;;  %v324_v33 = vld [vmem:[#allocation7 + $0xa0] sm:$0xff]  ;;  %v325_v34 = vld [vmem:[#allocation7 + $0xa8] sm:$0xff]  ;;  %v8168_v35 = vpack.c.bf16 %v449_v31, %v447_v30  ;;  %v326_v37 = vld [vmem:[#allocation7 + $0xb0] sm:$0xff] }
 0x174   :  { %8117 = vmatprep.subr.bf16.mxu0 %v10881_v0  ;;  %8153 = vmatpush1.bf16.msra.mxu1 %v8152_v56  ;;  %v8133_v36 = vpack.c.bf16 %v325_v34, %v324_v33  ;;  %v327_v38 = vld [vmem:[#allocation7 + $0xb8] sm:$0xff]  ;;  %v328_v40 = vld [vmem:[#allocation7 + $0xc0] sm:$0xff]  ;;  %v524_v44 = vld [vmem:[#allocation10 + $0x100] sm:$0xff] }
 0x175   :  { %v303_v8 = vadd.f32 %v302_v5, %v296_v62  ;;  %8155 = vmatprep.subr.bf16.mxu1 %v8154_v57  ;;  %v8136_v39 = vpack.c.bf16 %v327_v38, %v326_v37  ;;  %v527_v42 = vld [vmem:[#allocation10 + $0x118] sm:$0xff]  ;;  %v526_v45 = vld [vmem:[#allocation10 + $0x110] sm:$0xff]  ;;  %v529_v47 = vld [vmem:[#allocation10 + $0x128] sm:$0xff] }
 0x176   :  { %v8170_v43 = vpack.c.bf16 %v527_v42, %v525_v41  ;;  %v7727_v46 = vld [vmem:[#allocation8] ss:$0 sm:$0xff]  ;;  %v8172_v50 = vpack.c.bf16 %v526_v45, %v524_v44  ;;  %v528_v55 = vld [vmem:[#allocation10 + $0x120] sm:$0xff]  ;;  %v530_v56 = vld [vmem:[#allocation10 + $0x130] sm:$0xff] }
 0x177   :  { %8119 = vmatpush1.bf16.msra.mxu0 %v8118_v48  ;;  %v343_v17 = vrot.slane %v303_v8, %v342_v6  ;;  %v531_v48 = vld [vmem:[#allocation10 + $0x138] sm:$0xff]  ;;  %v533_v57 = vld [vmem:[#allocation10 + $0x148] sm:$0xff]  ;;  %v8176_v59 = vpack.c.bf16 %v530_v56, %v528_v55  ;;  %v534_v62 = vld [vmem:[#allocation10 + $0x150] sm:$0xff] }
 0x178   :  { %8120 = vmatprep.subr.bf16.mxu0 %v10881_v0  ;;  %8157 = vmatpush1.bf16.msra.mxu1 %v8156_v7  ;;  %v8174_v53 = vpack.c.bf16 %v531_v48, %v529_v47  ;;  %v535_v58 = vld [vmem:[#allocation10 + $0x158] sm:$0xff]  ;;  %v537_v63 = vld [vmem:[#allocation10 + $0x168] sm:$0xff]  ;;  %v536_v5 = vld [vmem:[#allocation10 + $0x160] sm:$0xff] }
 0x179   :  { %v344_v19 = vcombine.high %v343_v17, %v343_v17  ;;  %8159 = vmatprep.subr.bf16.mxu1 %v8158_v9  ;;  %v8178_v60 = vpack.c.bf16 %v535_v58, %v533_v57  ;;  %v539_v2 = vld [vmem:[#allocation10 + $0x178] sm:$0xff]  ;;  %v538_v6 = vld [vmem:[#allocation10 + $0x170] sm:$0xff]  ;;  %v541_v7 = vld [vmem:[#allocation10 + $0x188] sm:$0xff] }
 0x17a   :  { %v8182_v4 = vpack.c.bf16 %v539_v2, %v537_v63  ;;  %v543_v8 = vld [vmem:[#allocation10 + $0x198] sm:$0xff]  ;;  %v8184_v9 = vpack.c.bf16 %v538_v6, %v536_v5  ;;  %v540_v11 = vld [vmem:[#allocation10 + $0x180] sm:$0xff]  ;;  %v545_v13 = vld [vmem:[#allocation10 + $0x1a8] sm:$0xff] }
 0x17b   :  { %8122 = vmatpush1.bf16.msra.mxu0 %v8121_v61  ;;  %7728 = vmatprep.mubr.msk.f32.mxu0 %vm346_vm0, %v344_v19  ;;  %v532_v61 = vld [vmem:[#allocation10 + $0x140] sm:$0xff]  ;;  %v8186_v10 = vpack.c.bf16 %v543_v8, %v541_v7  ;;  %v547_v14 = vld [vmem:[#allocation10 + $0x1b8] sm:$0xff]  ;;  %v549_v19 = vld [vmem:[#allocation10 + $0x1c8] sm:$0xff] }
 0x17c   :  { %8123 = vmatprep.subr.bf16.mxu0 %v10881_v0  ;;  %8161 = vmatpush1.bf16.msra.mxu1 %v8160_v18  ;;  %v8180_v3 = vpack.c.bf16 %v534_v62, %v532_v61  ;;  %v8190_v16 = vpack.c.bf16 %v547_v14, %v545_v13  ;;  %v546_v18 = vld [vmem:[#allocation10 + $0x1b0] sm:$0xff]  ;;  %v553_v25 = vld [vmem:[#allocation10 + $0x1e8] sm:$0xff]  ;;  %v555_v26 = vld [vmem:[#allocation10 + $0x1f8] sm:$0xff] }
 0x17d   :  { %8163 = vmatprep.subr.bf16.mxu1 %v8162_v20  ;;  %v551_v20 = vld [vmem:[#allocation10 + $0x1d8] sm:$0xff]  ;;  %v550_v24 = vld [vmem:[#allocation10 + $0x1d0] sm:$0xff]  ;;  %v522_v41 = vld [vmem:[#allocation11] sm:$0xf] }
 0x17e   :  { %v8194_v22 = vpack.c.bf16 %v551_v20, %v549_v19  ;;  %v554_v30 = vld [vmem:[#allocation10 + $0x1f0] sm:$0xff]  ;;  %vm11511_vm9 = vmpackc.low %vm5382_vm7, %vm10884_vm8 }
 0x17f   :  { %8125 = vmatpush1.bf16.msra.mxu0 %v8124_v12  ;;  %v542_v12 = vld [vmem:[#allocation10 + $0x190] sm:$0xff]  ;;  %vm11796_vm12 = vmpackc.low %vm1355_vm3, %vm10884_vm8 }
 0x180   :  { %8126 = vmatprep.subr.bf16.mxu0 %v10881_v0  ;;  %8165 = vmatpush1.bf16.msra.mxu1 %v8164_v28  ;;  %v8188_v15 = vpack.c.bf16 %v542_v12, %v540_v11  ;;  %v8198_v28 = vpack.c.bf16 %v555_v26, %v553_v25  ;;  %v812_v33 = vld [vmem:[#allocation14 + $0x28] sm:$0xff]  ;;  %v807_v34 = vld [vmem:[#allocation14] sm:$0xff]  ;;  %v809_v25 = vld [vmem:[#allocation14 + $0x10] sm:$0xff] }
 0x181   :  { %8167 = vmatprep.subr.bf16.mxu1 %v8166_v29  ;;  %v552_v29 = vld [vmem:[#allocation10 + $0x1e0] sm:$0xff]  ;;  %v820_v37 = vld [vmem:[#allocation14 + $0x68] sm:$0xff]  ;;  %v815_v44 = vld [vmem:[#allocation14 + $0x40] sm:$0xff] }
 0x182   :  { %v8200_v31 = vpack.c.bf16 %v554_v30, %v552_v29  ;;  %v819_v45 = vld [vmem:[#allocation14 + $0x60] sm:$0xff]  ;;  %v828_v47 = vld [vmem:[#allocation14 + $0xa8] sm:$0xff]  ;;  %v813_v26 = vld [vmem:[#allocation14 + $0x30] sm:$0xff] }
 0x183   :  { %8128 = vmatpush1.bf16.msra.mxu0 %v8127_v23  ;;  %v548_v23 = vld [vmem:[#allocation10 + $0x1c0] sm:$0xff]  ;;  %v8208_v48 = vpack.c.bf16 %v819_v45, %v815_v44  ;;  %v831_v57 = vld [vmem:[#allocation14 + $0xc0] sm:$0xff] }
 0x184   :  { %8129 = vmatprep.subr.bf16.mxu0 %v10881_v0  ;;  %8169 = vmatpush1.bf16.msra.mxu1 %v8168_v35  ;;  %v8196_v27 = vpack.c.bf16 %v550_v24, %v548_v23  ;;  %v811_v35 = vld [vmem:[#allocation14 + $0x20] sm:$0xff]  ;;  %v810_v23 = vld [vmem:[#allocation14 + $0x18] sm:$0xff] }
 0x185   :  { %8171 = vmatprep.subr.bf16.mxu1 %v8170_v43  ;;  %v8204_v42 = vpack.c.bf16 %v811_v35, %v807_v34  ;;  %v835_v58 = vld [vmem:[#allocation14 + $0xe0] sm:$0xff]  ;;  %v814_v24 = vld [vmem:[#allocation14 + $0x38] sm:$0xff]  ;;  %v884_v34 = vld [vmem:[#allocation14 + $0x268] sm:$0xff] }
 0x186   :  { %v8216_v61 = vpack.c.bf16 %v835_v58, %v831_v57  ;;  %v839_v63 = vld [vmem:[#allocation14 + $0x100] sm:$0xff]  ;;  %v826_v44 = vld [vmem:[#allocation14 + $0x98] sm:$0xff] }
 0x187   :  { %8131 = vmatpush1.bf16.msra.mxu0 %v8130_v32  ;;  %v808_v32 = vld [vmem:[#allocation14 + $0x8] sm:$0xff]  ;;  %v843_v2 = vld [vmem:[#allocation14 + $0x120] sm:$0xff]  ;;  %v834_v57 = vld [vmem:[#allocation14 + $0xd8] sm:$0xff] }
 0x188   :  { %8132 = vmatprep.subr.bf16.mxu0 %v10881_v0  ;;  %v8220_v5 = vpack.c.bf16 %v843_v2, %v839_v63  ;;  %v847_v7 = vld [vmem:[#allocation14 + $0x140] sm:$0xff]  ;;  %v900_v63 = vld [vmem:[#allocation14 + $0x2e8] sm:$0xff] }
 0x189   :  { %v851_v8 = vld [vmem:[#allocation14 + $0x160] sm:$0xff] }
 0x18a   :  { %v8224_v11 = vpack.c.bf16 %v851_v8, %v847_v7  ;;  %v855_v13 = vld [vmem:[#allocation14 + $0x180] sm:$0xff]  ;;  %v842_v7 = vld [vmem:[#allocation14 + $0x118] sm:$0xff] }
 0x18b   :  { %8134 = vmatpush1.bf16.msra.mxu0 %v8133_v36  ;;  %v816_v36 = vld [vmem:[#allocation14 + $0x48] sm:$0xff]  ;;  %v859_v14 = vld [vmem:[#allocation14 + $0x1a0] sm:$0xff] }
 0x18c   :  { %8135 = vmatprep.subr.bf16.mxu0 %v10881_v0  ;;  %v8206_v43 = vpack.c.bf16 %v820_v37, %v816_v36  ;;  %v863_v19 = vld [vmem:[#allocation14 + $0x1c0] sm:$0xff]  ;;  %v8266_v36 = vpack.c.bf16 %v814_v24, %v810_v23  ;;  %v854_v23 = vld [vmem:[#allocation14 + $0x178] sm:$0xff]  ;;  %v912_v24 = vld [vmem:[#allocation14 + $0x348] sm:$0xff] }
 0x18d   :  { %v867_v20 = vld [vmem:[#allocation14 + $0x1e0] sm:$0xff] }
 0x18e   :  { %v871_v30 = vld [vmem:[#allocation14 + $0x200] sm:$0xff] }
 0x18f   :  { %8137 = vmatpush1.bf16.msra.mxu0 %v8136_v39  ;;  %v8202_v39 = vpack.c.bf16 %v812_v33, %v808_v32  ;;  %v822_v32 = vld [vmem:[#allocation14 + $0x78] sm:$0xff]  ;;  %v880_v33 = vld [vmem:[#allocation14 + $0x248] sm:$0xff] }
 0x190   :  { %397 = vmatprep.subr.mxu0 %v10882_v1  ;;  %v8238_v45 = vpack.c.bf16 %v884_v34, %v880_v33  ;;  %v915_v33 = vld [vmem:[#allocation14 + $0x360] sm:$0xff]  ;;  %v858_v34 = vld [vmem:[#allocation14 + $0x198] sm:$0xff] }
 0x193   :  { %398 = vmatpush1.msra.mxu0 %v328_v40 }
 0x194   :  { %414 = vmatmul.mubr.f32.vlgmr.msra.gmra.mrb[0].mxu0 %v343_v17  ;;  %v544_v17 = vld [vmem:[#allocation10 + $0x1a0] sm:$0xff] }
 0x195   :  { %784 = vmatprep.mubr.f32.mxu0 %v10882_v1  ;;  %v8192_v21 = vpack.c.bf16 %v546_v18, %v544_v17  ;;  %v8228_v17 = vpack.c.bf16 %v859_v14, %v855_v13  ;;  %v908_v13 = vld [vmem:[#allocation14 + $0x328] sm:$0xff] }
 0x267   :  { %v415_v49 = vpop.f32.mrb[0].mxu0 }
 0x268   :  { %v416_v51 = vadd.f32 %v7727_v46, %v415_v49  ;;  %v417_v52 = vpop.f32.mrb[1].mxu0  ;;  %v824_v46 = vld [vmem:[#allocation14 + $0x88] sm:$0xff] }
 0x269   :  { %v8210_v49 = vpack.c.bf16 %v828_v47, %v824_v46  ;;  %v832_v52 = vld [vmem:[#allocation14 + $0xc8] sm:$0xff]  ;;  %v879_v46 = vld [vmem:[#allocation14 + $0x240] sm:$0xff] }
 0x26a   :  { %516 = vmatmul.mubr.f32.vlgmr.msra.gmra.mrb[0].mxu1 %v416_v51  ;;  %v883_v47 = vld [vmem:[#allocation14 + $0x260] sm:$0xff] }
 0x26b   :  { %8173 = vmatpush1.bf16.msra.mxu1 %v8172_v50  ;;  %620 = vmatprep.mubr.f32.mxu1 %v10882_v1  ;;  %v823_v50 = vld [vmem:[#allocation14 + $0x80] sm:$0xff] }
 0x26c   :  { %8175 = vmatprep.subr.bf16.mxu1 %v8174_v53  ;;  %v836_v53 = vld [vmem:[#allocation14 + $0xe8] sm:$0xff] }
 0x26d   :  { %v8214_v56 = vpack.c.bf16 %v836_v53, %v832_v52  ;;  %v825_v52 = vld [vmem:[#allocation14 + $0x90] sm:$0xff] }
 0x26e   :  { %v829_v53 = vld [vmem:[#allocation14 + $0xb0] sm:$0xff] }
 0x26f   :  { %8177 = vmatpush1.bf16.msra.mxu1 %v8176_v59  ;;  %v840_v59 = vld [vmem:[#allocation14 + $0x108] sm:$0xff]  ;;  %v8276_v2 = vpack.c.bf16 %v829_v53, %v825_v52  ;;  %v877_v52 = vld [vmem:[#allocation14 + $0x230] sm:$0xff]  ;;  %v882_v53 = vld [vmem:[#allocation14 + $0x258] sm:$0xff] }
 0x270   :  { %8179 = vmatprep.subr.bf16.mxu1 %v8178_v60  ;;  %v844_v60 = vld [vmem:[#allocation14 + $0x128] sm:$0xff] }
 0x271   :  { %v8218_v62 = vpack.c.bf16 %v844_v60, %v840_v59  ;;  %v887_v59 = vld [vmem:[#allocation14 + $0x280] sm:$0xff] }
 0x272   :  { %v891_v60 = vld [vmem:[#allocation14 + $0x2a0] sm:$0xff] }
 0x273   :  { %8181 = vmatpush1.bf16.msra.mxu1 %v8180_v3  ;;  %v848_v3 = vld [vmem:[#allocation14 + $0x148] sm:$0xff] }
 0x274   :  { %8183 = vmatprep.subr.bf16.mxu1 %v8182_v4  ;;  %v852_v4 = vld [vmem:[#allocation14 + $0x168] sm:$0xff] }
 0x275   :  { %v8222_v6 = vpack.c.bf16 %v852_v4, %v848_v3  ;;  %v833_v3 = vld [vmem:[#allocation14 + $0xd0] sm:$0xff] }
 0x276   :  { %v837_v4 = vld [vmem:[#allocation14 + $0xf0] sm:$0xff] }
 0x277   :  { %8185 = vmatpush1.bf16.msra.mxu1 %v8184_v9  ;;  %v856_v9 = vld [vmem:[#allocation14 + $0x188] sm:$0xff]  ;;  %v8280_v14 = vpack.c.bf16 %v837_v4, %v833_v3  ;;  %v893_v3 = vld [vmem:[#allocation14 + $0x2b0] sm:$0xff]  ;;  %v898_v4 = vld [vmem:[#allocation14 + $0x2d8] sm:$0xff] }
 0x278   :  { %8187 = vmatprep.subr.bf16.mxu1 %v8186_v10  ;;  %v860_v10 = vld [vmem:[#allocation14 + $0x1a8] sm:$0xff] }
 0x279   :  { %v8226_v12 = vpack.c.bf16 %v860_v10, %v856_v9  ;;  %v895_v9 = vld [vmem:[#allocation14 + $0x2c0] sm:$0xff] }
 0x27a   :  { %v899_v10 = vld [vmem:[#allocation14 + $0x2e0] sm:$0xff] }
 0x27b   :  { %8189 = vmatpush1.bf16.msra.mxu1 %v8188_v15  ;;  %v864_v15 = vld [vmem:[#allocation14 + $0x1c8] sm:$0xff] }
 0x27c   :  { %8191 = vmatprep.subr.bf16.mxu1 %v8190_v16  ;;  %v868_v16 = vld [vmem:[#allocation14 + $0x1e8] sm:$0xff] }
 0x27d   :  { %v8230_v18 = vpack.c.bf16 %v868_v16, %v864_v15  ;;  %v841_v15 = vld [vmem:[#allocation14 + $0x110] sm:$0xff] }
 0x27e   :  { %v845_v16 = vld [vmem:[#allocation14 + $0x130] sm:$0xff] }
 0x27f   :  { %8193 = vmatpush1.bf16.msra.mxu1 %v8192_v21  ;;  %v872_v21 = vld [vmem:[#allocation14 + $0x208] sm:$0xff] }
 0x280   :  { %8195 = vmatprep.subr.bf16.mxu1 %v8194_v22  ;;  %v876_v22 = vld [vmem:[#allocation14 + $0x228] sm:$0xff] }
 0x281   :  { %v8234_v29 = vpack.c.bf16 %v876_v22, %v872_v21  ;;  %v903_v21 = vld [vmem:[#allocation14 + $0x300] sm:$0xff] }
 0x282   :  { %v907_v22 = vld [vmem:[#allocation14 + $0x320] sm:$0xff] }
 0x283   :  { %8197 = vmatpush1.bf16.msra.mxu1 %v8196_v27  ;;  %v8232_v27 = vpack.c.bf16 %v867_v20, %v863_v19  ;;  %v850_v19 = vld [vmem:[#allocation14 + $0x158] sm:$0xff] }
 0x284   :  { %8199 = vmatprep.subr.bf16.mxu1 %v8198_v28  ;;  %v818_v28 = vld [vmem:[#allocation14 + $0x58] sm:$0xff] }
 0x287   :  { %8201 = vmatpush1.bf16.msra.mxu1 %v8200_v31  ;;  %v875_v31 = vld [vmem:[#allocation14 + $0x220] sm:$0xff] }
 0x28a   :  { %621 = vmatmul.mubr.f32.vlgmr.msra.gmra.mrb[2].mxu1 %v416_v51  ;;  %v827_v51 = vld [vmem:[#allocation14 + $0xa0] sm:$0xff] }
 0x28b   :  { %704 = vmatprep.mubr.f32.mxu1 %v10882_v1  ;;  %v8212_v55 = vpack.c.bf16 %v827_v51, %v823_v50  ;;  %v892_v50 = vld [vmem:[#allocation14 + $0x2a8] sm:$0xff] }
 0x33d   :  { %v517_v38 = vpop.f32.mrb[0].mxu1 }
 0x33e   :  { %v519_v40 = vpop.f32.mrb[1].mxu1 }
 0x33f   :  { %7732 = vmatprep.subr.msk.mxu0 %vm633_vm1, %v519_v40  ;;  %v817_v40 = vld [vmem:[#allocation14 + $0x50] sm:$0xff] }
 0x340   :  { %7733 = vmatpush1.msk.msra.mxu0 %vm633_vm1, %v517_v38  ;;  %v628_v38 = vld [vmem:[#allocation11 + $0x4] sm:$0xf] }
 0x341   :  { %7734 = vmatmul.mubr.msk.f32.vlgmr.msra.gmra.mrb[2].mxu0 %vm629_vm2, %v522_v41  ;;  %8203 = vmatprep.subr.bf16.mxu0 %v8202_v39  ;;  %v8268_v39 = vpack.c.bf16 %v813_v26, %v809_v25  ;;  %v821_v41 = vld [vmem:[#allocation14 + $0x70] sm:$0xff]  ;;  %v916_v25 = vld [vmem:[#allocation14 + $0x368] sm:$0xff]  ;;  %v8284_v26 = vpack.c.bf16 %v845_v16, %v841_v15  ;;  %v914_v16 = vld [vmem:[#allocation14 + $0x358] sm:$0xff] }
 0x342   :  { %8205 = vmatpush1.bf16.msra.mxu0 %v8204_v42  ;;  %v8236_v42 = vpack.c.bf16 %v875_v31, %v871_v30  ;;  %v8272_v51 = vpack.c.bf16 %v821_v41, %v817_v40  ;;  %v853_v30 = vld [vmem:[#allocation14 + $0x170] sm:$0xff]  ;;  %v8254_v31 = vpack.c.bf16 %v916_v25, %v912_v24  ;;  %v866_v41 = vld [vmem:[#allocation14 + $0x1d8] sm:$0xff]  ;;  %v924_v24 = vld [vmem:[#allocation14 + $0x3a8] sm:$0xff] }
 0x343   :  { %8207 = vmatprep.subr.bf16.mxu0 %v8206_v43  ;;  %v8270_v43 = vpack.c.bf16 %v822_v32, %v818_v28  ;;  %v8252_v28 = vpack.c.bf16 %v907_v22, %v903_v21  ;;  %v911_v32 = vld [vmem:[#allocation14 + $0x340] sm:$0xff]  ;;  %v861_v40 = vld [vmem:[#allocation14 + $0x1b0] sm:$0xff]  ;;  %v922_v25 = vld [vmem:[#allocation14 + $0x398] sm:$0xff] }
 0x344   :  { %v909_v15 = vld [vmem:[#allocation14 + $0x330] sm:$0xff] }
 0x345   :  { %v917_v21 = vld [vmem:[#allocation14 + $0x370] sm:$0xff] }
 0x346   :  { %8209 = vmatpush1.bf16.msra.mxu0 %v8208_v48  ;;  %v830_v48 = vld [vmem:[#allocation14 + $0xb8] sm:$0xff] }
 0x347   :  { %8211 = vmatprep.subr.bf16.mxu0 %v8210_v49  ;;  %v888_v49 = vld [vmem:[#allocation14 + $0x288] sm:$0xff] }
 0x348   :  { %v8242_v58 = vpack.c.bf16 %v892_v50, %v888_v49 }
 0x34a   :  { %8213 = vmatpush1.bf16.msra.mxu0 %v8212_v55  ;;  %v8240_v55 = vpack.c.bf16 %v883_v47, %v879_v46  ;;  %v869_v46 = vld [vmem:[#allocation14 + $0x1f0] sm:$0xff]  ;;  %v874_v47 = vld [vmem:[#allocation14 + $0x218] sm:$0xff] }
 0x34b   :  { %8215 = vmatprep.subr.bf16.mxu0 %v8214_v56  ;;  %v8274_v56 = vpack.c.bf16 %v830_v48, %v826_v44  ;;  %v878_v48 = vld [vmem:[#allocation14 + $0x238] sm:$0xff] }
 0x34c   :  { %v8298_v50 = vpack.c.bf16 %v878_v48, %v874_v47  ;;  %v1080_v47 = vld [vmem:[#allocation14 + $0x408] sm:$0xff] }
 0x34d   :  { %v1084_v48 = vld [vmem:[#allocation14 + $0x428] sm:$0xff] }
 0x34e   :  { %8217 = vmatpush1.bf16.msra.mxu0 %v8216_v61  ;;  %v838_v61 = vld [vmem:[#allocation14 + $0xf8] sm:$0xff] }
 0x34f   :  { %8219 = vmatprep.subr.bf16.mxu0 %v8218_v62  ;;  %v896_v62 = vld [vmem:[#allocation14 + $0x2c8] sm:$0xff] }
 0x350   :  { %v8246_v8 = vpack.c.bf16 %v900_v63, %v896_v62 }
 0x352   :  { %8221 = vmatpush1.bf16.msra.mxu0 %v8220_v5  ;;  %v8244_v5 = vpack.c.bf16 %v891_v60, %v887_v59  ;;  %v885_v59 = vld [vmem:[#allocation14 + $0x270] sm:$0xff]  ;;  %v890_v60 = vld [vmem:[#allocation14 + $0x298] sm:$0xff] }
 0x353   :  { %8223 = vmatprep.subr.bf16.mxu0 %v8222_v6  ;;  %v8278_v6 = vpack.c.bf16 %v838_v61, %v834_v57  ;;  %v894_v61 = vld [vmem:[#allocation14 + $0x2b8] sm:$0xff] }
 0x354   :  { %v8306_v63 = vpack.c.bf16 %v894_v61, %v890_v60 }
 0x356   :  { %8225 = vmatpush1.bf16.msra.mxu0 %v8224_v11  ;;  %v846_v11 = vld [vmem:[#allocation14 + $0x138] sm:$0xff] }
 0x357   :  { %8227 = vmatprep.subr.bf16.mxu0 %v8226_v12  ;;  %v904_v12 = vld [vmem:[#allocation14 + $0x308] sm:$0xff] }
 0x358   :  { %v8250_v20 = vpack.c.bf16 %v908_v13, %v904_v12 }
 0x35a   :  { %8229 = vmatpush1.bf16.msra.mxu0 %v8228_v17  ;;  %v8248_v17 = vpack.c.bf16 %v899_v10, %v895_v9  ;;  %v901_v9 = vld [vmem:[#allocation14 + $0x2f0] sm:$0xff]  ;;  %v906_v10 = vld [vmem:[#allocation14 + $0x318] sm:$0xff] }
 0x35b   :  { %8231 = vmatprep.subr.bf16.mxu0 %v8230_v18  ;;  %v8282_v18 = vpack.c.bf16 %v846_v11, %v842_v7  ;;  %v910_v11 = vld [vmem:[#allocation14 + $0x338] sm:$0xff] }
 0x35c   :  { %v8314_v13 = vpack.c.bf16 %v910_v11, %v906_v10  ;;  %v1092_v10 = vld [vmem:[#allocation14 + $0x468] sm:$0xff]  ;;  %v1090_v11 = vld [vmem:[#allocation14 + $0x458] sm:$0xff] }
 0x35d   :  { %v622_v35 = vpop.f32.mrb[2].mxu1 }
 0x35e   :  { %v624_v37 = vpop.f32.mrb[3].mxu1  ;;  %8233 = vmatpush1.bf16.msra.mxu0 %v8232_v27  ;;  %v849_v27 = vld [vmem:[#allocation14 + $0x150] sm:$0xff] }
 0x35f   :  { %7729 = vmatprep.subr.msk.mxu1 %vm633_vm1, %v624_v37  ;;  %8235 = vmatprep.subr.bf16.mxu0 %v8234_v29  ;;  %v8286_v29 = vpack.c.bf16 %v854_v23, %v850_v19  ;;  %v8256_v37 = vpack.c.bf16 %v915_v33, %v911_v32  ;;  %v920_v23 = vld [vmem:[#allocation14 + $0x388] sm:$0xff]  ;;  %v921_v32 = vld [vmem:[#allocation14 + $0x390] sm:$0xff] }
 0x360   :  { %7730 = vmatpush1.msk.msra.mxu1 %vm633_vm1, %v622_v35  ;;  %v862_v35 = vld [vmem:[#allocation14 + $0x1b8] sm:$0xff]  ;;  %v925_v33 = vld [vmem:[#allocation14 + $0x3b0] sm:$0xff] }
 0x361   :  { %7731 = vmatmul.mubr.msk.f32.vlgmr.msra.gmra.mrb[4].mxu1 %vm629_vm2, %v628_v38  ;;  %8267 = vmatprep.subr.bf16.mxu1 %v8266_v36  ;;  %v8288_v36 = vpack.c.bf16 %v853_v30, %v849_v27  ;;  %v8290_v38 = vpack.c.bf16 %v862_v35, %v858_v34  ;;  %v926_v27 = vld [vmem:[#allocation14 + $0x3b8] sm:$0xff]  ;;  %v8324_v34 = vpack.c.bf16 %v925_v33, %v921_v32  ;;  %v928_v35 = vld [vmem:[#allocation14 + $0x3c8] sm:$0xff]  ;;  %v1097_v33 = vld [vmem:[#allocation14 + $0x490] sm:$0xff] }
 0x362   :  { %8269 = vmatpush1.bf16.msra.mxu1 %v8268_v39  ;;  %8237 = vmatpush1.bf16.msra.mxu0 %v8236_v42  ;;  %v857_v39 = vld [vmem:[#allocation14 + $0x190] sm:$0xff]  ;;  %v870_v42 = vld [vmem:[#allocation14 + $0x1f8] sm:$0xff]  ;;  %v8322_v30 = vpack.c.bf16 %v926_v27, %v922_v25 }
 0x363   :  { %8271 = vmatprep.subr.bf16.mxu1 %v8270_v43  ;;  %8239 = vmatprep.subr.bf16.mxu0 %v8238_v45  ;;  %v8292_v43 = vpack.c.bf16 %v861_v40, %v857_v39  ;;  %v8294_v44 = vpack.c.bf16 %v870_v42, %v866_v41  ;;  %v865_v45 = vld [vmem:[#allocation14 + $0x1d0] sm:$0xff]  ;;  %v934_v39 = vld [vmem:[#allocation14 + $0x3f8] sm:$0xff]  ;;  %v927_v40 = vld [vmem:[#allocation14 + $0x3c0] sm:$0xff] }
 0x364   :  { %v8296_v49 = vpack.c.bf16 %v869_v46, %v865_v45  ;;  %v931_v41 = vld [vmem:[#allocation14 + $0x3e0] sm:$0xff]  ;;  %v933_v45 = vld [vmem:[#allocation14 + $0x3f0] sm:$0xff]  ;;  %v1098_v25 = vld [vmem:[#allocation14 + $0x498] sm:$0xff] }
 0x366   :  { %8273 = vmatpush1.bf16.msra.mxu1 %v8272_v51  ;;  %8241 = vmatpush1.bf16.msra.mxu0 %v8240_v55  ;;  %v873_v51 = vld [vmem:[#allocation14 + $0x210] sm:$0xff]  ;;  %v886_v55 = vld [vmem:[#allocation14 + $0x278] sm:$0xff] }
 0x367   :  { %8275 = vmatprep.subr.bf16.mxu1 %v8274_v56  ;;  %8243 = vmatprep.subr.bf16.mxu0 %v8242_v58  ;;  %v8300_v56 = vpack.c.bf16 %v877_v52, %v873_v51  ;;  %v8302_v57 = vpack.c.bf16 %v886_v55, %v882_v53  ;;  %v881_v58 = vld [vmem:[#allocation14 + $0x250] sm:$0xff]  ;;  %v1086_v51 = vld [vmem:[#allocation14 + $0x438] sm:$0xff] }
 0x368   :  { %v8304_v62 = vpack.c.bf16 %v885_v59, %v881_v58  ;;  %v11268_v58 = vsub.s32 1, %v11242_v54 }
 0x36a   :  { %8277 = vmatpush1.bf16.msra.mxu1 %v8276_v2  ;;  %8245 = vmatpush1.bf16.msra.mxu0 %v8244_v5  ;;  %v889_v2 = vld [vmem:[#allocation14 + $0x290] sm:$0xff]  ;;  %v902_v5 = vld [vmem:[#allocation14 + $0x2f8] sm:$0xff] }
 0x36b   :  { %8279 = vmatprep.subr.bf16.mxu1 %v8278_v6  ;;  %8247 = vmatprep.subr.bf16.mxu0 %v8246_v8  ;;  %v8308_v6 = vpack.c.bf16 %v893_v3, %v889_v2  ;;  %v8310_v7 = vpack.c.bf16 %v902_v5, %v898_v4  ;;  %v897_v8 = vld [vmem:[#allocation14 + $0x2d0] sm:$0xff]  ;;  %v1079_v3 = vld [vmem:[#allocation14 + $0x400] sm:$0xff] }
 0x36c   :  { %v8312_v12 = vpack.c.bf16 %v901_v9, %v897_v8  ;;  %v1083_v5 = vld [vmem:[#allocation14 + $0x420] sm:$0xff]  ;;  %v1088_v9 = vld [vmem:[#allocation14 + $0x448] sm:$0xff] }
 0x36e   :  { %8281 = vmatpush1.bf16.msra.mxu1 %v8280_v14  ;;  %8249 = vmatpush1.bf16.msra.mxu0 %v8248_v17  ;;  %v905_v14 = vld [vmem:[#allocation14 + $0x310] sm:$0xff]  ;;  %v918_v17 = vld [vmem:[#allocation14 + $0x378] sm:$0xff] }
 0x36f   :  { %8283 = vmatprep.subr.bf16.mxu1 %v8282_v18  ;;  %8251 = vmatprep.subr.bf16.mxu0 %v8250_v20  ;;  %v8316_v18 = vpack.c.bf16 %v909_v15, %v905_v14  ;;  %v8318_v19 = vpack.c.bf16 %v918_v17, %v914_v16  ;;  %v913_v20 = vld [vmem:[#allocation14 + $0x350] sm:$0xff]  ;;  %v8332_v14 = vpack.c.bf16 %v1083_v5, %v1079_v3  ;;  %v1087_v16 = vld [vmem:[#allocation14 + $0x440] sm:$0xff]  ;;  %v1126_v3 = vld [vmem:[#allocation14 + $0x578] sm:$0xff] }
 0x370   :  { %v8320_v22 = vpack.c.bf16 %v917_v21, %v913_v20  ;;  %v1091_v17 = vld [vmem:[#allocation14 + $0x460] sm:$0xff]  ;;  %v1093_v20 = vld [vmem:[#allocation14 + $0x470] sm:$0xff]  ;;  %v1096_v21 = vld [vmem:[#allocation14 + $0x488] sm:$0xff] }
 0x371   :  { %v8336_v27 = vpack.c.bf16 %v1091_v17, %v1087_v16  ;;  %v1134_v16 = vld [vmem:[#allocation14 + $0x5b8] sm:$0xff] }
 0x372   :  { %8285 = vmatpush1.bf16.msra.mxu1 %v8284_v26  ;;  %8253 = vmatpush1.bf16.msra.mxu0 %v8252_v28  ;;  %v8258_v26 = vpack.c.bf16 %v924_v24, %v920_v23  ;;  %v919_v28 = vld [vmem:[#allocation14 + $0x380] sm:$0xff]  ;;  %v1100_v24 = vld [vmem:[#allocation14 + $0x4a8] sm:$0xff] }
 0x373   :  { %8287 = vmatprep.subr.bf16.mxu1 %v8286_v29  ;;  %8255 = vmatprep.subr.bf16.mxu0 %v8254_v31  ;;  %v923_v29 = vld [vmem:[#allocation14 + $0x3a0] sm:$0xff] }
 0x374   :  { %v8260_v31 = vpack.c.bf16 %v923_v29, %v919_v28  ;;  %v1095_v29 = vld [vmem:[#allocation14 + $0x480] sm:$0xff] }
 0x376   :  { %8289 = vmatpush1.bf16.msra.mxu1 %v8288_v36  ;;  %8257 = vmatpush1.bf16.msra.mxu0 %v8256_v37  ;;  %v932_v36 = vld [vmem:[#allocation14 + $0x3e8] sm:$0xff]  ;;  %v930_v37 = vld [vmem:[#allocation14 + $0x3d8] sm:$0xff] }
 0x377   :  { %8291 = vmatprep.subr.bf16.mxu1 %v8290_v38  ;;  %8259 = vmatprep.subr.bf16.mxu0 %v8258_v26  ;;  %v8262_v38 = vpack.c.bf16 %v932_v36, %v928_v35  ;;  %v8326_v42 = vpack.c.bf16 %v934_v39, %v930_v37  ;;  %v1102_v26 = vld [vmem:[#allocation14 + $0x4b8] sm:$0xff]  ;;  %v1104_v35 = vld [vmem:[#allocation14 + $0x4c8] sm:$0xff] }
 0x378   :  { %v8402_v32 = vpack.c.bf16 %v1102_v26, %v1098_v25  ;;  %v1108_v36 = vld [vmem:[#allocation14 + $0x4e8] sm:$0xff]  ;;  %v1106_v37 = vld [vmem:[#allocation14 + $0x4d8] sm:$0xff]  ;;  %v1133_v25 = vld [vmem:[#allocation14 + $0x5b0] sm:$0xff] }
 0x379   :  { %v1136_v26 = vld [vmem:[#allocation14 + $0x5c8] sm:$0xff] }
 0x37a   :  { %8293 = vmatpush1.bf16.msra.mxu1 %v8292_v43  ;;  %8261 = vmatpush1.bf16.msra.mxu0 %v8260_v31  ;;  %v8264_v43 = vpack.c.bf16 %v931_v41, %v927_v40  ;;  %v8338_v31 = vpack.c.bf16 %v1100_v24, %v1096_v21  ;;  %v1103_v41 = vld [vmem:[#allocation14 + $0x4c0] sm:$0xff]  ;;  %v1129_v24 = vld [vmem:[#allocation14 + $0x590] sm:$0xff] }
 0x37b   :  { %8295 = vmatprep.subr.bf16.mxu1 %v8294_v44  ;;  %v929_v44 = vld [vmem:[#allocation14 + $0x3d0] sm:$0xff]  ;;  %8263 = vmatprep.subr.bf16.mxu0 %v8262_v38  ;;  %v1110_v38 = vld [vmem:[#allocation14 + $0x4f8] sm:$0xff]  ;;  %v1131_v21 = vld [vmem:[#allocation14 + $0x5a0] sm:$0xff] }
 0x37c   :  { %v8328_v46 = vpack.c.bf16 %v933_v45, %v929_v44  ;;  %v8406_v44 = vpack.c.bf16 %v1110_v38, %v1106_v37  ;;  %v1105_v45 = vld [vmem:[#allocation14 + $0x4d0] sm:$0xff]  ;;  %v1144_v38 = vld [vmem:[#allocation14 + $0x608] sm:$0xff] }
 0x37d   :  { %v1141_v37 = vld [vmem:[#allocation14 + $0x5f0] sm:$0xff] }
 0x37e   :  { %8297 = vmatpush1.bf16.msra.mxu1 %v8296_v49  ;;  %8265 = vmatpush1.bf16.msra.mxu0 %v8264_v43  ;;  %v1082_v49 = vld [vmem:[#allocation14 + $0x418] sm:$0xff]  ;;  %v8342_v43 = vpack.c.bf16 %v1108_v36, %v1104_v35  ;;  %v1137_v36 = vld [vmem:[#allocation14 + $0x5d0] sm:$0xff] }
 0x37f   :  { %8299 = vmatprep.subr.bf16.mxu1 %v8298_v50  ;;  %v8330_v50 = vpack.c.bf16 %v1084_v48, %v1080_v47  ;;  %v8394_v52 = vpack.c.bf16 %v1086_v51, %v1082_v49  ;;  %v1112_v47 = vld [vmem:[#allocation14 + $0x508] sm:$0xff]  ;;  %v1114_v49 = vld [vmem:[#allocation14 + $0x518] sm:$0xff] }
 0x380   :  { %v1116_v48 = vld [vmem:[#allocation14 + $0x528] sm:$0xff] }
 0x381   :  { %8331 = vmatprep.subr.bf16.mxu0 %v8330_v50  ;;  %v1118_v50 = vld [vmem:[#allocation14 + $0x538] sm:$0xff] }
 0x382   :  { %8301 = vmatpush1.bf16.msra.mxu1 %v8300_v56  ;;  %v11265_v56 = vsub.s32 0, %v11242_v54 }
 0x383   :  { %8303 = vmatprep.subr.bf16.mxu1 %v8302_v57  ;;  %v791_v57 = vld [vmem:[#allocation13] sm:$0x3] }
 0x384   :  { %v796_v59 = vrot.slane %v791_v57, %v11265_v56  ;;  %v800_v61 = vrot.slane %v791_v57, %v11268_v58  ;;  %v8346_v57 = vpack.c.bf16 %v1116_v48, %v1112_v47  ;;  %v1145_v48 = vld [vmem:[#allocation14 + $0x610] sm:$0xff] }
 0x386   :  { %8305 = vmatpush1.bf16.msra.mxu1 %v8304_v62 }
 0x387   :  { %8307 = vmatprep.subr.bf16.mxu1 %v8306_v63 }
 0x38a   :  { %8309 = vmatpush1.bf16.msra.mxu1 %v8308_v6  ;;  %v1081_v6 = vld [vmem:[#allocation14 + $0x410] sm:$0xff] }
 0x38b   :  { %8311 = vmatprep.subr.bf16.mxu1 %v8310_v7  ;;  %v1085_v7 = vld [vmem:[#allocation14 + $0x430] sm:$0xff] }
 0x38c   :  { %v8396_v15 = vpack.c.bf16 %v1085_v7, %v1081_v6  ;;  %v1119_v6 = vld [vmem:[#allocation14 + $0x540] sm:$0xff] }
 0x38d   :  { %v1123_v7 = vld [vmem:[#allocation14 + $0x560] sm:$0xff] }
 0x38e   :  { %8313 = vmatpush1.bf16.msra.mxu1 %v8312_v12  ;;  %v1094_v12 = vld [vmem:[#allocation14 + $0x478] sm:$0xff]  ;;  %v8352_v17 = vpack.c.bf16 %v1123_v7, %v1119_v6 }
 0x38f   :  { %8315 = vmatprep.subr.bf16.mxu1 %v8314_v13  ;;  %v8398_v23 = vpack.c.bf16 %v1094_v12, %v1090_v11  ;;  %v1125_v11 = vld [vmem:[#allocation14 + $0x570] sm:$0xff]  ;;  %v1128_v12 = vld [vmem:[#allocation14 + $0x588] sm:$0xff]  ;;  %v1166_v6 = vld [vmem:[#allocation14 + $0x6b8] sm:$0xff] }
 0x392   :  { %8317 = vmatpush1.bf16.msra.mxu1 %v8316_v18 }
 0x393   :  { %8319 = vmatprep.subr.bf16.mxu1 %v8318_v19  ;;  %v1089_v19 = vld [vmem:[#allocation14 + $0x450] sm:$0xff] }
 0x394   :  { %v8400_v28 = vpack.c.bf16 %v1093_v20, %v1089_v19  ;;  %v1127_v20 = vld [vmem:[#allocation14 + $0x580] sm:$0xff] }
 0x396   :  { %8321 = vmatpush1.bf16.msra.mxu1 %v8320_v22  ;;  %v8334_v22 = vpack.c.bf16 %v1092_v10, %v1088_v9  ;;  %v1121_v10 = vld [vmem:[#allocation14 + $0x550] sm:$0xff] }
 0x397   :  { %8323 = vmatprep.subr.bf16.mxu1 %v8322_v30  ;;  %v1099_v30 = vld [vmem:[#allocation14 + $0x4a0] sm:$0xff]  ;;  %v8416_v19 = vpack.c.bf16 %v1125_v11, %v1121_v10 }
 0x398   :  { %v8340_v39 = vpack.c.bf16 %v1099_v30, %v1095_v29  ;;  %v1142_v29 = vld [vmem:[#allocation14 + $0x5f8] sm:$0xff]  ;;  %v8356_v30 = vpack.c.bf16 %v1131_v21, %v1127_v20  ;;  %v1163_v10 = vld [vmem:[#allocation14 + $0x6a0] sm:$0xff] }
 0x399   :  { %v1174_v20 = vld [vmem:[#allocation14 + $0x6f8] sm:$0xff] }
 0x39a   :  { %8325 = vmatpush1.bf16.msra.mxu1 %v8324_v34  ;;  %v1101_v34 = vld [vmem:[#allocation14 + $0x4b0] sm:$0xff] }
 0x39b   :  { %8327 = vmatprep.subr.bf16.mxu1 %v8326_v42  ;;  %v8404_v40 = vpack.c.bf16 %v1101_v34, %v1097_v33  ;;  %v1107_v42 = vld [vmem:[#allocation14 + $0x4e0] sm:$0xff] }
 0x39c   :  { %v8344_v51 = vpack.c.bf16 %v1107_v42, %v1103_v41  ;;  %v1139_v33 = vld [vmem:[#allocation14 + $0x5e0] sm:$0xff]  ;;  %v1150_v41 = vld [vmem:[#allocation14 + $0x638] sm:$0xff] }
 0x39e   :  { %8329 = vmatpush1.bf16.msra.mxu1 %v8328_v46  ;;  %v1109_v46 = vld [vmem:[#allocation14 + $0x4f0] sm:$0xff] }
 0x39f   :  { %8395 = vmatprep.subr.bf16.mxu1 %v8394_v52  ;;  %v8408_v52 = vpack.c.bf16 %v1109_v46, %v1105_v45  ;;  %v1147_v45 = vld [vmem:[#allocation14 + $0x620] sm:$0xff] }
 0x414   :  { %v786_v53 = vpop.f32.mrb[2].mxu0 }
 0x415   :  { %v788_v55 = vpop.f32.mrb[3].mxu0 }
 0x434   :  { %v706_v60 = vpop.f32.mrb[4].mxu1 }
 0x435   :  { %v787_v62 = vadd.f32 %v786_v53, %v706_v60  ;;  %v708_v63 = vpop.f32.mrb[5].mxu1  ;;  %v1111_v53 = vld [vmem:[#allocation14 + $0x500] sm:$0xff]  ;;  %v1113_v60 = vld [vmem:[#allocation14 + $0x510] sm:$0xff] }
 0x436   :  { %v789_v2 = vadd.f32 %v788_v55, %v708_v63  ;;  %v1115_v55 = vld [vmem:[#allocation14 + $0x520] sm:$0xff]  ;;  %v1124_v63 = vld [vmem:[#allocation14 + $0x568] sm:$0xff] }
 0x437   :  { %v803_v4 = vadd.f32 %v796_v59, %v787_v62  ;;  %v8410_v59 = vpack.c.bf16 %v1118_v50, %v1114_v49  ;;  %v1120_v62 = vld [vmem:[#allocation14 + $0x548] sm:$0xff]  ;;  %v1149_v49 = vld [vmem:[#allocation14 + $0x630] sm:$0xff] }
 0x438   :  { %v804_v8 = vadd.f32 %v800_v61, %v789_v2  ;;  %v1117_v61 = vld [vmem:[#allocation14 + $0x530] sm:$0xff]  ;;  %v1122_v2 = vld [vmem:[#allocation14 + $0x558] sm:$0xff]  ;;  %v1152_v50 = vld [vmem:[#allocation14 + $0x648] sm:$0xff] }
 0x439   :  { %v11274_v18 = vmax.f32 %v803_v4, 0.0  ;;  %v8348_v4 = vpack.c.bf16 %v1115_v55, %v1111_v53  ;;  %v8412_v5 = vpack.c.bf16 %v1117_v61, %v1113_v60  ;;  %v8414_v9 = vpack.c.bf16 %v1126_v3, %v1122_v2  ;;  %v1158_v53 = vld [vmem:[#allocation14 + $0x678] sm:$0xff]  ;;  %v1155_v60 = vld [vmem:[#allocation14 + $0x660] sm:$0xff]  ;;  %v1157_v2 = vld [vmem:[#allocation14 + $0x670] sm:$0xff] }
 0x43a   :  { %v11272_v13 = vmax.f32 %v804_v8, 0.0  ;;  %v8350_v8 = vpack.c.bf16 %v1124_v63, %v1120_v62  ;;  %v1153_v63 = vld [vmem:[#allocation14 + $0x650] sm:$0xff]  ;;  %v1160_v3 = vld [vmem:[#allocation14 + $0x688] sm:$0xff] }
 0x43c   :  { %999 = vmatprep.mubr.f32.mxu0 %v11272_v13  ;;  %1070 = vmatprep.mubr.f32.mxu1 %v11272_v13 }
 0x43d   :  { %1000 = vmatmul.mubr.f32.vlgmr.msra.gmra.mrb[4].mxu0 %v11274_v18  ;;  %1071 = vmatmul.mubr.f32.vlgmr.msra.gmra.mrb[6].mxu1 %v11274_v18 }
 0x43e   :  { %8333 = vmatpush1.bf16.msra.mxu0 %v8332_v14  ;;  %8397 = vmatpush1.bf16.msra.mxu1 %v8396_v15  ;;  %v1132_v14 = vld [vmem:[#allocation14 + $0x5a8] sm:$0xff]  ;;  %v1130_v15 = vld [vmem:[#allocation14 + $0x598] sm:$0xff] }
 0x43f   :  { %1271 = vmatprep.mubr.f32.mxu0 %v11272_v13  ;;  %1342 = vmatprep.mubr.f32.mxu1 %v11272_v13 }
 0x440   :  { %8335 = vmatprep.subr.bf16.mxu0 %v8334_v22  ;;  %8399 = vmatprep.subr.bf16.mxu1 %v8398_v23  ;;  %v8354_v22 = vpack.c.bf16 %v1132_v14, %v1128_v12  ;;  %v8418_v23 = vpack.c.bf16 %v1134_v16, %v1130_v15  ;;  %v1161_v14 = vld [vmem:[#allocation14 + $0x690] sm:$0xff]  ;;  %v1168_v16 = vld [vmem:[#allocation14 + $0x6c8] sm:$0xff] }
 0x441   :  { %v1165_v15 = vld [vmem:[#allocation14 + $0x6b0] sm:$0xff] }
 0x442   :  { %8337 = vmatpush1.bf16.msra.mxu0 %v8336_v27  ;;  %8401 = vmatpush1.bf16.msra.mxu1 %v8400_v28  ;;  %v1140_v27 = vld [vmem:[#allocation14 + $0x5e8] sm:$0xff]  ;;  %v1138_v28 = vld [vmem:[#allocation14 + $0x5d8] sm:$0xff] }
 0x443   :  { %8339 = vmatprep.subr.bf16.mxu0 %v8338_v31  ;;  %8403 = vmatprep.subr.bf16.mxu1 %v8402_v32  ;;  %v8420_v31 = vpack.c.bf16 %v1133_v25, %v1129_v24  ;;  %v1135_v32 = vld [vmem:[#allocation14 + $0x5c0] sm:$0xff]  ;;  %v8358_v34 = vpack.c.bf16 %v1140_v27, %v1136_v26  ;;  %v8422_v35 = vpack.c.bf16 %v1142_v29, %v1138_v28  ;;  %v1169_v27 = vld [vmem:[#allocation14 + $0x6d0] sm:$0xff]  ;;  %v1176_v29 = vld [vmem:[#allocation14 + $0x708] sm:$0xff] }
 0x444   :  { %v8360_v42 = vpack.c.bf16 %v1139_v33, %v1135_v32  ;;  %v1171_v24 = vld [vmem:[#allocation14 + $0x6e0] sm:$0xff]  ;;  %v1173_v28 = vld [vmem:[#allocation14 + $0x6f0] sm:$0xff]  ;;  %v1182_v32 = vld [vmem:[#allocation14 + $0x738] sm:$0xff] }
 0x446   :  { %8341 = vmatpush1.bf16.msra.mxu0 %v8340_v39  ;;  %8405 = vmatpush1.bf16.msra.mxu1 %v8404_v40  ;;  %v1148_v39 = vld [vmem:[#allocation14 + $0x628] sm:$0xff]  ;;  %v1146_v40 = vld [vmem:[#allocation14 + $0x618] sm:$0xff] }
 0x447   :  { %8343 = vmatprep.subr.bf16.mxu0 %v8342_v43  ;;  %8407 = vmatprep.subr.bf16.mxu1 %v8406_v44  ;;  %v8424_v43 = vpack.c.bf16 %v1141_v37, %v1137_v36  ;;  %v1143_v44 = vld [vmem:[#allocation14 + $0x600] sm:$0xff]  ;;  %v8362_v46 = vpack.c.bf16 %v1148_v39, %v1144_v38  ;;  %v8426_v47 = vpack.c.bf16 %v1150_v41, %v1146_v40  ;;  %v1177_v39 = vld [vmem:[#allocation14 + $0x710] sm:$0xff]  ;;  %v1184_v41 = vld [vmem:[#allocation14 + $0x748] sm:$0xff] }
 0x448   :  { %v8364_v55 = vpack.c.bf16 %v1147_v45, %v1143_v44  ;;  %v1179_v36 = vld [vmem:[#allocation14 + $0x720] sm:$0xff]  ;;  %v1181_v40 = vld [vmem:[#allocation14 + $0x730] sm:$0xff]  ;;  %v1190_v44 = vld [vmem:[#allocation14 + $0x778] sm:$0xff] }
 0x44a   :  { %8345 = vmatpush1.bf16.msra.mxu0 %v8344_v51  ;;  %8409 = vmatpush1.bf16.msra.mxu1 %v8408_v52  ;;  %v1156_v51 = vld [vmem:[#allocation14 + $0x668] sm:$0xff]  ;;  %v1154_v52 = vld [vmem:[#allocation14 + $0x658] sm:$0xff] }
 0x44b   :  { %8347 = vmatprep.subr.bf16.mxu0 %v8346_v57  ;;  %8411 = vmatprep.subr.bf16.mxu1 %v8410_v59  ;;  %v8428_v57 = vpack.c.bf16 %v1149_v49, %v1145_v48  ;;  %v1151_v59 = vld [vmem:[#allocation14 + $0x640] sm:$0xff]  ;;  %v8366_v61 = vpack.c.bf16 %v1156_v51, %v1152_v50  ;;  %v8430_v62 = vpack.c.bf16 %v1158_v53, %v1154_v52  ;;  %v1185_v51 = vld [vmem:[#allocation14 + $0x750] sm:$0xff]  ;;  %v1192_v53 = vld [vmem:[#allocation14 + $0x788] sm:$0xff] }
 0x44c   :  { %v8368_v7 = vpack.c.bf16 %v1155_v60, %v1151_v59  ;;  %v1187_v48 = vld [vmem:[#allocation14 + $0x760] sm:$0xff]  ;;  %v1189_v52 = vld [vmem:[#allocation14 + $0x770] sm:$0xff]  ;;  %v1198_v59 = vld [vmem:[#allocation14 + $0x7b8] sm:$0xff] }
 0x44e   :  { %8349 = vmatpush1.bf16.msra.mxu0 %v8348_v4  ;;  %8413 = vmatpush1.bf16.msra.mxu1 %v8412_v5  ;;  %v1164_v4 = vld [vmem:[#allocation14 + $0x6a8] sm:$0xff]  ;;  %v1162_v5 = vld [vmem:[#allocation14 + $0x698] sm:$0xff] }
 0x44f   :  { %8351 = vmatprep.subr.bf16.mxu0 %v8350_v8  ;;  %8415 = vmatprep.subr.bf16.mxu1 %v8414_v9  ;;  %v8432_v8 = vpack.c.bf16 %v1157_v2, %v1153_v63  ;;  %v1159_v9 = vld [vmem:[#allocation14 + $0x680] sm:$0xff]  ;;  %v8370_v11 = vpack.c.bf16 %v1164_v4, %v1160_v3  ;;  %v8434_v12 = vpack.c.bf16 %v1166_v6, %v1162_v5  ;;  %v1193_v4 = vld [vmem:[#allocation14 + $0x790] sm:$0xff]  ;;  %v1200_v6 = vld [vmem:[#allocation14 + $0x7c8] sm:$0xff] }
 0x450   :  { %v8372_v21 = vpack.c.bf16 %v1163_v10, %v1159_v9  ;;  %v1195_v63 = vld [vmem:[#allocation14 + $0x7a0] sm:$0xff]  ;;  %v1197_v5 = vld [vmem:[#allocation14 + $0x7b0] sm:$0xff]  ;;  %v1206_v9 = vld [vmem:[#allocation14 + $0x7f8] sm:$0xff] }
 0x452   :  { %8353 = vmatpush1.bf16.msra.mxu0 %v8352_v17  ;;  %8417 = vmatpush1.bf16.msra.mxu1 %v8416_v19  ;;  %v1172_v17 = vld [vmem:[#allocation14 + $0x6e8] sm:$0xff]  ;;  %v1170_v19 = vld [vmem:[#allocation14 + $0x6d8] sm:$0xff] }
 0x453   :  { %8355 = vmatprep.subr.bf16.mxu0 %v8354_v22  ;;  %8419 = vmatprep.subr.bf16.mxu1 %v8418_v23  ;;  %v8436_v22 = vpack.c.bf16 %v1165_v15, %v1161_v14  ;;  %v1167_v23 = vld [vmem:[#allocation14 + $0x6c0] sm:$0xff]  ;;  %v8374_v25 = vpack.c.bf16 %v1172_v17, %v1168_v16  ;;  %v8438_v26 = vpack.c.bf16 %v1174_v20, %v1170_v19  ;;  %v1201_v17 = vld [vmem:[#allocation14 + $0x7d0] sm:$0xff]  ;;  %v1669_v20 = vld [vmem:[#allocation14 + $0x808] sm:$0xff] }
 0x454   :  { %v8376_v33 = vpack.c.bf16 %v1171_v24, %v1167_v23  ;;  %v1203_v16 = vld [vmem:[#allocation14 + $0x7e0] sm:$0xff]  ;;  %v1205_v19 = vld [vmem:[#allocation14 + $0x7f0] sm:$0xff] }
 0x455   :  { %v8456_v23 = vpack.c.bf16 %v1205_v19, %v1201_v17  ;;  %v1741_v17 = vld [vmem:[#allocation14 + $0xa48] sm:$0xff] }
 0x456   :  { %8357 = vmatpush1.bf16.msra.mxu0 %v8356_v30  ;;  %8421 = vmatpush1.bf16.msra.mxu1 %v8420_v31  ;;  %v1180_v30 = vld [vmem:[#allocation14 + $0x728] sm:$0xff]  ;;  %v1178_v31 = vld [vmem:[#allocation14 + $0x718] sm:$0xff] }
 0x457   :  { %8359 = vmatprep.subr.bf16.mxu0 %v8358_v34  ;;  %8423 = vmatprep.subr.bf16.mxu1 %v8422_v35  ;;  %v8440_v34 = vpack.c.bf16 %v1173_v28, %v1169_v27  ;;  %v1175_v35 = vld [vmem:[#allocation14 + $0x700] sm:$0xff]  ;;  %v8378_v37 = vpack.c.bf16 %v1180_v30, %v1176_v29  ;;  %v8442_v38 = vpack.c.bf16 %v1182_v32, %v1178_v31  ;;  %v1677_v27 = vld [vmem:[#allocation14 + $0x848] sm:$0xff] }
 0x458   :  { %v8380_v45 = vpack.c.bf16 %v1179_v36, %v1175_v35  ;;  %v1681_v28 = vld [vmem:[#allocation14 + $0x868] sm:$0xff]  ;;  %v1676_v31 = vld [vmem:[#allocation14 + $0x840] sm:$0xff] }
 0x459   :  { %v8462_v30 = vpack.c.bf16 %v1681_v28, %v1677_v27  ;;  %v1680_v32 = vld [vmem:[#allocation14 + $0x860] sm:$0xff]  ;;  %v1745_v19 = vld [vmem:[#allocation14 + $0xa68] sm:$0xff] }
 0x45a   :  { %8361 = vmatpush1.bf16.msra.mxu0 %v8360_v42  ;;  %8425 = vmatpush1.bf16.msra.mxu1 %v8424_v43  ;;  %v1188_v42 = vld [vmem:[#allocation14 + $0x768] sm:$0xff]  ;;  %v1186_v43 = vld [vmem:[#allocation14 + $0x758] sm:$0xff]  ;;  %v8464_v35 = vpack.c.bf16 %v1680_v32, %v1676_v31  ;;  %v1748_v28 = vld [vmem:[#allocation14 + $0xa80] sm:$0xff] }
 0x45b   :  { %8363 = vmatprep.subr.bf16.mxu0 %v8362_v46  ;;  %8427 = vmatprep.subr.bf16.mxu1 %v8426_v47  ;;  %v8444_v46 = vpack.c.bf16 %v1181_v40, %v1177_v39  ;;  %v1183_v47 = vld [vmem:[#allocation14 + $0x740] sm:$0xff]  ;;  %v8382_v49 = vpack.c.bf16 %v1188_v42, %v1184_v41  ;;  %v8446_v50 = vpack.c.bf16 %v1190_v44, %v1186_v43  ;;  %v1693_v39 = vld [vmem:[#allocation14 + $0x8c8] sm:$0xff] }
 0x45c   :  { %v8384_v60 = vpack.c.bf16 %v1187_v48, %v1183_v47  ;;  %v1697_v40 = vld [vmem:[#allocation14 + $0x8e8] sm:$0xff]  ;;  %v1692_v43 = vld [vmem:[#allocation14 + $0x8c0] sm:$0xff] }
 0x45d   :  { %v8470_v42 = vpack.c.bf16 %v1697_v40, %v1693_v39  ;;  %v1696_v44 = vld [vmem:[#allocation14 + $0x8e0] sm:$0xff]  ;;  %v1761_v31 = vld [vmem:[#allocation14 + $0xae8] sm:$0xff] }
 0x45e   :  { %8365 = vmatpush1.bf16.msra.mxu0 %v8364_v55  ;;  %8429 = vmatpush1.bf16.msra.mxu1 %v8428_v57  ;;  %v1196_v55 = vld [vmem:[#allocation14 + $0x7a8] sm:$0xff]  ;;  %v1194_v57 = vld [vmem:[#allocation14 + $0x798] sm:$0xff]  ;;  %v8472_v47 = vpack.c.bf16 %v1696_v44, %v1692_v43  ;;  %v1764_v40 = vld [vmem:[#allocation14 + $0xb00] sm:$0xff] }
 0x45f   :  { %8367 = vmatprep.subr.bf16.mxu0 %v8366_v61  ;;  %8431 = vmatprep.subr.bf16.mxu1 %v8430_v62  ;;  %v8448_v61 = vpack.c.bf16 %v1189_v52, %v1185_v51  ;;  %v1191_v62 = vld [vmem:[#allocation14 + $0x780] sm:$0xff]  ;;  %v8386_v2 = vpack.c.bf16 %v1196_v55, %v1192_v53  ;;  %v8450_v3 = vpack.c.bf16 %v1198_v59, %v1194_v57  ;;  %v1709_v51 = vld [vmem:[#allocation14 + $0x948] sm:$0xff] }
 0x460   :  { %v8388_v10 = vpack.c.bf16 %v1195_v63, %v1191_v62  ;;  %v1713_v52 = vld [vmem:[#allocation14 + $0x968] sm:$0xff]  ;;  %v1708_v57 = vld [vmem:[#allocation14 + $0x940] sm:$0xff] }
 0x461   :  { %v8478_v55 = vpack.c.bf16 %v1713_v52, %v1709_v51  ;;  %v1712_v59 = vld [vmem:[#allocation14 + $0x960] sm:$0xff]  ;;  %v1777_v43 = vld [vmem:[#allocation14 + $0xb68] sm:$0xff] }
 0x462   :  { %8369 = vmatpush1.bf16.msra.mxu0 %v8368_v7  ;;  %8433 = vmatpush1.bf16.msra.mxu1 %v8432_v8  ;;  %v1204_v7 = vld [vmem:[#allocation14 + $0x7e8] sm:$0xff]  ;;  %v1202_v8 = vld [vmem:[#allocation14 + $0x7d8] sm:$0xff]  ;;  %v8480_v62 = vpack.c.bf16 %v1712_v59, %v1708_v57  ;;  %v1780_v52 = vld [vmem:[#allocation14 + $0xb80] sm:$0xff] }
 0x463   :  { %8371 = vmatprep.subr.bf16.mxu0 %v8370_v11  ;;  %8435 = vmatprep.subr.bf16.mxu1 %v8434_v12  ;;  %v8452_v11 = vpack.c.bf16 %v1197_v5, %v1193_v4  ;;  %v1199_v12 = vld [vmem:[#allocation14 + $0x7c0] sm:$0xff]  ;;  %v8390_v14 = vpack.c.bf16 %v1204_v7, %v1200_v6  ;;  %v8454_v15 = vpack.c.bf16 %v1206_v9, %v1202_v8  ;;  %v1725_v4 = vld [vmem:[#allocation14 + $0x9c8] sm:$0xff] }
 0x464   :  { %v1729_v5 = vld [vmem:[#allocation14 + $0x9e8] sm:$0xff]  ;;  %v1724_v8 = vld [vmem:[#allocation14 + $0x9c0] sm:$0xff] }
 0x465   :  { %v8486_v7 = vpack.c.bf16 %v1729_v5, %v1725_v4  ;;  %v1728_v9 = vld [vmem:[#allocation14 + $0x9e0] sm:$0xff]  ;;  %v1793_v57 = vld [vmem:[#allocation14 + $0xbe8] sm:$0xff] }
 0x466   :  { %8373 = vmatpush1.bf16.msra.mxu0 %v8372_v21  ;;  %8437 = vmatpush1.bf16.msra.mxu1 %v8436_v22  ;;  %v1673_v21 = vld [vmem:[#allocation14 + $0x828] sm:$0xff]  ;;  %v8392_v22 = vpack.c.bf16 %v1203_v16, %v1199_v12  ;;  %v8488_v12 = vpack.c.bf16 %v1728_v9, %v1724_v8  ;;  %v1736_v16 = vld [vmem:[#allocation14 + $0xa20] sm:$0xff] }
 0x467   :  { %8375 = vmatprep.subr.bf16.mxu0 %v8374_v25  ;;  %8439 = vmatprep.subr.bf16.mxu1 %v8438_v26  ;;  %v8458_v24 = vpack.c.bf16 %v1673_v21, %v1669_v20  ;;  %v1668_v25 = vld [vmem:[#allocation14 + $0x800] sm:$0xff]  ;;  %v8494_v21 = vpack.c.bf16 %v1745_v19, %v1741_v17 }
 0x468   :  { %v1672_v26 = vld [vmem:[#allocation14 + $0x820] sm:$0xff] }
 0x469   :  { %v8460_v29 = vpack.c.bf16 %v1672_v26, %v1668_v25  ;;  %v1753_v25 = vld [vmem:[#allocation14 + $0xaa8] sm:$0xff]  ;;  %v2131_v8 = vld [vmem:[#allocation19] sm:$0xff] }
 0x46a   :  { %8377 = vmatpush1.bf16.msra.mxu0 %v8376_v33  ;;  %8441 = vmatpush1.bf16.msra.mxu1 %v8440_v34  ;;  %v1685_v33 = vld [vmem:[#allocation14 + $0x888] sm:$0xff]  ;;  %v2143_v17 = vld [vmem:[#allocation19 + $0x60] sm:$0xff] }
 0x46b   :  { %8379 = vmatprep.subr.bf16.mxu0 %v8378_v37  ;;  %8443 = vmatprep.subr.bf16.mxu1 %v8442_v38  ;;  %v1689_v34 = vld [vmem:[#allocation14 + $0x8a8] sm:$0xff]  ;;  %v1684_v37 = vld [vmem:[#allocation14 + $0x880] sm:$0xff] }
 0x46c   :  { %v8466_v36 = vpack.c.bf16 %v1689_v34, %v1685_v33  ;;  %v1688_v38 = vld [vmem:[#allocation14 + $0x8a0] sm:$0xff] }
 0x46d   :  { %v8468_v41 = vpack.c.bf16 %v1688_v38, %v1684_v37  ;;  %v1756_v34 = vld [vmem:[#allocation14 + $0xac0] sm:$0xff]  ;;  %v1769_v37 = vld [vmem:[#allocation14 + $0xb28] sm:$0xff] }
 0x46e   :  { %8381 = vmatpush1.bf16.msra.mxu0 %v8380_v45  ;;  %8445 = vmatpush1.bf16.msra.mxu1 %v8444_v46  ;;  %v1701_v45 = vld [vmem:[#allocation14 + $0x908] sm:$0xff] }
 0x46f   :  { %8383 = vmatprep.subr.bf16.mxu0 %v8382_v49  ;;  %8447 = vmatprep.subr.bf16.mxu1 %v8446_v50  ;;  %v1705_v46 = vld [vmem:[#allocation14 + $0x928] sm:$0xff]  ;;  %v1700_v49 = vld [vmem:[#allocation14 + $0x900] sm:$0xff] }
 0x470   :  { %v8474_v48 = vpack.c.bf16 %v1705_v46, %v1701_v45  ;;  %v1704_v50 = vld [vmem:[#allocation14 + $0x920] sm:$0xff] }
 0x471   :  { %v8476_v53 = vpack.c.bf16 %v1704_v50, %v1700_v49  ;;  %v1772_v46 = vld [vmem:[#allocation14 + $0xb40] sm:$0xff]  ;;  %v1785_v49 = vld [vmem:[#allocation14 + $0xba8] sm:$0xff] }
 0x472   :  { %8385 = vmatpush1.bf16.msra.mxu0 %v8384_v60  ;;  %8449 = vmatpush1.bf16.msra.mxu1 %v8448_v61  ;;  %v1717_v60 = vld [vmem:[#allocation14 + $0x988] sm:$0xff] }
 0x473   :  { %8387 = vmatprep.subr.bf16.mxu0 %v8386_v2  ;;  %8451 = vmatprep.subr.bf16.mxu1 %v8450_v3  ;;  %v1721_v61 = vld [vmem:[#allocation14 + $0x9a8] sm:$0xff]  ;;  %v1716_v2 = vld [vmem:[#allocation14 + $0x980] sm:$0xff] }
 0x474   :  { %v8482_v63 = vpack.c.bf16 %v1721_v61, %v1717_v60  ;;  %v1720_v3 = vld [vmem:[#allocation14 + $0x9a0] sm:$0xff] }
 0x475   :  { %v8484_v6 = vpack.c.bf16 %v1720_v3, %v1716_v2  ;;  %v1788_v61 = vld [vmem:[#allocation14 + $0xbc0] sm:$0xff] }
 0x476   :  { %8389 = vmatpush1.bf16.msra.mxu0 %v8388_v10  ;;  %8453 = vmatpush1.bf16.msra.mxu1 %v8452_v11  ;;  %v1733_v10 = vld [vmem:[#allocation14 + $0xa08] sm:$0xff] }
 0x477   :  { %8391 = vmatprep.subr.bf16.mxu0 %v8390_v14  ;;  %8455 = vmatprep.subr.bf16.mxu1 %v8454_v15  ;;  %v1737_v11 = vld [vmem:[#allocation14 + $0xa28] sm:$0xff]  ;;  %v1732_v15 = vld [vmem:[#allocation14 + $0xa00] sm:$0xff] }
 0x478   :  { %v8490_v14 = vpack.c.bf16 %v1737_v11, %v1733_v10  ;;  %v8492_v20 = vpack.c.bf16 %v1736_v16, %v1732_v15  ;;  %v2135_v10 = vld [vmem:[#allocation19 + $0x20] sm:$0xff]  ;;  %v2140_v11 = vld [vmem:[#allocation19 + $0x48] sm:$0xff] }
 0x479   :  { %v2139_v16 = vld [vmem:[#allocation19 + $0x40] sm:$0xff]  ;;  %v2148_v19 = vld [vmem:[#allocation19 + $0x88] sm:$0xff] }
 0x47a   :  { %8393 = vmatpush1.bf16.msra.mxu0 %v8392_v22  ;;  %8457 = vmatpush1.bf16.msra.mxu1 %v8456_v23  ;;  %v1740_v22 = vld [vmem:[#allocation14 + $0xa40] sm:$0xff] }
 0x47b   :  { %8459 = vmatprep.subr.bf16.mxu1 %v8458_v24  ;;  %v1744_v23 = vld [vmem:[#allocation14 + $0xa60] sm:$0xff]  ;;  %v1749_v24 = vld [vmem:[#allocation14 + $0xa88] sm:$0xff] }
 0x47c   :  { %v8496_v26 = vpack.c.bf16 %v1744_v23, %v1740_v22  ;;  %v8498_v27 = vpack.c.bf16 %v1753_v25, %v1749_v24  ;;  %v2147_v23 = vld [vmem:[#allocation19 + $0x80] sm:$0xff]  ;;  %v2156_v25 = vld [vmem:[#allocation19 + $0xc8] sm:$0xff] }
 0x47d   :  { %1272 = vmatmul.mubr.f32.vlgmr.msra.gmra.mrb[6].mxu0 %v11274_v18  ;;  %1343 = vmatmul.mubr.f32.vlgmr.msra.gmra.mrb[8].mxu1 %v11274_v18  ;;  %v2151_v24 = vld [vmem:[#allocation19 + $0xa0] sm:$0xff] }
 0x47e   :  { %8461 = vmatpush1.bf16.msra.mxu1 %v8460_v29  ;;  %1860 = vmatprep.mubr.f32.mxu1 %v11272_v13  ;;  %v1752_v29 = vld [vmem:[#allocation14 + $0xaa0] sm:$0xff] }
 0x47f   :  { %8463 = vmatprep.subr.bf16.mxu1 %v8462_v30  ;;  %1432 = vmatprep.mubr.f32.mxu0 %v10882_v1  ;;  %v1757_v30 = vld [vmem:[#allocation14 + $0xac8] sm:$0xff]  ;;  %v8500_v32 = vpack.c.bf16 %v1752_v29, %v1748_v28  ;;  %v2155_v29 = vld [vmem:[#allocation19 + $0xc0] sm:$0xff] }
 0x480   :  { %v8502_v33 = vpack.c.bf16 %v1761_v31, %v1757_v30  ;;  %v2159_v30 = vld [vmem:[#allocation19 + $0xe0] sm:$0xff]  ;;  %v2164_v31 = vld [vmem:[#allocation19 + $0x108] sm:$0xff] }
 0x482   :  { %8465 = vmatpush1.bf16.msra.mxu1 %v8464_v35  ;;  %v1760_v35 = vld [vmem:[#allocation14 + $0xae0] sm:$0xff] }
 0x483   :  { %8467 = vmatprep.subr.bf16.mxu1 %v8466_v36  ;;  %v1765_v36 = vld [vmem:[#allocation14 + $0xb08] sm:$0xff]  ;;  %v8504_v38 = vpack.c.bf16 %v1760_v35, %v1756_v34  ;;  %v2163_v35 = vld [vmem:[#allocation19 + $0x100] sm:$0xff] }
 0x484   :  { %v8506_v39 = vpack.c.bf16 %v1769_v37, %v1765_v36  ;;  %v2167_v36 = vld [vmem:[#allocation19 + $0x120] sm:$0xff]  ;;  %v2172_v37 = vld [vmem:[#allocation19 + $0x148] sm:$0xff] }
 0x486   :  { %8469 = vmatpush1.bf16.msra.mxu1 %v8468_v41  ;;  %v1768_v41 = vld [vmem:[#allocation14 + $0xb20] sm:$0xff] }
 0x487   :  { %8471 = vmatprep.subr.bf16.mxu1 %v8470_v42  ;;  %v1773_v42 = vld [vmem:[#allocation14 + $0xb48] sm:$0xff]  ;;  %v8508_v44 = vpack.c.bf16 %v1768_v41, %v1764_v40  ;;  %v2171_v41 = vld [vmem:[#allocation19 + $0x140] sm:$0xff] }
 0x488   :  { %v8510_v45 = vpack.c.bf16 %v1777_v43, %v1773_v42  ;;  %v2175_v42 = vld [vmem:[#allocation19 + $0x160] sm:$0xff]  ;;  %v2180_v43 = vld [vmem:[#allocation19 + $0x188] sm:$0xff] }
 0x48a   :  { %8473 = vmatpush1.bf16.msra.mxu1 %v8472_v47  ;;  %v1776_v47 = vld [vmem:[#allocation14 + $0xb60] sm:$0xff] }
 0x48b   :  { %8475 = vmatprep.subr.bf16.mxu1 %v8474_v48  ;;  %v1781_v48 = vld [vmem:[#allocation14 + $0xb88] sm:$0xff]  ;;  %v8512_v50 = vpack.c.bf16 %v1776_v47, %v1772_v46  ;;  %v2179_v47 = vld [vmem:[#allocation19 + $0x180] sm:$0xff] }
 0x48c   :  { %v8514_v51 = vpack.c.bf16 %v1785_v49, %v1781_v48  ;;  %v2183_v48 = vld [vmem:[#allocation19 + $0x1a0] sm:$0xff]  ;;  %v2188_v49 = vld [vmem:[#allocation19 + $0x1c8] sm:$0xff] }
 0x48e   :  { %8477 = vmatpush1.bf16.msra.mxu1 %v8476_v53  ;;  %v1784_v53 = vld [vmem:[#allocation14 + $0xba0] sm:$0xff] }
 0x48f   :  { %8479 = vmatprep.subr.bf16.mxu1 %v8478_v55  ;;  %v1789_v55 = vld [vmem:[#allocation14 + $0xbc8] sm:$0xff]  ;;  %v8516_v59 = vpack.c.bf16 %v1784_v53, %v1780_v52  ;;  %v2187_v53 = vld [vmem:[#allocation19 + $0x1c0] sm:$0xff] }
 0x490   :  { %v8518_v60 = vpack.c.bf16 %v1793_v57, %v1789_v55  ;;  %v2191_v55 = vld [vmem:[#allocation19 + $0x1e0] sm:$0xff]  ;;  %v2196_v57 = vld [vmem:[#allocation19 + $0x208] sm:$0xff] }
 0x492   :  { %8481 = vmatpush1.bf16.msra.mxu1 %v8480_v62  ;;  %v1792_v62 = vld [vmem:[#allocation14 + $0xbe0] sm:$0xff] }
 0x493   :  { %8483 = vmatprep.subr.bf16.mxu1 %v8482_v63  ;;  %v8520_v63 = vpack.c.bf16 %v1792_v62, %v1788_v61  ;;  %v2195_v62 = vld [vmem:[#allocation19 + $0x200] sm:$0xff] }
 0x496   :  { %8485 = vmatpush1.bf16.msra.mxu1 %v8484_v6  ;;  %v2132_v6 = vld [vmem:[#allocation19 + $0x8] sm:$0xff] }
 0x497   :  { %8487 = vmatprep.subr.bf16.mxu1 %v8486_v7  ;;  %v2136_v7 = vld [vmem:[#allocation19 + $0x28] sm:$0xff] }
 0x498   :  { %v8586_v9 = vpack.c.bf16 %v2136_v7, %v2132_v6  ;;  %v2204_v6 = vld [vmem:[#allocation19 + $0x248] sm:$0xff] }
 0x499   :  { %v2208_v7 = vld [vmem:[#allocation19 + $0x268] sm:$0xff] }
 0x49a   :  { %8489 = vmatpush1.bf16.msra.mxu1 %v8488_v12  ;;  %v2144_v12 = vld [vmem:[#allocation19 + $0x68] sm:$0xff] }
 0x49b   :  { %8491 = vmatprep.subr.bf16.mxu1 %v8490_v14  ;;  %v8588_v14 = vpack.c.bf16 %v2135_v10, %v2131_v8  ;;  %v8590_v15 = vpack.c.bf16 %v2144_v12, %v2140_v11  ;;  %v2203_v10 = vld [vmem:[#allocation19 + $0x240] sm:$0xff]  ;;  %v2212_v12 = vld [vmem:[#allocation19 + $0x288] sm:$0xff] }
 0x49c   :  { %v2207_v11 = vld [vmem:[#allocation19 + $0x260] sm:$0xff] }
 0x49e   :  { %8493 = vmatpush1.bf16.msra.mxu1 %v8492_v20  ;;  %v2152_v20 = vld [vmem:[#allocation19 + $0xa8] sm:$0xff] }
 0x49f   :  { %8495 = vmatprep.subr.bf16.mxu1 %v8494_v21  ;;  %v8592_v21 = vpack.c.bf16 %v2143_v17, %v2139_v16  ;;  %v8594_v22 = vpack.c.bf16 %v2152_v20, %v2148_v19  ;;  %v2211_v17 = vld [vmem:[#allocation19 + $0x280] sm:$0xff]  ;;  %v2220_v20 = vld [vmem:[#allocation19 + $0x2c8] sm:$0xff] }
 0x4a0   :  { %v2215_v19 = vld [vmem:[#allocation19 + $0x2a0] sm:$0xff] }
 0x4a2   :  { %8497 = vmatpush1.bf16.msra.mxu1 %v8496_v26  ;;  %v2160_v26 = vld [vmem:[#allocation19 + $0xe8] sm:$0xff] }
 0x4a3   :  { %8499 = vmatprep.subr.bf16.mxu1 %v8498_v27  ;;  %v8596_v27 = vpack.c.bf16 %v2151_v24, %v2147_v23  ;;  %v8598_v28 = vpack.c.bf16 %v2160_v26, %v2156_v25  ;;  %v2219_v24 = vld [vmem:[#allocation19 + $0x2c0] sm:$0xff] }
 0x4a4   :  { %v2223_v25 = vld [vmem:[#allocation19 + $0x2e0] sm:$0xff] }
 0x4a6   :  { %8501 = vmatpush1.bf16.msra.mxu1 %v8500_v32  ;;  %v2168_v32 = vld [vmem:[#allocation19 + $0x128] sm:$0xff] }
 0x4a7   :  { %8503 = vmatprep.subr.bf16.mxu1 %v8502_v33  ;;  %v8600_v33 = vpack.c.bf16 %v2159_v30, %v2155_v29  ;;  %v8602_v34 = vpack.c.bf16 %v2168_v32, %v2164_v31  ;;  %v2232_v29 = vld [vmem:[#allocation19 + $0x328] sm:$0xff] }
 0x4a8   :  { %v1350_v32 = vld [vmem:[#allocation16 + $0x8] sm:$0xff] }
 0x4aa   :  { %8505 = vmatpush1.bf16.msra.mxu1 %v8504_v38  ;;  %v2176_v38 = vld [vmem:[#allocation19 + $0x168] sm:$0xff] }
 0x4ab   :  { %8507 = vmatprep.subr.bf16.mxu1 %v8506_v39  ;;  %v8604_v39 = vpack.c.bf16 %v2167_v36, %v2163_v35  ;;  %v8606_v40 = vpack.c.bf16 %v2176_v38, %v2172_v37  ;;  %v2227_v35 = vld [vmem:[#allocation19 + $0x300] sm:$0xff]  ;;  %v2236_v37 = vld [vmem:[#allocation19 + $0x348] sm:$0xff] }
 0x4ac   :  { %v2231_v36 = vld [vmem:[#allocation19 + $0x320] sm:$0xff]  ;;  %v2240_v38 = vld [vmem:[#allocation19 + $0x368] sm:$0xff] }
 0x4ae   :  { %8509 = vmatpush1.bf16.msra.mxu1 %v8508_v44  ;;  %v2184_v44 = vld [vmem:[#allocation19 + $0x1a8] sm:$0xff] }
 0x4af   :  { %8511 = vmatprep.subr.bf16.mxu1 %v8510_v45  ;;  %v8608_v45 = vpack.c.bf16 %v2175_v42, %v2171_v41  ;;  %v8610_v46 = vpack.c.bf16 %v2184_v44, %v2180_v43  ;;  %v1675_v41 = vld [vmem:[#allocation14 + $0x838] sm:$0xff]  ;;  %v8638_v42 = vpack.c.bf16 %v2240_v38, %v2236_v37  ;;  %v1077_v43 = vld [vmem:[#allocation16] sm:$0xff] }
 0x4b0   :  { %v1743_v37 = vld [vmem:[#allocation14 + $0xa58] sm:$0xff] }
 0x4b1   :  { %v1747_v38 = vld [vmem:[#allocation14 + $0xa78] sm:$0xff] }
 0x4b2   :  { %8513 = vmatpush1.bf16.msra.mxu1 %v8512_v50  ;;  %v2192_v50 = vld [vmem:[#allocation19 + $0x1e8] sm:$0xff] }
 0x4b3   :  { %8515 = vmatprep.subr.bf16.mxu1 %v8514_v51  ;;  %v8612_v51 = vpack.c.bf16 %v2183_v48, %v2179_v47  ;;  %v8614_v52 = vpack.c.bf16 %v2192_v50, %v2188_v49  ;;  %v1683_v47 = vld [vmem:[#allocation14 + $0x878] sm:$0xff]  ;;  %v1678_v49 = vld [vmem:[#allocation14 + $0x850] sm:$0xff] }
 0x4b4   :  { %v1682_v50 = vld [vmem:[#allocation14 + $0x870] sm:$0xff] }
 0x4b6   :  { %8517 = vmatpush1.bf16.msra.mxu1 %v8516_v59  ;;  %v2200_v59 = vld [vmem:[#allocation19 + $0x228] sm:$0xff] }
 0x4b7   :  { %8519 = vmatprep.subr.bf16.mxu1 %v8518_v60  ;;  %v8616_v60 = vpack.c.bf16 %v2191_v55, %v2187_v53  ;;  %v8618_v61 = vpack.c.bf16 %v2200_v59, %v2196_v57  ;;  %v1686_v55 = vld [vmem:[#allocation14 + $0x890] sm:$0xff]  ;;  %v1699_v59 = vld [vmem:[#allocation14 + $0x8f8] sm:$0xff] }
 0x4b8   :  { %v1690_v57 = vld [vmem:[#allocation14 + $0x8b0] sm:$0xff] }
 0x4ba   :  { %8521 = vmatpush1.bf16.msra.mxu1 %v8520_v63  ;;  %v2199_v63 = vld [vmem:[#allocation19 + $0x220] sm:$0xff] }
 0x4bb   :  { %8587 = vmatprep.subr.bf16.mxu1 %v8586_v9  ;;  %v8620_v8 = vpack.c.bf16 %v2199_v63, %v2195_v62  ;;  %v8622_v9 = vpack.c.bf16 %v2208_v7, %v2204_v6  ;;  %v1694_v62 = vld [vmem:[#allocation14 + $0x8d0] sm:$0xff]  ;;  %v1703_v6 = vld [vmem:[#allocation14 + $0x918] sm:$0xff] }
 0x4bc   :  { %v1698_v63 = vld [vmem:[#allocation14 + $0x8f0] sm:$0xff]  ;;  %v1707_v7 = vld [vmem:[#allocation14 + $0x938] sm:$0xff] }
 0x4bd   :  { %1861 = vmatmul.mubr.f32.vlgmr.msra.gmra.mrb[10].mxu1 %v11274_v18 }
 0x4be   :  { %8589 = vmatpush1.bf16.msra.mxu1 %v8588_v14  ;;  %v2216_v14 = vld [vmem:[#allocation19 + $0x2a8] sm:$0xff] }
 0x4bf   :  { %8591 = vmatprep.subr.bf16.mxu1 %v8590_v15  ;;  %v8624_v15 = vpack.c.bf16 %v2207_v11, %v2203_v10  ;;  %v8626_v16 = vpack.c.bf16 %v2216_v14, %v2212_v12  ;;  %v1706_v10 = vld [vmem:[#allocation14 + $0x930] sm:$0xff]  ;;  %v1711_v11 = vld [vmem:[#allocation14 + $0x958] sm:$0xff] }
 0x4c0   :  { %v1715_v12 = vld [vmem:[#allocation14 + $0x978] sm:$0xff] }
 0x4c2   :  { %8593 = vmatpush1.bf16.msra.mxu1 %v8592_v21  ;;  %v2224_v21 = vld [vmem:[#allocation19 + $0x2e8] sm:$0xff] }
 0x4c3   :  { %8595 = vmatprep.subr.bf16.mxu1 %v8594_v22  ;;  %v8628_v22 = vpack.c.bf16 %v2215_v19, %v2211_v17  ;;  %v8630_v23 = vpack.c.bf16 %v2224_v21, %v2220_v20  ;;  %v1714_v17 = vld [vmem:[#allocation14 + $0x970] sm:$0xff]  ;;  %v1719_v19 = vld [vmem:[#allocation14 + $0x998] sm:$0xff] }
 0x4c4   :  { %v1723_v20 = vld [vmem:[#allocation14 + $0x9b8] sm:$0xff] }
 0x4c6   :  { %8597 = vmatpush1.bf16.msra.mxu1 %v8596_v27 }
 0x4c7   :  { %8599 = vmatprep.subr.bf16.mxu1 %v8598_v28  ;;  %v2228_v28 = vld [vmem:[#allocation19 + $0x308] sm:$0xff] }
 0x4ca   :  { %8601 = vmatpush1.bf16.msra.mxu1 %v8600_v33  ;;  %v8632_v33 = vpack.c.bf16 %v2223_v25, %v2219_v24  ;;  %v1722_v24 = vld [vmem:[#allocation14 + $0x9b0] sm:$0xff]  ;;  %v1727_v25 = vld [vmem:[#allocation14 + $0x9d8] sm:$0xff] }
 0x4cb   :  { %8603 = vmatprep.subr.bf16.mxu1 %v8602_v34  ;;  %v8634_v34 = vpack.c.bf16 %v2232_v29, %v2228_v28  ;;  %v1726_v29 = vld [vmem:[#allocation14 + $0x9d0] sm:$0xff] }
 0x4ce   :  { %8605 = vmatpush1.bf16.msra.mxu1 %v8604_v39  ;;  %v8636_v39 = vpack.c.bf16 %v2231_v36, %v2227_v35  ;;  %v1734_v35 = vld [vmem:[#allocation14 + $0xa10] sm:$0xff] }
 0x4cf   :  { %8607 = vmatprep.subr.bf16.mxu1 %v8606_v40  ;;  %v1671_v40 = vld [vmem:[#allocation14 + $0x818] sm:$0xff]  ;;  %v1738_v36 = vld [vmem:[#allocation14 + $0xa30] sm:$0xff] }
 0x4d0   :  { %v8522_v44 = vpack.c.bf16 %v1675_v41, %v1671_v40  ;;  %v8558_v40 = vpack.c.bf16 %v1747_v38, %v1743_v37  ;;  %v1742_v41 = vld [vmem:[#allocation14 + $0xa50] sm:$0xff]  ;;  %v2255_v37 = vld [vmem:[#allocation19 + $0x3e0] sm:$0xff] }
 0x4d2   :  { %8609 = vmatpush1.bf16.msra.mxu1 %v8608_v45  ;;  %v1670_v45 = vld [vmem:[#allocation14 + $0x810] sm:$0xff] }
 0x4d3   :  { %8611 = vmatprep.subr.bf16.mxu1 %v8610_v46  ;;  %v1679_v46 = vld [vmem:[#allocation14 + $0x858] sm:$0xff] }
 0x4d4   :  { %v8526_v48 = vpack.c.bf16 %v1683_v47, %v1679_v46  ;;  %v1750_v46 = vld [vmem:[#allocation14 + $0xa90] sm:$0xff] }
 0x4d5   :  { %v1754_v47 = vld [vmem:[#allocation14 + $0xab0] sm:$0xff] }
 0x4d6   :  { %8613 = vmatpush1.bf16.msra.mxu1 %v8612_v51  ;;  %v1691_v51 = vld [vmem:[#allocation14 + $0x8b8] sm:$0xff] }
 0x4d7   :  { %8615 = vmatprep.subr.bf16.mxu1 %v8614_v52  ;;  %v8528_v52 = vpack.c.bf16 %v1682_v50, %v1678_v49  ;;  %v8564_v49 = vpack.c.bf16 %v1754_v47, %v1750_v46  ;;  %v2142_v46 = vld [vmem:[#allocation19 + $0x58] sm:$0xff] }
 0x4d8   :  { %v2146_v47 = vld [vmem:[#allocation19 + $0x78] sm:$0xff] }
 0x4da   :  { %8617 = vmatpush1.bf16.msra.mxu1 %v8616_v60  ;;  %v8532_v60 = vpack.c.bf16 %v1690_v57, %v1686_v55 }
 0x4db   :  { %8619 = vmatprep.subr.bf16.mxu1 %v8618_v61 }
 0x4de   :  { %8621 = vmatpush1.bf16.msra.mxu1 %v8620_v8  ;;  %v8536_v8 = vpack.c.bf16 %v1698_v63, %v1694_v62 }
 0x4df   :  { %8623 = vmatprep.subr.bf16.mxu1 %v8622_v9  ;;  %v8538_v9 = vpack.c.bf16 %v1707_v7, %v1703_v6  ;;  %v1774_v6 = vld [vmem:[#allocation14 + $0xb50] sm:$0xff] }
 0x4e0   :  { %v1778_v7 = vld [vmem:[#allocation14 + $0xb70] sm:$0xff] }
 0x4e2   :  { %8625 = vmatpush1.bf16.msra.mxu1 %v8624_v15  ;;  %v8542_v15 = vpack.c.bf16 %v1715_v12, %v1711_v11  ;;  %v8576_v11 = vpack.c.bf16 %v1778_v7, %v1774_v6  ;;  %v2259_v6 = vld [vmem:[#allocation19 + $0x400] sm:$0xff] }
 0x4e3   :  { %8627 = vmatprep.subr.bf16.mxu1 %v8626_v16  ;;  %v1710_v16 = vld [vmem:[#allocation14 + $0x950] sm:$0xff]  ;;  %v2263_v7 = vld [vmem:[#allocation19 + $0x420] sm:$0xff] }
 0x4e4   :  { %v8544_v21 = vpack.c.bf16 %v1714_v17, %v1710_v16  ;;  %v1791_v16 = vld [vmem:[#allocation14 + $0xbd8] sm:$0xff] }
 0x4e5   :  { %v1795_v17 = vld [vmem:[#allocation14 + $0xbf8] sm:$0xff] }
 0x4e6   :  { %8629 = vmatpush1.bf16.msra.mxu1 %v8628_v22  ;;  %v8546_v22 = vpack.c.bf16 %v1723_v20, %v1719_v19  ;;  %v8582_v20 = vpack.c.bf16 %v1795_v17, %v1791_v16  ;;  %v8652_v16 = vpack.c.bf16 %v2263_v7, %v2259_v6  ;;  %v2194_v6 = vld [vmem:[#allocation19 + $0x1f8] sm:$0xff] }
 0x4e7   :  { %8631 = vmatprep.subr.bf16.mxu1 %v8630_v23  ;;  %v1718_v23 = vld [vmem:[#allocation14 + $0x990] sm:$0xff] }
 0x4ea   :  { %8633 = vmatpush1.bf16.msra.mxu1 %v8632_v33 }
 0x4eb   :  { %8635 = vmatprep.subr.bf16.mxu1 %v8634_v34 }
 0x4ee   :  { %8637 = vmatpush1.bf16.msra.mxu1 %v8636_v39  ;;  %v8556_v39 = vpack.c.bf16 %v1738_v36, %v1734_v35  ;;  %v2251_v36 = vld [vmem:[#allocation19 + $0x3c0] sm:$0xff] }
 0x4ef   :  { %8639 = vmatprep.subr.bf16.mxu1 %v8638_v42  ;;  %v1746_v42 = vld [vmem:[#allocation14 + $0xa70] sm:$0xff]  ;;  %v8648_v38 = vpack.c.bf16 %v2255_v37, %v2251_v36  ;;  %v2284_v37 = vld [vmem:[#allocation19 + $0x4c8] sm:$0xff] }
 0x4f0   :  { %v2169_v36 = vld [vmem:[#allocation19 + $0x130] sm:$0xff] }
 0x510   :  { %v11287_v2 = vpop.f32.mrb[4].mxu0  ;;  %v11289_v3 = vpop.f32.mrb[6].mxu1 }
 0x511   :  { %v11291_v4 = vpop.f32.mrb[5].mxu0  ;;  %v11293_v5 = vpop.f32.mrb[7].mxu1 }
 0x550   :  { %v1273_v26 = vpop.f32.mrb[6].mxu0  ;;  %v1344_v27 = vpop.f32.mrb[8].mxu1 }
 0x551   :  { %v1275_v30 = vpop.f32.mrb[7].mxu0  ;;  %v1346_v31 = vpop.f32.mrb[9].mxu1 }
 0x552   :  { %7735 = vmatprep.subr.msk.mxu0 %vm1355_vm3, %v1275_v30  ;;  %v1730_v30 = vld [vmem:[#allocation14 + $0x9f0] sm:$0xff] }
 0x553   :  { %7736 = vmatpush1.msk.msra.mxu0 %vm1355_vm3, %v1273_v26  ;;  %v1731_v26 = vld [vmem:[#allocation14 + $0x9f8] sm:$0xff]  ;;  %v8552_v33 = vpack.c.bf16 %v1730_v30, %v1726_v29  ;;  %v2248_v29 = vld [vmem:[#allocation19 + $0x3a8] sm:$0xff] }
 0x554   :  { %7737 = vmatmul.mubr.msk.f32.vlgmr.msra.gmra.mrb[8].mxu0 %vm1351_vm4, %v1350_v32  ;;  %7738 = vmatprep.subr.msk.mxu0 %vm1355_vm3, %v1346_v31  ;;  %v8550_v28 = vpack.c.bf16 %v1731_v26, %v1727_v25  ;;  %v1735_v31 = vld [vmem:[#allocation14 + $0xa18] sm:$0xff] }
 0x555   :  { %7739 = vmatpush1.msk.msra.mxu0 %vm1355_vm3, %v1344_v27  ;;  %1503 = vmatprep.mubr.f32.mxu0 %v10882_v1  ;;  %v8548_v27 = vpack.c.bf16 %v1722_v24, %v1718_v23  ;;  %v1939_v24 = vld [vmem:[#allocation16 + $0x10] sm:$0xff]  ;;  %v2235_v25 = vld [vmem:[#allocation19 + $0x340] sm:$0xff] }
 0x556   :  { %7741 = vmatprep.subr.msk.mxu0 %vm1355_vm3, %v11291_v4  ;;  %v1674_v4 = vld [vmem:[#allocation14 + $0x830] sm:$0xff]  ;;  %v2239_v26 = vld [vmem:[#allocation19 + $0x360] sm:$0xff] }
 0x558   :  { %7740 = vmatmul.mubr.msk.f32.vlgmr.msra.gmra.mrb[10].mxu0 %vm1351_vm4, %v1350_v32  ;;  %v1739_v32 = vld [vmem:[#allocation14 + $0xa38] sm:$0xff] }
 0x559   :  { %7742 = vmatpush1.msk.msra.mxu0 %vm1355_vm3, %v11287_v2  ;;  %1589 = vmatprep.mubr.f32.mxu0 %v10882_v1  ;;  %v8524_v2 = vpack.c.bf16 %v1674_v4, %v1670_v45  ;;  %v8554_v34 = vpack.c.bf16 %v1739_v32, %v1735_v31  ;;  %v8560_v45 = vpack.c.bf16 %v1746_v42, %v1742_v41  ;;  %v2243_v31 = vld [vmem:[#allocation19 + $0x380] sm:$0xff]  ;;  %v2134_v42 = vld [vmem:[#allocation19 + $0x18] sm:$0xff] }
 0x55a   :  { %7744 = vmatprep.subr.msk.mxu0 %vm1355_vm3, %v11293_v5  ;;  %v1687_v5 = vld [vmem:[#allocation14 + $0x898] sm:$0xff] }
 0x55b   :  { %v8530_v53 = vpack.c.bf16 %v1691_v51, %v1687_v5  ;;  %v1758_v5 = vld [vmem:[#allocation14 + $0xad0] sm:$0xff]  ;;  %v2247_v32 = vld [vmem:[#allocation19 + $0x3a0] sm:$0xff] }
 0x55c   :  { %7743 = vmatmul.mubr.msk.f32.vlgmr.msra.gmra.mrb[8].mxu0 %vm1351_vm4, %v1077_v43  ;;  %v1762_v51 = vld [vmem:[#allocation14 + $0xaf0] sm:$0xff] }
 0x55d   :  { %7745 = vmatpush1.msk.msra.mxu0 %vm1355_vm3, %v11289_v3  ;;  %1660 = vmatprep.mubr.f32.mxu0 %v10882_v1  ;;  %v1695_v3 = vld [vmem:[#allocation14 + $0x8d8] sm:$0xff]  ;;  %v8568_v55 = vpack.c.bf16 %v1762_v51, %v1758_v5 }
 0x55e   :  { %8523 = vmatprep.subr.bf16.mxu0 %v8522_v44  ;;  %v8534_v61 = vpack.c.bf16 %v1699_v59, %v1695_v3  ;;  %v1755_v44 = vld [vmem:[#allocation14 + $0xab8] sm:$0xff]  ;;  %v1766_v3 = vld [vmem:[#allocation14 + $0xb10] sm:$0xff] }
 0x55f   :  { %v1770_v59 = vld [vmem:[#allocation14 + $0xb30] sm:$0xff] }
 0x560   :  { %7746 = vmatmul.mubr.msk.f32.vlgmr.msra.gmra.mrb[10].mxu0 %vm1351_vm4, %v1077_v43  ;;  %v1751_v43 = vld [vmem:[#allocation14 + $0xa98] sm:$0xff]  ;;  %v8572_v62 = vpack.c.bf16 %v1770_v59, %v1766_v3 }
 0x561   :  { %8525 = vmatpush1.bf16.msra.mxu0 %v8524_v2  ;;  %1931 = vmatprep.mubr.f32.mxu0 %v11272_v13  ;;  %v1702_v13 = vld [vmem:[#allocation14 + $0x910] sm:$0xff]  ;;  %v8562_v4 = vpack.c.bf16 %v1755_v44, %v1751_v43  ;;  %v1759_v2 = vld [vmem:[#allocation14 + $0xad8] sm:$0xff] }
 0x562   :  { %8527 = vmatprep.subr.bf16.mxu0 %v8526_v48  ;;  %v8540_v14 = vpack.c.bf16 %v1706_v10, %v1702_v13  ;;  %v1763_v48 = vld [vmem:[#allocation14 + $0xaf8] sm:$0xff] }
 0x563   :  { %v8566_v50 = vpack.c.bf16 %v1763_v48, %v1759_v2  ;;  %v2138_v43 = vld [vmem:[#allocation19 + $0x38] sm:$0xff] }
 0x564   :  { %v11321_v44 = vld [vmem:[#allocation17] sm:$0xf]  ;;  %v8714_v48 = vpack.c.bf16 %v2138_v43, %v2134_v42  ;;  %v2173_v43 = vld [vmem:[#allocation19 + $0x150] sm:$0xff] }
 0x565   :  { %8529 = vmatpush1.bf16.msra.mxu0 %v8528_v52  ;;  %v1767_v52 = vld [vmem:[#allocation14 + $0xb18] sm:$0xff]  ;;  %v2110_v51 = vrot.slane %v11321_v44, %v11268_v58 }
 0x566   :  { %8531 = vmatprep.subr.bf16.mxu0 %v8530_v53  ;;  %v1771_v53 = vld [vmem:[#allocation14 + $0xb38] sm:$0xff] }
 0x567   :  { %v8570_v57 = vpack.c.bf16 %v1771_v53, %v1767_v52  ;;  %v8718_v52 = vpack.c.bf16 %v2146_v47, %v2142_v46  ;;  %v2141_v53 = vld [vmem:[#allocation19 + $0x50] sm:$0xff]  ;;  %v2150_v3 = vld [vmem:[#allocation19 + $0x98] sm:$0xff]  ;;  %v2287_v46 = vld [vmem:[#allocation19 + $0x4e0] sm:$0xff] }
 0x568   :  { %v2154_v59 = vld [vmem:[#allocation19 + $0xb8] sm:$0xff] }
 0x569   :  { %8533 = vmatpush1.bf16.msra.mxu0 %v8532_v60  ;;  %v1775_v60 = vld [vmem:[#allocation14 + $0xb58] sm:$0xff] }
 0x56a   :  { %8535 = vmatprep.subr.bf16.mxu0 %v8534_v61  ;;  %v1779_v61 = vld [vmem:[#allocation14 + $0xb78] sm:$0xff] }
 0x56b   :  { %v8574_v63 = vpack.c.bf16 %v1779_v61, %v1775_v60 }
 0x56d   :  { %8537 = vmatpush1.bf16.msra.mxu0 %v8536_v8  ;;  %v1783_v8 = vld [vmem:[#allocation14 + $0xb98] sm:$0xff] }
 0x56e   :  { %8539 = vmatprep.subr.bf16.mxu0 %v8538_v9  ;;  %v1787_v9 = vld [vmem:[#allocation14 + $0xbb8] sm:$0xff] }
 0x56f   :  { %v8578_v12 = vpack.c.bf16 %v1787_v9, %v1783_v8  ;;  %v2153_v9 = vld [vmem:[#allocation19 + $0xb0] sm:$0xff] }
 0x571   :  { %8541 = vmatpush1.bf16.msra.mxu0 %v8540_v14  ;;  %v1782_v14 = vld [vmem:[#allocation14 + $0xb90] sm:$0xff] }
 0x572   :  { %8543 = vmatprep.subr.bf16.mxu0 %v8542_v15  ;;  %v1786_v15 = vld [vmem:[#allocation14 + $0xbb0] sm:$0xff] }
 0x573   :  { %v8580_v19 = vpack.c.bf16 %v1786_v15, %v1782_v14  ;;  %v2162_v14 = vld [vmem:[#allocation19 + $0xf8] sm:$0xff] }
 0x575   :  { %8545 = vmatpush1.bf16.msra.mxu0 %v8544_v21  ;;  %v1790_v21 = vld [vmem:[#allocation14 + $0xbd0] sm:$0xff] }
 0x576   :  { %8547 = vmatprep.subr.bf16.mxu0 %v8546_v22  ;;  %v1794_v22 = vld [vmem:[#allocation14 + $0xbf0] sm:$0xff] }
 0x577   :  { %v8584_v23 = vpack.c.bf16 %v1794_v22, %v1790_v21  ;;  %v2267_v22 = vld [vmem:[#allocation19 + $0x440] sm:$0xff] }
 0x579   :  { %8549 = vmatpush1.bf16.msra.mxu0 %v8548_v27  ;;  %v8640_v27 = vpack.c.bf16 %v2239_v26, %v2235_v25  ;;  %v2161_v25 = vld [vmem:[#allocation19 + $0xf0] sm:$0xff]  ;;  %v2276_v26 = vld [vmem:[#allocation19 + $0x488] sm:$0xff] }
 0x57a   :  { %8551 = vmatprep.subr.bf16.mxu0 %v8550_v28  ;;  %v2244_v28 = vld [vmem:[#allocation19 + $0x388] sm:$0xff] }
 0x57b   :  { %8641 = vmatpush1.bf16.msra.mxu1 %v8640_v27  ;;  %v8642_v30 = vpack.c.bf16 %v2248_v29, %v2244_v28  ;;  %v2280_v27 = vld [vmem:[#allocation19 + $0x4a8] sm:$0xff]  ;;  %v2166_v28 = vld [vmem:[#allocation19 + $0x118] sm:$0xff] }
 0x57c   :  { %v2170_v29 = vld [vmem:[#allocation19 + $0x138] sm:$0xff] }
 0x57d   :  { %8553 = vmatpush1.bf16.msra.mxu0 %v8552_v33  ;;  %v8644_v33 = vpack.c.bf16 %v2247_v32, %v2243_v31  ;;  %8643 = vmatprep.subr.bf16.mxu1 %v8642_v30  ;;  %v2165_v32 = vld [vmem:[#allocation19 + $0x110] sm:$0xff] }
 0x57e   :  { %8555 = vmatprep.subr.bf16.mxu0 %v8554_v34  ;;  %v2256_v34 = vld [vmem:[#allocation19 + $0x3e8] sm:$0xff]  ;;  %v8732_v42 = vpack.c.bf16 %v2169_v36, %v2165_v32  ;;  %v2206_v32 = vld [vmem:[#allocation19 + $0x258] sm:$0xff] }
 0x57f   :  { %8645 = vmatpush1.bf16.msra.mxu1 %v8644_v33  ;;  %v8658_v33 = vpack.c.bf16 %v2280_v27, %v2276_v26  ;;  %v2307_v26 = vld [vmem:[#allocation19 + $0x580] sm:$0xff] }
 0x580   :  { %v2311_v27 = vld [vmem:[#allocation19 + $0x5a0] sm:$0xff] }
 0x581   :  { %8557 = vmatpush1.bf16.msra.mxu0 %v8556_v39  ;;  %v2260_v39 = vld [vmem:[#allocation19 + $0x408] sm:$0xff] }
 0x582   :  { %8559 = vmatprep.subr.bf16.mxu0 %v8558_v40  ;;  %v2264_v40 = vld [vmem:[#allocation19 + $0x428] sm:$0xff] }
 0x583   :  { %v8650_v41 = vpack.c.bf16 %v2264_v40, %v2260_v39  ;;  %v2174_v39 = vld [vmem:[#allocation19 + $0x158] sm:$0xff] }
 0x584   :  { %v2178_v40 = vld [vmem:[#allocation19 + $0x178] sm:$0xff] }
 0x585   :  { %8561 = vmatpush1.bf16.msra.mxu0 %v8560_v45  ;;  %v2133_v45 = vld [vmem:[#allocation19 + $0x10] sm:$0xff]  ;;  %v8734_v47 = vpack.c.bf16 %v2178_v40, %v2174_v39 }
 0x586   :  { %8563 = vmatprep.subr.bf16.mxu0 %v8562_v4  ;;  %v2137_v4 = vld [vmem:[#allocation19 + $0x30] sm:$0xff] }
 0x587   :  { %v8716_v5 = vpack.c.bf16 %v2137_v4, %v2133_v45  ;;  %v2283_v4 = vld [vmem:[#allocation19 + $0x4c0] sm:$0xff]  ;;  %v2209_v40 = vld [vmem:[#allocation19 + $0x270] sm:$0xff] }
 0x589   :  { %8565 = vmatpush1.bf16.msra.mxu0 %v8564_v49 }
 0x58a   :  { %8567 = vmatprep.subr.bf16.mxu0 %v8566_v50  ;;  %v2106_v50 = vrot.slane %v11321_v44, %v11265_v56 }
 0x58d   :  { %8569 = vmatpush1.bf16.msra.mxu0 %v8568_v55  ;;  %v2145_v55 = vld [vmem:[#allocation19 + $0x70] sm:$0xff] }
 0x58e   :  { %8571 = vmatprep.subr.bf16.mxu0 %v8570_v57 }
 0x590   :  { %v1862_v13 = vpop.f32.mrb[10].mxu1 }
 0x591   :  { %8573 = vmatpush1.bf16.msra.mxu0 %v8572_v62  ;;  %v1864_v10 = vpop.f32.mrb[11].mxu1  ;;  %v8720_v62 = vpack.c.bf16 %v2145_v55, %v2141_v53  ;;  %v2181_v53 = vld [vmem:[#allocation19 + $0x190] sm:$0xff] }
 0x592   :  { %8575 = vmatprep.subr.bf16.mxu0 %v8574_v63  ;;  %v2149_v63 = vld [vmem:[#allocation19 + $0x90] sm:$0xff] }
 0x595   :  { %8577 = vmatpush1.bf16.msra.mxu0 %v8576_v11  ;;  %v8722_v11 = vpack.c.bf16 %v2154_v59, %v2150_v3  ;;  %v2295_v3 = vld [vmem:[#allocation19 + $0x520] sm:$0xff] }
 0x596   :  { %8579 = vmatprep.subr.bf16.mxu0 %v8578_v12  ;;  %v2158_v12 = vld [vmem:[#allocation19 + $0xd8] sm:$0xff] }
 0x599   :  { %8581 = vmatpush1.bf16.msra.mxu0 %v8580_v19  ;;  %v8724_v19 = vpack.c.bf16 %v2153_v9, %v2149_v63  ;;  %v2190_v63 = vld [vmem:[#allocation19 + $0x1d8] sm:$0xff]  ;;  %v2189_v9 = vld [vmem:[#allocation19 + $0x1d0] sm:$0xff] }
 0x59a   :  { %8583 = vmatprep.subr.bf16.mxu0 %v8582_v20  ;;  %v2157_v20 = vld [vmem:[#allocation19 + $0xd0] sm:$0xff] }
 0x59b   :  { %v8728_v31 = vpack.c.bf16 %v2161_v25, %v2157_v20  ;;  %v2198_v20 = vld [vmem:[#allocation19 + $0x218] sm:$0xff] }
 0x59d   :  { %8585 = vmatpush1.bf16.msra.mxu0 %v8584_v23  ;;  %v2271_v23 = vld [vmem:[#allocation19 + $0x460] sm:$0xff] }
 0x59e   :  { %7747 = vmatprep.subr.msk.mxu0 %vm1355_vm3, %v1864_v10  ;;  %v2272_v10 = vld [vmem:[#allocation19 + $0x468] sm:$0xff]  ;;  %v8656_v30 = vpack.c.bf16 %v2271_v23, %v2267_v22 }
 0x5a0   :  { %1932 = vmatmul.mubr.f32.vlgmr.msra.gmra.mrb[12].mxu0 %v11274_v18  ;;  %v2252_v18 = vld [vmem:[#allocation19 + $0x3c8] sm:$0xff] }
 0x5a1   :  { %7748 = vmatpush1.msk.msra.mxu0 %vm1355_vm3, %v1862_v13  ;;  %2019 = vmatprep.mubr.f32.mxu0 %v10882_v1  ;;  %v8646_v35 = vpack.c.bf16 %v2256_v34, %v2252_v18  ;;  %v2268_v13 = vld [vmem:[#allocation19 + $0x448] sm:$0xff]  ;;  %v2275_v18 = vld [vmem:[#allocation19 + $0x480] sm:$0xff] }
 0x5a2   :  { %v8654_v21 = vpack.c.bf16 %v2272_v10, %v2268_v13  ;;  %v2279_v34 = vld [vmem:[#allocation19 + $0x4a0] sm:$0xff] }
 0x5a3   :  { %8647 = vmatprep.subr.bf16.mxu1 %v8646_v35  ;;  %v8730_v35 = vpack.c.bf16 %v2170_v29, %v2166_v28  ;;  %v2299_v10 = vld [vmem:[#allocation19 + $0x540] sm:$0xff]  ;;  %v2201_v29 = vld [vmem:[#allocation19 + $0x230] sm:$0xff] }
 0x5a4   :  { %7749 = vmatmul.mubr.msk.f32.vlgmr.msra.gmra.mrb[8].mxu0 %vm1351_vm4, %v1939_v24  ;;  %8649 = vmatpush1.bf16.msra.mxu1 %v8648_v38  ;;  %v2288_v38 = vld [vmem:[#allocation19 + $0x4e8] sm:$0xff] }
 0x5a5   :  { %2090 = vmatprep.mubr.f32.mxu0 %v10882_v1  ;;  %8651 = vmatprep.subr.bf16.mxu1 %v8650_v41  ;;  %v8660_v41 = vpack.c.bf16 %v2279_v34, %v2275_v18  ;;  %v8662_v45 = vpack.c.bf16 %v2288_v38, %v2284_v37  ;;  %v8676_v18 = vpack.c.bf16 %v2311_v27, %v2307_v26  ;;  %v2315_v37 = vld [vmem:[#allocation19 + $0x5c0] sm:$0xff] }
 0x5a6   :  { %v2319_v38 = vld [vmem:[#allocation19 + $0x5e0] sm:$0xff] }
 0x673   :  { %v1933_v2 = vpop.f32.mrb[12].mxu0 }
 0x674   :  { %v1935_v49 = vpop.f32.mrb[13].mxu0 }
 0x675   :  { %7750 = vmatprep.subr.msk.mxu0 %vm1355_vm3, %v1935_v49  ;;  %v2296_v49 = vld [vmem:[#allocation19 + $0x528] sm:$0xff] }
 0x676   :  { %7751 = vmatpush1.msk.msra.mxu0 %vm1355_vm3, %v1933_v2  ;;  %v2177_v2 = vld [vmem:[#allocation19 + $0x170] sm:$0xff] }
 0x677   :  { %v2021_v57 = vpop.f32.mrb[8].mxu0  ;;  %7752 = vmatmul.mubr.msk.f32.vlgmr.msra.gmra.mrb[10].mxu0 %vm1351_vm4, %v1939_v24  ;;  %8715 = vmatprep.subr.bf16.mxu0 %v8714_v48  ;;  %v8726_v24 = vpack.c.bf16 %v2162_v14, %v2158_v12  ;;  %v2292_v48 = vld [vmem:[#allocation19 + $0x508] sm:$0xff]  ;;  %v8742_v12 = vpack.c.bf16 %v2194_v6, %v2190_v63  ;;  %v2193_v14 = vld [vmem:[#allocation19 + $0x1f0] sm:$0xff] }
 0x678   :  { %v2123_v60 = vadd.f32 %v2106_v50, %v2021_v57  ;;  %v2023_v61 = vpop.f32.mrb[9].mxu0  ;;  %8717 = vmatpush1.bf16.msra.mxu0 %v8716_v5  ;;  %v2182_v50 = vld [vmem:[#allocation19 + $0x198] sm:$0xff]  ;;  %v8666_v55 = vpack.c.bf16 %v2296_v49, %v2292_v48  ;;  %v2291_v57 = vld [vmem:[#allocation19 + $0x500] sm:$0xff]  ;;  %v8744_v23 = vpack.c.bf16 %v2193_v14, %v2189_v9  ;;  %v2225_v6 = vld [vmem:[#allocation19 + $0x2f0] sm:$0xff] }
 0x679   :  { %v2124_v8 = vadd.f32 %v2110_v51, %v2023_v61  ;;  %8719 = vmatprep.subr.bf16.mxu0 %v8718_v52  ;;  %v2186_v5 = vld [vmem:[#allocation19 + $0x1b8] sm:$0xff]  ;;  %v8664_v51 = vpack.c.bf16 %v2287_v46, %v2283_v4  ;;  %v8736_v52 = vpack.c.bf16 %v2177_v2, %v2173_v43  ;;  %v2300_v61 = vld [vmem:[#allocation19 + $0x548] sm:$0xff]  ;;  %v8668_v7 = vpack.c.bf16 %v2295_v3, %v2291_v57  ;;  %v2323_v48 = vld [vmem:[#allocation19 + $0x600] sm:$0xff] }
 0x67a   :  { %v11332_v17 = vmax.f32 %v2123_v60, 0.0  ;;  %v8738_v59 = vpack.c.bf16 %v2186_v5, %v2182_v50  ;;  %v2185_v60 = vld [vmem:[#allocation19 + $0x1b0] sm:$0xff]  ;;  %v2214_v43 = vld [vmem:[#allocation19 + $0x298] sm:$0xff]  ;;  %v8680_v4 = vpack.c.bf16 %v2319_v38, %v2315_v37  ;;  %v2327_v49 = vld [vmem:[#allocation19 + $0x620] sm:$0xff] }
 0x67b   :  { %v11330_v15 = vmax.f32 %v2124_v8, 0.0  ;;  %v8740_v8 = vpack.c.bf16 %v2185_v60, %v2181_v53  ;;  %v2217_v5 = vld [vmem:[#allocation19 + $0x2b0] sm:$0xff]  ;;  %v2222_v53 = vld [vmem:[#allocation19 + $0x2d8] sm:$0xff]  ;;  %v8684_v57 = vpack.c.bf16 %v2327_v49, %v2323_v48 }
 0x67c   :  { %8721 = vmatpush1.bf16.msra.mxu0 %v8720_v62  ;;  %v2304_v62 = vld [vmem:[#allocation19 + $0x568] sm:$0xff]  ;;  %v2230_v9 = vld [vmem:[#allocation19 + $0x318] sm:$0xff] }
 0x67d   :  { %2451 = vmatprep.mubr.f32.mxu1 %v11330_v15  ;;  %2593 = vmatprep.mubr.f32.mxu0 %v11330_v15  ;;  %v8670_v13 = vpack.c.bf16 %v2304_v62, %v2300_v61  ;;  %v2331_v61 = vld [vmem:[#allocation19 + $0x640] sm:$0xff] }
 0x67e   :  { %2452 = vmatmul.mubr.f32.vlgmr.msra.gmra.mrb[12].mxu1 %v11332_v17  ;;  %8723 = vmatprep.subr.bf16.mxu0 %v8722_v11  ;;  %v2303_v11 = vld [vmem:[#allocation19 + $0x560] sm:$0xff] }
 0x67f   :  { %8653 = vmatpush1.bf16.msra.mxu1 %v8652_v16  ;;  %v2308_v16 = vld [vmem:[#allocation19 + $0x588] sm:$0xff]  ;;  %v8672_v22 = vpack.c.bf16 %v2303_v11, %v2299_v10  ;;  %v2335_v62 = vld [vmem:[#allocation19 + $0x660] sm:$0xff] }
 0x680   :  { %8725 = vmatpush1.bf16.msra.mxu0 %v8724_v19  ;;  %8655 = vmatprep.subr.bf16.mxu1 %v8654_v21  ;;  %v2312_v19 = vld [vmem:[#allocation19 + $0x5a8] sm:$0xff]  ;;  %v2202_v21 = vld [vmem:[#allocation19 + $0x238] sm:$0xff]  ;;  %v8688_v10 = vpack.c.bf16 %v2335_v62, %v2331_v61 }
 0x681   :  { %8727 = vmatprep.subr.bf16.mxu0 %v8726_v24  ;;  %v2197_v24 = vld [vmem:[#allocation19 + $0x210] sm:$0xff]  ;;  %v8674_v25 = vpack.c.bf16 %v2312_v19, %v2308_v16  ;;  %v8746_v28 = vpack.c.bf16 %v2202_v21, %v2198_v20  ;;  %v2339_v16 = vld [vmem:[#allocation19 + $0x680] sm:$0xff] }
 0x682   :  { %v8748_v34 = vpack.c.bf16 %v2201_v29, %v2197_v24  ;;  %v2343_v19 = vld [vmem:[#allocation19 + $0x6a0] sm:$0xff]  ;;  %v2233_v21 = vld [vmem:[#allocation19 + $0x330] sm:$0xff]  ;;  %v2238_v24 = vld [vmem:[#allocation19 + $0x358] sm:$0xff] }
 0x683   :  { %8657 = vmatpush1.bf16.msra.mxu1 %v8656_v30  ;;  %v2316_v30 = vld [vmem:[#allocation19 + $0x5c8] sm:$0xff]  ;;  %v8692_v26 = vpack.c.bf16 %v2343_v19, %v2339_v16  ;;  %v2269_v19 = vld [vmem:[#allocation19 + $0x450] sm:$0xff] }
 0x684   :  { %8729 = vmatpush1.bf16.msra.mxu0 %v8728_v31  ;;  %8659 = vmatprep.subr.bf16.mxu1 %v8658_v33  ;;  %v2320_v31 = vld [vmem:[#allocation19 + $0x5e8] sm:$0xff]  ;;  %v2210_v33 = vld [vmem:[#allocation19 + $0x278] sm:$0xff] }
 0x685   :  { %8731 = vmatprep.subr.bf16.mxu0 %v8730_v35  ;;  %v2205_v35 = vld [vmem:[#allocation19 + $0x250] sm:$0xff]  ;;  %v8678_v36 = vpack.c.bf16 %v2320_v31, %v2316_v30  ;;  %v8750_v39 = vpack.c.bf16 %v2210_v33, %v2206_v32  ;;  %v2347_v30 = vld [vmem:[#allocation19 + $0x6c0] sm:$0xff] }
 0x686   :  { %v8752_v46 = vpack.c.bf16 %v2209_v40, %v2205_v35  ;;  %v2351_v31 = vld [vmem:[#allocation19 + $0x6e0] sm:$0xff]  ;;  %v2241_v33 = vld [vmem:[#allocation19 + $0x370] sm:$0xff]  ;;  %v2246_v35 = vld [vmem:[#allocation19 + $0x398] sm:$0xff] }
 0x687   :  { %8661 = vmatpush1.bf16.msra.mxu1 %v8660_v41  ;;  %v2324_v41 = vld [vmem:[#allocation19 + $0x608] sm:$0xff]  ;;  %v8696_v37 = vpack.c.bf16 %v2351_v31, %v2347_v30  ;;  %v2285_v31 = vld [vmem:[#allocation19 + $0x4d0] sm:$0xff] }
 0x688   :  { %8733 = vmatpush1.bf16.msra.mxu0 %v8732_v42  ;;  %8663 = vmatprep.subr.bf16.mxu1 %v8662_v45  ;;  %v2328_v42 = vld [vmem:[#allocation19 + $0x628] sm:$0xff]  ;;  %v2218_v45 = vld [vmem:[#allocation19 + $0x2b8] sm:$0xff] }
 0x689   :  { %8735 = vmatprep.subr.bf16.mxu0 %v8734_v47  ;;  %v2213_v47 = vld [vmem:[#allocation19 + $0x290] sm:$0xff]  ;;  %v8682_v2 = vpack.c.bf16 %v2328_v42, %v2324_v41  ;;  %v8754_v50 = vpack.c.bf16 %v2218_v45, %v2214_v43  ;;  %v2355_v41 = vld [vmem:[#allocation19 + $0x700] sm:$0xff] }
 0x68a   :  { %v8756_v3 = vpack.c.bf16 %v2217_v5, %v2213_v47  ;;  %v2359_v42 = vld [vmem:[#allocation19 + $0x720] sm:$0xff]  ;;  %v2249_v45 = vld [vmem:[#allocation19 + $0x3b0] sm:$0xff]  ;;  %v2254_v47 = vld [vmem:[#allocation19 + $0x3d8] sm:$0xff] }
 0x68b   :  { %8665 = vmatpush1.bf16.msra.mxu1 %v8664_v51  ;;  %v2332_v51 = vld [vmem:[#allocation19 + $0x648] sm:$0xff]  ;;  %v8700_v48 = vpack.c.bf16 %v2359_v42, %v2355_v41  ;;  %v2301_v42 = vld [vmem:[#allocation19 + $0x550] sm:$0xff] }
 0x68c   :  { %8737 = vmatpush1.bf16.msra.mxu0 %v8736_v52  ;;  %8667 = vmatprep.subr.bf16.mxu1 %v8666_v55  ;;  %v2336_v52 = vld [vmem:[#allocation19 + $0x668] sm:$0xff]  ;;  %v2226_v55 = vld [vmem:[#allocation19 + $0x2f8] sm:$0xff] }
 0x68d   :  { %8739 = vmatprep.subr.bf16.mxu0 %v8738_v59  ;;  %v2221_v59 = vld [vmem:[#allocation19 + $0x2d0] sm:$0xff]  ;;  %v8686_v60 = vpack.c.bf16 %v2336_v52, %v2332_v51  ;;  %v8758_v63 = vpack.c.bf16 %v2226_v55, %v2222_v53  ;;  %v2363_v51 = vld [vmem:[#allocation19 + $0x740] sm:$0xff] }
 0x68e   :  { %v8760_v11 = vpack.c.bf16 %v2225_v6, %v2221_v59  ;;  %v2367_v52 = vld [vmem:[#allocation19 + $0x760] sm:$0xff]  ;;  %v2257_v55 = vld [vmem:[#allocation19 + $0x3f0] sm:$0xff]  ;;  %v2262_v59 = vld [vmem:[#allocation19 + $0x418] sm:$0xff] }
 0x68f   :  { %8669 = vmatpush1.bf16.msra.mxu1 %v8668_v7  ;;  %v2340_v7 = vld [vmem:[#allocation19 + $0x688] sm:$0xff]  ;;  %v8704_v61 = vpack.c.bf16 %v2367_v52, %v2363_v51  ;;  %v2371_v6 = vld [vmem:[#allocation19 + $0x780] sm:$0xff]  ;;  %v2322_v51 = vld [vmem:[#allocation19 + $0x5f8] sm:$0xff] }
 0x690   :  { %8741 = vmatpush1.bf16.msra.mxu0 %v8740_v8  ;;  %8671 = vmatprep.subr.bf16.mxu1 %v8670_v13  ;;  %v2344_v8 = vld [vmem:[#allocation19 + $0x6a8] sm:$0xff]  ;;  %v2234_v13 = vld [vmem:[#allocation19 + $0x338] sm:$0xff] }
 0x691   :  { %8743 = vmatprep.subr.bf16.mxu0 %v8742_v12  ;;  %v2229_v12 = vld [vmem:[#allocation19 + $0x310] sm:$0xff]  ;;  %v8690_v14 = vpack.c.bf16 %v2344_v8, %v2340_v7  ;;  %v8762_v20 = vpack.c.bf16 %v2234_v13, %v2230_v9  ;;  %v2375_v7 = vld [vmem:[#allocation19 + $0x7a0] sm:$0xff] }
 0x692   :  { %v8764_v27 = vpack.c.bf16 %v2233_v21, %v2229_v12  ;;  %v2261_v9 = vld [vmem:[#allocation19 + $0x410] sm:$0xff]  ;;  %v8708_v12 = vpack.c.bf16 %v2375_v7, %v2371_v6  ;;  %v2278_v21 = vld [vmem:[#allocation19 + $0x498] sm:$0xff] }
 0x693   :  { %8673 = vmatpush1.bf16.msra.mxu1 %v8672_v22  ;;  %v2348_v22 = vld [vmem:[#allocation19 + $0x6c8] sm:$0xff]  ;;  %v2265_v13 = vld [vmem:[#allocation19 + $0x430] sm:$0xff]  ;;  %v2326_v6 = vld [vmem:[#allocation19 + $0x618] sm:$0xff] }
 0x694   :  { %8745 = vmatpush1.bf16.msra.mxu0 %v8744_v23  ;;  %8675 = vmatprep.subr.bf16.mxu1 %v8674_v25  ;;  %v2352_v23 = vld [vmem:[#allocation19 + $0x6e8] sm:$0xff]  ;;  %v2242_v25 = vld [vmem:[#allocation19 + $0x378] sm:$0xff] }
 0x695   :  { %8747 = vmatprep.subr.bf16.mxu0 %v8746_v28  ;;  %v2237_v28 = vld [vmem:[#allocation19 + $0x350] sm:$0xff]  ;;  %v8694_v29 = vpack.c.bf16 %v2352_v23, %v2348_v22  ;;  %v8766_v32 = vpack.c.bf16 %v2242_v25, %v2238_v24  ;;  %v2282_v22 = vld [vmem:[#allocation19 + $0x4b8] sm:$0xff] }
 0x696   :  { %v8768_v38 = vpack.c.bf16 %v2241_v33, %v2237_v28  ;;  %v8786_v24 = vpack.c.bf16 %v2282_v22, %v2278_v21  ;;  %v2277_v25 = vld [vmem:[#allocation19 + $0x490] sm:$0xff]  ;;  %v2290_v28 = vld [vmem:[#allocation19 + $0x4f8] sm:$0xff] }
 0x697   :  { %8677 = vmatpush1.bf16.msra.mxu1 %v8676_v18  ;;  %v2356_v18 = vld [vmem:[#allocation19 + $0x708] sm:$0xff]  ;;  %v2294_v33 = vld [vmem:[#allocation19 + $0x518] sm:$0xff]  ;;  %v2337_v21 = vld [vmem:[#allocation19 + $0x670] sm:$0xff] }
 0x698   :  { %8749 = vmatpush1.bf16.msra.mxu0 %v8748_v34  ;;  %8679 = vmatprep.subr.bf16.mxu1 %v8678_v36  ;;  %v2360_v34 = vld [vmem:[#allocation19 + $0x728] sm:$0xff]  ;;  %v2250_v36 = vld [vmem:[#allocation19 + $0x3b8] sm:$0xff] }
 0x699   :  { %8751 = vmatprep.subr.bf16.mxu0 %v8750_v39  ;;  %v2245_v39 = vld [vmem:[#allocation19 + $0x390] sm:$0xff]  ;;  %v8698_v40 = vpack.c.bf16 %v2360_v34, %v2356_v18  ;;  %v8770_v43 = vpack.c.bf16 %v2250_v36, %v2246_v35  ;;  %v2298_v18 = vld [vmem:[#allocation19 + $0x538] sm:$0xff] }
 0x69a   :  { %v8772_v49 = vpack.c.bf16 %v2249_v45, %v2245_v39  ;;  %v8794_v35 = vpack.c.bf16 %v2298_v18, %v2294_v33  ;;  %v2293_v36 = vld [vmem:[#allocation19 + $0x510] sm:$0xff]  ;;  %v2306_v39 = vld [vmem:[#allocation19 + $0x578] sm:$0xff] }
 0x69b   :  { %8681 = vmatpush1.bf16.msra.mxu1 %v8680_v4  ;;  %v2364_v4 = vld [vmem:[#allocation19 + $0x748] sm:$0xff]  ;;  %v2310_v45 = vld [vmem:[#allocation19 + $0x598] sm:$0xff]  ;;  %v2353_v33 = vld [vmem:[#allocation19 + $0x6f0] sm:$0xff] }
 0x69c   :  { %8753 = vmatpush1.bf16.msra.mxu0 %v8752_v46  ;;  %8683 = vmatprep.subr.bf16.mxu1 %v8682_v2  ;;  %v2368_v46 = vld [vmem:[#allocation19 + $0x768] sm:$0xff]  ;;  %v2258_v2 = vld [vmem:[#allocation19 + $0x3f8] sm:$0xff] }
 0x69d   :  { %8755 = vmatprep.subr.bf16.mxu0 %v8754_v50  ;;  %v2253_v50 = vld [vmem:[#allocation19 + $0x3d0] sm:$0xff]  ;;  %v8702_v5 = vpack.c.bf16 %v2368_v46, %v2364_v4  ;;  %v8774_v53 = vpack.c.bf16 %v2258_v2, %v2254_v47  ;;  %v2314_v4 = vld [vmem:[#allocation19 + $0x5b8] sm:$0xff] }
 0x69e   :  { %v8776_v62 = vpack.c.bf16 %v2257_v55, %v2253_v50  ;;  %v2309_v47 = vld [vmem:[#allocation19 + $0x590] sm:$0xff]  ;;  %v2380_v50 = vld [vmem:[#allocation19 + $0x7c8] sm:$0xff]  ;;  %v2383_v55 = vld [vmem:[#allocation19 + $0x7e0] sm:$0xff] }
 0x69f   :  { %8685 = vmatpush1.bf16.msra.mxu1 %v8684_v57  ;;  %v2372_v57 = vld [vmem:[#allocation19 + $0x788] sm:$0xff]  ;;  %v2313_v2 = vld [vmem:[#allocation19 + $0x5b0] sm:$0xff]  ;;  %v2330_v7 = vld [vmem:[#allocation19 + $0x638] sm:$0xff] }
 0x6a0   :  { %8757 = vmatpush1.bf16.msra.mxu0 %v8756_v3  ;;  %8687 = vmatprep.subr.bf16.mxu1 %v8686_v60  ;;  %v2376_v3 = vld [vmem:[#allocation19 + $0x7a8] sm:$0xff]  ;;  %v2266_v60 = vld [vmem:[#allocation19 + $0x438] sm:$0xff] }
 0x6a1   :  { %8759 = vmatprep.subr.bf16.mxu0 %v8758_v63  ;;  %v8706_v63 = vpack.c.bf16 %v2376_v3, %v2372_v57  ;;  %v8778_v8 = vpack.c.bf16 %v2266_v60, %v2262_v59  ;;  %v8804_v3 = vpack.c.bf16 %v2313_v2, %v2309_v47  ;;  %v2317_v59 = vld [vmem:[#allocation19 + $0x5d0] sm:$0xff]  ;;  %v2342_v22 = vld [vmem:[#allocation19 + $0x698] sm:$0xff] }
 0x6a2   :  { %v2358_v18 = vld [vmem:[#allocation19 + $0x718] sm:$0xff] }
 0x6a3   :  { %8689 = vmatpush1.bf16.msra.mxu1 %v8688_v10  ;;  %v2270_v10 = vld [vmem:[#allocation19 + $0x458] sm:$0xff] }
 0x6a4   :  { %8761 = vmatpush1.bf16.msra.mxu0 %v8760_v11  ;;  %8691 = vmatprep.subr.bf16.mxu1 %v8690_v14  ;;  %v2274_v11 = vld [vmem:[#allocation19 + $0x478] sm:$0xff]  ;;  %v8780_v14 = vpack.c.bf16 %v2265_v13, %v2261_v9  ;;  %v8810_v13 = vpack.c.bf16 %v2330_v7, %v2326_v6 }
 0x6a5   :  { %8763 = vmatprep.subr.bf16.mxu0 %v8762_v20  ;;  %v8782_v16 = vpack.c.bf16 %v2274_v11, %v2270_v10  ;;  %v2273_v20 = vld [vmem:[#allocation19 + $0x470] sm:$0xff] }
 0x6a6   :  { %v8784_v23 = vpack.c.bf16 %v2273_v20, %v2269_v19  ;;  %v2325_v10 = vld [vmem:[#allocation19 + $0x610] sm:$0xff] }
 0x6a7   :  { %8693 = vmatpush1.bf16.msra.mxu1 %v8692_v26  ;;  %v2281_v26 = vld [vmem:[#allocation19 + $0x4b0] sm:$0xff] }
 0x6a8   :  { %8765 = vmatpush1.bf16.msra.mxu0 %v8764_v27  ;;  %8695 = vmatprep.subr.bf16.mxu1 %v8694_v29  ;;  %v2286_v27 = vld [vmem:[#allocation19 + $0x4d8] sm:$0xff]  ;;  %v8788_v29 = vpack.c.bf16 %v2281_v26, %v2277_v25  ;;  %v2329_v11 = vld [vmem:[#allocation19 + $0x630] sm:$0xff] }
 0x6a9   :  { %8767 = vmatprep.subr.bf16.mxu0 %v8766_v32  ;;  %v8790_v30 = vpack.c.bf16 %v2290_v28, %v2286_v27  ;;  %v2289_v32 = vld [vmem:[#allocation19 + $0x4f0] sm:$0xff]  ;;  %v2350_v28 = vld [vmem:[#allocation19 + $0x6d8] sm:$0xff] }
 0x6aa   :  { %v8792_v34 = vpack.c.bf16 %v2289_v32, %v2285_v31  ;;  %v2333_v20 = vld [vmem:[#allocation19 + $0x650] sm:$0xff] }
 0x6ab   :  { %8697 = vmatpush1.bf16.msra.mxu1 %v8696_v37  ;;  %v2297_v37 = vld [vmem:[#allocation19 + $0x530] sm:$0xff] }
 0x6ac   :  { %8769 = vmatpush1.bf16.msra.mxu0 %v8768_v38  ;;  %8699 = vmatprep.subr.bf16.mxu1 %v8698_v40  ;;  %v2302_v38 = vld [vmem:[#allocation19 + $0x558] sm:$0xff]  ;;  %v8796_v40 = vpack.c.bf16 %v2297_v37, %v2293_v36  ;;  %v2341_v26 = vld [vmem:[#allocation19 + $0x690] sm:$0xff] }
 0x6ad   :  { %8771 = vmatprep.subr.bf16.mxu0 %v8770_v43  ;;  %v8798_v41 = vpack.c.bf16 %v2306_v39, %v2302_v38  ;;  %v2305_v43 = vld [vmem:[#allocation19 + $0x570] sm:$0xff]  ;;  %v2366_v39 = vld [vmem:[#allocation19 + $0x758] sm:$0xff] }
 0x6ae   :  { %v8800_v46 = vpack.c.bf16 %v2305_v43, %v2301_v42  ;;  %v2345_v27 = vld [vmem:[#allocation19 + $0x6b0] sm:$0xff] }
 0x6af   :  { %8701 = vmatpush1.bf16.msra.mxu1 %v8700_v48  ;;  %v8802_v48 = vpack.c.bf16 %v2314_v4, %v2310_v45  ;;  %v2349_v32 = vld [vmem:[#allocation19 + $0x6d0] sm:$0xff]  ;;  %v2374_v4 = vld [vmem:[#allocation19 + $0x798] sm:$0xff] }
 0x6b0   :  { %8773 = vmatpush1.bf16.msra.mxu0 %v8772_v49  ;;  %8703 = vmatprep.subr.bf16.mxu1 %v8702_v5  ;;  %v2318_v49 = vld [vmem:[#allocation19 + $0x5d8] sm:$0xff]  ;;  %v2384_v5 = vld [vmem:[#allocation19 + $0x7e8] sm:$0xff]  ;;  %v2357_v37 = vld [vmem:[#allocation19 + $0x710] sm:$0xff] }
 0x6b1   :  { %8775 = vmatprep.subr.bf16.mxu0 %v8774_v53  ;;  %v8710_v52 = vpack.c.bf16 %v2384_v5, %v2380_v50  ;;  %v2379_v53 = vld [vmem:[#allocation19 + $0x7c0] sm:$0xff]  ;;  %v8806_v60 = vpack.c.bf16 %v2322_v51, %v2318_v49  ;;  %v2361_v38 = vld [vmem:[#allocation19 + $0x730] sm:$0xff]  ;;  %v2382_v50 = vld [vmem:[#allocation19 + $0x7d8] sm:$0xff] }
 0x6b2   :  { %v8712_v57 = vpack.c.bf16 %v2383_v55, %v2379_v53  ;;  %v2365_v43 = vld [vmem:[#allocation19 + $0x750] sm:$0xff]  ;;  %v2386_v5 = vld [vmem:[#allocation19 + $0x7f8] sm:$0xff] }
 0x6b3   :  { %8705 = vmatpush1.bf16.msra.mxu1 %v8704_v61  ;;  %v2321_v61 = vld [vmem:[#allocation19 + $0x5f0] sm:$0xff] }
 0x6b4   :  { %8777 = vmatpush1.bf16.msra.mxu0 %v8776_v62  ;;  %8707 = vmatprep.subr.bf16.mxu1 %v8706_v63  ;;  %v2675_v62 = vld [vmem:[#allocation19 + $0x808] sm:$0xff]  ;;  %v8808_v9 = vpack.c.bf16 %v2321_v61, %v2317_v59  ;;  %v2369_v45 = vld [vmem:[#allocation19 + $0x770] sm:$0xff]  ;;  %v11339_v61 = vsub.s32 2, %v11242_v54 }
 0x6b5   :  { %8779 = vmatprep.subr.bf16.mxu0 %v8778_v8  ;;  %v2679_v63 = vld [vmem:[#allocation19 + $0x828] sm:$0xff]  ;;  %v8832_v47 = vpack.c.bf16 %v2369_v45, %v2365_v43  ;;  %v2377_v49 = vld [vmem:[#allocation19 + $0x7b0] sm:$0xff]  ;;  %v2701_v43 = vld [vmem:[#allocation19 + $0x8d8] sm:$0xff] }
 0x6b6   :  { %v8842_v8 = vpack.c.bf16 %v2679_v63, %v2675_v62  ;;  %v2381_v53 = vld [vmem:[#allocation19 + $0x7d0] sm:$0xff]  ;;  %v11342_v62 = vsub.s32 3, %v11242_v54  ;;  %v2114_v63 = vrot.slane %v11321_v44, %v11339_v61  ;;  %v2705_v45 = vld [vmem:[#allocation19 + $0x8f8] sm:$0xff] }
 0x6b7   :  { %2594 = vmatmul.mubr.f32.vlgmr.msra.gmra.mrb[14].mxu0 %v11332_v17  ;;  %8709 = vmatpush1.bf16.msra.mxu1 %v8708_v12  ;;  %v2334_v12 = vld [vmem:[#allocation19 + $0x658] sm:$0xff]  ;;  %v2385_v55 = vld [vmem:[#allocation19 + $0x7f0] sm:$0xff] }
 0x6b8   :  { %8781 = vmatpush1.bf16.msra.mxu0 %v8780_v14  ;;  %8711 = vmatprep.subr.bf16.mxu1 %v8710_v52  ;;  %v2338_v14 = vld [vmem:[#allocation19 + $0x678] sm:$0xff]  ;;  %v8838_v52 = vpack.c.bf16 %v2386_v5, %v2382_v50  ;;  %v8840_v59 = vpack.c.bf16 %v2385_v55, %v2381_v53  ;;  %v2118_v6 = vrot.slane %v11321_v44, %v11342_v62  ;;  %v2684_v44 = vld [vmem:[#allocation19 + $0x850] sm:$0xff] }
 0x6b9   :  { %8783 = vmatprep.subr.bf16.mxu0 %v8782_v16  ;;  %v8812_v16 = vpack.c.bf16 %v2329_v11, %v2325_v10  ;;  %v8814_v19 = vpack.c.bf16 %v2338_v14, %v2334_v12  ;;  %v2678_v10 = vld [vmem:[#allocation19 + $0x820] sm:$0xff]  ;;  %v2676_v11 = vld [vmem:[#allocation19 + $0x810] sm:$0xff]  ;;  %v2709_v53 = vld [vmem:[#allocation19 + $0x918] sm:$0xff] }
 0x6ba   :  { %v2680_v12 = vld [vmem:[#allocation19 + $0x830] sm:$0xff]  ;;  %v2713_v55 = vld [vmem:[#allocation19 + $0x938] sm:$0xff] }
 0x6bb   :  { %8713 = vmatpush1.bf16.msra.mxu1 %v8712_v57  ;;  %v2677_v57 = vld [vmem:[#allocation19 + $0x818] sm:$0xff]  ;;  %v2700_v50 = vld [vmem:[#allocation19 + $0x8d0] sm:$0xff] }
 0x6bc   :  { %8785 = vmatpush1.bf16.msra.mxu0 %v8784_v23  ;;  %8843 = vmatprep.subr.bf16.mxu1 %v8842_v8  ;;  %v2346_v23 = vld [vmem:[#allocation19 + $0x6b8] sm:$0xff]  ;;  %v2674_v8 = vld [vmem:[#allocation19 + $0x800] sm:$0xff]  ;;  %v2704_v5 = vld [vmem:[#allocation19 + $0x8f0] sm:$0xff] }
 0x6bd   :  { %8787 = vmatprep.subr.bf16.mxu0 %v8786_v24  ;;  %v8816_v24 = vpack.c.bf16 %v2337_v21, %v2333_v20  ;;  %v8818_v25 = vpack.c.bf16 %v2346_v23, %v2342_v22  ;;  %v2685_v20 = vld [vmem:[#allocation19 + $0x858] sm:$0xff]  ;;  %v8844_v22 = vpack.c.bf16 %v2678_v10, %v2674_v8  ;;  %v8972_v23 = vpack.c.bf16 %v2680_v12, %v2676_v11  ;;  %v2712_v8 = vld [vmem:[#allocation19 + $0x930] sm:$0xff] }
 0x6be   :  { %v2689_v21 = vld [vmem:[#allocation19 + $0x878] sm:$0xff] }
 0x6bf   :  { %v2717_v10 = vld [vmem:[#allocation19 + $0x958] sm:$0xff] }
 0x6c0   :  { %8789 = vmatpush1.bf16.msra.mxu0 %v8788_v29  ;;  %v2354_v29 = vld [vmem:[#allocation19 + $0x6f8] sm:$0xff] }
 0x6c1   :  { %8791 = vmatprep.subr.bf16.mxu0 %v8790_v30  ;;  %v8820_v30 = vpack.c.bf16 %v2345_v27, %v2341_v26  ;;  %v8822_v31 = vpack.c.bf16 %v2354_v29, %v2350_v28  ;;  %v2688_v27 = vld [vmem:[#allocation19 + $0x870] sm:$0xff]  ;;  %v2691_v28 = vld [vmem:[#allocation19 + $0x888] sm:$0xff]  ;;  %v2721_v11 = vld [vmem:[#allocation19 + $0x978] sm:$0xff] }
 0x6c4   :  { %8793 = vmatpush1.bf16.msra.mxu0 %v8792_v34  ;;  %v2362_v34 = vld [vmem:[#allocation19 + $0x738] sm:$0xff] }
 0x6c5   :  { %8795 = vmatprep.subr.bf16.mxu0 %v8794_v35  ;;  %v8824_v35 = vpack.c.bf16 %v2353_v33, %v2349_v32  ;;  %v8826_v36 = vpack.c.bf16 %v2362_v34, %v2358_v18  ;;  %v2693_v32 = vld [vmem:[#allocation19 + $0x898] sm:$0xff]  ;;  %v8976_v34 = vpack.c.bf16 %v2688_v27, %v2684_v44 }
 0x6c6   :  { %v2697_v33 = vld [vmem:[#allocation19 + $0x8b8] sm:$0xff] }
 0x6c7   :  { %v2725_v44 = vld [vmem:[#allocation19 + $0x998] sm:$0xff] }
 0x6c8   :  { %8797 = vmatpush1.bf16.msra.mxu0 %v8796_v40  ;;  %v2370_v40 = vld [vmem:[#allocation19 + $0x778] sm:$0xff] }
 0x6c9   :  { %8799 = vmatprep.subr.bf16.mxu0 %v8798_v41  ;;  %v8828_v41 = vpack.c.bf16 %v2361_v38, %v2357_v37  ;;  %v8830_v42 = vpack.c.bf16 %v2370_v40, %v2366_v39  ;;  %v8978_v38 = vpack.c.bf16 %v2697_v33, %v2693_v32  ;;  %v2692_v39 = vld [vmem:[#allocation19 + $0x890] sm:$0xff]  ;;  %v2729_v27 = vld [vmem:[#allocation19 + $0x9b8] sm:$0xff] }
 0x6ca   :  { %v2696_v40 = vld [vmem:[#allocation19 + $0x8b0] sm:$0xff]  ;;  %v8994_v33 = vpack.c.bf16 %v2729_v27, %v2725_v44 }
 0x6cc   :  { %8801 = vmatpush1.bf16.msra.mxu0 %v8800_v46  ;;  %v2378_v46 = vld [vmem:[#allocation19 + $0x7b8] sm:$0xff] }
 0x6cd   :  { %8803 = vmatprep.subr.bf16.mxu0 %v8802_v48  ;;  %v8834_v2 = vpack.c.bf16 %v2378_v46, %v2374_v4  ;;  %v2373_v48 = vld [vmem:[#allocation19 + $0x790] sm:$0xff]  ;;  %v8980_v46 = vpack.c.bf16 %v2696_v40, %v2692_v39 }
 0x6ce   :  { %v8836_v51 = vpack.c.bf16 %v2377_v49, %v2373_v48  ;;  %v8982_v49 = vpack.c.bf16 %v2705_v45, %v2701_v43 }
 0x6d0   :  { %8805 = vmatpush1.bf16.msra.mxu0 %v8804_v3  ;;  %v2681_v3 = vld [vmem:[#allocation19 + $0x838] sm:$0xff] }
 0x6d1   :  { %8807 = vmatprep.subr.bf16.mxu0 %v8806_v60  ;;  %v8970_v60 = vpack.c.bf16 %v2681_v3, %v2677_v57  ;;  %v8984_v3 = vpack.c.bf16 %v2704_v5, %v2700_v50 }
 0x6d4   :  { %8809 = vmatpush1.bf16.msra.mxu0 %v8808_v9 }
 0x6d5   :  { %8811 = vmatprep.subr.bf16.mxu0 %v8810_v13 }
 0x6d8   :  { %8813 = vmatpush1.bf16.msra.mxu0 %v8812_v16  ;;  %v2683_v16 = vld [vmem:[#allocation19 + $0x848] sm:$0xff] }
 0x6d9   :  { %8815 = vmatprep.subr.bf16.mxu0 %v8814_v19  ;;  %v2687_v19 = vld [vmem:[#allocation19 + $0x868] sm:$0xff] }
 0x6da   :  { %v8846_v29 = vpack.c.bf16 %v2687_v19, %v2683_v16  ;;  %v2714_v16 = vld [vmem:[#allocation19 + $0x940] sm:$0xff] }
 0x6db   :  { %v2718_v19 = vld [vmem:[#allocation19 + $0x960] sm:$0xff] }
 0x6dc   :  { %8817 = vmatpush1.bf16.msra.mxu0 %v8816_v24  ;;  %v2682_v24 = vld [vmem:[#allocation19 + $0x840] sm:$0xff] }
 0x6dd   :  { %8819 = vmatprep.subr.bf16.mxu0 %v8818_v25  ;;  %v2686_v25 = vld [vmem:[#allocation19 + $0x860] sm:$0xff] }
 0x6de   :  { %v8848_v18 = vpack.c.bf16 %v2686_v25, %v2682_v24  ;;  %v2723_v24 = vld [vmem:[#allocation19 + $0x988] sm:$0xff] }
 0x6df   :  { %v2727_v25 = vld [vmem:[#allocation19 + $0x9a8] sm:$0xff] }
 0x6e0   :  { %8821 = vmatpush1.bf16.msra.mxu0 %v8820_v30  ;;  %v8974_v30 = vpack.c.bf16 %v2689_v21, %v2685_v20  ;;  %v8990_v21 = vpack.c.bf16 %v2721_v11, %v2717_v10  ;;  %v8866_v32 = vpack.c.bf16 %v2727_v25, %v2723_v24  ;;  %v2754_v24 = vld [vmem:[#allocation19 + $0xa80] sm:$0xff] }
 0x6e1   :  { %8823 = vmatprep.subr.bf16.mxu0 %v8822_v31  ;;  %v2695_v31 = vld [vmem:[#allocation19 + $0x8a8] sm:$0xff]  ;;  %v2758_v25 = vld [vmem:[#allocation19 + $0xaa0] sm:$0xff] }
 0x6e2   :  { %v8850_v37 = vpack.c.bf16 %v2695_v31, %v2691_v28  ;;  %v8864_v28 = vpack.c.bf16 %v2718_v19, %v2714_v16  ;;  %v2726_v31 = vld [vmem:[#allocation19 + $0x9a0] sm:$0xff]  ;;  %v2755_v16 = vld [vmem:[#allocation19 + $0xa88] sm:$0xff] }
 0x6e3   :  { %v2759_v19 = vld [vmem:[#allocation19 + $0xaa8] sm:$0xff] }
 0x6e4   :  { %8825 = vmatpush1.bf16.msra.mxu0 %v8824_v35  ;;  %v2690_v35 = vld [vmem:[#allocation19 + $0x880] sm:$0xff]  ;;  %v8882_v44 = vpack.c.bf16 %v2759_v19, %v2755_v16 }
 0x6e5   :  { %8827 = vmatprep.subr.bf16.mxu0 %v8826_v36  ;;  %v2694_v36 = vld [vmem:[#allocation19 + $0x8a0] sm:$0xff] }
 0x6e6   :  { %v8852_v4 = vpack.c.bf16 %v2694_v36, %v2690_v35  ;;  %v2731_v35 = vld [vmem:[#allocation19 + $0x9c8] sm:$0xff]  ;;  %v2786_v16 = vld [vmem:[#allocation19 + $0xb80] sm:$0xff] }
 0x6e7   :  { %v2735_v36 = vld [vmem:[#allocation19 + $0x9e8] sm:$0xff]  ;;  %v2790_v19 = vld [vmem:[#allocation19 + $0xba0] sm:$0xff] }
 0x6e8   :  { %8829 = vmatpush1.bf16.msra.mxu0 %v8828_v41  ;;  %v2699_v41 = vld [vmem:[#allocation19 + $0x8c8] sm:$0xff]  ;;  %v8870_v43 = vpack.c.bf16 %v2735_v36, %v2731_v35  ;;  %v2762_v35 = vld [vmem:[#allocation19 + $0xac0] sm:$0xff] }
 0x6e9   :  { %8831 = vmatprep.subr.bf16.mxu0 %v8830_v42  ;;  %v2703_v42 = vld [vmem:[#allocation19 + $0x8e8] sm:$0xff]  ;;  %v2766_v36 = vld [vmem:[#allocation19 + $0xae0] sm:$0xff] }
 0x6ea   :  { %v8854_v48 = vpack.c.bf16 %v2703_v42, %v2699_v41  ;;  %v2730_v41 = vld [vmem:[#allocation19 + $0x9c0] sm:$0xff] }
 0x6eb   :  { %v2734_v42 = vld [vmem:[#allocation19 + $0x9e0] sm:$0xff] }
 0x6ec   :  { %8833 = vmatpush1.bf16.msra.mxu0 %v8832_v47  ;;  %v2698_v47 = vld [vmem:[#allocation19 + $0x8c0] sm:$0xff]  ;;  %v8872_v50 = vpack.c.bf16 %v2734_v42, %v2730_v41  ;;  %v2771_v41 = vld [vmem:[#allocation19 + $0xb08] sm:$0xff] }
 0x6ed   :  { %8835 = vmatprep.subr.bf16.mxu0 %v8834_v2  ;;  %v2702_v2 = vld [vmem:[#allocation19 + $0x8e0] sm:$0xff]  ;;  %v2775_v42 = vld [vmem:[#allocation19 + $0xb28] sm:$0xff] }
 0x6ee   :  { %v8856_v57 = vpack.c.bf16 %v2702_v2, %v2698_v47  ;;  %v2739_v47 = vld [vmem:[#allocation19 + $0xa08] sm:$0xff] }
 0x6ef   :  { %v2743_v2 = vld [vmem:[#allocation19 + $0xa28] sm:$0xff] }
 0x6f0   :  { %8837 = vmatpush1.bf16.msra.mxu0 %v8836_v51  ;;  %v2707_v51 = vld [vmem:[#allocation19 + $0x908] sm:$0xff] }
 0x6f1   :  { %8839 = vmatprep.subr.bf16.mxu0 %v8838_v52  ;;  %v2711_v52 = vld [vmem:[#allocation19 + $0x928] sm:$0xff] }
 0x6f4   :  { %8841 = vmatpush1.bf16.msra.mxu0 %v8840_v59  ;;  %v2706_v59 = vld [vmem:[#allocation19 + $0x900] sm:$0xff] }
 0x6f5   :  { %8971 = vmatprep.subr.bf16.mxu0 %v8970_v60  ;;  %v2710_v60 = vld [vmem:[#allocation19 + $0x920] sm:$0xff] }
 0x6f6   :  { %v8860_v12 = vpack.c.bf16 %v2710_v60, %v2706_v59  ;;  %v2747_v59 = vld [vmem:[#allocation19 + $0xa48] sm:$0xff] }
 0x6f7   :  { %v2751_v60 = vld [vmem:[#allocation19 + $0xa68] sm:$0xff] }
 0x6f8   :  { %v8878_v10 = vpack.c.bf16 %v2751_v60, %v2747_v59  ;;  %v2778_v59 = vld [vmem:[#allocation19 + $0xb40] sm:$0xff] }
 0x6f9   :  { %v2782_v60 = vld [vmem:[#allocation19 + $0xb60] sm:$0xff] }
 0x74a   :  { %v2092_v7 = vpop.f32.mrb[10].mxu0 }
 0x74b   :  { %v2125_v9 = vadd.f32 %v2114_v63, %v2092_v7  ;;  %v2094_v13 = vpop.f32.mrb[11].mxu0  ;;  %v8858_v63 = vpack.c.bf16 %v2711_v52, %v2707_v51  ;;  %v2708_v7 = vld [vmem:[#allocation19 + $0x910] sm:$0xff]  ;;  %v2738_v51 = vld [vmem:[#allocation19 + $0xa00] sm:$0xff] }
 0x74c   :  { %v2126_v14 = vadd.f32 %v2118_v6, %v2094_v13  ;;  %v8986_v6 = vpack.c.bf16 %v2713_v55, %v2709_v53  ;;  %v2719_v13 = vld [vmem:[#allocation19 + $0x968] sm:$0xff]  ;;  %v2742_v52 = vld [vmem:[#allocation19 + $0xa20] sm:$0xff]  ;;  %v8874_v53 = vpack.c.bf16 %v2743_v2, %v2739_v47 }
 0x74d   :  { %v11350_v26 = vmax.f32 %v2125_v9, 0.0  ;;  %v2715_v9 = vld [vmem:[#allocation19 + $0x948] sm:$0xff]  ;;  %v2770_v47 = vld [vmem:[#allocation19 + $0xb00] sm:$0xff] }
 0x74e   :  { %v11348_v54 = vmax.f32 %v2126_v14, 0.0  ;;  %v8988_v14 = vpack.c.bf16 %v2712_v8, %v2708_v7  ;;  %v8862_v20 = vpack.c.bf16 %v2719_v13, %v2715_v9  ;;  %v8876_v7 = vpack.c.bf16 %v2742_v52, %v2738_v51  ;;  %v2746_v9 = vld [vmem:[#allocation19 + $0xa40] sm:$0xff]  ;;  %v2779_v51 = vld [vmem:[#allocation19 + $0xb48] sm:$0xff] }
 0x74f   :  { %v2750_v13 = vld [vmem:[#allocation19 + $0xa60] sm:$0xff]  ;;  %v2783_v52 = vld [vmem:[#allocation19 + $0xb68] sm:$0xff] }
 0x750   :  { %2522 = vmatprep.mubr.f32.mxu1 %v11348_v54  ;;  %2664 = vmatprep.mubr.f32.mxu0 %v11348_v54  ;;  %v2774_v2 = vld [vmem:[#allocation19 + $0xb20] sm:$0xff] }
 0x751   :  { %2523 = vmatmul.mubr.f32.vlgmr.msra.gmra.mrb[12].mxu1 %v11350_v26  ;;  %2665 = vmatmul.mubr.f32.vlgmr.msra.gmra.mrb[14].mxu0 %v11350_v26 }
 0x752   :  { %8845 = vmatpush1.bf16.msra.mxu1 %v8844_v22  ;;  %8973 = vmatpush1.bf16.msra.mxu0 %v8972_v23  ;;  %v2716_v22 = vld [vmem:[#allocation19 + $0x950] sm:$0xff] }
 0x753   :  { %2994 = vmatprep.mubr.f32.mxu1 %v11330_v15  ;;  %3136 = vmatprep.mubr.f32.mxu0 %v11330_v15  ;;  %v2720_v23 = vld [vmem:[#allocation19 + $0x970] sm:$0xff] }
 0x754   :  { %8847 = vmatprep.subr.bf16.mxu1 %v8846_v29  ;;  %8975 = vmatprep.subr.bf16.mxu0 %v8974_v30  ;;  %v8992_v29 = vpack.c.bf16 %v2720_v23, %v2716_v22  ;;  %v2722_v30 = vld [vmem:[#allocation19 + $0x980] sm:$0xff]  ;;  %v8880_v22 = vpack.c.bf16 %v2750_v13, %v2746_v9  ;;  %v2787_v9 = vld [vmem:[#allocation19 + $0xb88] sm:$0xff] }
 0x755   :  { %v8868_v39 = vpack.c.bf16 %v2726_v31, %v2722_v30  ;;  %v2763_v30 = vld [vmem:[#allocation19 + $0xac8] sm:$0xff] }
 0x756   :  { %8849 = vmatpush1.bf16.msra.mxu1 %v8848_v18  ;;  %8977 = vmatpush1.bf16.msra.mxu0 %v8976_v34  ;;  %v2724_v18 = vld [vmem:[#allocation19 + $0x990] sm:$0xff]  ;;  %v2767_v31 = vld [vmem:[#allocation19 + $0xae8] sm:$0xff] }
 0x757   :  { %8851 = vmatprep.subr.bf16.mxu1 %v8850_v37  ;;  %8979 = vmatprep.subr.bf16.mxu0 %v8978_v38  ;;  %v2728_v34 = vld [vmem:[#allocation19 + $0x9b0] sm:$0xff]  ;;  %v2733_v37 = vld [vmem:[#allocation19 + $0x9d8] sm:$0xff]  ;;  %v2791_v13 = vld [vmem:[#allocation19 + $0xba8] sm:$0xff] }
 0x758   :  { %v2737_v38 = vld [vmem:[#allocation19 + $0x9f8] sm:$0xff]  ;;  %v8996_v40 = vpack.c.bf16 %v2728_v34, %v2724_v18  ;;  %v8884_v18 = vpack.c.bf16 %v2758_v25, %v2754_v24  ;;  %v2795_v24 = vld [vmem:[#allocation19 + $0xbc8] sm:$0xff] }
 0x759   :  { %v8998_v45 = vpack.c.bf16 %v2737_v38, %v2733_v37  ;;  %v8886_v37 = vpack.c.bf16 %v2767_v31, %v2763_v30  ;;  %v2799_v25 = vld [vmem:[#allocation19 + $0xbe8] sm:$0xff]  ;;  %v2794_v30 = vld [vmem:[#allocation19 + $0xbc0] sm:$0xff] }
 0x75a   :  { %8853 = vmatpush1.bf16.msra.mxu1 %v8852_v4  ;;  %8981 = vmatpush1.bf16.msra.mxu0 %v8980_v46  ;;  %v2732_v4 = vld [vmem:[#allocation19 + $0x9d0] sm:$0xff]  ;;  %v2798_v31 = vld [vmem:[#allocation19 + $0xbe0] sm:$0xff] }
 0x75b   :  { %8855 = vmatprep.subr.bf16.mxu1 %v8854_v48  ;;  %8983 = vmatprep.subr.bf16.mxu0 %v8982_v49  ;;  %v2736_v46 = vld [vmem:[#allocation19 + $0x9f0] sm:$0xff]  ;;  %v2741_v48 = vld [vmem:[#allocation19 + $0xa18] sm:$0xff] }
 0x75c   :  { %v2745_v49 = vld [vmem:[#allocation19 + $0xa38] sm:$0xff]  ;;  %v9000_v5 = vpack.c.bf16 %v2736_v46, %v2732_v4  ;;  %v8888_v4 = vpack.c.bf16 %v2766_v36, %v2762_v35  ;;  %v2803_v35 = vld [vmem:[#allocation19 + $0xc08] sm:$0xff] }
 0x75d   :  { %v9002_v55 = vpack.c.bf16 %v2745_v49, %v2741_v48  ;;  %v8890_v48 = vpack.c.bf16 %v2775_v42, %v2771_v41  ;;  %v2807_v36 = vld [vmem:[#allocation19 + $0xc28] sm:$0xff] }
 0x75e   :  { %8857 = vmatpush1.bf16.msra.mxu1 %v8856_v57  ;;  %8985 = vmatpush1.bf16.msra.mxu0 %v8984_v3  ;;  %v2740_v57 = vld [vmem:[#allocation19 + $0xa10] sm:$0xff]  ;;  %v8906_v41 = vpack.c.bf16 %v2807_v36, %v2803_v35  ;;  %v2834_v36 = vld [vmem:[#allocation19 + $0xd00] sm:$0xff] }
 0x75f   :  { %8859 = vmatprep.subr.bf16.mxu1 %v8858_v63  ;;  %8987 = vmatprep.subr.bf16.mxu0 %v8986_v6  ;;  %v2744_v3 = vld [vmem:[#allocation19 + $0xa30] sm:$0xff]  ;;  %v2749_v63 = vld [vmem:[#allocation19 + $0xa58] sm:$0xff] }
 0x760   :  { %v2753_v6 = vld [vmem:[#allocation19 + $0xa78] sm:$0xff]  ;;  %v9004_v8 = vpack.c.bf16 %v2744_v3, %v2740_v57  ;;  %v8892_v57 = vpack.c.bf16 %v2774_v2, %v2770_v47  ;;  %v2811_v47 = vld [vmem:[#allocation19 + $0xc48] sm:$0xff] }
 0x761   :  { %v9006_v11 = vpack.c.bf16 %v2753_v6, %v2749_v63  ;;  %v8894_v63 = vpack.c.bf16 %v2783_v52, %v2779_v51  ;;  %v2815_v2 = vld [vmem:[#allocation19 + $0xc68] sm:$0xff]  ;;  %v2810_v51 = vld [vmem:[#allocation19 + $0xc40] sm:$0xff] }
 0x762   :  { %8861 = vmatpush1.bf16.msra.mxu1 %v8860_v12  ;;  %8989 = vmatpush1.bf16.msra.mxu0 %v8988_v14  ;;  %v2748_v12 = vld [vmem:[#allocation19 + $0xa50] sm:$0xff]  ;;  %v2814_v52 = vld [vmem:[#allocation19 + $0xc60] sm:$0xff] }
 0x763   :  { %8863 = vmatprep.subr.bf16.mxu1 %v8862_v20  ;;  %8991 = vmatprep.subr.bf16.mxu0 %v8990_v21  ;;  %v2752_v14 = vld [vmem:[#allocation19 + $0xa70] sm:$0xff]  ;;  %v2757_v20 = vld [vmem:[#allocation19 + $0xa98] sm:$0xff] }
 0x764   :  { %v2761_v21 = vld [vmem:[#allocation19 + $0xab8] sm:$0xff]  ;;  %v9008_v23 = vpack.c.bf16 %v2752_v14, %v2748_v12  ;;  %v8896_v12 = vpack.c.bf16 %v2782_v60, %v2778_v59  ;;  %v2819_v59 = vld [vmem:[#allocation19 + $0xc88] sm:$0xff] }
 0x765   :  { %v9010_v27 = vpack.c.bf16 %v2761_v21, %v2757_v20  ;;  %v8898_v20 = vpack.c.bf16 %v2791_v13, %v2787_v9  ;;  %v2823_v60 = vld [vmem:[#allocation19 + $0xca8] sm:$0xff]  ;;  %v2818_v13 = vld [vmem:[#allocation19 + $0xc80] sm:$0xff] }
 0x766   :  { %8865 = vmatpush1.bf16.msra.mxu1 %v8864_v28  ;;  %8993 = vmatpush1.bf16.msra.mxu0 %v8992_v29  ;;  %v2756_v28 = vld [vmem:[#allocation19 + $0xa90] sm:$0xff]  ;;  %v8914_v9 = vpack.c.bf16 %v2823_v60, %v2819_v59  ;;  %v2850_v60 = vld [vmem:[#allocation19 + $0xd80] sm:$0xff] }
 0x767   :  { %8867 = vmatprep.subr.bf16.mxu1 %v8866_v32  ;;  %8995 = vmatprep.subr.bf16.mxu0 %v8994_v33  ;;  %v2760_v29 = vld [vmem:[#allocation19 + $0xab0] sm:$0xff]  ;;  %v2765_v32 = vld [vmem:[#allocation19 + $0xad8] sm:$0xff] }
 0x768   :  { %v2769_v33 = vld [vmem:[#allocation19 + $0xaf8] sm:$0xff]  ;;  %v9012_v34 = vpack.c.bf16 %v2760_v29, %v2756_v28  ;;  %v8900_v28 = vpack.c.bf16 %v2790_v19, %v2786_v16  ;;  %v2827_v16 = vld [vmem:[#allocation19 + $0xcc8] sm:$0xff] }
 0x769   :  { %v9014_v38 = vpack.c.bf16 %v2769_v33, %v2765_v32  ;;  %v8902_v32 = vpack.c.bf16 %v2799_v25, %v2795_v24  ;;  %v2831_v19 = vld [vmem:[#allocation19 + $0xce8] sm:$0xff]  ;;  %v2826_v25 = vld [vmem:[#allocation19 + $0xcc0] sm:$0xff] }
 0x76a   :  { %8869 = vmatpush1.bf16.msra.mxu1 %v8868_v39  ;;  %8997 = vmatpush1.bf16.msra.mxu0 %v8996_v40  ;;  %v2764_v39 = vld [vmem:[#allocation19 + $0xad0] sm:$0xff]  ;;  %v8918_v24 = vpack.c.bf16 %v2831_v19, %v2827_v16  ;;  %v2858_v19 = vld [vmem:[#allocation19 + $0xdc0] sm:$0xff] }
 0x76b   :  { %8871 = vmatprep.subr.bf16.mxu1 %v8870_v43  ;;  %8999 = vmatprep.subr.bf16.mxu0 %v8998_v45  ;;  %v2768_v40 = vld [vmem:[#allocation19 + $0xaf0] sm:$0xff]  ;;  %v2773_v43 = vld [vmem:[#allocation19 + $0xb18] sm:$0xff] }
 0x76c   :  { %v2777_v45 = vld [vmem:[#allocation19 + $0xb38] sm:$0xff]  ;;  %v9016_v46 = vpack.c.bf16 %v2768_v40, %v2764_v39  ;;  %v8904_v39 = vpack.c.bf16 %v2798_v31, %v2794_v30  ;;  %v2835_v30 = vld [vmem:[#allocation19 + $0xd08] sm:$0xff] }
 0x76d   :  { %v9018_v49 = vpack.c.bf16 %v2777_v45, %v2773_v43  ;;  %v2802_v43 = vld [vmem:[#allocation19 + $0xc00] sm:$0xff]  ;;  %v2839_v31 = vld [vmem:[#allocation19 + $0xd28] sm:$0xff] }
 0x76e   :  { %8873 = vmatpush1.bf16.msra.mxu1 %v8872_v50  ;;  %9001 = vmatpush1.bf16.msra.mxu0 %v9000_v5  ;;  %v2772_v50 = vld [vmem:[#allocation19 + $0xb10] sm:$0xff]  ;;  %v2806_v45 = vld [vmem:[#allocation19 + $0xc20] sm:$0xff]  ;;  %v8922_v35 = vpack.c.bf16 %v2839_v31, %v2835_v30 }
 0x76f   :  { %8875 = vmatprep.subr.bf16.mxu1 %v8874_v53  ;;  %9003 = vmatprep.subr.bf16.mxu0 %v9002_v55  ;;  %v2776_v5 = vld [vmem:[#allocation19 + $0xb30] sm:$0xff]  ;;  %v2781_v53 = vld [vmem:[#allocation19 + $0xb58] sm:$0xff]  ;;  %v2866_v31 = vld [vmem:[#allocation19 + $0xe00] sm:$0xff] }
 0x770   :  { %v2785_v55 = vld [vmem:[#allocation19 + $0xb78] sm:$0xff]  ;;  %v9020_v3 = vpack.c.bf16 %v2776_v5, %v2772_v50  ;;  %v8908_v50 = vpack.c.bf16 %v2806_v45, %v2802_v43 }
 0x771   :  { %v9022_v6 = vpack.c.bf16 %v2785_v55, %v2781_v53  ;;  %v2812_v53 = vld [vmem:[#allocation19 + $0xc50] sm:$0xff]  ;;  %v8910_v55 = vpack.c.bf16 %v2815_v2, %v2811_v47  ;;  %v2845_v43 = vld [vmem:[#allocation19 + $0xd58] sm:$0xff]  ;;  %v2842_v2 = vld [vmem:[#allocation19 + $0xd40] sm:$0xff] }
 0x772   :  { %8877 = vmatpush1.bf16.msra.mxu1 %v8876_v7  ;;  %9005 = vmatpush1.bf16.msra.mxu0 %v9004_v8  ;;  %v2780_v7 = vld [vmem:[#allocation19 + $0xb50] sm:$0xff]  ;;  %v2849_v45 = vld [vmem:[#allocation19 + $0xd78] sm:$0xff] }
 0x773   :  { %8879 = vmatprep.subr.bf16.mxu1 %v8878_v10  ;;  %9007 = vmatprep.subr.bf16.mxu0 %v9006_v11  ;;  %v2784_v8 = vld [vmem:[#allocation19 + $0xb70] sm:$0xff]  ;;  %v2789_v10 = vld [vmem:[#allocation19 + $0xb98] sm:$0xff] }
 0x774   :  { %v2793_v11 = vld [vmem:[#allocation19 + $0xbb8] sm:$0xff]  ;;  %v9024_v14 = vpack.c.bf16 %v2784_v8, %v2780_v7  ;;  %v8912_v7 = vpack.c.bf16 %v2814_v52, %v2810_v51  ;;  %v2851_v51 = vld [vmem:[#allocation19 + $0xd88] sm:$0xff] }
 0x775   :  { %v9026_v21 = vpack.c.bf16 %v2793_v11, %v2789_v10  ;;  %v2822_v10 = vld [vmem:[#allocation19 + $0xca0] sm:$0xff]  ;;  %v2820_v11 = vld [vmem:[#allocation19 + $0xc90] sm:$0xff]  ;;  %v2855_v52 = vld [vmem:[#allocation19 + $0xda8] sm:$0xff] }
 0x776   :  { %8881 = vmatpush1.bf16.msra.mxu1 %v8880_v22  ;;  %9009 = vmatpush1.bf16.msra.mxu0 %v9008_v23  ;;  %v2788_v22 = vld [vmem:[#allocation19 + $0xb90] sm:$0xff]  ;;  %v8930_v59 = vpack.c.bf16 %v2855_v52, %v2851_v51  ;;  %v2882_v52 = vld [vmem:[#allocation19 + $0xe80] sm:$0xff] }
 0x777   :  { %8883 = vmatprep.subr.bf16.mxu1 %v8882_v44  ;;  %9011 = vmatprep.subr.bf16.mxu0 %v9010_v27  ;;  %v2792_v23 = vld [vmem:[#allocation19 + $0xbb0] sm:$0xff]  ;;  %v2797_v44 = vld [vmem:[#allocation19 + $0xbd8] sm:$0xff] }
 0x778   :  { %v2801_v27 = vld [vmem:[#allocation19 + $0xbf8] sm:$0xff]  ;;  %v9028_v29 = vpack.c.bf16 %v2792_v23, %v2788_v22  ;;  %v8916_v22 = vpack.c.bf16 %v2822_v10, %v2818_v13  ;;  %v2863_v13 = vld [vmem:[#allocation19 + $0xde8] sm:$0xff] }
 0x779   :  { %v9030_v33 = vpack.c.bf16 %v2801_v27, %v2797_v44  ;;  %v2830_v44 = vld [vmem:[#allocation19 + $0xce0] sm:$0xff]  ;;  %v2828_v27 = vld [vmem:[#allocation19 + $0xcd0] sm:$0xff]  ;;  %v2861_v10 = vld [vmem:[#allocation19 + $0xdd8] sm:$0xff] }
 0x77a   :  { %8885 = vmatpush1.bf16.msra.mxu1 %v8884_v18  ;;  %9013 = vmatpush1.bf16.msra.mxu0 %v9012_v34  ;;  %v2796_v18 = vld [vmem:[#allocation19 + $0xbd0] sm:$0xff] }
 0x77b   :  { %8887 = vmatprep.subr.bf16.mxu1 %v8886_v37  ;;  %9015 = vmatprep.subr.bf16.mxu0 %v9014_v38  ;;  %v2800_v34 = vld [vmem:[#allocation19 + $0xbf0] sm:$0xff]  ;;  %v2805_v37 = vld [vmem:[#allocation19 + $0xc18] sm:$0xff] }
 0x77c   :  { %v2809_v38 = vld [vmem:[#allocation19 + $0xc38] sm:$0xff]  ;;  %v9032_v40 = vpack.c.bf16 %v2800_v34, %v2796_v18  ;;  %v8920_v18 = vpack.c.bf16 %v2830_v44, %v2826_v25  ;;  %v2871_v25 = vld [vmem:[#allocation19 + $0xe28] sm:$0xff] }
 0x77d   :  { %v9034_v42 = vpack.c.bf16 %v2809_v38, %v2805_v37  ;;  %v2838_v37 = vld [vmem:[#allocation19 + $0xd20] sm:$0xff]  ;;  %v2836_v38 = vld [vmem:[#allocation19 + $0xd10] sm:$0xff]  ;;  %v2869_v44 = vld [vmem:[#allocation19 + $0xe18] sm:$0xff] }
 0x77e   :  { %8889 = vmatpush1.bf16.msra.mxu1 %v8888_v4  ;;  %9017 = vmatpush1.bf16.msra.mxu0 %v9016_v46  ;;  %v2804_v4 = vld [vmem:[#allocation19 + $0xc10] sm:$0xff] }
 0x77f   :  { %8891 = vmatprep.subr.bf16.mxu1 %v8890_v48  ;;  %9019 = vmatprep.subr.bf16.mxu0 %v9018_v49  ;;  %v2808_v46 = vld [vmem:[#allocation19 + $0xc30] sm:$0xff]  ;;  %v2813_v48 = vld [vmem:[#allocation19 + $0xc58] sm:$0xff] }
 0x780   :  { %v2817_v49 = vld [vmem:[#allocation19 + $0xc78] sm:$0xff]  ;;  %v9036_v5 = vpack.c.bf16 %v2808_v46, %v2804_v4  ;;  %v8924_v4 = vpack.c.bf16 %v2838_v37, %v2834_v36  ;;  %v2879_v36 = vld [vmem:[#allocation19 + $0xe68] sm:$0xff] }
 0x781   :  { %v2877_v37 = vld [vmem:[#allocation19 + $0xe58] sm:$0xff] }
 0x782   :  { %8893 = vmatpush1.bf16.msra.mxu1 %v8892_v57  ;;  %9021 = vmatpush1.bf16.msra.mxu0 %v9020_v3  ;;  %v9038_v57 = vpack.c.bf16 %v2817_v49, %v2813_v48  ;;  %v2816_v3 = vld [vmem:[#allocation19 + $0xc70] sm:$0xff]  ;;  %v2846_v48 = vld [vmem:[#allocation19 + $0xd60] sm:$0xff] }
 0x783   :  { %8895 = vmatprep.subr.bf16.mxu1 %v8894_v63  ;;  %9023 = vmatprep.subr.bf16.mxu0 %v9022_v6  ;;  %v2821_v63 = vld [vmem:[#allocation19 + $0xc98] sm:$0xff]  ;;  %v9040_v8 = vpack.c.bf16 %v2816_v3, %v2812_v53  ;;  %v2844_v49 = vld [vmem:[#allocation19 + $0xd50] sm:$0xff] }
 0x784   :  { %v2825_v6 = vld [vmem:[#allocation19 + $0xcb8] sm:$0xff] }
 0x785   :  { %v2853_v53 = vld [vmem:[#allocation19 + $0xd98] sm:$0xff] }
 0x786   :  { %8897 = vmatpush1.bf16.msra.mxu1 %v8896_v12  ;;  %9025 = vmatpush1.bf16.msra.mxu0 %v9024_v14  ;;  %v9042_v12 = vpack.c.bf16 %v2825_v6, %v2821_v63  ;;  %v2824_v14 = vld [vmem:[#allocation19 + $0xcb0] sm:$0xff]  ;;  %v2854_v63 = vld [vmem:[#allocation19 + $0xda0] sm:$0xff] }
 0x787   :  { %8899 = vmatprep.subr.bf16.mxu1 %v8898_v20  ;;  %9027 = vmatprep.subr.bf16.mxu0 %v9026_v21  ;;  %v2829_v20 = vld [vmem:[#allocation19 + $0xcd8] sm:$0xff]  ;;  %v9044_v23 = vpack.c.bf16 %v2824_v14, %v2820_v11  ;;  %v2852_v6 = vld [vmem:[#allocation19 + $0xd90] sm:$0xff] }
 0x788   :  { %v2833_v21 = vld [vmem:[#allocation19 + $0xcf8] sm:$0xff] }
 0x789   :  { %v2865_v11 = vld [vmem:[#allocation19 + $0xdf8] sm:$0xff] }
 0x78a   :  { %8901 = vmatpush1.bf16.msra.mxu1 %v8900_v28  ;;  %9029 = vmatpush1.bf16.msra.mxu0 %v9028_v29  ;;  %v9046_v28 = vpack.c.bf16 %v2833_v21, %v2829_v20  ;;  %v2832_v29 = vld [vmem:[#allocation19 + $0xcf0] sm:$0xff]  ;;  %v2862_v20 = vld [vmem:[#allocation19 + $0xde0] sm:$0xff] }
 0x78b   :  { %8903 = vmatprep.subr.bf16.mxu1 %v8902_v32  ;;  %9031 = vmatprep.subr.bf16.mxu0 %v9030_v33  ;;  %v2837_v32 = vld [vmem:[#allocation19 + $0xd18] sm:$0xff]  ;;  %v9048_v34 = vpack.c.bf16 %v2832_v29, %v2828_v27  ;;  %v2860_v21 = vld [vmem:[#allocation19 + $0xdd0] sm:$0xff] }
 0x78c   :  { %v2841_v33 = vld [vmem:[#allocation19 + $0xd38] sm:$0xff] }
 0x78d   :  { %v2873_v27 = vld [vmem:[#allocation19 + $0xe38] sm:$0xff] }
 0x78e   :  { %8905 = vmatpush1.bf16.msra.mxu1 %v8904_v39  ;;  %9033 = vmatpush1.bf16.msra.mxu0 %v9032_v40  ;;  %v9050_v39 = vpack.c.bf16 %v2841_v33, %v2837_v32  ;;  %v2840_v40 = vld [vmem:[#allocation19 + $0xd30] sm:$0xff]  ;;  %v2870_v32 = vld [vmem:[#allocation19 + $0xe20] sm:$0xff] }
 0x78f   :  { %8907 = vmatprep.subr.bf16.mxu1 %v8906_v41  ;;  %9035 = vmatprep.subr.bf16.mxu0 %v9034_v42  ;;  %v2843_v41 = vld [vmem:[#allocation19 + $0xd48] sm:$0xff]  ;;  %v9052_v46 = vpack.c.bf16 %v2840_v40, %v2836_v38  ;;  %v2868_v33 = vld [vmem:[#allocation19 + $0xe10] sm:$0xff]  ;;  %v2881_v38 = vld [vmem:[#allocation19 + $0xe78] sm:$0xff] }
 0x790   :  { %v2847_v42 = vld [vmem:[#allocation19 + $0xd68] sm:$0xff] }
 0x791   :  { %2995 = vmatmul.mubr.f32.vlgmr.msra.gmra.mrb[14].mxu1 %v11332_v17  ;;  %3137 = vmatmul.mubr.f32.vlgmr.msra.gmra.mrb[16].mxu0 %v11332_v17  ;;  %v8926_v47 = vpack.c.bf16 %v2847_v42, %v2843_v41  ;;  %v2874_v42 = vld [vmem:[#allocation19 + $0xe40] sm:$0xff] }
 0x792   :  { %8909 = vmatpush1.bf16.msra.mxu1 %v8908_v50  ;;  %3065 = vmatprep.mubr.f32.mxu1 %v11348_v54  ;;  %v9054_v50 = vpack.c.bf16 %v2849_v45, %v2845_v43  ;;  %v2878_v43 = vld [vmem:[#allocation19 + $0xe60] sm:$0xff]  ;;  %v2876_v45 = vld [vmem:[#allocation19 + $0xe50] sm:$0xff] }
 0x793   :  { %9037 = vmatpush1.bf16.msra.mxu0 %v9036_v5  ;;  %3207 = vmatprep.mubr.f32.mxu0 %v11348_v54  ;;  %v2848_v5 = vld [vmem:[#allocation19 + $0xd70] sm:$0xff] }
 0x794   :  { %8911 = vmatprep.subr.bf16.mxu1 %v8910_v55  ;;  %9039 = vmatprep.subr.bf16.mxu0 %v9038_v57  ;;  %v2857_v55 = vld [vmem:[#allocation19 + $0xdb8] sm:$0xff]  ;;  %v8928_v57 = vpack.c.bf16 %v2846_v48, %v2842_v2  ;;  %v9056_v3 = vpack.c.bf16 %v2848_v5, %v2844_v49  ;;  %v2887_v2 = vld [vmem:[#allocation19 + $0xea8] sm:$0xff] }
 0x795   :  { %v2885_v48 = vld [vmem:[#allocation19 + $0xe98] sm:$0xff] }
 0x796   :  { %8913 = vmatpush1.bf16.msra.mxu1 %v8912_v7  ;;  %v9058_v7 = vpack.c.bf16 %v2857_v55, %v2853_v53  ;;  %v2889_v49 = vld [vmem:[#allocation19 + $0xeb8] sm:$0xff]  ;;  %v2886_v53 = vld [vmem:[#allocation19 + $0xea0] sm:$0xff]  ;;  %v2884_v55 = vld [vmem:[#allocation19 + $0xe90] sm:$0xff] }
 0x797   :  { %9041 = vmatpush1.bf16.msra.mxu0 %v9040_v8  ;;  %8915 = vmatprep.subr.bf16.mxu1 %v8914_v9  ;;  %v2856_v8 = vld [vmem:[#allocation19 + $0xdb0] sm:$0xff]  ;;  %v2859_v9 = vld [vmem:[#allocation19 + $0xdc8] sm:$0xff] }
 0x798   :  { %9043 = vmatprep.subr.bf16.mxu0 %v9042_v12  ;;  %v8932_v12 = vpack.c.bf16 %v2854_v63, %v2850_v60  ;;  %v9060_v14 = vpack.c.bf16 %v2856_v8, %v2852_v6  ;;  %v8934_v16 = vpack.c.bf16 %v2863_v13, %v2859_v9  ;;  %v2895_v60 = vld [vmem:[#allocation19 + $0xee8] sm:$0xff]  ;;  %v2893_v63 = vld [vmem:[#allocation19 + $0xed8] sm:$0xff]  ;;  %v2890_v13 = vld [vmem:[#allocation19 + $0xec0] sm:$0xff] }
 0x799   :  { %v2897_v6 = vld [vmem:[#allocation19 + $0xef8] sm:$0xff] }
 0x79a   :  { %8917 = vmatpush1.bf16.msra.mxu1 %v8916_v22  ;;  %v9062_v22 = vpack.c.bf16 %v2865_v11, %v2861_v10  ;;  %v2894_v10 = vld [vmem:[#allocation19 + $0xee0] sm:$0xff]  ;;  %v2892_v11 = vld [vmem:[#allocation19 + $0xed0] sm:$0xff] }
 0x79b   :  { %9045 = vmatpush1.bf16.msra.mxu0 %v9044_v23  ;;  %8919 = vmatprep.subr.bf16.mxu1 %v8918_v24  ;;  %v2864_v23 = vld [vmem:[#allocation19 + $0xdf0] sm:$0xff]  ;;  %v2867_v24 = vld [vmem:[#allocation19 + $0xe08] sm:$0xff] }
 0x79c   :  { %9047 = vmatprep.subr.bf16.mxu0 %v9046_v28  ;;  %v8936_v28 = vpack.c.bf16 %v2862_v20, %v2858_v19  ;;  %v9064_v29 = vpack.c.bf16 %v2864_v23, %v2860_v21  ;;  %v8938_v30 = vpack.c.bf16 %v2871_v25, %v2867_v24  ;;  %v2903_v19 = vld [vmem:[#allocation19 + $0xf28] sm:$0xff]  ;;  %v2901_v20 = vld [vmem:[#allocation19 + $0xf18] sm:$0xff]  ;;  %v2898_v25 = vld [vmem:[#allocation19 + $0xf00] sm:$0xff] }
 0x79d   :  { %v2905_v21 = vld [vmem:[#allocation19 + $0xf38] sm:$0xff] }
 0x79e   :  { %8921 = vmatpush1.bf16.msra.mxu1 %v8920_v18  ;;  %v9066_v18 = vpack.c.bf16 %v2873_v27, %v2869_v44  ;;  %v2902_v44 = vld [vmem:[#allocation19 + $0xf20] sm:$0xff]  ;;  %v2900_v27 = vld [vmem:[#allocation19 + $0xf10] sm:$0xff] }
 0x79f   :  { %9049 = vmatpush1.bf16.msra.mxu0 %v9048_v34  ;;  %8923 = vmatprep.subr.bf16.mxu1 %v8922_v35  ;;  %v2872_v34 = vld [vmem:[#allocation19 + $0xe30] sm:$0xff]  ;;  %v2875_v35 = vld [vmem:[#allocation19 + $0xe48] sm:$0xff] }
 0x7a0   :  { %9051 = vmatprep.subr.bf16.mxu0 %v9050_v39  ;;  %v8940_v39 = vpack.c.bf16 %v2870_v32, %v2866_v31  ;;  %v9068_v40 = vpack.c.bf16 %v2872_v34, %v2868_v33  ;;  %v8942_v41 = vpack.c.bf16 %v2879_v36, %v2875_v35  ;;  %v2911_v31 = vld [vmem:[#allocation19 + $0xf68] sm:$0xff]  ;;  %v2909_v32 = vld [vmem:[#allocation19 + $0xf58] sm:$0xff]  ;;  %v2906_v36 = vld [vmem:[#allocation19 + $0xf40] sm:$0xff] }
 0x7a1   :  { %v2913_v33 = vld [vmem:[#allocation19 + $0xf78] sm:$0xff] }
 0x7a2   :  { %8925 = vmatpush1.bf16.msra.mxu1 %v8924_v4  ;;  %v9070_v4 = vpack.c.bf16 %v2881_v38, %v2877_v37  ;;  %v2910_v37 = vld [vmem:[#allocation19 + $0xf60] sm:$0xff]  ;;  %v2908_v38 = vld [vmem:[#allocation19 + $0xf50] sm:$0xff] }
 0x7a3   :  { %9053 = vmatpush1.bf16.msra.mxu0 %v9052_v46  ;;  %8927 = vmatprep.subr.bf16.mxu1 %v8926_v47  ;;  %v2880_v46 = vld [vmem:[#allocation19 + $0xe70] sm:$0xff]  ;;  %v2883_v47 = vld [vmem:[#allocation19 + $0xe88] sm:$0xff] }
 0x7a4   :  { %9055 = vmatprep.subr.bf16.mxu0 %v9054_v50  ;;  %v8944_v50 = vpack.c.bf16 %v2878_v43, %v2874_v42  ;;  %v9072_v5 = vpack.c.bf16 %v2880_v46, %v2876_v45  ;;  %v8946_v51 = vpack.c.bf16 %v2887_v2, %v2883_v47  ;;  %v2919_v42 = vld [vmem:[#allocation19 + $0xfa8] sm:$0xff]  ;;  %v2917_v43 = vld [vmem:[#allocation19 + $0xf98] sm:$0xff]  ;;  %v2914_v2 = vld [vmem:[#allocation19 + $0xf80] sm:$0xff] }
 0x7a5   :  { %v2921_v45 = vld [vmem:[#allocation19 + $0xfb8] sm:$0xff] }
 0x7a6   :  { %8929 = vmatpush1.bf16.msra.mxu1 %v8928_v57  ;;  %v9074_v57 = vpack.c.bf16 %v2889_v49, %v2885_v48  ;;  %v2918_v48 = vld [vmem:[#allocation19 + $0xfa0] sm:$0xff]  ;;  %v2916_v49 = vld [vmem:[#allocation19 + $0xf90] sm:$0xff] }
 0x7a7   :  { %9057 = vmatpush1.bf16.msra.mxu0 %v9056_v3  ;;  %8931 = vmatprep.subr.bf16.mxu1 %v8930_v59  ;;  %v2888_v3 = vld [vmem:[#allocation19 + $0xeb0] sm:$0xff]  ;;  %v2891_v59 = vld [vmem:[#allocation19 + $0xec8] sm:$0xff] }
 0x7a8   :  { %9059 = vmatprep.subr.bf16.mxu0 %v9058_v7  ;;  %v8948_v7 = vpack.c.bf16 %v2886_v53, %v2882_v52  ;;  %v9076_v8 = vpack.c.bf16 %v2888_v3, %v2884_v55  ;;  %v8950_v9 = vpack.c.bf16 %v2895_v60, %v2891_v59  ;;  %v2927_v52 = vld [vmem:[#allocation19 + $0xfe8] sm:$0xff]  ;;  %v2925_v53 = vld [vmem:[#allocation19 + $0xfd8] sm:$0xff]  ;;  %v2922_v60 = vld [vmem:[#allocation19 + $0xfc0] sm:$0xff] }
 0x7a9   :  { %v2929_v55 = vld [vmem:[#allocation19 + $0xff8] sm:$0xff] }
 0x7aa   :  { %8933 = vmatpush1.bf16.msra.mxu1 %v8932_v12  ;;  %v9078_v12 = vpack.c.bf16 %v2897_v6, %v2893_v63  ;;  %v2926_v63 = vld [vmem:[#allocation19 + $0xfe0] sm:$0xff]  ;;  %v9094_v6 = vpack.c.bf16 %v2929_v55, %v2925_v53  ;;  %v3545_v53 = vld [vmem:[#allocation19 + $0x1030] sm:$0xff] }
 0x7ab   :  { %9061 = vmatpush1.bf16.msra.mxu0 %v9060_v14  ;;  %8935 = vmatprep.subr.bf16.mxu1 %v8934_v16  ;;  %v2896_v14 = vld [vmem:[#allocation19 + $0xef0] sm:$0xff]  ;;  %v2899_v16 = vld [vmem:[#allocation19 + $0xf08] sm:$0xff]  ;;  %v3571_v55 = vld [vmem:[#allocation19 + $0x1100] sm:$0xff] }
 0x7ac   :  { %9063 = vmatprep.subr.bf16.mxu0 %v9062_v22  ;;  %v8952_v22 = vpack.c.bf16 %v2894_v10, %v2890_v13  ;;  %v9080_v23 = vpack.c.bf16 %v2896_v14, %v2892_v11  ;;  %v8954_v24 = vpack.c.bf16 %v2903_v19, %v2899_v16  ;;  %v3540_v16 = vld [vmem:[#allocation19 + $0x1008] sm:$0xff] }
 0x7ad   :  { %v3544_v19 = vld [vmem:[#allocation19 + $0x1028] sm:$0xff] }
 0x7ae   :  { %8937 = vmatpush1.bf16.msra.mxu1 %v8936_v28  ;;  %v9082_v28 = vpack.c.bf16 %v2905_v21, %v2901_v20  ;;  %v3539_v21 = vld [vmem:[#allocation19 + $0x1000] sm:$0xff] }
 0x7af   :  { %9065 = vmatpush1.bf16.msra.mxu0 %v9064_v29  ;;  %8939 = vmatprep.subr.bf16.mxu1 %v8938_v30  ;;  %v2904_v29 = vld [vmem:[#allocation19 + $0xf30] sm:$0xff]  ;;  %v2907_v30 = vld [vmem:[#allocation19 + $0xf48] sm:$0xff] }
 0x7b0   :  { %9067 = vmatprep.subr.bf16.mxu0 %v9066_v18  ;;  %v8956_v18 = vpack.c.bf16 %v2902_v44, %v2898_v25  ;;  %v9084_v34 = vpack.c.bf16 %v2904_v29, %v2900_v27  ;;  %v8958_v35 = vpack.c.bf16 %v2911_v31, %v2907_v30  ;;  %v3215_v25 = vld [vmem:[#allocation20 + $0x10] sm:$0xff]  ;;  %v9098_v27 = vpack.c.bf16 %v3544_v19, %v3540_v16  ;;  %v3548_v29 = vld [vmem:[#allocation19 + $0x1048] sm:$0xff]  ;;  %v3547_v31 = vld [vmem:[#allocation19 + $0x1040] sm:$0xff] }
 0x7b1   :  { %v3552_v30 = vld [vmem:[#allocation19 + $0x1068] sm:$0xff]  ;;  %v3558_v16 = vld [vmem:[#allocation19 + $0x1098] sm:$0xff] }
 0x7b2   :  { %8941 = vmatpush1.bf16.msra.mxu1 %v8940_v39  ;;  %v9086_v39 = vpack.c.bf16 %v2913_v33, %v2909_v32  ;;  %v3551_v32 = vld [vmem:[#allocation19 + $0x1060] sm:$0xff]  ;;  %v3556_v33 = vld [vmem:[#allocation19 + $0x1088] sm:$0xff]  ;;  %v3562_v19 = vld [vmem:[#allocation19 + $0x10b8] sm:$0xff] }
 0x7b3   :  { %9069 = vmatpush1.bf16.msra.mxu0 %v9068_v40  ;;  %8943 = vmatprep.subr.bf16.mxu1 %v8942_v41  ;;  %v2912_v40 = vld [vmem:[#allocation19 + $0xf70] sm:$0xff]  ;;  %v2915_v41 = vld [vmem:[#allocation19 + $0xf88] sm:$0xff] }
 0x7b4   :  { %9071 = vmatprep.subr.bf16.mxu0 %v9070_v4  ;;  %v8960_v4 = vpack.c.bf16 %v2910_v37, %v2906_v36  ;;  %v9088_v46 = vpack.c.bf16 %v2912_v40, %v2908_v38  ;;  %v8962_v47 = vpack.c.bf16 %v2919_v42, %v2915_v41  ;;  %v9104_v36 = vpack.c.bf16 %v3551_v32, %v3547_v31  ;;  %v3555_v37 = vld [vmem:[#allocation19 + $0x1080] sm:$0xff]  ;;  %v3542_v40 = vld [vmem:[#allocation19 + $0x1018] sm:$0xff]  ;;  %v3564_v42 = vld [vmem:[#allocation19 + $0x10c8] sm:$0xff] }
 0x7b5   :  { %v3546_v41 = vld [vmem:[#allocation19 + $0x1038] sm:$0xff]  ;;  %v3596_v32 = vld [vmem:[#allocation19 + $0x11c8] sm:$0xff] }
 0x7b6   :  { %8945 = vmatpush1.bf16.msra.mxu1 %v8944_v50  ;;  %v9090_v50 = vpack.c.bf16 %v2921_v45, %v2917_v43  ;;  %v3568_v43 = vld [vmem:[#allocation19 + $0x10e8] sm:$0xff]  ;;  %v2671_v45 = vld [vmem:[#allocation20] sm:$0xff]  ;;  %v3570_v31 = vld [vmem:[#allocation19 + $0x10f8] sm:$0xff] }
 0x7b7   :  { %9073 = vmatpush1.bf16.msra.mxu0 %v9072_v5  ;;  %8947 = vmatprep.subr.bf16.mxu1 %v8946_v51  ;;  %v2920_v5 = vld [vmem:[#allocation19 + $0xfb0] sm:$0xff]  ;;  %v2923_v51 = vld [vmem:[#allocation19 + $0xfc8] sm:$0xff] }
 0x7b8   :  { %9075 = vmatprep.subr.bf16.mxu0 %v9074_v57  ;;  %v8964_v57 = vpack.c.bf16 %v2918_v48, %v2914_v2  ;;  %v9092_v3 = vpack.c.bf16 %v2920_v5, %v2916_v49  ;;  %v8966_v59 = vpack.c.bf16 %v2927_v52, %v2923_v51  ;;  %v3563_v2 = vld [vmem:[#allocation19 + $0x10c0] sm:$0xff]  ;;  %v3572_v49 = vld [vmem:[#allocation19 + $0x1108] sm:$0xff]  ;;  %v3541_v52 = vld [vmem:[#allocation19 + $0x1010] sm:$0xff] }
 0x7b9   :  { %v3567_v48 = vld [vmem:[#allocation19 + $0x10e0] sm:$0xff]  ;;  %v2672_v5 = vld [vmem:[#allocation20 + $0x8] sm:$0x3f] }
 0x7ba   :  { %8949 = vmatpush1.bf16.msra.mxu1 %v8948_v7  ;;  %v2924_v7 = vld [vmem:[#allocation19 + $0xfd0] sm:$0xff]  ;;  %v9112_v51 = vpack.c.bf16 %v3567_v48, %v3563_v2  ;;  %v3603_v48 = vld [vmem:[#allocation19 + $0x1200] sm:$0xff] }
 0x7bb   :  { %9077 = vmatpush1.bf16.msra.mxu0 %v9076_v8  ;;  %8951 = vmatprep.subr.bf16.mxu1 %v8950_v9  ;;  %v2928_v8 = vld [vmem:[#allocation19 + $0xff0] sm:$0xff]  ;;  %v8968_v9 = vpack.c.bf16 %v2926_v63, %v2922_v60  ;;  %v3554_v60 = vld [vmem:[#allocation19 + $0x1078] sm:$0xff]  ;;  %v3580_v63 = vld [vmem:[#allocation19 + $0x1148] sm:$0xff] }
 0x7bc   :  { %9079 = vmatprep.subr.bf16.mxu0 %v9078_v12  ;;  %v9096_v13 = vpack.c.bf16 %v2928_v8, %v2924_v7  ;;  %v9228_v7 = vpack.c.bf16 %v3545_v53, %v3541_v52  ;;  %v3577_v2 = vld [vmem:[#allocation19 + $0x1130] sm:$0xff]  ;;  %v3612_v52 = vld [vmem:[#allocation19 + $0x1248] sm:$0xff] }
 0x7bd   :  { %v3616_v53 = vld [vmem:[#allocation19 + $0x1268] sm:$0xff] }
 0x7be   :  { %8953 = vmatpush1.bf16.msra.mxu1 %v8952_v22  ;;  %v3543_v22 = vld [vmem:[#allocation19 + $0x1020] sm:$0xff] }
 0x7bf   :  { %9081 = vmatpush1.bf16.msra.mxu0 %v9080_v23  ;;  %8955 = vmatprep.subr.bf16.mxu1 %v8954_v24 }
 0x7c0   :  { %9083 = vmatprep.subr.bf16.mxu0 %v9082_v28  ;;  %v9100_v28 = vpack.c.bf16 %v3543_v22, %v3539_v21  ;;  %v3592_v21 = vld [vmem:[#allocation19 + $0x11a8] sm:$0xff] }
 0x7c2   :  { %8957 = vmatpush1.bf16.msra.mxu1 %v8956_v18  ;;  %v3560_v18 = vld [vmem:[#allocation19 + $0x10a8] sm:$0xff] }
 0x7c3   :  { %9085 = vmatpush1.bf16.msra.mxu0 %v9084_v34  ;;  %8959 = vmatprep.subr.bf16.mxu1 %v8958_v35  ;;  %v3216_v34 = vld [vmem:[#allocation20 + $0x18] sm:$0x3f]  ;;  %v9102_v35 = vpack.c.bf16 %v3552_v30, %v3548_v29  ;;  %v9106_v38 = vpack.c.bf16 %v3560_v18, %v3556_v33  ;;  %v3591_v29 = vld [vmem:[#allocation19 + $0x11a0] sm:$0xff]  ;;  %v3600_v33 = vld [vmem:[#allocation19 + $0x11e8] sm:$0xff] }
 0x7c4   :  { %9087 = vmatprep.subr.bf16.mxu0 %v9086_v39  ;;  %v3559_v39 = vld [vmem:[#allocation19 + $0x10a0] sm:$0xff]  ;;  %v3566_v30 = vld [vmem:[#allocation19 + $0x10d8] sm:$0xff] }
 0x7c6   :  { %8961 = vmatpush1.bf16.msra.mxu1 %v8960_v4  ;;  %v9108_v4 = vpack.c.bf16 %v3559_v39, %v3555_v37  ;;  %v3569_v37 = vld [vmem:[#allocation19 + $0x10f0] sm:$0xff]  ;;  %v9126_v39 = vpack.c.bf16 %v3600_v33, %v3596_v32  ;;  %v3627_v32 = vld [vmem:[#allocation19 + $0x12c0] sm:$0xff] }
 0x7c7   :  { %9089 = vmatpush1.bf16.msra.mxu0 %v9088_v46  ;;  %8963 = vmatprep.subr.bf16.mxu1 %v8962_v47  ;;  %v9226_v46 = vpack.c.bf16 %v3546_v41, %v3542_v40  ;;  %v9110_v47 = vpack.c.bf16 %v3568_v43, %v3564_v42  ;;  %v3599_v40 = vld [vmem:[#allocation19 + $0x11e0] sm:$0xff]  ;;  %v3574_v41 = vld [vmem:[#allocation19 + $0x1118] sm:$0xff]  ;;  %v3604_v43 = vld [vmem:[#allocation19 + $0x1208] sm:$0xff] }
 0x7c8   :  { %9091 = vmatprep.subr.bf16.mxu0 %v9090_v50  ;;  %v3576_v50 = vld [vmem:[#allocation19 + $0x1128] sm:$0xff]  ;;  %v3578_v42 = vld [vmem:[#allocation19 + $0x1138] sm:$0xff] }
 0x7ca   :  { %8965 = vmatpush1.bf16.msra.mxu1 %v8964_v57  ;;  %v9114_v57 = vpack.c.bf16 %v3576_v50, %v3572_v49  ;;  %v3607_v50 = vld [vmem:[#allocation19 + $0x1220] sm:$0xff] }
 0x7cb   :  { %9093 = vmatpush1.bf16.msra.mxu0 %v9092_v3  ;;  %8967 = vmatprep.subr.bf16.mxu1 %v8966_v59  ;;  %v3575_v3 = vld [vmem:[#allocation19 + $0x1120] sm:$0xff]  ;;  %v3550_v59 = vld [vmem:[#allocation19 + $0x1058] sm:$0xff] }
 0x7cc   :  { %9095 = vmatprep.subr.bf16.mxu0 %v9094_v6  ;;  %v3584_v6 = vld [vmem:[#allocation19 + $0x1168] sm:$0xff]  ;;  %v9116_v8 = vpack.c.bf16 %v3575_v3, %v3571_v55 }
 0x7ce   :  { %8969 = vmatpush1.bf16.msra.mxu1 %v8968_v9  ;;  %v9230_v9 = vpack.c.bf16 %v3554_v60, %v3550_v59  ;;  %v3581_v59 = vld [vmem:[#allocation19 + $0x1150] sm:$0xff] }
 0x7cf   :  { %9097 = vmatpush1.bf16.msra.mxu0 %v9096_v13  ;;  %v3549_v13 = vld [vmem:[#allocation19 + $0x1050] sm:$0xff] }
 0x7d0   :  { %v3585_v60 = vld [vmem:[#allocation19 + $0x1170] sm:$0xff] }
 0x7d1   :  { %3066 = vmatmul.mubr.f32.vlgmr.msra.gmra.mrb[14].mxu1 %v11350_v26 }
 0x7d2   :  { %3208 = vmatmul.mubr.f32.vlgmr.msra.gmra.mrb[16].mxu0 %v11350_v26  ;;  %3365 = vmatprep.mubr.f32.mxu1 %v10882_v1 }
 0x7d3   :  { %3288 = vmatprep.mubr.f32.mxu0 %v10882_v1 }
 0x824   :  { %v2524_v10 = vpop.f32.mrb[12].mxu1  ;;  %v2666_v11 = vpop.f32.mrb[14].mxu0 }
 0x825   :  { %v2526_v12 = vpop.f32.mrb[13].mxu1  ;;  %v2668_v14 = vpop.f32.mrb[15].mxu0 }
 0x8a4   :  { %v3067_v20 = vpop.f32.mrb[14].mxu1 }
 0x8a5   :  { %v3209_v23 = vpop.f32.mrb[16].mxu0  ;;  %v3069_v24 = vpop.f32.mrb[15].mxu1 }
 0x8a6   :  { %v3211_v44 = vpop.f32.mrb[17].mxu0  ;;  %3224 = vmatprep.subr.mxu0 %v3069_v24  ;;  %v9234_v24 = vpack.c.bf16 %v3562_v19, %v3558_v16  ;;  %v3589_v16 = vld [vmem:[#allocation19 + $0x1190] sm:$0xff] }
 0x8a7   :  { %3301 = vmatprep.subr.mxu1 %v3211_v44  ;;  %3225 = vmatpush1.msra.mxu0 %v3067_v20  ;;  %v3588_v20 = vld [vmem:[#allocation19 + $0x1188] sm:$0xff]  ;;  %v3561_v44 = vld [vmem:[#allocation19 + $0x10b0] sm:$0xff] }
 0x8a8   :  { %3302 = vmatpush1.msra.mxu1 %v3209_v23  ;;  %7753 = vmatmul.mubr.msk.f32.vlgmr.msra.gmra.mrb[18].mxu0 %vm3217_vm5, %v3215_v25  ;;  %v3593_v19 = vld [vmem:[#allocation19 + $0x11b0] sm:$0xff] }
 0x8a9   :  { %7755 = vmatmul.mubr.msk.f32.vlgmr.msra.gmra.mrb[16].mxu1 %vm3217_vm5, %v3215_v25  ;;  %3384 = vmatprep.subr.mxu1 %v2526_v12  ;;  %v9118_v12 = vpack.c.bf16 %v3584_v6, %v3580_v63  ;;  %v3557_v25 = vld [vmem:[#allocation19 + $0x1090] sm:$0xff]  ;;  %v3611_v63 = vld [vmem:[#allocation19 + $0x1240] sm:$0xff]  ;;  %v9134_v6 = vpack.c.bf16 %v3616_v53, %v3612_v52 }
 0x8aa   :  { %9099 = vmatprep.subr.bf16.mxu0 %v9098_v27  ;;  %3385 = vmatpush1.msra.mxu1 %v2524_v10  ;;  %v3553_v10 = vld [vmem:[#allocation19 + $0x1070] sm:$0xff]  ;;  %v3587_v27 = vld [vmem:[#allocation19 + $0x1180] sm:$0xff]  ;;  %v9236_v18 = vpack.c.bf16 %v3561_v44, %v3557_v25  ;;  %v3628_v25 = vld [vmem:[#allocation19 + $0x12c8] sm:$0xff] }
 0x8ab   :  { %9101 = vmatpush1.bf16.msra.mxu0 %v9100_v28  ;;  %3461 = vmatprep.subr.mxu1 %v2668_v14  ;;  %v3583_v14 = vld [vmem:[#allocation19 + $0x1160] sm:$0xff]  ;;  %v9232_v22 = vpack.c.bf16 %v3553_v10, %v3549_v13  ;;  %v9122_v28 = vpack.c.bf16 %v3592_v21, %v3588_v20  ;;  %v3620_v13 = vld [vmem:[#allocation19 + $0x1288] sm:$0xff] }
 0x8ac   :  { %3294 = vmatprep.mubr.f32.mxu0 %v10882_v1  ;;  %3371 = vmatprep.mubr.f32.mxu1 %v10882_v1  ;;  %v3624_v10 = vld [vmem:[#allocation19 + $0x12a8] sm:$0xff]  ;;  %v3619_v20 = vld [vmem:[#allocation19 + $0x1280] sm:$0xff] }
 0x8ad   :  { %7754 = vmatmul.mubr.msk.f32.gmra.mrb[20].mxu0 %vm3217_vm5, %v3216_v34  ;;  %7756 = vmatmul.mubr.msk.f32.gmra.mrb[18].mxu1 %vm3217_vm5, %v3216_v34  ;;  %v9124_v34 = vpack.c.bf16 %v3591_v29, %v3587_v27  ;;  %v9138_v21 = vpack.c.bf16 %v3624_v10, %v3620_v13  ;;  %v3632_v44 = vld [vmem:[#allocation19 + $0x12e8] sm:$0xff]  ;;  %v9252_v27 = vpack.c.bf16 %v3593_v19, %v3589_v16  ;;  %v3643_v52 = vld [vmem:[#allocation19 + $0x1340] sm:$0xff] }
 0x8ae   :  { %9103 = vmatprep.subr.bf16.mxu0 %v9102_v35  ;;  %3859 = vmatprep.mubr.f32.mxu0 %v11330_v15  ;;  %v9238_v35 = vpack.c.bf16 %v3570_v31, %v3566_v30  ;;  %v3597_v30 = vld [vmem:[#allocation19 + $0x11d0] sm:$0xff]  ;;  %v9142_v33 = vpack.c.bf16 %v3632_v44, %v3628_v25  ;;  %v3651_v13 = vld [vmem:[#allocation19 + $0x1380] sm:$0xff]  ;;  %v3660_v16 = vld [vmem:[#allocation19 + $0x13c8] sm:$0xff] }
 0x8af   :  { %9105 = vmatpush1.bf16.msra.mxu0 %v9104_v36  ;;  %3448 = vmatprep.mubr.f32.mxu1 %v10882_v1  ;;  %v3565_v36 = vld [vmem:[#allocation19 + $0x10d0] sm:$0xff]  ;;  %v3664_v19 = vld [vmem:[#allocation19 + $0x13e8] sm:$0xff]  ;;  %v3659_v25 = vld [vmem:[#allocation19 + $0x13c0] sm:$0xff] }
 0x8b0   :  { %9107 = vmatprep.subr.bf16.mxu0 %v9106_v38  ;;  %v3595_v38 = vld [vmem:[#allocation19 + $0x11c0] sm:$0xff]  ;;  %v3601_v31 = vld [vmem:[#allocation19 + $0x11f0] sm:$0xff]  ;;  %v9158_v44 = vpack.c.bf16 %v3664_v19, %v3660_v16 }
 0x8b1   :  { %7757 = vmatmul.mubr.msk.f32.vlgmr.msra.gmra.mrb[20].mxu1 %vm3217_vm5, %v2671_v45  ;;  %v3691_v16 = vld [vmem:[#allocation19 + $0x14c0] sm:$0xff] }
 0x8b2   :  { %3462 = vmatpush1.msra.mxu1 %v2666_v11  ;;  %3454 = vmatprep.mubr.f32.mxu1 %v10882_v1  ;;  %v3579_v11 = vld [vmem:[#allocation19 + $0x1140] sm:$0xff] }
 0x8b3   :  { %9109 = vmatpush1.bf16.msra.mxu0 %v9108_v4  ;;  %9227 = vmatprep.subr.bf16.mxu1 %v9226_v46  ;;  %v9120_v23 = vpack.c.bf16 %v3583_v14, %v3579_v11  ;;  %v9240_v4 = vpack.c.bf16 %v3569_v37, %v3565_v36  ;;  %v9242_v46 = vpack.c.bf16 %v3578_v42, %v3574_v41  ;;  %v3636_v36 = vld [vmem:[#allocation19 + $0x1308] sm:$0xff]  ;;  %v3605_v41 = vld [vmem:[#allocation19 + $0x1210] sm:$0xff] }
 0x8b4   :  { %9111 = vmatprep.subr.bf16.mxu0 %v9110_v47  ;;  %v3573_v47 = vld [vmem:[#allocation19 + $0x1110] sm:$0xff]  ;;  %v9248_v11 = vpack.c.bf16 %v3585_v60, %v3581_v59  ;;  %v3640_v37 = vld [vmem:[#allocation19 + $0x1328] sm:$0xff] }
 0x8b5   :  { %7758 = vmatmul.mubr.msk.f32.gmra.mrb[22].mxu1 %vm3217_vm5, %v2672_v5  ;;  %v9244_v55 = vpack.c.bf16 %v3577_v2, %v3573_v47  ;;  %v3609_v42 = vld [vmem:[#allocation19 + $0x1230] sm:$0xff]  ;;  %v3644_v47 = vld [vmem:[#allocation19 + $0x1348] sm:$0xff] }
 0x8b6   :  { %3525 = vmatprep.mubr.f32.mxu1 %v10882_v1  ;;  %v3648_v2 = vld [vmem:[#allocation19 + $0x1368] sm:$0xff] }
 0x8b7   :  { %9113 = vmatpush1.bf16.msra.mxu0 %v9112_v51  ;;  %v3586_v51 = vld [vmem:[#allocation19 + $0x1178] sm:$0xff]  ;;  %v9150_v53 = vpack.c.bf16 %v3648_v2, %v3644_v47  ;;  %v3652_v59 = vld [vmem:[#allocation19 + $0x1388] sm:$0xff] }
 0x8b8   :  { %9115 = vmatprep.subr.bf16.mxu0 %v9114_v57  ;;  %v9132_v57 = vpack.c.bf16 %v3607_v50, %v3603_v48  ;;  %v9260_v48 = vpack.c.bf16 %v3609_v42, %v3605_v41  ;;  %v3656_v60 = vld [vmem:[#allocation19 + $0x13a8] sm:$0xff] }
 0x8b9   :  { %7759 = vmatmul.mubr.msk.f32.vlgmr.msra.gmra.mrb[16].mxu1 %vm3217_vm5, %v2671_v45  ;;  %v3608_v45 = vld [vmem:[#allocation19 + $0x1228] sm:$0xff]  ;;  %v9154_v10 = vpack.c.bf16 %v3656_v60, %v3652_v59  ;;  %v3683_v59 = vld [vmem:[#allocation19 + $0x1480] sm:$0xff] }
 0x8ba   :  { %9229 = vmatpush1.bf16.msra.mxu1 %v9228_v7  ;;  %3531 = vmatprep.mubr.f32.mxu1 %v10882_v1  ;;  %v9130_v49 = vpack.c.bf16 %v3608_v45, %v3604_v43  ;;  %v3615_v7 = vld [vmem:[#allocation19 + $0x1260] sm:$0xff]  ;;  %v9146_v45 = vpack.c.bf16 %v3640_v37, %v3636_v36  ;;  %v3676_v41 = vld [vmem:[#allocation19 + $0x1448] sm:$0xff] }
 0x8bb   :  { %9117 = vmatpush1.bf16.msra.mxu0 %v9116_v8  ;;  %9231 = vmatprep.subr.bf16.mxu1 %v9230_v9  ;;  %v3590_v8 = vld [vmem:[#allocation19 + $0x1198] sm:$0xff]  ;;  %v3635_v43 = vld [vmem:[#allocation19 + $0x1300] sm:$0xff]  ;;  %v3680_v42 = vld [vmem:[#allocation19 + $0x1468] sm:$0xff] }
 0x8bc   :  { %9119 = vmatprep.subr.bf16.mxu0 %v9118_v12  ;;  %v3594_v9 = vld [vmem:[#allocation19 + $0x11b8] sm:$0xff]  ;;  %v9136_v12 = vpack.c.bf16 %v3615_v7, %v3611_v63  ;;  %v3667_v37 = vld [vmem:[#allocation19 + $0x1400] sm:$0xff]  ;;  %v9166_v2 = vpack.c.bf16 %v3680_v42, %v3676_v41 }
 0x8bd   :  { %7760 = vmatmul.mubr.msk.f32.gmra.mrb[18].mxu1 %vm3217_vm5, %v2672_v5  ;;  %v3582_v5 = vld [vmem:[#allocation19 + $0x1158] sm:$0xff]  ;;  %v9250_v14 = vpack.c.bf16 %v3594_v9, %v3590_v8  ;;  %v3621_v8 = vld [vmem:[#allocation19 + $0x1290] sm:$0xff]  ;;  %v3707_v41 = vld [vmem:[#allocation19 + $0x1540] sm:$0xff] }
 0x8be   :  { %9233 = vmatpush1.bf16.msra.mxu1 %v9232_v22  ;;  %4001 = vmatprep.mubr.f32.mxu1 %v11330_v15  ;;  %v9128_v15 = vpack.c.bf16 %v3599_v40, %v3595_v38  ;;  %v9246_v3 = vpack.c.bf16 %v3586_v51, %v3582_v5  ;;  %v3623_v22 = vld [vmem:[#allocation19 + $0x12a0] sm:$0xff]  ;;  %v9256_v38 = vpack.c.bf16 %v3601_v31, %v3597_v30  ;;  %v3613_v5 = vld [vmem:[#allocation19 + $0x1250] sm:$0xff]  ;;  %v3668_v30 = vld [vmem:[#allocation19 + $0x1408] sm:$0xff] }
 0x8bf   :  { %9121 = vmatpush1.bf16.msra.mxu0 %v9120_v23  ;;  %9235 = vmatprep.subr.bf16.mxu1 %v9234_v24  ;;  %v3598_v23 = vld [vmem:[#allocation19 + $0x11d8] sm:$0xff]  ;;  %v3617_v51 = vld [vmem:[#allocation19 + $0x1270] sm:$0xff]  ;;  %v3672_v31 = vld [vmem:[#allocation19 + $0x1428] sm:$0xff] }
 0x8c0   :  { %9123 = vmatprep.subr.bf16.mxu0 %v9122_v28  ;;  %v3602_v24 = vld [vmem:[#allocation19 + $0x11f8] sm:$0xff]  ;;  %v9140_v28 = vpack.c.bf16 %v3623_v22, %v3619_v20  ;;  %v9264_v63 = vpack.c.bf16 %v3617_v51, %v3613_v5  ;;  %v3625_v9 = vld [vmem:[#allocation19 + $0x12b0] sm:$0xff]  ;;  %v9162_v36 = vpack.c.bf16 %v3672_v31, %v3668_v30  ;;  %v3684_v5 = vld [vmem:[#allocation19 + $0x1488] sm:$0xff] }
 0x8c1   :  { %v9254_v29 = vpack.c.bf16 %v3602_v24, %v3598_v23  ;;  %v9268_v20 = vpack.c.bf16 %v3625_v9, %v3621_v8  ;;  %v3629_v23 = vld [vmem:[#allocation19 + $0x12d0] sm:$0xff]  ;;  %v3688_v51 = vld [vmem:[#allocation19 + $0x14a8] sm:$0xff]  ;;  %v3699_v30 = vld [vmem:[#allocation19 + $0x1500] sm:$0xff] }
 0x8c2   :  { %9237 = vmatpush1.bf16.msra.mxu1 %v9236_v18  ;;  %v3631_v18 = vld [vmem:[#allocation19 + $0x12e0] sm:$0xff]  ;;  %v3633_v24 = vld [vmem:[#allocation19 + $0x12f0] sm:$0xff]  ;;  %v9170_v60 = vpack.c.bf16 %v3688_v51, %v3684_v5  ;;  %v3692_v8 = vld [vmem:[#allocation19 + $0x14c8] sm:$0xff] }
 0x8c3   :  { %9125 = vmatpush1.bf16.msra.mxu0 %v9124_v34  ;;  %9239 = vmatprep.subr.bf16.mxu1 %v9238_v35  ;;  %v3606_v34 = vld [vmem:[#allocation19 + $0x1218] sm:$0xff]  ;;  %v3696_v9 = vld [vmem:[#allocation19 + $0x14e8] sm:$0xff]  ;;  %v3715_v5 = vld [vmem:[#allocation19 + $0x1580] sm:$0xff] }
 0x8c4   :  { %9127 = vmatprep.subr.bf16.mxu0 %v9126_v39  ;;  %v3610_v35 = vld [vmem:[#allocation19 + $0x1238] sm:$0xff]  ;;  %v9144_v39 = vpack.c.bf16 %v3631_v18, %v3627_v32  ;;  %v9272_v32 = vpack.c.bf16 %v3633_v24, %v3629_v23  ;;  %v9174_v19 = vpack.c.bf16 %v3696_v9, %v3692_v8  ;;  %v3700_v23 = vld [vmem:[#allocation19 + $0x1508] sm:$0xff]  ;;  %v3727_v8 = vld [vmem:[#allocation19 + $0x15e0] sm:$0xff] }
 0x8c5   :  { %v9258_v40 = vpack.c.bf16 %v3610_v35, %v3606_v34  ;;  %v3637_v34 = vld [vmem:[#allocation19 + $0x1310] sm:$0xff]  ;;  %v3704_v24 = vld [vmem:[#allocation19 + $0x1528] sm:$0xff]  ;;  %v3702_v9 = vld [vmem:[#allocation19 + $0x1518] sm:$0xff] }
 0x8c6   :  { %9241 = vmatpush1.bf16.msra.mxu1 %v9240_v4  ;;  %v3639_v4 = vld [vmem:[#allocation19 + $0x1320] sm:$0xff]  ;;  %v3641_v35 = vld [vmem:[#allocation19 + $0x1330] sm:$0xff]  ;;  %v9178_v31 = vpack.c.bf16 %v3704_v24, %v3700_v23  ;;  %v3710_v24 = vld [vmem:[#allocation19 + $0x1558] sm:$0xff] }
 0x8c7   :  { %9129 = vmatpush1.bf16.msra.mxu0 %v9128_v15  ;;  %9243 = vmatprep.subr.bf16.mxu1 %v9242_v46  ;;  %v3614_v15 = vld [vmem:[#allocation19 + $0x1258] sm:$0xff]  ;;  %v3735_v23 = vld [vmem:[#allocation19 + $0x1620] sm:$0xff] }
 0x8c8   :  { %9131 = vmatprep.subr.bf16.mxu0 %v9130_v49  ;;  %v3618_v46 = vld [vmem:[#allocation19 + $0x1278] sm:$0xff]  ;;  %v9148_v49 = vpack.c.bf16 %v3639_v4, %v3635_v43  ;;  %v9276_v43 = vpack.c.bf16 %v3641_v35, %v3637_v34  ;;  %v3645_v4 = vld [vmem:[#allocation19 + $0x1350] sm:$0xff]  ;;  %v3708_v34 = vld [vmem:[#allocation19 + $0x1548] sm:$0xff] }
 0x8c9   :  { %v9262_v50 = vpack.c.bf16 %v3618_v46, %v3614_v15  ;;  %v3649_v15 = vld [vmem:[#allocation19 + $0x1370] sm:$0xff]  ;;  %v3675_v46 = vld [vmem:[#allocation19 + $0x1440] sm:$0xff]  ;;  %v3712_v35 = vld [vmem:[#allocation19 + $0x1568] sm:$0xff] }
 0x8ca   :  { %9245 = vmatpush1.bf16.msra.mxu1 %v9244_v55  ;;  %v3647_v55 = vld [vmem:[#allocation19 + $0x1360] sm:$0xff]  ;;  %v9182_v42 = vpack.c.bf16 %v3712_v35, %v3708_v34  ;;  %v3718_v35 = vld [vmem:[#allocation19 + $0x1598] sm:$0xff] }
 0x8cb   :  { %9133 = vmatpush1.bf16.msra.mxu0 %v9132_v57  ;;  %9247 = vmatprep.subr.bf16.mxu1 %v9246_v3  ;;  %v3622_v57 = vld [vmem:[#allocation19 + $0x1298] sm:$0xff]  ;;  %v3743_v34 = vld [vmem:[#allocation19 + $0x1660] sm:$0xff] }
 0x8cc   :  { %9135 = vmatprep.subr.bf16.mxu0 %v9134_v6  ;;  %v3626_v3 = vld [vmem:[#allocation19 + $0x12b8] sm:$0xff]  ;;  %v9152_v6 = vpack.c.bf16 %v3647_v55, %v3643_v52  ;;  %v9280_v52 = vpack.c.bf16 %v3649_v15, %v3645_v4  ;;  %v3716_v15 = vld [vmem:[#allocation19 + $0x1588] sm:$0xff] }
 0x8cd   :  { %v9266_v7 = vpack.c.bf16 %v3626_v3, %v3622_v57  ;;  %v3653_v57 = vld [vmem:[#allocation19 + $0x1390] sm:$0xff]  ;;  %v3690_v4 = vld [vmem:[#allocation19 + $0x14b8] sm:$0xff] }
 0x8ce   :  { %9249 = vmatpush1.bf16.msra.mxu1 %v9248_v11  ;;  %v3655_v11 = vld [vmem:[#allocation19 + $0x13a0] sm:$0xff]  ;;  %v3657_v3 = vld [vmem:[#allocation19 + $0x13b0] sm:$0xff] }
 0x8cf   :  { %9137 = vmatpush1.bf16.msra.mxu0 %v9136_v12  ;;  %9251 = vmatprep.subr.bf16.mxu1 %v9250_v14  ;;  %v3630_v12 = vld [vmem:[#allocation19 + $0x12d8] sm:$0xff] }
 0x8d0   :  { %9139 = vmatprep.subr.bf16.mxu0 %v9138_v21  ;;  %v3634_v14 = vld [vmem:[#allocation19 + $0x12f8] sm:$0xff]  ;;  %v9156_v21 = vpack.c.bf16 %v3655_v11, %v3651_v13  ;;  %v9284_v13 = vpack.c.bf16 %v3657_v3, %v3653_v57  ;;  %v3724_v57 = vld [vmem:[#allocation19 + $0x15c8] sm:$0xff] }
 0x8d1   :  { %v9270_v22 = vpack.c.bf16 %v3634_v14, %v3630_v12  ;;  %v3661_v12 = vld [vmem:[#allocation19 + $0x13d0] sm:$0xff] }
 0x8d2   :  { %9253 = vmatpush1.bf16.msra.mxu1 %v9252_v27  ;;  %v3663_v27 = vld [vmem:[#allocation19 + $0x13e0] sm:$0xff]  ;;  %v3665_v14 = vld [vmem:[#allocation19 + $0x13f0] sm:$0xff] }
 0x8d3   :  { %9141 = vmatpush1.bf16.msra.mxu0 %v9140_v28  ;;  %9255 = vmatprep.subr.bf16.mxu1 %v9254_v29  ;;  %v3638_v28 = vld [vmem:[#allocation19 + $0x1318] sm:$0xff] }
 0x8d4   :  { %9143 = vmatprep.subr.bf16.mxu0 %v9142_v33  ;;  %v3642_v29 = vld [vmem:[#allocation19 + $0x1338] sm:$0xff]  ;;  %v9160_v33 = vpack.c.bf16 %v3663_v27, %v3659_v25  ;;  %v9288_v25 = vpack.c.bf16 %v3665_v14, %v3661_v12 }
 0x8d5   :  { %v9274_v18 = vpack.c.bf16 %v3642_v29, %v3638_v28  ;;  %v3669_v28 = vld [vmem:[#allocation19 + $0x1410] sm:$0xff] }
 0x8d6   :  { %9257 = vmatpush1.bf16.msra.mxu1 %v9256_v38  ;;  %v3671_v38 = vld [vmem:[#allocation19 + $0x1420] sm:$0xff]  ;;  %v3673_v29 = vld [vmem:[#allocation19 + $0x1430] sm:$0xff] }
 0x8d7   :  { %9145 = vmatpush1.bf16.msra.mxu0 %v9144_v39  ;;  %9259 = vmatprep.subr.bf16.mxu1 %v9258_v40  ;;  %v3646_v39 = vld [vmem:[#allocation19 + $0x1358] sm:$0xff] }
 0x8d8   :  { %9147 = vmatprep.subr.bf16.mxu0 %v9146_v45  ;;  %v3650_v40 = vld [vmem:[#allocation19 + $0x1378] sm:$0xff]  ;;  %v9164_v45 = vpack.c.bf16 %v3671_v38, %v3667_v37 }
 0x8d9   :  { %v9278_v47 = vpack.c.bf16 %v3650_v40, %v3646_v39  ;;  %v3677_v39 = vld [vmem:[#allocation19 + $0x1450] sm:$0xff] }
 0x8da   :  { %9261 = vmatpush1.bf16.msra.mxu1 %v9260_v48  ;;  %v3679_v48 = vld [vmem:[#allocation19 + $0x1460] sm:$0xff]  ;;  %v3681_v40 = vld [vmem:[#allocation19 + $0x1470] sm:$0xff] }
 0x8db   :  { %9149 = vmatpush1.bf16.msra.mxu0 %v9148_v49  ;;  %9263 = vmatprep.subr.bf16.mxu1 %v9262_v50  ;;  %v3654_v49 = vld [vmem:[#allocation19 + $0x1398] sm:$0xff] }
 0x8dc   :  { %9151 = vmatprep.subr.bf16.mxu0 %v9150_v53  ;;  %v3658_v50 = vld [vmem:[#allocation19 + $0x13b8] sm:$0xff]  ;;  %v9168_v53 = vpack.c.bf16 %v3679_v48, %v3675_v46  ;;  %v3720_v46 = vld [vmem:[#allocation19 + $0x15a8] sm:$0xff] }
 0x8dd   :  { %v9282_v55 = vpack.c.bf16 %v3658_v50, %v3654_v49  ;;  %v3685_v49 = vld [vmem:[#allocation19 + $0x1490] sm:$0xff]  ;;  %v9186_v51 = vpack.c.bf16 %v3720_v46, %v3716_v15  ;;  %v3751_v15 = vld [vmem:[#allocation19 + $0x16a0] sm:$0xff]  ;;  %v3726_v46 = vld [vmem:[#allocation19 + $0x15d8] sm:$0xff] }
 0x8de   :  { %9265 = vmatpush1.bf16.msra.mxu1 %v9264_v63  ;;  %v3687_v63 = vld [vmem:[#allocation19 + $0x14a0] sm:$0xff]  ;;  %v3689_v50 = vld [vmem:[#allocation19 + $0x14b0] sm:$0xff] }
 0x8df   :  { %9153 = vmatpush1.bf16.msra.mxu0 %v9152_v6  ;;  %9267 = vmatprep.subr.bf16.mxu1 %v9266_v7  ;;  %v3662_v6 = vld [vmem:[#allocation19 + $0x13d8] sm:$0xff]  ;;  %v9300_v3 = vpack.c.bf16 %v3689_v50, %v3685_v49 }
 0x8e0   :  { %9155 = vmatprep.subr.bf16.mxu0 %v9154_v10  ;;  %v3666_v7 = vld [vmem:[#allocation19 + $0x13f8] sm:$0xff]  ;;  %v9172_v10 = vpack.c.bf16 %v3687_v63, %v3683_v59  ;;  %v3697_v63 = vld [vmem:[#allocation19 + $0x14f0] sm:$0xff] }
 0x8e1   :  { %v9286_v11 = vpack.c.bf16 %v3666_v7, %v3662_v6  ;;  %v3723_v6 = vld [vmem:[#allocation19 + $0x15c0] sm:$0xff] }
 0x8e2   :  { %9269 = vmatpush1.bf16.msra.mxu1 %v9268_v20  ;;  %v3695_v20 = vld [vmem:[#allocation19 + $0x14e0] sm:$0xff]  ;;  %v9192_v14 = vpack.c.bf16 %v3727_v8, %v3723_v6  ;;  %v3737_v8 = vld [vmem:[#allocation19 + $0x1630] sm:$0xff] }
 0x8e3   :  { %9157 = vmatpush1.bf16.msra.mxu0 %v9156_v21  ;;  %9271 = vmatprep.subr.bf16.mxu1 %v9270_v22  ;;  %v3670_v21 = vld [vmem:[#allocation19 + $0x1418] sm:$0xff] }
 0x8e4   :  { %9159 = vmatprep.subr.bf16.mxu0 %v9158_v44  ;;  %v3674_v22 = vld [vmem:[#allocation19 + $0x1438] sm:$0xff]  ;;  %v9176_v44 = vpack.c.bf16 %v3695_v20, %v3691_v16  ;;  %v3705_v20 = vld [vmem:[#allocation19 + $0x1530] sm:$0xff] }
 0x8e5   :  { %v9290_v27 = vpack.c.bf16 %v3674_v22, %v3670_v21  ;;  %v3731_v21 = vld [vmem:[#allocation19 + $0x1600] sm:$0xff] }
 0x8e6   :  { %9273 = vmatpush1.bf16.msra.mxu1 %v9272_v32  ;;  %v3703_v32 = vld [vmem:[#allocation19 + $0x1520] sm:$0xff] }
 0x8e7   :  { %9161 = vmatpush1.bf16.msra.mxu0 %v9160_v33  ;;  %9275 = vmatprep.subr.bf16.mxu1 %v9274_v18  ;;  %v3678_v33 = vld [vmem:[#allocation19 + $0x1458] sm:$0xff]  ;;  %v9180_v37 = vpack.c.bf16 %v3703_v32, %v3699_v30  ;;  %v3713_v32 = vld [vmem:[#allocation19 + $0x1570] sm:$0xff] }
 0x8e8   :  { %9163 = vmatprep.subr.bf16.mxu0 %v9162_v36  ;;  %v3682_v18 = vld [vmem:[#allocation19 + $0x1478] sm:$0xff]  ;;  %v9292_v36 = vpack.c.bf16 %v3673_v29, %v3669_v28  ;;  %v9196_v29 = vpack.c.bf16 %v3735_v23, %v3731_v21  ;;  %v3745_v23 = vld [vmem:[#allocation19 + $0x1670] sm:$0xff] }
 0x8e9   :  { %v9294_v38 = vpack.c.bf16 %v3682_v18, %v3678_v33  ;;  %v3739_v33 = vld [vmem:[#allocation19 + $0x1640] sm:$0xff] }
 0x8ea   :  { %3860 = vmatmul.mubr.f32.vlgmr.msra.gmra.mrb[22].mxu0 %v11332_v17  ;;  %9277 = vmatpush1.bf16.msra.mxu1 %v9276_v43  ;;  %v3711_v43 = vld [vmem:[#allocation19 + $0x1560] sm:$0xff] }
 0x8eb   :  { %9165 = vmatpush1.bf16.msra.mxu0 %v9164_v45  ;;  %3930 = vmatprep.mubr.f32.mxu0 %v11348_v54  ;;  %v3686_v45 = vld [vmem:[#allocation19 + $0x1498] sm:$0xff] }
 0x8ec   :  { %9279 = vmatprep.subr.bf16.mxu1 %v9278_v47  ;;  %9167 = vmatprep.subr.bf16.mxu0 %v9166_v2  ;;  %v9296_v47 = vpack.c.bf16 %v3681_v40, %v3677_v39  ;;  %v9184_v2 = vpack.c.bf16 %v3711_v43, %v3707_v41  ;;  %v9298_v48 = vpack.c.bf16 %v3690_v4, %v3686_v45  ;;  %v3721_v43 = vld [vmem:[#allocation19 + $0x15b0] sm:$0xff]  ;;  %v3747_v45 = vld [vmem:[#allocation19 + $0x1680] sm:$0xff] }
 0x8ed   :  { %v9200_v40 = vpack.c.bf16 %v3743_v34, %v3739_v33  ;;  %v9204_v50 = vpack.c.bf16 %v3751_v15, %v3747_v45  ;;  %v3753_v34 = vld [vmem:[#allocation19 + $0x16b0] sm:$0xff] }
 0x8ee   :  { %9281 = vmatpush1.bf16.msra.mxu1 %v9280_v52  ;;  %v3719_v52 = vld [vmem:[#allocation19 + $0x15a0] sm:$0xff]  ;;  %v3761_v15 = vld [vmem:[#allocation19 + $0x16f0] sm:$0xff] }
 0x8ef   :  { %9169 = vmatpush1.bf16.msra.mxu0 %v9168_v53  ;;  %9283 = vmatprep.subr.bf16.mxu1 %v9282_v55  ;;  %v3694_v53 = vld [vmem:[#allocation19 + $0x14d8] sm:$0xff] }
 0x8f0   :  { %9171 = vmatprep.subr.bf16.mxu0 %v9170_v60  ;;  %v3698_v55 = vld [vmem:[#allocation19 + $0x14f8] sm:$0xff]  ;;  %v3693_v60 = vld [vmem:[#allocation19 + $0x14d0] sm:$0xff] }
 0x8f1   :  { %v9302_v59 = vpack.c.bf16 %v3698_v55, %v3694_v53  ;;  %v9304_v12 = vpack.c.bf16 %v3697_v63, %v3693_v60  ;;  %v3755_v53 = vld [vmem:[#allocation19 + $0x16c0] sm:$0xff] }
 0x8f2   :  { %9285 = vmatpush1.bf16.msra.mxu1 %v9284_v13  ;;  %v3706_v13 = vld [vmem:[#allocation19 + $0x1538] sm:$0xff] }
 0x8f3   :  { %9173 = vmatpush1.bf16.msra.mxu0 %v9172_v10  ;;  %9287 = vmatprep.subr.bf16.mxu1 %v9286_v11  ;;  %v3732_v10 = vld [vmem:[#allocation19 + $0x1608] sm:$0xff]  ;;  %v9306_v16 = vpack.c.bf16 %v3706_v13, %v3702_v9  ;;  %v3763_v9 = vld [vmem:[#allocation19 + $0x1700] sm:$0xff] }
 0x8f4   :  { %9175 = vmatprep.subr.bf16.mxu0 %v9174_v19  ;;  %v3736_v11 = vld [vmem:[#allocation19 + $0x1628] sm:$0xff]  ;;  %v3701_v19 = vld [vmem:[#allocation19 + $0x1510] sm:$0xff] }
 0x8f5   :  { %v9194_v22 = vpack.c.bf16 %v3736_v11, %v3732_v10  ;;  %v9308_v28 = vpack.c.bf16 %v3705_v20, %v3701_v19  ;;  %v3767_v10 = vld [vmem:[#allocation19 + $0x1720] sm:$0xff]  ;;  %v3742_v11 = vld [vmem:[#allocation19 + $0x1658] sm:$0xff] }
 0x8f6   :  { %9289 = vmatpush1.bf16.msra.mxu1 %v9288_v25  ;;  %v3714_v25 = vld [vmem:[#allocation19 + $0x1578] sm:$0xff]  ;;  %v9212_v20 = vpack.c.bf16 %v3767_v10, %v3763_v9  ;;  %v3785_v9 = vld [vmem:[#allocation19 + $0x17b0] sm:$0xff] }
 0x8f7   :  { %9177 = vmatpush1.bf16.msra.mxu0 %v9176_v44  ;;  %9291 = vmatprep.subr.bf16.mxu1 %v9290_v27  ;;  %v3740_v44 = vld [vmem:[#allocation19 + $0x1648] sm:$0xff]  ;;  %v9310_v30 = vpack.c.bf16 %v3714_v25, %v3710_v24  ;;  %v3771_v24 = vld [vmem:[#allocation19 + $0x1740] sm:$0xff]  ;;  %v3794_v10 = vld [vmem:[#allocation19 + $0x17f8] sm:$0xff] }
 0x8f8   :  { %9179 = vmatprep.subr.bf16.mxu0 %v9178_v31  ;;  %v3744_v27 = vld [vmem:[#allocation19 + $0x1668] sm:$0xff]  ;;  %v3709_v31 = vld [vmem:[#allocation19 + $0x1550] sm:$0xff] }
 0x8f9   :  { %4002 = vmatmul.mubr.f32.vlgmr.msra.gmra.mrb[24].mxu1 %v11332_v17  ;;  %v3728_v17 = vld [vmem:[#allocation19 + $0x15e8] sm:$0xff]  ;;  %v9198_v18 = vpack.c.bf16 %v3744_v27, %v3740_v44  ;;  %v9312_v39 = vpack.c.bf16 %v3713_v32, %v3709_v31  ;;  %v3775_v44 = vld [vmem:[#allocation19 + $0x1760] sm:$0xff]  ;;  %v3750_v27 = vld [vmem:[#allocation19 + $0x1698] sm:$0xff] }
 0x8fa   :  { %9293 = vmatpush1.bf16.msra.mxu1 %v9292_v36  ;;  %4072 = vmatprep.mubr.f32.mxu1 %v11348_v54  ;;  %v9188_v54 = vpack.c.bf16 %v3719_v52, %v3715_v5  ;;  %v9190_v7 = vpack.c.bf16 %v3728_v17, %v3724_v57  ;;  %v3722_v36 = vld [vmem:[#allocation19 + $0x15b8] sm:$0xff]  ;;  %v3729_v52 = vld [vmem:[#allocation19 + $0x15f0] sm:$0xff]  ;;  %v3759_v57 = vld [vmem:[#allocation19 + $0x16e0] sm:$0xff]  ;;  %v9216_v32 = vpack.c.bf16 %v3775_v44, %v3771_v24 }
 0x8fb   :  { %9181 = vmatpush1.bf16.msra.mxu0 %v9180_v37  ;;  %9295 = vmatprep.subr.bf16.mxu1 %v9294_v38  ;;  %v3748_v37 = vld [vmem:[#allocation19 + $0x1688] sm:$0xff]  ;;  %v9314_v41 = vpack.c.bf16 %v3722_v36, %v3718_v35  ;;  %v3734_v17 = vld [vmem:[#allocation19 + $0x1618] sm:$0xff]  ;;  %v9208_v63 = vpack.c.bf16 %v3759_v57, %v3755_v53  ;;  %v3779_v35 = vld [vmem:[#allocation19 + $0x1780] sm:$0xff] }
 0x8fc   :  { %9183 = vmatprep.subr.bf16.mxu0 %v9182_v42  ;;  %v3752_v38 = vld [vmem:[#allocation19 + $0x16a8] sm:$0xff]  ;;  %v3717_v42 = vld [vmem:[#allocation19 + $0x1590] sm:$0xff]  ;;  %v3778_v57 = vld [vmem:[#allocation19 + $0x1778] sm:$0xff] }
 0x8fd   :  { %v9202_v4 = vpack.c.bf16 %v3752_v38, %v3748_v37  ;;  %v9316_v49 = vpack.c.bf16 %v3721_v43, %v3717_v42  ;;  %v3783_v37 = vld [vmem:[#allocation19 + $0x17a0] sm:$0xff]  ;;  %v3758_v38 = vld [vmem:[#allocation19 + $0x16d8] sm:$0xff]  ;;  %v3769_v53 = vld [vmem:[#allocation19 + $0x1730] sm:$0xff] }
 0x8fe   :  { %9297 = vmatpush1.bf16.msra.mxu1 %v9296_v47  ;;  %v3730_v47 = vld [vmem:[#allocation19 + $0x15f8] sm:$0xff]  ;;  %v9220_v43 = vpack.c.bf16 %v3783_v37, %v3779_v35 }
 0x8ff   :  { %9185 = vmatpush1.bf16.msra.mxu0 %v9184_v2  ;;  %9299 = vmatprep.subr.bf16.mxu1 %v9298_v48  ;;  %v3756_v2 = vld [vmem:[#allocation19 + $0x16c8] sm:$0xff]  ;;  %v9318_v5 = vpack.c.bf16 %v3730_v47, %v3726_v46  ;;  %v3787_v46 = vld [vmem:[#allocation19 + $0x17c0] sm:$0xff]  ;;  %v4304_v37 = vld [vmem:[#allocation23 + $0x80] sm:$0xff] }
 0x900   :  { %9187 = vmatprep.subr.bf16.mxu0 %v9186_v51  ;;  %v3760_v48 = vld [vmem:[#allocation19 + $0x16e8] sm:$0xff]  ;;  %v3725_v51 = vld [vmem:[#allocation19 + $0x15d0] sm:$0xff]  ;;  %v4289_v24 = vld [vmem:[#allocation23 + $0x8] sm:$0xff] }
 0x901   :  { %v9206_v55 = vpack.c.bf16 %v3760_v48, %v3756_v2  ;;  %v9320_v60 = vpack.c.bf16 %v3729_v52, %v3725_v51  ;;  %v3791_v2 = vld [vmem:[#allocation19 + $0x17e0] sm:$0xff]  ;;  %v3766_v48 = vld [vmem:[#allocation19 + $0x1718] sm:$0xff]  ;;  %v3765_v52 = vld [vmem:[#allocation19 + $0x1710] sm:$0xff] }
 0x902   :  { %9301 = vmatpush1.bf16.msra.mxu1 %v9300_v3  ;;  %v3738_v3 = vld [vmem:[#allocation19 + $0x1638] sm:$0xff] }
 0x903   :  { %9189 = vmatpush1.bf16.msra.mxu0 %v9188_v54  ;;  %9303 = vmatprep.subr.bf16.mxu1 %v9302_v59  ;;  %v3764_v54 = vld [vmem:[#allocation19 + $0x1708] sm:$0xff]  ;;  %v9322_v6 = vpack.c.bf16 %v3738_v3, %v3734_v17  ;;  %v9340_v17 = vpack.c.bf16 %v3769_v53, %v3765_v52  ;;  %v4309_v35 = vld [vmem:[#allocation23 + $0xa8] sm:$0xff]  ;;  %v4328_v52 = vld [vmem:[#allocation23 + $0x140] sm:$0xff] }
 0x904   :  { %9191 = vmatprep.subr.bf16.mxu0 %v9190_v7  ;;  %v3768_v59 = vld [vmem:[#allocation19 + $0x1728] sm:$0xff]  ;;  %v3733_v7 = vld [vmem:[#allocation19 + $0x1610] sm:$0xff] }
 0x905   :  { %v9210_v13 = vpack.c.bf16 %v3768_v59, %v3764_v54  ;;  %v9324_v19 = vpack.c.bf16 %v3737_v8, %v3733_v7  ;;  %v3773_v54 = vld [vmem:[#allocation19 + $0x1750] sm:$0xff] }
 0x906   :  { %9305 = vmatpush1.bf16.msra.mxu1 %v9304_v12  ;;  %v3746_v12 = vld [vmem:[#allocation19 + $0x1678] sm:$0xff]  ;;  %v3777_v59 = vld [vmem:[#allocation19 + $0x1770] sm:$0xff] }
 0x907   :  { %9193 = vmatpush1.bf16.msra.mxu0 %v9192_v14  ;;  %9307 = vmatprep.subr.bf16.mxu1 %v9306_v16  ;;  %v3772_v14 = vld [vmem:[#allocation19 + $0x1748] sm:$0xff]  ;;  %v9326_v21 = vpack.c.bf16 %v3746_v12, %v3742_v11  ;;  %v3781_v8 = vld [vmem:[#allocation19 + $0x1790] sm:$0xff] }
 0x908   :  { %9195 = vmatprep.subr.bf16.mxu0 %v9194_v22  ;;  %v3776_v16 = vld [vmem:[#allocation19 + $0x1768] sm:$0xff]  ;;  %v3741_v22 = vld [vmem:[#allocation19 + $0x1650] sm:$0xff]  ;;  %v9348_v11 = vpack.c.bf16 %v3785_v9, %v3781_v8 }
 0x909   :  { %v9214_v25 = vpack.c.bf16 %v3776_v16, %v3772_v14  ;;  %v9328_v31 = vpack.c.bf16 %v3745_v23, %v3741_v22  ;;  %v3789_v14 = vld [vmem:[#allocation19 + $0x17d0] sm:$0xff] }
 0x90a   :  { %9309 = vmatpush1.bf16.msra.mxu1 %v9308_v28  ;;  %v3754_v28 = vld [vmem:[#allocation19 + $0x16b8] sm:$0xff]  ;;  %v3793_v16 = vld [vmem:[#allocation19 + $0x17f0] sm:$0xff] }
 0x90b   :  { %9197 = vmatpush1.bf16.msra.mxu0 %v9196_v29  ;;  %9311 = vmatprep.subr.bf16.mxu1 %v9310_v30  ;;  %v3780_v29 = vld [vmem:[#allocation19 + $0x1788] sm:$0xff]  ;;  %v9330_v33 = vpack.c.bf16 %v3754_v28, %v3750_v27  ;;  %v4288_v27 = vld [vmem:[#allocation23] sm:$0xff] }
 0x90c   :  { %9199 = vmatprep.subr.bf16.mxu0 %v9198_v18  ;;  %v3784_v30 = vld [vmem:[#allocation19 + $0x17a8] sm:$0xff]  ;;  %v3749_v18 = vld [vmem:[#allocation19 + $0x1690] sm:$0xff] }
 0x90d   :  { %v9218_v36 = vpack.c.bf16 %v3784_v30, %v3780_v29  ;;  %v9332_v42 = vpack.c.bf16 %v3753_v34, %v3749_v18  ;;  %v4292_v28 = vld [vmem:[#allocation23 + $0x20] sm:$0xff]  ;;  %v4297_v30 = vld [vmem:[#allocation23 + $0x48] sm:$0xff] }
 0x90e   :  { %9313 = vmatpush1.bf16.msra.mxu1 %v9312_v39  ;;  %v3762_v39 = vld [vmem:[#allocation19 + $0x16f8] sm:$0xff]  ;;  %v9356_v29 = vpack.c.bf16 %v4292_v28, %v4288_v27 }
 0x90f   :  { %9201 = vmatpush1.bf16.msra.mxu0 %v9200_v40  ;;  %9315 = vmatprep.subr.bf16.mxu1 %v9314_v41  ;;  %v3788_v40 = vld [vmem:[#allocation19 + $0x17c8] sm:$0xff]  ;;  %v9334_v45 = vpack.c.bf16 %v3762_v39, %v3758_v38  ;;  %v4305_v34 = vld [vmem:[#allocation23 + $0x88] sm:$0xff]  ;;  %v4308_v38 = vld [vmem:[#allocation23 + $0xa0] sm:$0xff] }
 0x910   :  { %9203 = vmatprep.subr.bf16.mxu0 %v9202_v4  ;;  %v3792_v41 = vld [vmem:[#allocation19 + $0x17e8] sm:$0xff]  ;;  %v3757_v4 = vld [vmem:[#allocation19 + $0x16d0] sm:$0xff]  ;;  %v9364_v39 = vpack.c.bf16 %v4308_v38, %v4304_v37 }
 0x911   :  { %v9222_v47 = vpack.c.bf16 %v3792_v41, %v3788_v40  ;;  %v4313_v40 = vld [vmem:[#allocation23 + $0xc8] sm:$0xff]  ;;  %v4332_v53 = vld [vmem:[#allocation23 + $0x160] sm:$0xff] }
 0x912   :  { %9317 = vmatpush1.bf16.msra.mxu1 %v9316_v49  ;;  %v3770_v49 = vld [vmem:[#allocation19 + $0x1738] sm:$0xff] }
 0x913   :  { %9205 = vmatpush1.bf16.msra.mxu0 %v9204_v50  ;;  %9319 = vmatprep.subr.bf16.mxu1 %v9318_v5  ;;  %v9336_v50 = vpack.c.bf16 %v3761_v15, %v3757_v4  ;;  %v9224_v5 = vpack.c.bf16 %v3791_v2, %v3787_v46  ;;  %v9338_v51 = vpack.c.bf16 %v3770_v49, %v3766_v48  ;;  %v4317_v41 = vld [vmem:[#allocation23 + $0xe8] sm:$0xff]  ;;  %v4320_v2 = vld [vmem:[#allocation23 + $0x100] sm:$0xff] }
 0x914   :  { %9207 = vmatprep.subr.bf16.mxu0 %v9206_v55  ;;  %v3774_v55 = vld [vmem:[#allocation19 + $0x1758] sm:$0xff] }
 0x915   :  { %v9342_v3 = vpack.c.bf16 %v3778_v57, %v3774_v55  ;;  %v4321_v4 = vld [vmem:[#allocation23 + $0x108] sm:$0xff]  ;;  %v4324_v48 = vld [vmem:[#allocation23 + $0x120] sm:$0xff] }
 0x916   :  { %9321 = vmatpush1.bf16.msra.mxu1 %v9320_v60  ;;  %v3782_v60 = vld [vmem:[#allocation19 + $0x1798] sm:$0xff] }
 0x917   :  { %9209 = vmatpush1.bf16.msra.mxu0 %v9208_v63  ;;  %9323 = vmatprep.subr.bf16.mxu1 %v9322_v6  ;;  %v3786_v63 = vld [vmem:[#allocation19 + $0x17b8] sm:$0xff]  ;;  %v9344_v6 = vpack.c.bf16 %v3777_v59, %v3773_v54 }
 0x918   :  { %9211 = vmatprep.subr.bf16.mxu0 %v9210_v13  ;;  %v9346_v7 = vpack.c.bf16 %v3786_v63, %v3782_v60  ;;  %v3790_v13 = vld [vmem:[#allocation19 + $0x17d8] sm:$0xff] }
 0x919   :  { %v9350_v12 = vpack.c.bf16 %v3794_v10, %v3790_v13  ;;  %v4325_v15 = vld [vmem:[#allocation23 + $0x128] sm:$0xff]  ;;  %v4336_v54 = vld [vmem:[#allocation23 + $0x180] sm:$0xff] }
 0x91a   :  { %9325 = vmatpush1.bf16.msra.mxu1 %v9324_v19  ;;  %v9352_v19 = vpack.c.bf16 %v3793_v16, %v3789_v14  ;;  %v4329_v49 = vld [vmem:[#allocation23 + $0x148] sm:$0xff]  ;;  %v4340_v59 = vld [vmem:[#allocation23 + $0x1a0] sm:$0xff] }
 0x91b   :  { %9213 = vmatpush1.bf16.msra.mxu0 %v9212_v20  ;;  %9327 = vmatprep.subr.bf16.mxu1 %v9326_v21  ;;  %v4337_v55 = vld [vmem:[#allocation23 + $0x188] sm:$0xff]  ;;  %v4344_v8 = vld [vmem:[#allocation23 + $0x1c0] sm:$0xff] }
 0x91c   :  { %9215 = vmatprep.subr.bf16.mxu0 %v9214_v25  ;;  %v4293_v25 = vld [vmem:[#allocation23 + $0x28] sm:$0xff]  ;;  %v4348_v9 = vld [vmem:[#allocation23 + $0x1e0] sm:$0xff] }
 0x91d   :  { %v9354_v44 = vpack.c.bf16 %v4293_v25, %v4289_v24  ;;  %v4341_v57 = vld [vmem:[#allocation23 + $0x1a8] sm:$0xff]  ;;  %v4352_v14 = vld [vmem:[#allocation23 + $0x200] sm:$0xff] }
 0x91e   :  { %9329 = vmatpush1.bf16.msra.mxu1 %v9328_v31  ;;  %v4301_v31 = vld [vmem:[#allocation23 + $0x68] sm:$0xff]  ;;  %v4356_v16 = vld [vmem:[#allocation23 + $0x220] sm:$0xff] }
 0x91f   :  { %9217 = vmatpush1.bf16.msra.mxu0 %v9216_v32  ;;  %9331 = vmatprep.subr.bf16.mxu1 %v9330_v33  ;;  %v4296_v32 = vld [vmem:[#allocation23 + $0x40] sm:$0xff]  ;;  %v4345_v60 = vld [vmem:[#allocation23 + $0x1c8] sm:$0xff]  ;;  %v9388_v25 = vpack.c.bf16 %v4356_v16, %v4352_v14  ;;  %v4306_v14 = vld [vmem:[#allocation23 + $0x90] sm:$0xff] }
 0x920   :  { %9219 = vmatprep.subr.bf16.mxu0 %v9218_v36  ;;  %v4300_v33 = vld [vmem:[#allocation23 + $0x60] sm:$0xff]  ;;  %v9362_v36 = vpack.c.bf16 %v4309_v35, %v4305_v34  ;;  %v4349_v63 = vld [vmem:[#allocation23 + $0x1e8] sm:$0xff]  ;;  %v4310_v16 = vld [vmem:[#allocation23 + $0xb0] sm:$0xff] }
 0x921   :  { %v9360_v18 = vpack.c.bf16 %v4300_v33, %v4296_v32  ;;  %v4353_v13 = vld [vmem:[#allocation23 + $0x208] sm:$0xff]  ;;  %v4360_v27 = vld [vmem:[#allocation23 + $0x240] sm:$0xff] }
 0x922   :  { %9333 = vmatpush1.bf16.msra.mxu1 %v9332_v42  ;;  %v9366_v42 = vpack.c.bf16 %v4317_v41, %v4313_v40  ;;  %v4357_v10 = vld [vmem:[#allocation23 + $0x228] sm:$0xff]  ;;  %v4364_v28 = vld [vmem:[#allocation23 + $0x260] sm:$0xff] }
 0x923   :  { %9221 = vmatpush1.bf16.msra.mxu0 %v9220_v43  ;;  %9335 = vmatprep.subr.bf16.mxu1 %v9334_v45  ;;  %v4312_v43 = vld [vmem:[#allocation23 + $0xc0] sm:$0xff]  ;;  %v4365_v24 = vld [vmem:[#allocation23 + $0x268] sm:$0xff] }
 0x924   :  { %9223 = vmatprep.subr.bf16.mxu0 %v9222_v47  ;;  %v4316_v45 = vld [vmem:[#allocation23 + $0xe0] sm:$0xff]  ;;  %v9370_v47 = vpack.c.bf16 %v4325_v15, %v4321_v4  ;;  %v4381_v34 = vld [vmem:[#allocation23 + $0x2e8] sm:$0xff] }
 0x925   :  { %v9368_v46 = vpack.c.bf16 %v4316_v45, %v4312_v43  ;;  %v4368_v32 = vld [vmem:[#allocation23 + $0x280] sm:$0xff]  ;;  %v4389_v40 = vld [vmem:[#allocation23 + $0x328] sm:$0xff] }
 0x926   :  { %9337 = vmatpush1.bf16.msra.mxu1 %v9336_v50  ;;  %v4333_v50 = vld [vmem:[#allocation23 + $0x168] sm:$0xff]  ;;  %v4372_v33 = vld [vmem:[#allocation23 + $0x2a0] sm:$0xff] }
 0x927   :  { %9225 = vmatpush1.bf16.msra.mxu0 %v9224_v5  ;;  %9339 = vmatprep.subr.bf16.mxu1 %v9338_v51  ;;  %v9372_v5 = vpack.c.bf16 %v4324_v48, %v4320_v2  ;;  %v9374_v51 = vpack.c.bf16 %v4333_v50, %v4329_v49  ;;  %v9396_v35 = vpack.c.bf16 %v4372_v33, %v4368_v32  ;;  %v4376_v37 = vld [vmem:[#allocation23 + $0x2c0] sm:$0xff]  ;;  %v4393_v4 = vld [vmem:[#allocation23 + $0x348] sm:$0xff]  ;;  %v4322_v32 = vld [vmem:[#allocation23 + $0x110] sm:$0xff] }
 0x928   :  { %9355 = vmatprep.subr.bf16.mxu0 %v9354_v44  ;;  %v4380_v38 = vld [vmem:[#allocation23 + $0x2e0] sm:$0xff]  ;;  %v4397_v15 = vld [vmem:[#allocation23 + $0x368] sm:$0xff]  ;;  %v4326_v33 = vld [vmem:[#allocation23 + $0x130] sm:$0xff] }
 0x929   :  { %v9400_v41 = vpack.c.bf16 %v4380_v38, %v4376_v37  ;;  %v4384_v43 = vld [vmem:[#allocation23 + $0x300] sm:$0xff]  ;;  %v4330_v37 = vld [vmem:[#allocation23 + $0x150] sm:$0xff] }
 0x92a   :  { %3931 = vmatmul.mubr.f32.vlgmr.msra.gmra.mrb[22].mxu0 %v11350_v26  ;;  %9341 = vmatpush1.bf16.msra.mxu1 %v9340_v17  ;;  %v9376_v17 = vpack.c.bf16 %v4332_v53, %v4328_v52  ;;  %v4388_v45 = vld [vmem:[#allocation23 + $0x320] sm:$0xff]  ;;  %v4081_v52 = vld [vmem:[#allocation20 + $0x28] sm:$0x3f] }
 0x92b   :  { %9343 = vmatprep.subr.bf16.mxu1 %v9342_v3  ;;  %9357 = vmatpush1.bf16.msra.mxu0 %v9356_v29  ;;  %v9378_v3 = vpack.c.bf16 %v4341_v57, %v4337_v55  ;;  %v4369_v29 = vld [vmem:[#allocation23 + $0x288] sm:$0xff]  ;;  %v4392_v2 = vld [vmem:[#allocation23 + $0x340] sm:$0xff]  ;;  %v4291_v53 = vld [vmem:[#allocation23 + $0x18] sm:$0xff] }
 0x92c   :  { %v4396_v48 = vld [vmem:[#allocation23 + $0x360] sm:$0xff]  ;;  %v4295_v55 = vld [vmem:[#allocation23 + $0x38] sm:$0xff]  ;;  %v4290_v57 = vld [vmem:[#allocation23 + $0x10] sm:$0xff] }
 0x92d   :  { %v9408_v49 = vpack.c.bf16 %v4396_v48, %v4392_v2  ;;  %v4334_v38 = vld [vmem:[#allocation23 + $0x170] sm:$0xff] }
 0x92e   :  { %9345 = vmatpush1.bf16.msra.mxu1 %v9344_v6  ;;  %v9380_v6 = vpack.c.bf16 %v4340_v59, %v4336_v54  ;;  %v4303_v54 = vld [vmem:[#allocation23 + $0x78] sm:$0xff]  ;;  %v4346_v2 = vld [vmem:[#allocation23 + $0x1d0] sm:$0xff] }
 0x92f   :  { %9347 = vmatprep.subr.bf16.mxu1 %v9346_v7  ;;  %v9382_v7 = vpack.c.bf16 %v4349_v63, %v4345_v60  ;;  %v9466_v60 = vpack.c.bf16 %v4295_v55, %v4291_v53  ;;  %v4350_v48 = vld [vmem:[#allocation23 + $0x1f0] sm:$0xff]  ;;  %v4363_v55 = vld [vmem:[#allocation23 + $0x258] sm:$0xff] }
 0x930   :  { %v4358_v53 = vld [vmem:[#allocation23 + $0x230] sm:$0xff] }
 0x932   :  { %9349 = vmatpush1.bf16.msra.mxu1 %v9348_v11  ;;  %v9384_v11 = vpack.c.bf16 %v4348_v9, %v4344_v8  ;;  %v4298_v8 = vld [vmem:[#allocation23 + $0x50] sm:$0xff] }
 0x933   :  { %9351 = vmatprep.subr.bf16.mxu1 %v9350_v12  ;;  %v9386_v12 = vpack.c.bf16 %v4357_v10, %v4353_v13  ;;  %v4302_v9 = vld [vmem:[#allocation23 + $0x70] sm:$0xff]  ;;  %v4307_v13 = vld [vmem:[#allocation23 + $0x98] sm:$0xff] }
 0x934   :  { %v4311_v10 = vld [vmem:[#allocation23 + $0xb8] sm:$0xff] }
 0x936   :  { %9353 = vmatpush1.bf16.msra.mxu1 %v9352_v19  ;;  %v4361_v19 = vld [vmem:[#allocation23 + $0x248] sm:$0xff] }
 0x937   :  { %v9390_v44 = vpack.c.bf16 %v4365_v24, %v4361_v19  ;;  %v4315_v19 = vld [vmem:[#allocation23 + $0xd8] sm:$0xff] }
 0x938   :  { %v4319_v24 = vld [vmem:[#allocation23 + $0xf8] sm:$0xff] }
 0x939   :  { %4073 = vmatmul.mubr.f32.vlgmr.msra.gmra.mrb[24].mxu1 %v11350_v26  ;;  %v9358_v26 = vpack.c.bf16 %v4301_v31, %v4297_v30  ;;  %v4373_v30 = vld [vmem:[#allocation23 + $0x2a8] sm:$0xff]  ;;  %v9392_v31 = vpack.c.bf16 %v4364_v28, %v4360_v27  ;;  %v4314_v27 = vld [vmem:[#allocation23 + $0xd0] sm:$0xff] }
 0x93a   :  { %4152 = vmatprep.mubr.f32.mxu1 %v10882_v1  ;;  %v4318_v28 = vld [vmem:[#allocation23 + $0xf0] sm:$0xff] }
 0x93b   :  { %9359 = vmatprep.subr.bf16.mxu0 %v9358_v26  ;;  %v9394_v26 = vpack.c.bf16 %v4373_v30, %v4369_v29  ;;  %v4323_v29 = vld [vmem:[#allocation23 + $0x118] sm:$0xff] }
 0x93c   :  { %9361 = vmatpush1.bf16.msra.mxu0 %v9360_v18  ;;  %v4377_v18 = vld [vmem:[#allocation23 + $0x2c8] sm:$0xff]  ;;  %v4327_v30 = vld [vmem:[#allocation23 + $0x138] sm:$0xff] }
 0x93d   :  { %9363 = vmatprep.subr.bf16.mxu0 %v9362_v36  ;;  %v9398_v36 = vpack.c.bf16 %v4381_v34, %v4377_v18  ;;  %v4331_v18 = vld [vmem:[#allocation23 + $0x158] sm:$0xff] }
 0x93e   :  { %v4335_v34 = vld [vmem:[#allocation23 + $0x178] sm:$0xff] }
 0x940   :  { %9365 = vmatpush1.bf16.msra.mxu0 %v9364_v39  ;;  %v4385_v39 = vld [vmem:[#allocation23 + $0x308] sm:$0xff] }
 0x941   :  { %9367 = vmatprep.subr.bf16.mxu0 %v9366_v42  ;;  %v9402_v42 = vpack.c.bf16 %v4389_v40, %v4385_v39  ;;  %v4339_v39 = vld [vmem:[#allocation23 + $0x198] sm:$0xff] }
 0x942   :  { %v4343_v40 = vld [vmem:[#allocation23 + $0x1b8] sm:$0xff] }
 0x944   :  { %9369 = vmatpush1.bf16.msra.mxu0 %v9368_v46  ;;  %v9404_v46 = vpack.c.bf16 %v4388_v45, %v4384_v43  ;;  %v4338_v43 = vld [vmem:[#allocation23 + $0x190] sm:$0xff] }
 0x945   :  { %9371 = vmatprep.subr.bf16.mxu0 %v9370_v47  ;;  %v9406_v47 = vpack.c.bf16 %v4397_v15, %v4393_v4  ;;  %v4342_v45 = vld [vmem:[#allocation23 + $0x1b0] sm:$0xff]  ;;  %v4347_v4 = vld [vmem:[#allocation23 + $0x1d8] sm:$0xff] }
 0x946   :  { %v4351_v15 = vld [vmem:[#allocation23 + $0x1f8] sm:$0xff] }
 0x948   :  { %9373 = vmatpush1.bf16.msra.mxu0 %v9372_v5 }
 0x949   :  { %9375 = vmatprep.subr.bf16.mxu0 %v9374_v51  ;;  %v4080_v51 = vld [vmem:[#allocation20 + $0x20] sm:$0xff] }
 0x94c   :  { %9377 = vmatpush1.bf16.msra.mxu0 %v9376_v17  ;;  %v4294_v17 = vld [vmem:[#allocation23 + $0x30] sm:$0xff] }
 0x94d   :  { %9379 = vmatprep.subr.bf16.mxu0 %v9378_v3  ;;  %v4299_v3 = vld [vmem:[#allocation23 + $0x58] sm:$0xff] }
 0x950   :  { %9381 = vmatpush1.bf16.msra.mxu0 %v9380_v6  ;;  %v9468_v6 = vpack.c.bf16 %v4294_v17, %v4290_v57  ;;  %v4367_v57 = vld [vmem:[#allocation23 + $0x278] sm:$0xff] }
 0x951   :  { %9383 = vmatprep.subr.bf16.mxu0 %v9382_v7  ;;  %v9470_v7 = vpack.c.bf16 %v4303_v54, %v4299_v3  ;;  %v9502_v3 = vpack.c.bf16 %v4367_v57, %v4363_v55  ;;  %v4362_v54 = vld [vmem:[#allocation23 + $0x250] sm:$0xff]  ;;  %v4417_v57 = vld [vmem:[#allocation23 + $0x408] sm:$0xff] }
 0x954   :  { %9385 = vmatpush1.bf16.msra.mxu0 %v9384_v11  ;;  %v9472_v11 = vpack.c.bf16 %v4302_v9, %v4298_v8  ;;  %v4370_v8 = vld [vmem:[#allocation23 + $0x290] sm:$0xff] }
 0x955   :  { %9387 = vmatprep.subr.bf16.mxu0 %v9386_v12  ;;  %v9474_v12 = vpack.c.bf16 %v4311_v10, %v4307_v13  ;;  %v4374_v9 = vld [vmem:[#allocation23 + $0x2b0] sm:$0xff]  ;;  %v4379_v13 = vld [vmem:[#allocation23 + $0x2d8] sm:$0xff] }
 0x956   :  { %v4383_v10 = vld [vmem:[#allocation23 + $0x2f8] sm:$0xff] }
 0x958   :  { %9389 = vmatpush1.bf16.msra.mxu0 %v9388_v25  ;;  %v9476_v25 = vpack.c.bf16 %v4310_v16, %v4306_v14  ;;  %v4378_v14 = vld [vmem:[#allocation23 + $0x2d0] sm:$0xff] }
 0x959   :  { %9391 = vmatprep.subr.bf16.mxu0 %v9390_v44  ;;  %v9478_v44 = vpack.c.bf16 %v4319_v24, %v4315_v19  ;;  %v4382_v16 = vld [vmem:[#allocation23 + $0x2f0] sm:$0xff]  ;;  %v4387_v19 = vld [vmem:[#allocation23 + $0x318] sm:$0xff] }
 0x95a   :  { %v4391_v24 = vld [vmem:[#allocation23 + $0x338] sm:$0xff] }
 0x95c   :  { %9393 = vmatpush1.bf16.msra.mxu0 %v9392_v31  ;;  %v9480_v31 = vpack.c.bf16 %v4318_v28, %v4314_v27  ;;  %v4386_v27 = vld [vmem:[#allocation23 + $0x310] sm:$0xff] }
 0x95d   :  { %9395 = vmatprep.subr.bf16.mxu0 %v9394_v26  ;;  %v9482_v26 = vpack.c.bf16 %v4327_v30, %v4323_v29  ;;  %v4390_v28 = vld [vmem:[#allocation23 + $0x330] sm:$0xff]  ;;  %v4395_v29 = vld [vmem:[#allocation23 + $0x358] sm:$0xff] }
 0x95e   :  { %v4399_v30 = vld [vmem:[#allocation23 + $0x378] sm:$0xff] }
 0x960   :  { %9397 = vmatpush1.bf16.msra.mxu0 %v9396_v35  ;;  %v9484_v35 = vpack.c.bf16 %v4326_v33, %v4322_v32  ;;  %v4394_v32 = vld [vmem:[#allocation23 + $0x350] sm:$0xff] }
 0x961   :  { %9399 = vmatprep.subr.bf16.mxu0 %v9398_v36  ;;  %v9486_v36 = vpack.c.bf16 %v4335_v34, %v4331_v18  ;;  %v4398_v33 = vld [vmem:[#allocation23 + $0x370] sm:$0xff]  ;;  %v4401_v34 = vld [vmem:[#allocation23 + $0x388] sm:$0xff] }
 0x962   :  { %v9520_v18 = vpack.c.bf16 %v4398_v33, %v4394_v32  ;;  %v4424_v33 = vld [vmem:[#allocation23 + $0x440] sm:$0xff] }
 0x964   :  { %9401 = vmatpush1.bf16.msra.mxu0 %v9400_v41  ;;  %v9488_v41 = vpack.c.bf16 %v4334_v38, %v4330_v37  ;;  %v4407_v38 = vld [vmem:[#allocation23 + $0x3b8] sm:$0xff] }
 0x965   :  { %9403 = vmatprep.subr.bf16.mxu0 %v9402_v42  ;;  %v9490_v42 = vpack.c.bf16 %v4343_v40, %v4339_v39  ;;  %v4400_v39 = vld [vmem:[#allocation23 + $0x380] sm:$0xff] }
 0x966   :  { %v4404_v40 = vld [vmem:[#allocation23 + $0x3a0] sm:$0xff] }
 0x968   :  { %9405 = vmatpush1.bf16.msra.mxu0 %v9404_v46  ;;  %v9492_v46 = vpack.c.bf16 %v4342_v45, %v4338_v43  ;;  %v4402_v43 = vld [vmem:[#allocation23 + $0x390] sm:$0xff] }
 0x969   :  { %9407 = vmatprep.subr.bf16.mxu0 %v9406_v47  ;;  %v9494_v47 = vpack.c.bf16 %v4351_v15, %v4347_v4  ;;  %v4406_v45 = vld [vmem:[#allocation23 + $0x3b0] sm:$0xff]  ;;  %v4409_v15 = vld [vmem:[#allocation23 + $0x3c8] sm:$0xff] }
 0x96a   :  { %v9524_v4 = vpack.c.bf16 %v4406_v45, %v4402_v43 }
 0x96c   :  { %9409 = vmatpush1.bf16.msra.mxu0 %v9408_v49  ;;  %v4355_v49 = vld [vmem:[#allocation23 + $0x218] sm:$0xff] }
 0x97b   :  { %v11389_v20 = vpop.f32.mrb[18].mxu0 }
 0x97c   :  { %v11391_v21 = vpop.f32.mrb[19].mxu0 }
 0x980   :  { %v11393_v22 = vpop.f32.mrb[20].mxu0 }
 0x981   :  { %v11395_v23 = vpop.f32.mrb[21].mxu0 }
 0x9fd   :  { %v3932_v50 = vpop.f32.mrb[22].mxu0 }
 0x9fe   :  { %v3934_v5 = vpop.f32.mrb[23].mxu0 }
 0x9ff   :  { %4088 = vmatprep.subr.mxu1 %v3934_v5  ;;  %v9496_v5 = vpack.c.bf16 %v4350_v48, %v4346_v2  ;;  %v4415_v48 = vld [vmem:[#allocation23 + $0x3f8] sm:$0xff] }
 0xa00   :  { %4089 = vmatpush1.msra.mxu1 %v3932_v50  ;;  %v4359_v50 = vld [vmem:[#allocation23 + $0x238] sm:$0xff] }
 0xa01   :  { %7761 = vmatmul.mubr.msk.f32.vlgmr.msra.gmra.mrb[20].mxu1 %vm3217_vm5, %v4080_v51 }
 0xa02   :  { %4158 = vmatprep.mubr.f32.mxu1 %v10882_v1 }
 0xa05   :  { %7762 = vmatmul.mubr.msk.f32.gmra.mrb[22].mxu1 %vm3217_vm5, %v4081_v52 }
 0xa06   :  { %4229 = vmatprep.mubr.f32.mxu1 %v10882_v1 }
 0xa0c   :  { %v4074_v59 = vpop.f32.mrb[24].mxu1 }
 0xa0d   :  { %v4076_v63 = vpop.f32.mrb[25].mxu1 }
 0xa0e   :  { %4165 = vmatprep.subr.mxu1 %v4076_v63  ;;  %v4375_v63 = vld [vmem:[#allocation23 + $0x2b8] sm:$0xff] }
 0xa0f   :  { %4166 = vmatpush1.msra.mxu1 %v4074_v59  ;;  %v4366_v59 = vld [vmem:[#allocation23 + $0x270] sm:$0xff] }
 0xa10   :  { %7763 = vmatmul.mubr.msk.f32.vlgmr.msra.gmra.mrb[16].mxu1 %vm3217_vm5, %v4080_v51  ;;  %9467 = vmatprep.subr.bf16.mxu1 %v9466_v60  ;;  %v9498_v51 = vpack.c.bf16 %v4359_v50, %v4355_v49  ;;  %v4371_v60 = vld [vmem:[#allocation23 + $0x298] sm:$0xff]  ;;  %v4408_v49 = vld [vmem:[#allocation23 + $0x3c0] sm:$0xff] }
 0xa11   :  { %4235 = vmatprep.mubr.f32.mxu1 %v10882_v1  ;;  %9469 = vmatpush1.bf16.msra.mxu1 %v9468_v6  ;;  %v9504_v6 = vpack.c.bf16 %v4366_v59, %v4362_v54  ;;  %v4412_v50 = vld [vmem:[#allocation23 + $0x3e0] sm:$0xff]  ;;  %v4423_v59 = vld [vmem:[#allocation23 + $0x438] sm:$0xff] }
 0xa12   :  { %9471 = vmatprep.subr.bf16.mxu1 %v9470_v7  ;;  %v9506_v7 = vpack.c.bf16 %v4375_v63, %v4371_v60  ;;  %v11404_v63 = vld [vmem:[#allocation22] sm:$0xf] }
 0xa14   :  { %7764 = vmatmul.mubr.msk.f32.gmra.mrb[18].mxu1 %vm3217_vm5, %v4081_v52  ;;  %v4354_v52 = vld [vmem:[#allocation23 + $0x210] sm:$0xff] }
 0xa15   :  { %9473 = vmatpush1.bf16.msra.mxu1 %v9472_v11  ;;  %v9500_v17 = vpack.c.bf16 %v4358_v53, %v4354_v52  ;;  %v9508_v11 = vpack.c.bf16 %v4374_v9, %v4370_v8  ;;  %v4410_v52 = vld [vmem:[#allocation23 + $0x3d0] sm:$0xff]  ;;  %v4259_v8 = vrot.slane %v11404_v63, %v11268_v58 }
 0xa16   :  { %9475 = vmatprep.subr.bf16.mxu1 %v9474_v12  ;;  %v9510_v12 = vpack.c.bf16 %v4383_v10, %v4379_v13  ;;  %v4414_v53 = vld [vmem:[#allocation23 + $0x3f0] sm:$0xff] }
 0xa17   :  { %v9528_v55 = vpack.c.bf16 %v4414_v53, %v4410_v52  ;;  %v4443_v52 = vld [vmem:[#allocation23 + $0x4d8] sm:$0xff] }
 0xa18   :  { %v4447_v53 = vld [vmem:[#allocation23 + $0x4f8] sm:$0xff] }
 0xa19   :  { %9477 = vmatpush1.bf16.msra.mxu1 %v9476_v25  ;;  %v9512_v25 = vpack.c.bf16 %v4382_v16, %v4378_v14  ;;  %v4418_v16 = vld [vmem:[#allocation23 + $0x410] sm:$0xff] }
 0xa1a   :  { %9479 = vmatprep.subr.bf16.mxu1 %v9478_v44  ;;  %v9514_v44 = vpack.c.bf16 %v4391_v24, %v4387_v19  ;;  %v4422_v19 = vld [vmem:[#allocation23 + $0x430] sm:$0xff]  ;;  %v4425_v24 = vld [vmem:[#allocation23 + $0x448] sm:$0xff] }
 0xa1d   :  { %9481 = vmatpush1.bf16.msra.mxu1 %v9480_v31  ;;  %v9516_v31 = vpack.c.bf16 %v4390_v28, %v4386_v27  ;;  %v4429_v27 = vld [vmem:[#allocation23 + $0x468] sm:$0xff]  ;;  %v4427_v28 = vld [vmem:[#allocation23 + $0x458] sm:$0xff] }
 0xa1e   :  { %9483 = vmatprep.subr.bf16.mxu1 %v9482_v26  ;;  %v9518_v26 = vpack.c.bf16 %v4399_v30, %v4395_v29  ;;  %v4431_v29 = vld [vmem:[#allocation23 + $0x478] sm:$0xff] }
 0xa21   :  { %9485 = vmatpush1.bf16.msra.mxu1 %v9484_v35  ;;  %v4405_v35 = vld [vmem:[#allocation23 + $0x3a8] sm:$0xff] }
 0xa22   :  { %9487 = vmatprep.subr.bf16.mxu1 %v9486_v36  ;;  %v4403_v36 = vld [vmem:[#allocation23 + $0x398] sm:$0xff]  ;;  %v9410_v37 = vpack.c.bf16 %v4405_v35, %v4401_v34 }
 0xa24   :  { %9411 = vmatprep.subr.bf16.mxu0 %v9410_v37  ;;  %v9534_v37 = vpack.c.bf16 %v4431_v29, %v4427_v28 }
 0xa25   :  { %9489 = vmatpush1.bf16.msra.mxu1 %v9488_v41  ;;  %v9522_v41 = vpack.c.bf16 %v4407_v38, %v4403_v36  ;;  %v9422_v36 = vpack.c.bf16 %v4429_v27, %v4425_v24  ;;  %v4426_v38 = vld [vmem:[#allocation23 + $0x450] sm:$0xff]  ;;  %v4448_v24 = vld [vmem:[#allocation23 + $0x500] sm:$0xff] }
 0xa26   :  { %9491 = vmatprep.subr.bf16.mxu1 %v9490_v42  ;;  %v9412_v42 = vpack.c.bf16 %v4404_v40, %v4400_v39  ;;  %v4430_v39 = vld [vmem:[#allocation23 + $0x470] sm:$0xff]  ;;  %v4433_v40 = vld [vmem:[#allocation23 + $0x488] sm:$0xff] }
 0xa28   :  { %9413 = vmatpush1.bf16.msra.mxu0 %v9412_v42  ;;  %v4435_v42 = vld [vmem:[#allocation23 + $0x498] sm:$0xff] }
 0xa29   :  { %9493 = vmatpush1.bf16.msra.mxu1 %v9492_v46  ;;  %v4413_v46 = vld [vmem:[#allocation23 + $0x3e8] sm:$0xff] }
 0xa2a   :  { %9495 = vmatprep.subr.bf16.mxu1 %v9494_v47  ;;  %v4411_v47 = vld [vmem:[#allocation23 + $0x3d8] sm:$0xff]  ;;  %v9414_v2 = vpack.c.bf16 %v4413_v46, %v4409_v15  ;;  %v4432_v15 = vld [vmem:[#allocation23 + $0x480] sm:$0xff] }
 0xa2b   :  { %v4436_v46 = vld [vmem:[#allocation23 + $0x4a0] sm:$0xff] }
 0xa2c   :  { %9415 = vmatprep.subr.bf16.mxu0 %v9414_v2 }
 0xa2d   :  { %9497 = vmatpush1.bf16.msra.mxu1 %v9496_v5  ;;  %v9526_v5 = vpack.c.bf16 %v4415_v48, %v4411_v47 }
 0xa2e   :  { %9499 = vmatprep.subr.bf16.mxu1 %v9498_v51  ;;  %v9416_v51 = vpack.c.bf16 %v4412_v50, %v4408_v49  ;;  %v4434_v49 = vld [vmem:[#allocation23 + $0x490] sm:$0xff] }
 0xa2f   :  { %v4438_v50 = vld [vmem:[#allocation23 + $0x4b0] sm:$0xff] }
 0xa30   :  { %9417 = vmatpush1.bf16.msra.mxu0 %v9416_v51  ;;  %v4445_v51 = vld [vmem:[#allocation23 + $0x4e8] sm:$0xff] }
 0xa31   :  { %9501 = vmatpush1.bf16.msra.mxu1 %v9500_v17  ;;  %v4421_v17 = vld [vmem:[#allocation23 + $0x428] sm:$0xff] }
 0xa32   :  { %9503 = vmatprep.subr.bf16.mxu1 %v9502_v3  ;;  %v4419_v3 = vld [vmem:[#allocation23 + $0x418] sm:$0xff]  ;;  %v9418_v54 = vpack.c.bf16 %v4421_v17, %v4417_v57  ;;  %v9428_v57 = vpack.c.bf16 %v4436_v46, %v4432_v15  ;;  %v9540_v17 = vpack.c.bf16 %v4438_v50, %v4434_v49 }
 0xa33   :  { %v9530_v60 = vpack.c.bf16 %v4423_v59, %v4419_v3  ;;  %v4440_v3 = vld [vmem:[#allocation23 + $0x4c0] sm:$0xff] }
 0xa34   :  { %9419 = vmatprep.subr.bf16.mxu0 %v9418_v54  ;;  %v4444_v54 = vld [vmem:[#allocation23 + $0x4e0] sm:$0xff] }
 0xa35   :  { %9505 = vmatpush1.bf16.msra.mxu1 %v9504_v6  ;;  %v4255_v6 = vrot.slane %v11404_v63, %v11265_v56 }
 0xa36   :  { %9507 = vmatprep.subr.bf16.mxu1 %v9506_v7 }
 0xa39   :  { %9509 = vmatpush1.bf16.msra.mxu1 %v9508_v11  ;;  %v4416_v11 = vld [vmem:[#allocation23 + $0x400] sm:$0xff] }
 0xa3a   :  { %9511 = vmatprep.subr.bf16.mxu1 %v9510_v12  ;;  %v4420_v12 = vld [vmem:[#allocation23 + $0x420] sm:$0xff] }
 0xa3b   :  { %v9420_v32 = vpack.c.bf16 %v4420_v12, %v4416_v11  ;;  %v4451_v11 = vld [vmem:[#allocation23 + $0x518] sm:$0xff] }
 0xa3c   :  { %v4455_v12 = vld [vmem:[#allocation23 + $0x538] sm:$0xff] }
 0xa3d   :  { %9513 = vmatpush1.bf16.msra.mxu1 %v9512_v25  ;;  %v9546_v29 = vpack.c.bf16 %v4455_v12, %v4451_v11  ;;  %v4485_v11 = vld [vmem:[#allocation23 + $0x628] sm:$0xff]  ;;  %v4483_v12 = vld [vmem:[#allocation23 + $0x618] sm:$0xff] }
 0xa3e   :  { %9515 = vmatprep.subr.bf16.mxu1 %v9514_v44 }
 0xa41   :  { %9517 = vmatpush1.bf16.msra.mxu1 %v9516_v31 }
 0xa42   :  { %9519 = vmatprep.subr.bf16.mxu1 %v9518_v26 }
 0xa45   :  { %9521 = vmatpush1.bf16.msra.mxu1 %v9520_v18  ;;  %v4428_v18 = vld [vmem:[#allocation23 + $0x460] sm:$0xff] }
 0xa46   :  { %9523 = vmatprep.subr.bf16.mxu1 %v9522_v41  ;;  %v9424_v45 = vpack.c.bf16 %v4428_v18, %v4424_v33  ;;  %v4459_v33 = vld [vmem:[#allocation23 + $0x558] sm:$0xff] }
 0xa47   :  { %v4463_v18 = vld [vmem:[#allocation23 + $0x578] sm:$0xff] }
 0xa49   :  { %9525 = vmatpush1.bf16.msra.mxu1 %v9524_v4  ;;  %v9536_v4 = vpack.c.bf16 %v4430_v39, %v4426_v38  ;;  %v4460_v38 = vld [vmem:[#allocation23 + $0x560] sm:$0xff] }
 0xa4a   :  { %9527 = vmatprep.subr.bf16.mxu1 %v9526_v5  ;;  %v4441_v5 = vld [vmem:[#allocation23 + $0x4c8] sm:$0xff] }
 0xa4d   :  { %9529 = vmatpush1.bf16.msra.mxu1 %v9528_v55  ;;  %v11432_v55 = vrot.slane %v11404_v63, %v11342_v62 }
 0xa4e   :  { %9531 = vmatprep.subr.bf16.mxu1 %v9530_v60  ;;  %v9430_v60 = vpack.c.bf16 %v4445_v51, %v4441_v5  ;;  %v4466_v5 = vld [vmem:[#allocation23 + $0x590] sm:$0xff] }
 0xa4f   :  { %v4470_v51 = vld [vmem:[#allocation23 + $0x5b0] sm:$0xff] }
 0xad4   :  { %v4154_v7 = vpop.f32.mrb[20].mxu1 }
 0xad5   :  { %v10289_v9 = vadd.f32 %v4154_v7, %v11389_v20  ;;  %v4156_v13 = vpop.f32.mrb[21].mxu1  ;;  %v4442_v7 = vld [vmem:[#allocation23 + $0x4d0] sm:$0xff] }
 0xad6   :  { %v10290_v10 = vadd.f32 %v4156_v13, %v11391_v21  ;;  %v9532_v21 = vpack.c.bf16 %v4422_v19, %v4418_v16  ;;  %v9432_v16 = vpack.c.bf16 %v4444_v54, %v4440_v3  ;;  %v9556_v54 = vpack.c.bf16 %v4470_v51, %v4466_v5  ;;  %v4498_v5 = vld [vmem:[#allocation23 + $0x690] sm:$0xff] }
 0xad7   :  { %v4272_v14 = vadd.f32 %v10289_v9, %v4255_v6  ;;  %v4449_v9 = vld [vmem:[#allocation23 + $0x508] sm:$0xff]  ;;  %v4502_v51 = vld [vmem:[#allocation23 + $0x6b0] sm:$0xff] }
 0xad8   :  { %v4273_v25 = vadd.f32 %v10290_v10, %v4259_v8  ;;  %v4160_v44 = vpop.f32.mrb[22].mxu1  ;;  %v4453_v10 = vld [vmem:[#allocation23 + $0x528] sm:$0xff] }
 0xad9   :  { %v10291_v30 = vadd.f32 %v4160_v44, %v11393_v22  ;;  %v4162_v31 = vpop.f32.mrb[23].mxu1  ;;  %v11416_v34 = vmax.f32 %v4272_v14, 0.0  ;;  %v4437_v22 = vld [vmem:[#allocation23 + $0x4a8] sm:$0xff]  ;;  %v9434_v28 = vpack.c.bf16 %v4453_v10, %v4449_v9  ;;  %v4474_v9 = vld [vmem:[#allocation23 + $0x5d0] sm:$0xff] }
 0xada   :  { %v11413_v26 = vmax.f32 %v4273_v25, 0.0  ;;  %v10292_v20 = vadd.f32 %v4162_v31, %v11395_v23  ;;  %v4439_v23 = vld [vmem:[#allocation23 + $0x4b8] sm:$0xff]  ;;  %v9426_v2 = vpack.c.bf16 %v4437_v22, %v4433_v40  ;;  %v4452_v25 = vld [vmem:[#allocation23 + $0x520] sm:$0xff]  ;;  %v4454_v31 = vld [vmem:[#allocation23 + $0x530] sm:$0xff]  ;;  %v9550_v40 = vpack.c.bf16 %v4463_v18, %v4459_v33 }
 0xadb   :  { %v4276_v35 = vadd.f32 %v10291_v30, %v4255_v6  ;;  %v9538_v48 = vpack.c.bf16 %v4439_v23, %v4435_v42  ;;  %v9542_v6 = vpack.c.bf16 %v4447_v53, %v4443_v52  ;;  %v4450_v30 = vld [vmem:[#allocation23 + $0x510] sm:$0xff]  ;;  %v4465_v42 = vld [vmem:[#allocation23 + $0x588] sm:$0xff]  ;;  %v4491_v33 = vld [vmem:[#allocation23 + $0x658] sm:$0xff] }
 0xadc   :  { %v4277_v41 = vadd.f32 %v10292_v20, %v4259_v8  ;;  %4583 = vmatprep.mubr.f32.mxu0 %v11413_v26  ;;  %4737 = vmatprep.mubr.f32.mxu1 %v11413_v26  ;;  %v4446_v8 = vld [vmem:[#allocation23 + $0x4f0] sm:$0xff]  ;;  %v4457_v20 = vld [vmem:[#allocation23 + $0x548] sm:$0xff]  ;;  %v4495_v18 = vld [vmem:[#allocation23 + $0x678] sm:$0xff] }
 0xadd   :  { %4584 = vmatmul.mubr.f32.vlgmr.msra.gmra.mrb[24].mxu0 %v11416_v34  ;;  %4738 = vmatmul.mubr.f32.vlgmr.msra.gmra.mrb[26].mxu1 %v11416_v34  ;;  %v11424_v47 = vmax.f32 %v4276_v35, 0.0  ;;  %v9544_v19 = vpack.c.bf16 %v4446_v8, %v4442_v7  ;;  %v9436_v35 = vpack.c.bf16 %v4452_v25, %v4448_v24  ;;  %v4462_v22 = vld [vmem:[#allocation23 + $0x570] sm:$0xff]  ;;  %v4469_v23 = vld [vmem:[#allocation23 + $0x5a8] sm:$0xff]  ;;  %v4480_v24 = vld [vmem:[#allocation23 + $0x600] sm:$0xff] }
 0xade   :  { %v11422_v43 = vmax.f32 %v4277_v41, 0.0  ;;  %9421 = vmatpush1.bf16.msra.mxu0 %v9420_v32  ;;  %9533 = vmatpush1.bf16.msra.mxu1 %v9532_v21  ;;  %v4461_v21 = vld [vmem:[#allocation23 + $0x568] sm:$0xff]  ;;  %v4458_v41 = vld [vmem:[#allocation23 + $0x550] sm:$0xff]  ;;  %v9442_v49 = vpack.c.bf16 %v4469_v23, %v4465_v42  ;;  %v4484_v25 = vld [vmem:[#allocation23 + $0x620] sm:$0xff] }
 0xadf   :  { %9423 = vmatprep.subr.bf16.mxu0 %v9422_v36  ;;  %9535 = vmatprep.subr.bf16.mxu1 %v9534_v37  ;;  %v9548_v36 = vpack.c.bf16 %v4454_v31, %v4450_v30  ;;  %v4456_v37 = vld [vmem:[#allocation23 + $0x540] sm:$0xff]  ;;  %v9438_v39 = vpack.c.bf16 %v4461_v21, %v4457_v20  ;;  %v9552_v46 = vpack.c.bf16 %v4462_v22, %v4458_v41  ;;  %v4473_v52 = vld [vmem:[#allocation23 + $0x5c8] sm:$0xff]  ;;  %v4482_v30 = vld [vmem:[#allocation23 + $0x610] sm:$0xff] }
 0xae0   :  { %4589 = vmatprep.mubr.f32.mxu0 %v11422_v43  ;;  %4743 = vmatprep.mubr.f32.mxu1 %v11422_v43  ;;  %v9440_v15 = vpack.c.bf16 %v4460_v38, %v4456_v37  ;;  %v4477_v53 = vld [vmem:[#allocation23 + $0x5e8] sm:$0xff]  ;;  %v4486_v31 = vld [vmem:[#allocation23 + $0x630] sm:$0xff]  ;;  %v4488_v37 = vld [vmem:[#allocation23 + $0x640] sm:$0xff] }
 0xae1   :  { %4590 = vmatmul.mubr.f32.gmra.mrb[26].mxu0 %v11424_v47  ;;  %4744 = vmatmul.mubr.f32.gmra.mrb[28].mxu1 %v11424_v47  ;;  %v9446_v7 = vpack.c.bf16 %v4477_v53, %v4473_v52  ;;  %v4481_v10 = vld [vmem:[#allocation23 + $0x608] sm:$0xff]  ;;  %v4492_v38 = vld [vmem:[#allocation23 + $0x660] sm:$0xff]  ;;  %v4490_v41 = vld [vmem:[#allocation23 + $0x650] sm:$0xff] }
 0xae2   :  { %9425 = vmatpush1.bf16.msra.mxu0 %v9424_v45  ;;  %9537 = vmatpush1.bf16.msra.mxu1 %v9536_v4  ;;  %v4467_v45 = vld [vmem:[#allocation23 + $0x598] sm:$0xff]  ;;  %v4489_v20 = vld [vmem:[#allocation23 + $0x648] sm:$0xff]  ;;  %v4494_v22 = vld [vmem:[#allocation23 + $0x670] sm:$0xff] }
 0xae3   :  { %v11434_v59 = vpop.f32.mrb[16].mxu1  ;;  %9427 = vmatprep.subr.bf16.mxu0 %v9426_v2  ;;  %9539 = vmatprep.subr.bf16.mxu1 %v9538_v48  ;;  %v4471_v4 = vld [vmem:[#allocation23 + $0x5b8] sm:$0xff]  ;;  %v4464_v2 = vld [vmem:[#allocation23 + $0x580] sm:$0xff]  ;;  %v4493_v21 = vld [vmem:[#allocation23 + $0x668] sm:$0xff] }
 0xae4   :  { %v4233_v13 = vpop.f32.mrb[17].mxu1  ;;  %v4468_v48 = vld [vmem:[#allocation23 + $0x5a0] sm:$0xff]  ;;  %v9554_v50 = vpack.c.bf16 %v4471_v4, %v4467_v45  ;;  %v4497_v42 = vld [vmem:[#allocation23 + $0x688] sm:$0xff]  ;;  %v4499_v45 = vld [vmem:[#allocation23 + $0x698] sm:$0xff] }
 0xae5   :  { %v4275_v14 = vadd.f32 %v11432_v55, %v4233_v13  ;;  %v9444_v3 = vpack.c.bf16 %v4468_v48, %v4464_v2  ;;  %v4478_v13 = vld [vmem:[#allocation23 + $0x5f0] sm:$0xff]  ;;  %v4501_v23 = vld [vmem:[#allocation23 + $0x6a8] sm:$0xff]  ;;  %v4503_v4 = vld [vmem:[#allocation23 + $0x6b8] sm:$0xff] }
 0xae6   :  { %9429 = vmatpush1.bf16.msra.mxu0 %v9428_v57  ;;  %9541 = vmatpush1.bf16.msra.mxu1 %v9540_v17  ;;  %v4475_v57 = vld [vmem:[#allocation23 + $0x5d8] sm:$0xff]  ;;  %v4496_v2 = vld [vmem:[#allocation23 + $0x680] sm:$0xff]  ;;  %v4505_v52 = vld [vmem:[#allocation23 + $0x6c8] sm:$0xff] }
 0xae7   :  { %v11437_v44 = vmax.f32 %v4275_v14, 0.0  ;;  %v11439_v27 = vpop.f32.mrb[18].mxu1  ;;  %9431 = vmatprep.subr.bf16.mxu0 %v9430_v60  ;;  %9543 = vmatprep.subr.bf16.mxu1 %v9542_v6  ;;  %v4479_v17 = vld [vmem:[#allocation23 + $0x5f8] sm:$0xff]  ;;  %v4472_v60 = vld [vmem:[#allocation23 + $0x5c0] sm:$0xff]  ;;  %v4509_v53 = vld [vmem:[#allocation23 + $0x6e8] sm:$0xff] }
 0xae8   :  { %v11441_v32 = vpop.f32.mrb[19].mxu1  ;;  %v4476_v6 = vld [vmem:[#allocation23 + $0x5e0] sm:$0xff]  ;;  %v9558_v8 = vpack.c.bf16 %v4479_v17, %v4475_v57  ;;  %v4487_v14 = vld [vmem:[#allocation23 + $0x638] sm:$0xff] }
 0xae9   :  { %7765 = vmatprep.mubr.msk.f32.mxu0 %vm4512_vm6, %v11437_v44  ;;  %7767 = vmatprep.mubr.msk.f32.mxu1 %vm4512_vm6, %v11437_v44  ;;  %v4500_v48 = vld [vmem:[#allocation23 + $0x6a0] sm:$0xff]  ;;  %v4507_v57 = vld [vmem:[#allocation23 + $0x6d8] sm:$0xff] }
 0xaea   :  { %9433 = vmatpush1.bf16.msra.mxu0 %v9432_v16  ;;  %9545 = vmatpush1.bf16.msra.mxu1 %v9544_v19  ;;  %v9448_v16 = vpack.c.bf16 %v4476_v6, %v4472_v60  ;;  %v9560_v19 = vpack.c.bf16 %v4478_v13, %v4474_v9  ;;  %v4511_v17 = vld [vmem:[#allocation23 + $0x6f8] sm:$0xff]  ;;  %v4504_v60 = vld [vmem:[#allocation23 + $0x6c0] sm:$0xff]  ;;  %v4506_v13 = vld [vmem:[#allocation23 + $0x6d0] sm:$0xff] }
 0xaeb   :  { %9435 = vmatprep.subr.bf16.mxu0 %v9434_v28  ;;  %9547 = vmatprep.subr.bf16.mxu1 %v9546_v29  ;;  %v9450_v28 = vpack.c.bf16 %v4485_v11, %v4481_v10  ;;  %v9562_v29 = vpack.c.bf16 %v4487_v14, %v4483_v12  ;;  %v4508_v6 = vld [vmem:[#allocation23 + $0x6e0] sm:$0xff]  ;;  %v9574_v9 = vpack.c.bf16 %v4511_v17, %v4507_v57  ;;  %v4510_v10 = vld [vmem:[#allocation23 + $0x6f0] sm:$0xff]  ;;  %v4833_v11 = vld [vmem:[#allocation23 + $0x708] sm:$0xff] }
 0xaec   :  { %v4837_v12 = vld [vmem:[#allocation23 + $0x728] sm:$0xff]  ;;  %v4835_v14 = vld [vmem:[#allocation23 + $0x718] sm:$0xff] }
 0xaed   :  { %v4857_v57 = vld [vmem:[#allocation23 + $0x7c8] sm:$0xff] }
 0xaee   :  { %9437 = vmatpush1.bf16.msra.mxu0 %v9436_v35  ;;  %9549 = vmatpush1.bf16.msra.mxu1 %v9548_v36  ;;  %v9452_v35 = vpack.c.bf16 %v4484_v25, %v4480_v24  ;;  %v9564_v36 = vpack.c.bf16 %v4486_v31, %v4482_v30  ;;  %v9576_v24 = vpack.c.bf16 %v4510_v10, %v4506_v13  ;;  %v4836_v30 = vld [vmem:[#allocation23 + $0x720] sm:$0xff]  ;;  %v4861_v17 = vld [vmem:[#allocation23 + $0x7e8] sm:$0xff]  ;;  %v4858_v10 = vld [vmem:[#allocation23 + $0x7d0] sm:$0xff] }
 0xaef   :  { %9439 = vmatprep.subr.bf16.mxu0 %v9438_v39  ;;  %9551 = vmatprep.subr.bf16.mxu1 %v9550_v40  ;;  %v9454_v39 = vpack.c.bf16 %v4493_v21, %v4489_v20  ;;  %v9566_v40 = vpack.c.bf16 %v4495_v18, %v4491_v33  ;;  %v4279_v31 = vadd.f32 %v11432_v55, %v11441_v32  ;;  %v4834_v20 = vld [vmem:[#allocation23 + $0x710] sm:$0xff]  ;;  %v4841_v33 = vld [vmem:[#allocation23 + $0x748] sm:$0xff] }
 0xaf0   :  { %v4838_v21 = vld [vmem:[#allocation23 + $0x730] sm:$0xff]  ;;  %v4845_v18 = vld [vmem:[#allocation23 + $0x768] sm:$0xff] }
 0xaf1   :  { %v9582_v55 = vpack.c.bf16 %v4845_v18, %v4841_v33  ;;  %v4877_v33 = vld [vmem:[#allocation23 + $0x868] sm:$0xff]  ;;  %v4875_v18 = vld [vmem:[#allocation23 + $0x858] sm:$0xff] }
 0xaf2   :  { %9441 = vmatpush1.bf16.msra.mxu0 %v9440_v15  ;;  %9553 = vmatpush1.bf16.msra.mxu1 %v9552_v46  ;;  %v9456_v15 = vpack.c.bf16 %v4492_v38, %v4488_v37  ;;  %v9568_v46 = vpack.c.bf16 %v4494_v22, %v4490_v41  ;;  %v4844_v41 = vld [vmem:[#allocation23 + $0x760] sm:$0xff]  ;;  %v11455_v22 = vmax.f32 %v4279_v31, 0.0  ;;  %v4866_v31 = vld [vmem:[#allocation23 + $0x810] sm:$0xff] }
 0xaf3   :  { %9443 = vmatprep.subr.bf16.mxu0 %v9442_v49  ;;  %9555 = vmatprep.subr.bf16.mxu1 %v9554_v50  ;;  %v9458_v49 = vpack.c.bf16 %v4501_v23, %v4497_v42  ;;  %v9570_v50 = vpack.c.bf16 %v4503_v4, %v4499_v45  ;;  %v4842_v42 = vld [vmem:[#allocation23 + $0x750] sm:$0xff]  ;;  %v4849_v45 = vld [vmem:[#allocation23 + $0x788] sm:$0xff] }
 0xaf4   :  { %v4846_v23 = vld [vmem:[#allocation23 + $0x770] sm:$0xff]  ;;  %v4853_v4 = vld [vmem:[#allocation23 + $0x7a8] sm:$0xff] }
 0xaf6   :  { %9445 = vmatpush1.bf16.msra.mxu0 %v9444_v3  ;;  %9557 = vmatpush1.bf16.msra.mxu1 %v9556_v54  ;;  %v9460_v3 = vpack.c.bf16 %v4500_v48, %v4496_v2  ;;  %v9572_v54 = vpack.c.bf16 %v4502_v51, %v4498_v5  ;;  %v9696_v48 = vpack.c.bf16 %v4846_v23, %v4842_v42  ;;  %v4881_v42 = vld [vmem:[#allocation23 + $0x888] sm:$0xff] }
 0xaf7   :  { %9447 = vmatprep.subr.bf16.mxu0 %v9446_v7  ;;  %9559 = vmatprep.subr.bf16.mxu1 %v9558_v8  ;;  %v4263_v7 = vrot.slane %v11404_v63, %v11339_v61  ;;  %v9462_v8 = vpack.c.bf16 %v4509_v53, %v4505_v52  ;;  %v9586_v5 = vpack.c.bf16 %v4853_v4, %v4849_v45  ;;  %v4850_v52 = vld [vmem:[#allocation23 + $0x790] sm:$0xff]  ;;  %v4885_v23 = vld [vmem:[#allocation23 + $0x8a8] sm:$0xff]  ;;  %v4883_v45 = vld [vmem:[#allocation23 + $0x898] sm:$0xff] }
 0xaf8   :  { %v4854_v53 = vld [vmem:[#allocation23 + $0x7b0] sm:$0xff]  ;;  %v4887_v4 = vld [vmem:[#allocation23 + $0x8b8] sm:$0xff] }
 0xaf9   :  { %v4274_v25 = vadd.f32 %v4263_v7, %v11434_v59  ;;  %v4278_v59 = vadd.f32 %v4263_v7, %v11439_v27  ;;  %v4855_v27 = vld [vmem:[#allocation23 + $0x7b8] sm:$0xff]  ;;  %v4856_v7 = vld [vmem:[#allocation23 + $0x7c0] sm:$0xff] }
 0xafa   :  { %9449 = vmatpush1.bf16.msra.mxu0 %v9448_v16  ;;  %9561 = vmatpush1.bf16.msra.mxu1 %v9560_v19  ;;  %v4839_v16 = vld [vmem:[#allocation23 + $0x738] sm:$0xff]  ;;  %v9464_v19 = vpack.c.bf16 %v4508_v6, %v4504_v60  ;;  %v9700_v6 = vpack.c.bf16 %v4854_v53, %v4850_v52  ;;  %v4889_v52 = vld [vmem:[#allocation23 + $0x8c8] sm:$0xff] }
 0xafb   :  { %9451 = vmatprep.subr.bf16.mxu0 %v9450_v28  ;;  %9563 = vmatprep.subr.bf16.mxu1 %v9562_v29  ;;  %v9578_v28 = vpack.c.bf16 %v4837_v12, %v4833_v11  ;;  %v9690_v63 = vpack.c.bf16 %v4839_v16, %v4835_v14  ;;  %v4832_v29 = vld [vmem:[#allocation23 + $0x700] sm:$0xff]  ;;  %v11452_v37 = vmax.f32 %v4274_v25, 0.0  ;;  %v4862_v11 = vld [vmem:[#allocation23 + $0x7f0] sm:$0xff]  ;;  %v4865_v12 = vld [vmem:[#allocation23 + $0x808] sm:$0xff] }
 0xafc   :  { %v9580_v38 = vpack.c.bf16 %v4836_v30, %v4832_v29  ;;  %v4869_v14 = vld [vmem:[#allocation23 + $0x828] sm:$0xff]  ;;  %v4867_v16 = vld [vmem:[#allocation23 + $0x818] sm:$0xff]  ;;  %v9704_v25 = vpack.c.bf16 %v4862_v11, %v4858_v10 }
 0xafd   :  { %v9594_v29 = vpack.c.bf16 %v4869_v14, %v4865_v12  ;;  %v4893_v53 = vld [vmem:[#allocation23 + $0x8e8] sm:$0xff]  ;;  %v4899_v12 = vld [vmem:[#allocation23 + $0x918] sm:$0xff] }
 0xafe   :  { %9453 = vmatpush1.bf16.msra.mxu0 %v9452_v35  ;;  %9565 = vmatpush1.bf16.msra.mxu1 %v9564_v36  ;;  %v4843_v35 = vld [vmem:[#allocation23 + $0x758] sm:$0xff]  ;;  %v4897_v10 = vld [vmem:[#allocation23 + $0x908] sm:$0xff] }
 0xaff   :  { %9455 = vmatprep.subr.bf16.mxu0 %v9454_v39  ;;  %9567 = vmatprep.subr.bf16.mxu1 %v9566_v40  ;;  %v4847_v36 = vld [vmem:[#allocation23 + $0x778] sm:$0xff]  ;;  %v9692_v39 = vpack.c.bf16 %v4838_v21, %v4834_v20  ;;  %v4840_v40 = vld [vmem:[#allocation23 + $0x740] sm:$0xff]  ;;  %v4870_v20 = vld [vmem:[#allocation23 + $0x830] sm:$0xff] }
 0xb00   :  { %v9694_v32 = vpack.c.bf16 %v4847_v36, %v4843_v35  ;;  %v9584_v2 = vpack.c.bf16 %v4844_v41, %v4840_v40  ;;  %v4873_v21 = vld [vmem:[#allocation23 + $0x848] sm:$0xff]  ;;  %v4879_v35 = vld [vmem:[#allocation23 + $0x878] sm:$0xff] }
 0xb01   :  { %v9598_v40 = vpack.c.bf16 %v4877_v33, %v4873_v21  ;;  %v9710_v41 = vpack.c.bf16 %v4879_v35, %v4875_v18  ;;  %v4901_v11 = vld [vmem:[#allocation23 + $0x928] sm:$0xff]  ;;  %v4903_v14 = vld [vmem:[#allocation23 + $0x938] sm:$0xff] }
 0xb02   :  { %9457 = vmatpush1.bf16.msra.mxu0 %v9456_v15  ;;  %9569 = vmatpush1.bf16.msra.mxu1 %v9568_v46  ;;  %v4851_v15 = vld [vmem:[#allocation23 + $0x798] sm:$0xff]  ;;  %v11463_v46 = vmax.f32 %v4278_v59, 0.0  ;;  %v9708_v59 = vpack.c.bf16 %v4870_v20, %v4866_v31  ;;  %v4905_v31 = vld [vmem:[#allocation23 + $0x948] sm:$0xff] }
 0xb03   :  { %9459 = vmatprep.subr.bf16.mxu0 %v9458_v49  ;;  %9571 = vmatprep.subr.bf16.mxu1 %v9570_v50  ;;  %v4848_v49 = vld [vmem:[#allocation23 + $0x780] sm:$0xff]  ;;  %v9698_v51 = vpack.c.bf16 %v4855_v27, %v4851_v15  ;;  %v4909_v20 = vld [vmem:[#allocation23 + $0x968] sm:$0xff]  ;;  %v4907_v21 = vld [vmem:[#allocation23 + $0x958] sm:$0xff] }
 0xb04   :  { %v4852_v50 = vld [vmem:[#allocation23 + $0x7a0] sm:$0xff]  ;;  %v4911_v33 = vld [vmem:[#allocation23 + $0x978] sm:$0xff] }
 0xb05   :  { %v9588_v60 = vpack.c.bf16 %v4852_v50, %v4848_v49  ;;  %v9602_v49 = vpack.c.bf16 %v4885_v23, %v4881_v42  ;;  %v9714_v50 = vpack.c.bf16 %v4887_v4, %v4883_v45  ;;  %v4915_v42 = vld [vmem:[#allocation23 + $0x998] sm:$0xff] }
 0xb06   :  { %9461 = vmatpush1.bf16.msra.mxu0 %v9460_v3  ;;  %9573 = vmatpush1.bf16.msra.mxu1 %v9572_v54  ;;  %v4859_v3 = vld [vmem:[#allocation23 + $0x7d8] sm:$0xff] }
 0xb07   :  { %9463 = vmatprep.subr.bf16.mxu0 %v9462_v8  ;;  %9575 = vmatprep.subr.bf16.mxu1 %v9574_v9  ;;  %v4863_v54 = vld [vmem:[#allocation23 + $0x7f8] sm:$0xff]  ;;  %v4860_v8 = vld [vmem:[#allocation23 + $0x7e0] sm:$0xff]  ;;  %v9590_v9 = vpack.c.bf16 %v4861_v17, %v4857_v57 }
 0xb08   :  { %v9702_v13 = vpack.c.bf16 %v4863_v54, %v4859_v3  ;;  %v4891_v57 = vld [vmem:[#allocation23 + $0x8d8] sm:$0xff] }
 0xb09   :  { %v4895_v17 = vld [vmem:[#allocation23 + $0x8f8] sm:$0xff] }
 0xb0a   :  { %9465 = vmatpush1.bf16.msra.mxu0 %v9464_v19  ;;  %9577 = vmatpush1.bf16.msra.mxu1 %v9576_v24  ;;  %v4871_v19 = vld [vmem:[#allocation23 + $0x838] sm:$0xff]  ;;  %v9592_v24 = vpack.c.bf16 %v4860_v8, %v4856_v7  ;;  %v9606_v7 = vpack.c.bf16 %v4893_v53, %v4889_v52  ;;  %v9718_v8 = vpack.c.bf16 %v4895_v17, %v4891_v57 }
 0xb0b   :  { %9579 = vmatprep.subr.bf16.mxu0 %v9578_v28  ;;  %9691 = vmatprep.subr.bf16.mxu1 %v9690_v63  ;;  %v4864_v28 = vld [vmem:[#allocation23 + $0x800] sm:$0xff]  ;;  %v9706_v30 = vpack.c.bf16 %v4871_v19, %v4867_v16  ;;  %v4919_v23 = vld [vmem:[#allocation23 + $0x9b8] sm:$0xff] }
 0xb0c   :  { %v4868_v63 = vld [vmem:[#allocation23 + $0x820] sm:$0xff]  ;;  %v4923_v52 = vld [vmem:[#allocation23 + $0x9d8] sm:$0xff] }
 0xb0d   :  { %4661 = vmatmul.mubr.f32.vlgmr.msra.gmra.mrb[24].mxu0 %v11452_v37  ;;  %4815 = vmatmul.mubr.f32.vlgmr.msra.gmra.mrb[26].mxu1 %v11452_v37  ;;  %v9596_v36 = vpack.c.bf16 %v4868_v63, %v4864_v28  ;;  %v9610_v28 = vpack.c.bf16 %v4901_v11, %v4897_v10  ;;  %v9722_v63 = vpack.c.bf16 %v4903_v14, %v4899_v12  ;;  %v4927_v53 = vld [vmem:[#allocation23 + $0x9f8] sm:$0xff] }
 0xb0e   :  { %7766 = vmatprep.mubr.msk.f32.mxu0 %vm4512_vm6, %v11455_v22  ;;  %7768 = vmatprep.mubr.msk.f32.mxu1 %vm4512_vm6, %v11455_v22  ;;  %v4931_v10 = vld [vmem:[#allocation23 + $0xa18] sm:$0xff] }
 0xb0f   :  { %9581 = vmatpush1.bf16.msra.mxu0 %v9580_v38  ;;  %9693 = vmatpush1.bf16.msra.mxu1 %v9692_v39  ;;  %v4872_v38 = vld [vmem:[#allocation23 + $0x840] sm:$0xff]  ;;  %v4935_v11 = vld [vmem:[#allocation23 + $0xa38] sm:$0xff] }
 0xb10   :  { %9583 = vmatprep.subr.bf16.mxu0 %v9582_v55  ;;  %9695 = vmatprep.subr.bf16.mxu1 %v9694_v32  ;;  %v4876_v39 = vld [vmem:[#allocation23 + $0x860] sm:$0xff]  ;;  %v4874_v55 = vld [vmem:[#allocation23 + $0x850] sm:$0xff] }
 0xb11   :  { %4667 = vmatmul.mubr.f32.gmra.mrb[26].mxu0 %v11463_v46  ;;  %4821 = vmatmul.mubr.f32.gmra.mrb[28].mxu1 %v11463_v46  ;;  %v4878_v32 = vld [vmem:[#allocation23 + $0x870] sm:$0xff]  ;;  %v9600_v15 = vpack.c.bf16 %v4876_v39, %v4872_v38  ;;  %v9614_v38 = vpack.c.bf16 %v4909_v20, %v4905_v31  ;;  %v9726_v39 = vpack.c.bf16 %v4911_v33, %v4907_v21  ;;  %v4939_v31 = vld [vmem:[#allocation23 + $0xa58] sm:$0xff] }
 0xb12   :  { %5120 = vmatprep.mubr.f32.mxu0 %v11413_v26  ;;  %5274 = vmatprep.mubr.f32.mxu1 %v11413_v26  ;;  %v9712_v27 = vpack.c.bf16 %v4878_v32, %v4874_v55  ;;  %v4913_v55 = vld [vmem:[#allocation23 + $0x988] sm:$0xff]  ;;  %v4943_v20 = vld [vmem:[#allocation23 + $0xa78] sm:$0xff] }
 0xb13   :  { %9585 = vmatpush1.bf16.msra.mxu0 %v9584_v2  ;;  %9697 = vmatpush1.bf16.msra.mxu1 %v9696_v48  ;;  %v4880_v2 = vld [vmem:[#allocation23 + $0x880] sm:$0xff]  ;;  %v4917_v32 = vld [vmem:[#allocation23 + $0x9a8] sm:$0xff] }
 0xb14   :  { %9587 = vmatprep.subr.bf16.mxu0 %v9586_v5  ;;  %9699 = vmatprep.subr.bf16.mxu1 %v9698_v51  ;;  %v4884_v48 = vld [vmem:[#allocation23 + $0x8a0] sm:$0xff]  ;;  %v4882_v5 = vld [vmem:[#allocation23 + $0x890] sm:$0xff] }
 0xb15   :  { %v4886_v51 = vld [vmem:[#allocation23 + $0x8b0] sm:$0xff]  ;;  %v9604_v3 = vpack.c.bf16 %v4884_v48, %v4880_v2  ;;  %v9618_v2 = vpack.c.bf16 %v4917_v32, %v4913_v55  ;;  %v9730_v48 = vpack.c.bf16 %v4919_v23, %v4915_v42  ;;  %v4947_v55 = vld [vmem:[#allocation23 + $0xa98] sm:$0xff] }
 0xb16   :  { %v9716_v54 = vpack.c.bf16 %v4886_v51, %v4882_v5  ;;  %v4921_v5 = vld [vmem:[#allocation23 + $0x9c8] sm:$0xff]  ;;  %v4951_v32 = vld [vmem:[#allocation23 + $0xab8] sm:$0xff] }
 0xb17   :  { %9589 = vmatpush1.bf16.msra.mxu0 %v9588_v60  ;;  %9701 = vmatpush1.bf16.msra.mxu1 %v9700_v6  ;;  %v4888_v60 = vld [vmem:[#allocation23 + $0x8c0] sm:$0xff]  ;;  %v4925_v51 = vld [vmem:[#allocation23 + $0x9e8] sm:$0xff] }
 0xb18   :  { %9591 = vmatprep.subr.bf16.mxu0 %v9590_v9  ;;  %9703 = vmatprep.subr.bf16.mxu1 %v9702_v13  ;;  %v4892_v6 = vld [vmem:[#allocation23 + $0x8e0] sm:$0xff]  ;;  %v4890_v9 = vld [vmem:[#allocation23 + $0x8d0] sm:$0xff] }
 0xb19   :  { %v4894_v13 = vld [vmem:[#allocation23 + $0x8f0] sm:$0xff]  ;;  %v9608_v16 = vpack.c.bf16 %v4892_v6, %v4888_v60  ;;  %v9622_v60 = vpack.c.bf16 %v4925_v51, %v4921_v5  ;;  %v9734_v6 = vpack.c.bf16 %v4927_v53, %v4923_v52  ;;  %v4955_v5 = vld [vmem:[#allocation23 + $0xad8] sm:$0xff] }
 0xb1a   :  { %v9720_v19 = vpack.c.bf16 %v4894_v13, %v4890_v9  ;;  %v4929_v9 = vld [vmem:[#allocation23 + $0xa08] sm:$0xff]  ;;  %v4959_v51 = vld [vmem:[#allocation23 + $0xaf8] sm:$0xff] }
 0xb1b   :  { %9593 = vmatpush1.bf16.msra.mxu0 %v9592_v24  ;;  %9705 = vmatpush1.bf16.msra.mxu1 %v9704_v25  ;;  %v4896_v24 = vld [vmem:[#allocation23 + $0x900] sm:$0xff]  ;;  %v4933_v13 = vld [vmem:[#allocation23 + $0xa28] sm:$0xff] }
 0xb1c   :  { %9595 = vmatprep.subr.bf16.mxu0 %v9594_v29  ;;  %9707 = vmatprep.subr.bf16.mxu1 %v9706_v30  ;;  %v4900_v25 = vld [vmem:[#allocation23 + $0x920] sm:$0xff]  ;;  %v4898_v29 = vld [vmem:[#allocation23 + $0x910] sm:$0xff] }
 0xb1d   :  { %v4902_v30 = vld [vmem:[#allocation23 + $0x930] sm:$0xff]  ;;  %v9612_v18 = vpack.c.bf16 %v4900_v25, %v4896_v24  ;;  %v9626_v24 = vpack.c.bf16 %v4933_v13, %v4929_v9  ;;  %v9738_v25 = vpack.c.bf16 %v4935_v11, %v4931_v10  ;;  %v4963_v9 = vld [vmem:[#allocation23 + $0xb18] sm:$0xff] }
 0xb1e   :  { %v9724_v35 = vpack.c.bf16 %v4902_v30, %v4898_v29  ;;  %v4937_v29 = vld [vmem:[#allocation23 + $0xa48] sm:$0xff]  ;;  %v4967_v13 = vld [vmem:[#allocation23 + $0xb38] sm:$0xff] }
 0xb1f   :  { %9597 = vmatpush1.bf16.msra.mxu0 %v9596_v36  ;;  %9709 = vmatpush1.bf16.msra.mxu1 %v9708_v59  ;;  %v4904_v36 = vld [vmem:[#allocation23 + $0x940] sm:$0xff]  ;;  %v4941_v30 = vld [vmem:[#allocation23 + $0xa68] sm:$0xff] }
 0xb20   :  { %9599 = vmatprep.subr.bf16.mxu0 %v9598_v40  ;;  %9711 = vmatprep.subr.bf16.mxu1 %v9710_v41  ;;  %v4908_v59 = vld [vmem:[#allocation23 + $0x960] sm:$0xff]  ;;  %v4906_v40 = vld [vmem:[#allocation23 + $0x950] sm:$0xff] }
 0xb21   :  { %v4910_v41 = vld [vmem:[#allocation23 + $0x970] sm:$0xff]  ;;  %v9616_v45 = vpack.c.bf16 %v4908_v59, %v4904_v36  ;;  %v9630_v36 = vpack.c.bf16 %v4941_v30, %v4937_v29  ;;  %v9742_v59 = vpack.c.bf16 %v4943_v20, %v4939_v31  ;;  %v4971_v29 = vld [vmem:[#allocation23 + $0xb58] sm:$0xff] }
 0xb22   :  { %v9728_v4 = vpack.c.bf16 %v4910_v41, %v4906_v40  ;;  %v4945_v40 = vld [vmem:[#allocation23 + $0xa88] sm:$0xff]  ;;  %v4975_v30 = vld [vmem:[#allocation23 + $0xb78] sm:$0xff] }
 0xb23   :  { %9601 = vmatpush1.bf16.msra.mxu0 %v9600_v15  ;;  %9713 = vmatpush1.bf16.msra.mxu1 %v9712_v27  ;;  %v4912_v15 = vld [vmem:[#allocation23 + $0x980] sm:$0xff]  ;;  %v4949_v41 = vld [vmem:[#allocation23 + $0xaa8] sm:$0xff] }
 0xb24   :  { %9603 = vmatprep.subr.bf16.mxu0 %v9602_v49  ;;  %9715 = vmatprep.subr.bf16.mxu1 %v9714_v50  ;;  %v4916_v27 = vld [vmem:[#allocation23 + $0x9a0] sm:$0xff]  ;;  %v4914_v49 = vld [vmem:[#allocation23 + $0x990] sm:$0xff] }
 0xb25   :  { %v4918_v50 = vld [vmem:[#allocation23 + $0x9b0] sm:$0xff]  ;;  %v9620_v57 = vpack.c.bf16 %v4916_v27, %v4912_v15  ;;  %v9634_v15 = vpack.c.bf16 %v4949_v41, %v4945_v40  ;;  %v9746_v27 = vpack.c.bf16 %v4951_v32, %v4947_v55  ;;  %v4979_v40 = vld [vmem:[#allocation23 + $0xb98] sm:$0xff] }
 0xb26   :  { %v9732_v17 = vpack.c.bf16 %v4918_v50, %v4914_v49  ;;  %v4953_v49 = vld [vmem:[#allocation23 + $0xac8] sm:$0xff]  ;;  %v4983_v41 = vld [vmem:[#allocation23 + $0xbb8] sm:$0xff] }
 0xb27   :  { %9605 = vmatpush1.bf16.msra.mxu0 %v9604_v3  ;;  %9717 = vmatpush1.bf16.msra.mxu1 %v9716_v54  ;;  %v4920_v3 = vld [vmem:[#allocation23 + $0x9c0] sm:$0xff]  ;;  %v4957_v50 = vld [vmem:[#allocation23 + $0xae8] sm:$0xff] }
 0xb28   :  { %9607 = vmatprep.subr.bf16.mxu0 %v9606_v7  ;;  %9719 = vmatprep.subr.bf16.mxu1 %v9718_v8  ;;  %v4924_v54 = vld [vmem:[#allocation23 + $0x9e0] sm:$0xff]  ;;  %v4922_v7 = vld [vmem:[#allocation23 + $0x9d0] sm:$0xff] }
 0xb29   :  { %v4926_v8 = vld [vmem:[#allocation23 + $0x9f0] sm:$0xff]  ;;  %v9624_v12 = vpack.c.bf16 %v4924_v54, %v4920_v3  ;;  %v9638_v3 = vpack.c.bf16 %v4957_v50, %v4953_v49  ;;  %v9750_v54 = vpack.c.bf16 %v4959_v51, %v4955_v5  ;;  %v4987_v49 = vld [vmem:[#allocation23 + $0xbd8] sm:$0xff] }
 0xb2a   :  { %v9736_v14 = vpack.c.bf16 %v4926_v8, %v4922_v7  ;;  %v4961_v7 = vld [vmem:[#allocation23 + $0xb08] sm:$0xff]  ;;  %v4991_v50 = vld [vmem:[#allocation23 + $0xbf8] sm:$0xff] }
 0xb2b   :  { %9609 = vmatpush1.bf16.msra.mxu0 %v9608_v16  ;;  %9721 = vmatpush1.bf16.msra.mxu1 %v9720_v19  ;;  %v4928_v16 = vld [vmem:[#allocation23 + $0xa00] sm:$0xff]  ;;  %v4965_v8 = vld [vmem:[#allocation23 + $0xb28] sm:$0xff] }
 0xb2c   :  { %9611 = vmatprep.subr.bf16.mxu0 %v9610_v28  ;;  %9723 = vmatprep.subr.bf16.mxu1 %v9722_v63  ;;  %v4932_v19 = vld [vmem:[#allocation23 + $0xa20] sm:$0xff]  ;;  %v4930_v28 = vld [vmem:[#allocation23 + $0xa10] sm:$0xff] }
 0xb2d   :  { %v4934_v63 = vld [vmem:[#allocation23 + $0xa30] sm:$0xff]  ;;  %v9628_v21 = vpack.c.bf16 %v4932_v19, %v4928_v16  ;;  %v4960_v16 = vld [vmem:[#allocation23 + $0xb00] sm:$0xff] }
 0xb2e   :  { %v9740_v33 = vpack.c.bf16 %v4934_v63, %v4930_v28  ;;  %v4964_v19 = vld [vmem:[#allocation23 + $0xb20] sm:$0xff]  ;;  %v4969_v28 = vld [vmem:[#allocation23 + $0xb48] sm:$0xff] }
 0xb2f   :  { %9613 = vmatpush1.bf16.msra.mxu0 %v9612_v18  ;;  %9725 = vmatpush1.bf16.msra.mxu1 %v9724_v35  ;;  %v4936_v18 = vld [vmem:[#allocation23 + $0xa40] sm:$0xff]  ;;  %v4973_v63 = vld [vmem:[#allocation23 + $0xb68] sm:$0xff]  ;;  %v9644_v31 = vpack.c.bf16 %v4964_v19, %v4960_v16  ;;  %v4998_v19 = vld [vmem:[#allocation23 + $0xc30] sm:$0xff] }
 0xb30   :  { %9615 = vmatprep.subr.bf16.mxu0 %v9614_v38  ;;  %9727 = vmatprep.subr.bf16.mxu1 %v9726_v39  ;;  %v4940_v35 = vld [vmem:[#allocation23 + $0xa60] sm:$0xff]  ;;  %v4938_v38 = vld [vmem:[#allocation23 + $0xa50] sm:$0xff] }
 0xb31   :  { %v4942_v39 = vld [vmem:[#allocation23 + $0xa70] sm:$0xff]  ;;  %v9632_v42 = vpack.c.bf16 %v4940_v35, %v4936_v18  ;;  %v9646_v18 = vpack.c.bf16 %v4973_v63, %v4969_v28  ;;  %v9758_v35 = vpack.c.bf16 %v4975_v30, %v4971_v29  ;;  %v5003_v28 = vld [vmem:[#allocation23 + $0xc58] sm:$0xff] }
 0xb32   :  { %v9744_v23 = vpack.c.bf16 %v4942_v39, %v4938_v38  ;;  %v4977_v38 = vld [vmem:[#allocation23 + $0xb88] sm:$0xff]  ;;  %v5007_v63 = vld [vmem:[#allocation23 + $0xc78] sm:$0xff] }
 0xb33   :  { %9617 = vmatpush1.bf16.msra.mxu0 %v9616_v45  ;;  %9729 = vmatpush1.bf16.msra.mxu1 %v9728_v4  ;;  %v4944_v45 = vld [vmem:[#allocation23 + $0xa80] sm:$0xff]  ;;  %v4981_v39 = vld [vmem:[#allocation23 + $0xba8] sm:$0xff] }
 0xb34   :  { %9619 = vmatprep.subr.bf16.mxu0 %v9618_v2  ;;  %9731 = vmatprep.subr.bf16.mxu1 %v9730_v48  ;;  %v4948_v4 = vld [vmem:[#allocation23 + $0xaa0] sm:$0xff]  ;;  %v4946_v2 = vld [vmem:[#allocation23 + $0xa90] sm:$0xff] }
 0xb35   :  { %v4950_v48 = vld [vmem:[#allocation23 + $0xab0] sm:$0xff]  ;;  %v9636_v52 = vpack.c.bf16 %v4948_v4, %v4944_v45  ;;  %v9650_v4 = vpack.c.bf16 %v4981_v39, %v4977_v38  ;;  %v5011_v38 = vld [vmem:[#allocation23 + $0xc98] sm:$0xff] }
 0xb36   :  { %v9748_v53 = vpack.c.bf16 %v4950_v48, %v4946_v2  ;;  %v4978_v45 = vld [vmem:[#allocation23 + $0xb90] sm:$0xff]  ;;  %v4985_v2 = vld [vmem:[#allocation23 + $0xbc8] sm:$0xff]  ;;  %v5015_v39 = vld [vmem:[#allocation23 + $0xcb8] sm:$0xff] }
 0xb37   :  { %9621 = vmatpush1.bf16.msra.mxu0 %v9620_v57  ;;  %9733 = vmatpush1.bf16.msra.mxu1 %v9732_v17  ;;  %v4952_v57 = vld [vmem:[#allocation23 + $0xac0] sm:$0xff]  ;;  %v4989_v48 = vld [vmem:[#allocation23 + $0xbe8] sm:$0xff] }
 0xb38   :  { %9623 = vmatprep.subr.bf16.mxu0 %v9622_v60  ;;  %9735 = vmatprep.subr.bf16.mxu1 %v9734_v6  ;;  %v4956_v17 = vld [vmem:[#allocation23 + $0xae0] sm:$0xff]  ;;  %v4954_v60 = vld [vmem:[#allocation23 + $0xad0] sm:$0xff] }
 0xb39   :  { %v4958_v6 = vld [vmem:[#allocation23 + $0xaf0] sm:$0xff]  ;;  %v9640_v10 = vpack.c.bf16 %v4956_v17, %v4952_v57  ;;  %v4988_v57 = vld [vmem:[#allocation23 + $0xbe0] sm:$0xff] }
 0xb3a   :  { %v9752_v11 = vpack.c.bf16 %v4958_v6, %v4954_v60  ;;  %v4986_v17 = vld [vmem:[#allocation23 + $0xbd0] sm:$0xff]  ;;  %v4993_v60 = vld [vmem:[#allocation23 + $0xc08] sm:$0xff] }
 0xb3b   :  { %9625 = vmatpush1.bf16.msra.mxu0 %v9624_v12  ;;  %9737 = vmatpush1.bf16.msra.mxu1 %v9736_v14  ;;  %v9642_v12 = vpack.c.bf16 %v4965_v8, %v4961_v7  ;;  %v9754_v14 = vpack.c.bf16 %v4967_v13, %v4963_v9  ;;  %v4997_v6 = vld [vmem:[#allocation23 + $0xc28] sm:$0xff]  ;;  %v4995_v7 = vld [vmem:[#allocation23 + $0xc18] sm:$0xff] }
 0xb3c   :  { %9627 = vmatprep.subr.bf16.mxu0 %v9626_v24  ;;  %9739 = vmatprep.subr.bf16.mxu1 %v9738_v25  ;;  %v4962_v24 = vld [vmem:[#allocation23 + $0xb10] sm:$0xff]  ;;  %v4999_v8 = vld [vmem:[#allocation23 + $0xc38] sm:$0xff] }
 0xb3d   :  { %v4966_v25 = vld [vmem:[#allocation23 + $0xb30] sm:$0xff]  ;;  %v9770_v16 = vpack.c.bf16 %v4999_v8, %v4995_v7 }
 0xb3e   :  { %v9756_v20 = vpack.c.bf16 %v4966_v25, %v4962_v24  ;;  %v5001_v24 = vld [vmem:[#allocation23 + $0xc48] sm:$0xff] }
 0xb3f   :  { %9629 = vmatpush1.bf16.msra.mxu0 %v9628_v21  ;;  %9741 = vmatpush1.bf16.msra.mxu1 %v9740_v33  ;;  %v4968_v21 = vld [vmem:[#allocation23 + $0xb40] sm:$0xff]  ;;  %v5005_v25 = vld [vmem:[#allocation23 + $0xc68] sm:$0xff] }
 0xb40   :  { %9631 = vmatprep.subr.bf16.mxu0 %v9630_v36  ;;  %9743 = vmatprep.subr.bf16.mxu1 %v9742_v59  ;;  %v4972_v33 = vld [vmem:[#allocation23 + $0xb60] sm:$0xff]  ;;  %v4970_v36 = vld [vmem:[#allocation23 + $0xb50] sm:$0xff] }
 0xb41   :  { %v4974_v59 = vld [vmem:[#allocation23 + $0xb70] sm:$0xff]  ;;  %v9648_v55 = vpack.c.bf16 %v4972_v33, %v4968_v21  ;;  %v5004_v21 = vld [vmem:[#allocation23 + $0xc60] sm:$0xff] }
 0xb42   :  { %v9760_v32 = vpack.c.bf16 %v4974_v59, %v4970_v36  ;;  %v5002_v33 = vld [vmem:[#allocation23 + $0xc50] sm:$0xff]  ;;  %v5009_v36 = vld [vmem:[#allocation23 + $0xc88] sm:$0xff] }
 0xb43   :  { %9633 = vmatpush1.bf16.msra.mxu0 %v9632_v42  ;;  %9745 = vmatpush1.bf16.msra.mxu1 %v9744_v23  ;;  %v4976_v42 = vld [vmem:[#allocation23 + $0xb80] sm:$0xff]  ;;  %v5013_v59 = vld [vmem:[#allocation23 + $0xca8] sm:$0xff] }
 0xb44   :  { %9635 = vmatprep.subr.bf16.mxu0 %v9634_v15  ;;  %9747 = vmatprep.subr.bf16.mxu1 %v9746_v27  ;;  %v4980_v23 = vld [vmem:[#allocation23 + $0xba0] sm:$0xff]  ;;  %v9762_v15 = vpack.c.bf16 %v4983_v41, %v4979_v40  ;;  %v4982_v27 = vld [vmem:[#allocation23 + $0xbb0] sm:$0xff] }
 0xb45   :  { %v9652_v5 = vpack.c.bf16 %v4980_v23, %v4976_v42  ;;  %v9764_v51 = vpack.c.bf16 %v4982_v27, %v4978_v45  ;;  %v5012_v42 = vld [vmem:[#allocation23 + $0xca0] sm:$0xff]  ;;  %v5010_v23 = vld [vmem:[#allocation23 + $0xc90] sm:$0xff]  ;;  %v9778_v45 = vpack.c.bf16 %v5015_v39, %v5011_v38  ;;  %v5021_v27 = vld [vmem:[#allocation23 + $0xce8] sm:$0xff] }
 0xb47   :  { %9637 = vmatpush1.bf16.msra.mxu0 %v9636_v52  ;;  %9749 = vmatpush1.bf16.msra.mxu1 %v9748_v53  ;;  %v9654_v52 = vpack.c.bf16 %v4989_v48, %v4985_v2  ;;  %v4984_v53 = vld [vmem:[#allocation23 + $0xbc0] sm:$0xff]  ;;  %v5019_v2 = vld [vmem:[#allocation23 + $0xcd8] sm:$0xff] }
 0xb48   :  { %9639 = vmatprep.subr.bf16.mxu0 %v9638_v3  ;;  %9751 = vmatprep.subr.bf16.mxu1 %v9750_v54  ;;  %v9766_v3 = vpack.c.bf16 %v4991_v50, %v4987_v49  ;;  %v4990_v54 = vld [vmem:[#allocation23 + $0xbf0] sm:$0xff]  ;;  %v9656_v9 = vpack.c.bf16 %v4988_v57, %v4984_v53  ;;  %v5023_v48 = vld [vmem:[#allocation23 + $0xcf8] sm:$0xff] }
 0xb49   :  { %v9768_v13 = vpack.c.bf16 %v4990_v54, %v4986_v17  ;;  %v5018_v53 = vld [vmem:[#allocation23 + $0xcd0] sm:$0xff]  ;;  %v9782_v57 = vpack.c.bf16 %v5023_v48, %v5019_v2  ;;  %v5029_v54 = vld [vmem:[#allocation23 + $0xd28] sm:$0xff] }
 0xb4a   :  { %v5022_v17 = vld [vmem:[#allocation23 + $0xcf0] sm:$0xff] }
 0xb4b   :  { %9641 = vmatpush1.bf16.msra.mxu0 %v9640_v10  ;;  %9753 = vmatpush1.bf16.msra.mxu1 %v9752_v11  ;;  %v9658_v10 = vpack.c.bf16 %v4997_v6, %v4993_v60  ;;  %v4992_v11 = vld [vmem:[#allocation23 + $0xc00] sm:$0xff]  ;;  %v5027_v60 = vld [vmem:[#allocation23 + $0xd18] sm:$0xff]  ;;  %v9784_v8 = vpack.c.bf16 %v5022_v17, %v5018_v53  ;;  %v5054_v53 = vld [vmem:[#allocation23 + $0xdf0] sm:$0xff] }
 0xb4c   :  { %9643 = vmatprep.subr.bf16.mxu0 %v9642_v12  ;;  %9755 = vmatprep.subr.bf16.mxu1 %v9754_v14  ;;  %v4996_v12 = vld [vmem:[#allocation23 + $0xc20] sm:$0xff]  ;;  %v4994_v14 = vld [vmem:[#allocation23 + $0xc10] sm:$0xff]  ;;  %v5031_v6 = vld [vmem:[#allocation23 + $0xd38] sm:$0xff] }
 0xb4d   :  { %v9660_v29 = vpack.c.bf16 %v4996_v12, %v4992_v11  ;;  %v9772_v30 = vpack.c.bf16 %v4998_v19, %v4994_v14  ;;  %v5026_v11 = vld [vmem:[#allocation23 + $0xd10] sm:$0xff]  ;;  %v9786_v12 = vpack.c.bf16 %v5031_v6, %v5027_v60  ;;  %v5037_v19 = vld [vmem:[#allocation23 + $0xd68] sm:$0xff]  ;;  %v5776_v6 = vld [vmem:[#allocation23 + $0xe00] sm:$0xff] }
 0xb4e   :  { %5121 = vmatmul.mubr.f32.vlgmr.msra.gmra.mrb[28].mxu0 %v11416_v34  ;;  %5275 = vmatmul.mubr.f32.vlgmr.msra.gmra.mrb[30].mxu1 %v11416_v34  ;;  %v5030_v14 = vld [vmem:[#allocation23 + $0xd30] sm:$0xff]  ;;  %v5781_v17 = vld [vmem:[#allocation23 + $0xe28] sm:$0xff] }
 0xb4f   :  { %5126 = vmatprep.mubr.f32.mxu0 %v11422_v43  ;;  %9645 = vmatpush1.bf16.msra.mxu0 %v9644_v31  ;;  %v9662_v31 = vpack.c.bf16 %v5005_v25, %v5001_v24  ;;  %v5035_v24 = vld [vmem:[#allocation23 + $0xd58] sm:$0xff] }
 0xb50   :  { %5280 = vmatprep.mubr.f32.mxu1 %v11422_v43  ;;  %9757 = vmatpush1.bf16.msra.mxu1 %v9756_v20  ;;  %v5000_v20 = vld [vmem:[#allocation23 + $0xc40] sm:$0xff]  ;;  %v5039_v25 = vld [vmem:[#allocation23 + $0xd78] sm:$0xff] }
 0xb51   :  { %9647 = vmatprep.subr.bf16.mxu0 %v9646_v18  ;;  %9759 = vmatprep.subr.bf16.mxu1 %v9758_v35  ;;  %v9774_v18 = vpack.c.bf16 %v5007_v63, %v5003_v28  ;;  %v5006_v35 = vld [vmem:[#allocation23 + $0xc70] sm:$0xff]  ;;  %v9664_v40 = vpack.c.bf16 %v5004_v21, %v5000_v20  ;;  %v9788_v63 = vpack.c.bf16 %v5030_v14, %v5026_v11  ;;  %v5784_v11 = vld [vmem:[#allocation23 + $0xe40] sm:$0xff]  ;;  %v5793_v14 = vld [vmem:[#allocation23 + $0xe88] sm:$0xff] }
 0xb52   :  { %5127 = vmatmul.mubr.f32.gmra.mrb[30].mxu0 %v11424_v47  ;;  %5281 = vmatmul.mubr.f32.gmra.mrb[32].mxu1 %v11424_v47  ;;  %v9776_v41 = vpack.c.bf16 %v5006_v35, %v5002_v33  ;;  %v5034_v20 = vld [vmem:[#allocation23 + $0xd50] sm:$0xff]  ;;  %v9790_v21 = vpack.c.bf16 %v5039_v25, %v5035_v24  ;;  %v5045_v35 = vld [vmem:[#allocation23 + $0xda8] sm:$0xff]  ;;  %v5792_v25 = vld [vmem:[#allocation23 + $0xe80] sm:$0xff] }
 0xb53   :  { %9649 = vmatpush1.bf16.msra.mxu0 %v9648_v55  ;;  %7769 = vmatprep.mubr.msk.f32.mxu0 %vm4512_vm6, %v11437_v44  ;;  %v9666_v55 = vpack.c.bf16 %v5013_v59, %v5009_v36  ;;  %v5038_v33 = vld [vmem:[#allocation23 + $0xd70] sm:$0xff]  ;;  %v5043_v36 = vld [vmem:[#allocation23 + $0xd98] sm:$0xff] }
 0xb54   :  { %9761 = vmatpush1.bf16.msra.mxu1 %v9760_v32  ;;  %7771 = vmatprep.mubr.msk.f32.mxu1 %vm4512_vm6, %v11437_v44  ;;  %v5008_v32 = vld [vmem:[#allocation23 + $0xc80] sm:$0xff]  ;;  %v5047_v59 = vld [vmem:[#allocation23 + $0xdb8] sm:$0xff]  ;;  %v9792_v39 = vpack.c.bf16 %v5038_v33, %v5034_v20  ;;  %v5809_v33 = vld [vmem:[#allocation23 + $0xf08] sm:$0xff] }
 0xb55   :  { %9651 = vmatprep.subr.bf16.mxu0 %v9650_v4  ;;  %9763 = vmatprep.subr.bf16.mxu1 %v9762_v15  ;;  %v5014_v4 = vld [vmem:[#allocation23 + $0xcb0] sm:$0xff]  ;;  %v5017_v15 = vld [vmem:[#allocation23 + $0xcc8] sm:$0xff]  ;;  %v9668_v49 = vpack.c.bf16 %v5012_v42, %v5008_v32  ;;  %v9794_v42 = vpack.c.bf16 %v5047_v59, %v5043_v36  ;;  %v5800_v20 = vld [vmem:[#allocation23 + $0xec0] sm:$0xff] }
 0xb56   :  { %v9780_v50 = vpack.c.bf16 %v5014_v4, %v5010_v23  ;;  %v5042_v32 = vld [vmem:[#allocation23 + $0xd90] sm:$0xff]  ;;  %v5053_v4 = vld [vmem:[#allocation23 + $0xde8] sm:$0xff]  ;;  %v5808_v59 = vld [vmem:[#allocation23 + $0xf00] sm:$0xff] }
 0xb57   :  { %9653 = vmatpush1.bf16.msra.mxu0 %v9652_v5  ;;  %v9670_v5 = vpack.c.bf16 %v5021_v27, %v5017_v15  ;;  %v5046_v23 = vld [vmem:[#allocation23 + $0xdb0] sm:$0xff]  ;;  %v5051_v15 = vld [vmem:[#allocation23 + $0xdd8] sm:$0xff] }
 0xb58   :  { %9765 = vmatpush1.bf16.msra.mxu1 %v9764_v51  ;;  %9655 = vmatprep.subr.bf16.mxu0 %v9654_v52  ;;  %v5016_v51 = vld [vmem:[#allocation23 + $0xcc0] sm:$0xff]  ;;  %v5055_v27 = vld [vmem:[#allocation23 + $0xdf8] sm:$0xff]  ;;  %v9796_v48 = vpack.c.bf16 %v5046_v23, %v5042_v32  ;;  %v5825_v23 = vld [vmem:[#allocation23 + $0xf88] sm:$0xff] }
 0xb59   :  { %9767 = vmatprep.subr.bf16.mxu1 %v9766_v3  ;;  %v5020_v52 = vld [vmem:[#allocation23 + $0xce0] sm:$0xff]  ;;  %v5025_v3 = vld [vmem:[#allocation23 + $0xd08] sm:$0xff] }
 0xb5a   :  { %v9672_v7 = vpack.c.bf16 %v5020_v52, %v5016_v51  ;;  %v9798_v51 = vpack.c.bf16 %v5055_v27, %v5051_v15  ;;  %v5050_v52 = vld [vmem:[#allocation23 + $0xdd0] sm:$0xff]  ;;  %v5816_v32 = vld [vmem:[#allocation23 + $0xf40] sm:$0xff] }
 0xb5b   :  { %9657 = vmatpush1.bf16.msra.mxu0 %v9656_v9  ;;  %v9674_v9 = vpack.c.bf16 %v5029_v54, %v5025_v3  ;;  %v9800_v54 = vpack.c.bf16 %v5054_v53, %v5050_v52  ;;  %v5824_v27 = vld [vmem:[#allocation23 + $0xf80] sm:$0xff]  ;;  %v5841_v53 = vld [vmem:[#allocation23 + $0x1008] sm:$0xff] }
 0xb5c   :  { %9769 = vmatpush1.bf16.msra.mxu1 %v9768_v13  ;;  %9659 = vmatprep.subr.bf16.mxu0 %v9658_v10  ;;  %v5024_v13 = vld [vmem:[#allocation23 + $0xd00] sm:$0xff] }
 0xb5d   :  { %9771 = vmatprep.subr.bf16.mxu1 %v9770_v16  ;;  %v5028_v10 = vld [vmem:[#allocation23 + $0xd20] sm:$0xff]  ;;  %v5033_v16 = vld [vmem:[#allocation23 + $0xd48] sm:$0xff] }
 0xb5e   :  { %v9676_v28 = vpack.c.bf16 %v5028_v10, %v5024_v13  ;;  %v5836_v52 = vld [vmem:[#allocation23 + $0xfe0] sm:$0xff] }
 0xb5f   :  { %9661 = vmatpush1.bf16.msra.mxu0 %v9660_v29  ;;  %v9678_v29 = vpack.c.bf16 %v5037_v19, %v5033_v16  ;;  %v5797_v16 = vld [vmem:[#allocation23 + $0xea8] sm:$0xff] }
 0xb60   :  { %9773 = vmatpush1.bf16.msra.mxu1 %v9772_v30  ;;  %9663 = vmatprep.subr.bf16.mxu0 %v9662_v31  ;;  %v5032_v30 = vld [vmem:[#allocation23 + $0xd40] sm:$0xff]  ;;  %v9834_v24 = vpack.c.bf16 %v5797_v16, %v5793_v14 }
 0xb61   :  { %9775 = vmatprep.subr.bf16.mxu1 %v9774_v18  ;;  %v5036_v31 = vld [vmem:[#allocation23 + $0xd60] sm:$0xff]  ;;  %v5041_v18 = vld [vmem:[#allocation23 + $0xd88] sm:$0xff] }
 0xb62   :  { %v9680_v38 = vpack.c.bf16 %v5036_v31, %v5032_v30 }
 0xb63   :  { %9665 = vmatpush1.bf16.msra.mxu0 %v9664_v40  ;;  %v9682_v40 = vpack.c.bf16 %v5045_v35, %v5041_v18  ;;  %v5813_v18 = vld [vmem:[#allocation23 + $0xf28] sm:$0xff] }
 0xb64   :  { %9777 = vmatpush1.bf16.msra.mxu1 %v9776_v41  ;;  %9667 = vmatprep.subr.bf16.mxu0 %v9666_v55  ;;  %v5040_v41 = vld [vmem:[#allocation23 + $0xd80] sm:$0xff]  ;;  %v9842_v36 = vpack.c.bf16 %v5813_v18, %v5809_v33 }
 0xb65   :  { %9779 = vmatprep.subr.bf16.mxu1 %v9778_v45  ;;  %v5044_v55 = vld [vmem:[#allocation23 + $0xda0] sm:$0xff]  ;;  %v5049_v45 = vld [vmem:[#allocation23 + $0xdc8] sm:$0xff] }
 0xb66   :  { %v9684_v2 = vpack.c.bf16 %v5044_v55, %v5040_v41 }
 0xb67   :  { %9669 = vmatpush1.bf16.msra.mxu0 %v9668_v49  ;;  %v9686_v49 = vpack.c.bf16 %v5053_v4, %v5049_v45  ;;  %v5829_v45 = vld [vmem:[#allocation23 + $0xfa8] sm:$0xff] }
 0xb68   :  { %9781 = vmatpush1.bf16.msra.mxu1 %v9780_v50  ;;  %9671 = vmatprep.subr.bf16.mxu0 %v9670_v5  ;;  %v5048_v50 = vld [vmem:[#allocation23 + $0xdc0] sm:$0xff]  ;;  %v9850_v15 = vpack.c.bf16 %v5829_v45, %v5825_v23 }
 0xb69   :  { %9783 = vmatprep.subr.bf16.mxu1 %v9782_v57  ;;  %v5052_v5 = vld [vmem:[#allocation23 + $0xde0] sm:$0xff]  ;;  %v5777_v57 = vld [vmem:[#allocation23 + $0xe08] sm:$0xff] }
 0xb6a   :  { %v9688_v3 = vpack.c.bf16 %v5052_v5, %v5048_v50  ;;  %v9826_v60 = vpack.c.bf16 %v5781_v17, %v5777_v57  ;;  %v5845_v57 = vld [vmem:[#allocation23 + $0x1028] sm:$0xff] }
 0xb6b   :  { %9673 = vmatpush1.bf16.msra.mxu0 %v9672_v7  ;;  %v5780_v7 = vld [vmem:[#allocation23 + $0xe20] sm:$0xff] }
 0xb6c   :  { %9785 = vmatpush1.bf16.msra.mxu1 %v9784_v8  ;;  %9675 = vmatprep.subr.bf16.mxu0 %v9674_v9  ;;  %v5785_v8 = vld [vmem:[#allocation23 + $0xe48] sm:$0xff]  ;;  %v9828_v13 = vpack.c.bf16 %v5780_v7, %v5776_v6 }
 0xb6d   :  { %9787 = vmatprep.subr.bf16.mxu1 %v9786_v12  ;;  %v5789_v9 = vld [vmem:[#allocation23 + $0xe68] sm:$0xff]  ;;  %v5788_v12 = vld [vmem:[#allocation23 + $0xe60] sm:$0xff] }
 0xb6e   :  { %v9830_v10 = vpack.c.bf16 %v5789_v9, %v5785_v8  ;;  %v9832_v19 = vpack.c.bf16 %v5788_v12, %v5784_v11  ;;  %v5849_v6 = vld [vmem:[#allocation23 + $0x1048] sm:$0xff] }
 0xb6f   :  { %9677 = vmatpush1.bf16.msra.mxu0 %v9676_v28  ;;  %v5796_v28 = vld [vmem:[#allocation23 + $0xea0] sm:$0xff]  ;;  %v5853_v7 = vld [vmem:[#allocation23 + $0x1068] sm:$0xff] }
 0xb70   :  { %9789 = vmatpush1.bf16.msra.mxu1 %v9788_v63  ;;  %9679 = vmatprep.subr.bf16.mxu0 %v9678_v29  ;;  %v5801_v63 = vld [vmem:[#allocation23 + $0xec8] sm:$0xff]  ;;  %v9836_v30 = vpack.c.bf16 %v5796_v28, %v5792_v25  ;;  %v9862_v9 = vpack.c.bf16 %v5853_v7, %v5849_v6 }
 0xb71   :  { %9791 = vmatprep.subr.bf16.mxu1 %v9790_v21  ;;  %v5805_v29 = vld [vmem:[#allocation23 + $0xee8] sm:$0xff]  ;;  %v5804_v21 = vld [vmem:[#allocation23 + $0xee0] sm:$0xff] }
 0xb72   :  { %v9838_v31 = vpack.c.bf16 %v5805_v29, %v5801_v63  ;;  %v9840_v35 = vpack.c.bf16 %v5804_v21, %v5800_v20  ;;  %v5857_v11 = vld [vmem:[#allocation23 + $0x1088] sm:$0xff] }
 0xb73   :  { %9681 = vmatpush1.bf16.msra.mxu0 %v9680_v38  ;;  %v5812_v38 = vld [vmem:[#allocation23 + $0xf20] sm:$0xff]  ;;  %v5861_v12 = vld [vmem:[#allocation23 + $0x10a8] sm:$0xff] }
 0xb74   :  { %9793 = vmatpush1.bf16.msra.mxu1 %v9792_v39  ;;  %9683 = vmatprep.subr.bf16.mxu0 %v9682_v40  ;;  %v5817_v39 = vld [vmem:[#allocation23 + $0xf48] sm:$0xff]  ;;  %v9844_v41 = vpack.c.bf16 %v5812_v38, %v5808_v59  ;;  %v9866_v16 = vpack.c.bf16 %v5861_v12, %v5857_v11 }
 0xb75   :  { %9795 = vmatprep.subr.bf16.mxu1 %v9794_v42  ;;  %v5821_v40 = vld [vmem:[#allocation23 + $0xf68] sm:$0xff]  ;;  %v5820_v42 = vld [vmem:[#allocation23 + $0xf60] sm:$0xff] }
 0xb76   :  { %v9846_v55 = vpack.c.bf16 %v5821_v40, %v5817_v39  ;;  %v9848_v4 = vpack.c.bf16 %v5820_v42, %v5816_v32  ;;  %v5865_v25 = vld [vmem:[#allocation23 + $0x10c8] sm:$0xff] }
 0xb77   :  { %9685 = vmatpush1.bf16.msra.mxu0 %v9684_v2  ;;  %v5828_v2 = vld [vmem:[#allocation23 + $0xfa0] sm:$0xff]  ;;  %v5869_v28 = vld [vmem:[#allocation23 + $0x10e8] sm:$0xff] }
 0xb78   :  { %9797 = vmatpush1.bf16.msra.mxu1 %v9796_v48  ;;  %9687 = vmatprep.subr.bf16.mxu0 %v9686_v49  ;;  %v5833_v48 = vld [vmem:[#allocation23 + $0xfc8] sm:$0xff]  ;;  %v9852_v50 = vpack.c.bf16 %v5828_v2, %v5824_v27  ;;  %v9870_v29 = vpack.c.bf16 %v5869_v28, %v5865_v25 }
 0xb79   :  { %9799 = vmatprep.subr.bf16.mxu1 %v9798_v51  ;;  %v5837_v49 = vld [vmem:[#allocation23 + $0xfe8] sm:$0xff]  ;;  %v5832_v51 = vld [vmem:[#allocation23 + $0xfc0] sm:$0xff] }
 0xb7a   :  { %v9854_v5 = vpack.c.bf16 %v5837_v49, %v5833_v48  ;;  %v9856_v17 = vpack.c.bf16 %v5836_v52, %v5832_v51  ;;  %v5873_v20 = vld [vmem:[#allocation23 + $0x1108] sm:$0xff] }
 0xb7b   :  { %9689 = vmatpush1.bf16.msra.mxu0 %v9688_v3  ;;  %v9858_v3 = vpack.c.bf16 %v5845_v57, %v5841_v53  ;;  %v5877_v21 = vld [vmem:[#allocation23 + $0x1128] sm:$0xff] }
 0xb7c   :  { %9801 = vmatpush1.bf16.msra.mxu1 %v9800_v54  ;;  %v5840_v54 = vld [vmem:[#allocation23 + $0x1000] sm:$0xff]  ;;  %v9874_v18 = vpack.c.bf16 %v5877_v21, %v5873_v20  ;;  %v5881_v59 = vld [vmem:[#allocation23 + $0x1148] sm:$0xff] }
 0xb7d   :  { %9827 = vmatprep.subr.bf16.mxu1 %v9826_v60  ;;  %v5844_v60 = vld [vmem:[#allocation23 + $0x1020] sm:$0xff]  ;;  %v5885_v38 = vld [vmem:[#allocation23 + $0x1168] sm:$0xff] }
 0xb7e   :  { %5198 = vmatmul.mubr.f32.vlgmr.msra.gmra.mrb[28].mxu0 %v11452_v37  ;;  %v9860_v8 = vpack.c.bf16 %v5844_v60, %v5840_v54  ;;  %v9878_v40 = vpack.c.bf16 %v5885_v38, %v5881_v59  ;;  %v5889_v32 = vld [vmem:[#allocation23 + $0x1188] sm:$0xff] }
 0xb7f   :  { %5352 = vmatmul.mubr.f32.vlgmr.msra.gmra.mrb[30].mxu1 %v11452_v37  ;;  %7770 = vmatprep.mubr.msk.f32.mxu0 %vm4512_vm6, %v11455_v22  ;;  %v5893_v42 = vld [vmem:[#allocation23 + $0x11a8] sm:$0xff] }
 0xb80   :  { %7772 = vmatprep.mubr.msk.f32.mxu1 %vm4512_vm6, %v11455_v22  ;;  %9829 = vmatpush1.bf16.msra.mxu1 %v9828_v13  ;;  %v5848_v13 = vld [vmem:[#allocation23 + $0x1040] sm:$0xff]  ;;  %v9882_v45 = vpack.c.bf16 %v5893_v42, %v5889_v32  ;;  %v5897_v27 = vld [vmem:[#allocation23 + $0x11c8] sm:$0xff] }
 0xb81   :  { %9831 = vmatprep.subr.bf16.mxu1 %v9830_v10  ;;  %v5852_v10 = vld [vmem:[#allocation23 + $0x1060] sm:$0xff]  ;;  %v5901_v2 = vld [vmem:[#allocation23 + $0x11e8] sm:$0xff] }
 0xb82   :  { %5204 = vmatmul.mubr.f32.gmra.mrb[30].mxu0 %v11463_v46  ;;  %v9864_v14 = vpack.c.bf16 %v5852_v10, %v5848_v13  ;;  %v9886_v49 = vpack.c.bf16 %v5901_v2, %v5897_v27  ;;  %v5905_v51 = vld [vmem:[#allocation23 + $0x1208] sm:$0xff] }
 0xb83   :  { %5358 = vmatmul.mubr.f32.gmra.mrb[32].mxu1 %v11463_v46  ;;  %5459 = vmatprep.mubr.f32.mxu0 %v10882_v1  ;;  %v5909_v52 = vld [vmem:[#allocation23 + $0x1228] sm:$0xff] }
 0xb84   :  { %9833 = vmatpush1.bf16.msra.mxu1 %v9832_v19  ;;  %6064 = vmatprep.mubr.f32.mxu1 %v11413_v26  ;;  %v5856_v19 = vld [vmem:[#allocation23 + $0x1080] sm:$0xff]  ;;  %v9890_v57 = vpack.c.bf16 %v5909_v52, %v5905_v51  ;;  %v5913_v54 = vld [vmem:[#allocation23 + $0x1248] sm:$0xff] }
 0xb85   :  { %9835 = vmatprep.subr.bf16.mxu1 %v9834_v24  ;;  %v5860_v24 = vld [vmem:[#allocation23 + $0x10a0] sm:$0xff]  ;;  %v5917_v60 = vld [vmem:[#allocation23 + $0x1268] sm:$0xff] }
 0xb86   :  { %v9868_v63 = vpack.c.bf16 %v5860_v24, %v5856_v19  ;;  %v9894_v7 = vpack.c.bf16 %v5917_v60, %v5913_v54  ;;  %v5921_v13 = vld [vmem:[#allocation23 + $0x1288] sm:$0xff] }
 0xb87   :  { %v5925_v10 = vld [vmem:[#allocation23 + $0x12a8] sm:$0xff] }
 0xb88   :  { %9837 = vmatpush1.bf16.msra.mxu1 %v9836_v30  ;;  %v5864_v30 = vld [vmem:[#allocation23 + $0x10c0] sm:$0xff]  ;;  %v9898_v12 = vpack.c.bf16 %v5925_v10, %v5921_v13  ;;  %v5929_v19 = vld [vmem:[#allocation23 + $0x12c8] sm:$0xff] }
 0xb89   :  { %9839 = vmatprep.subr.bf16.mxu1 %v9838_v31  ;;  %v5868_v31 = vld [vmem:[#allocation23 + $0x10e0] sm:$0xff]  ;;  %v5933_v24 = vld [vmem:[#allocation23 + $0x12e8] sm:$0xff] }
 0xb8a   :  { %v9872_v33 = vpack.c.bf16 %v5868_v31, %v5864_v30  ;;  %v9902_v28 = vpack.c.bf16 %v5933_v24, %v5929_v19  ;;  %v5937_v30 = vld [vmem:[#allocation23 + $0x1308] sm:$0xff]  ;;  %v5984_v19 = vld [vmem:[#allocation23 + $0x1480] sm:$0xff] }
 0xb8b   :  { %v5941_v31 = vld [vmem:[#allocation23 + $0x1328] sm:$0xff]  ;;  %v5988_v24 = vld [vmem:[#allocation23 + $0x14a0] sm:$0xff] }
 0xb8c   :  { %9841 = vmatpush1.bf16.msra.mxu1 %v9840_v35  ;;  %v5872_v35 = vld [vmem:[#allocation23 + $0x1100] sm:$0xff]  ;;  %v9906_v21 = vpack.c.bf16 %v5941_v31, %v5937_v30  ;;  %v9932_v30 = vpack.c.bf16 %v5988_v24, %v5984_v19  ;;  %v5799_v19 = vld [vmem:[#allocation23 + $0xeb8] sm:$0xff] }
 0xb8d   :  { %9843 = vmatprep.subr.bf16.mxu1 %v9842_v36  ;;  %v5876_v36 = vld [vmem:[#allocation23 + $0x1120] sm:$0xff] }
 0xb8e   :  { %v9876_v39 = vpack.c.bf16 %v5876_v36, %v5872_v35  ;;  %v5945_v35 = vld [vmem:[#allocation23 + $0x1348] sm:$0xff] }
 0xb8f   :  { %v5949_v36 = vld [vmem:[#allocation23 + $0x1368] sm:$0xff] }
 0xb90   :  { %9845 = vmatpush1.bf16.msra.mxu1 %v9844_v41  ;;  %v5880_v41 = vld [vmem:[#allocation23 + $0x1140] sm:$0xff]  ;;  %v9910_v38 = vpack.c.bf16 %v5949_v36, %v5945_v35 }
 0xb91   :  { %9847 = vmatprep.subr.bf16.mxu1 %v9846_v55  ;;  %v5884_v55 = vld [vmem:[#allocation23 + $0x1160] sm:$0xff] }
 0xb92   :  { %v9880_v23 = vpack.c.bf16 %v5884_v55, %v5880_v41  ;;  %v5953_v41 = vld [vmem:[#allocation23 + $0x1388] sm:$0xff]  ;;  %v5992_v35 = vld [vmem:[#allocation23 + $0x14c0] sm:$0xff] }
 0xb93   :  { %v5957_v55 = vld [vmem:[#allocation23 + $0x13a8] sm:$0xff]  ;;  %v5996_v36 = vld [vmem:[#allocation23 + $0x14e0] sm:$0xff] }
 0xb94   :  { %9849 = vmatpush1.bf16.msra.mxu1 %v9848_v4  ;;  %v5888_v4 = vld [vmem:[#allocation23 + $0x1180] sm:$0xff]  ;;  %v9914_v42 = vpack.c.bf16 %v5957_v55, %v5953_v41 }
 0xb95   :  { %9851 = vmatprep.subr.bf16.mxu1 %v9850_v15  ;;  %v5892_v15 = vld [vmem:[#allocation23 + $0x11a0] sm:$0xff] }
 0xb96   :  { %v9884_v48 = vpack.c.bf16 %v5892_v15, %v5888_v4  ;;  %v5961_v4 = vld [vmem:[#allocation23 + $0x13c8] sm:$0xff] }
 0xb97   :  { %v5965_v15 = vld [vmem:[#allocation23 + $0x13e8] sm:$0xff] }
 0xb98   :  { %9853 = vmatpush1.bf16.msra.mxu1 %v9852_v50  ;;  %v5896_v50 = vld [vmem:[#allocation23 + $0x11c0] sm:$0xff]  ;;  %v9918_v2 = vpack.c.bf16 %v5965_v15, %v5961_v4 }
 0xb99   :  { %9855 = vmatprep.subr.bf16.mxu1 %v9854_v5  ;;  %v5900_v5 = vld [vmem:[#allocation23 + $0x11e0] sm:$0xff] }
 0xb9a   :  { %v9888_v53 = vpack.c.bf16 %v5900_v5, %v5896_v50  ;;  %v5969_v50 = vld [vmem:[#allocation23 + $0x1408] sm:$0xff] }
 0xb9b   :  { %v5973_v5 = vld [vmem:[#allocation23 + $0x1428] sm:$0xff] }
 0xb9c   :  { %9857 = vmatpush1.bf16.msra.mxu1 %v9856_v17  ;;  %v5904_v17 = vld [vmem:[#allocation23 + $0x1200] sm:$0xff]  ;;  %v9922_v52 = vpack.c.bf16 %v5973_v5, %v5969_v50  ;;  %v5366_v5 = vld [vmem:[#allocation25 + $0x28] sm:$0xff] }
 0xb9d   :  { %9859 = vmatprep.subr.bf16.mxu1 %v9858_v3  ;;  %v5908_v3 = vld [vmem:[#allocation23 + $0x1220] sm:$0xff] }
 0xb9e   :  { %v9892_v6 = vpack.c.bf16 %v5908_v3, %v5904_v17  ;;  %v5977_v17 = vld [vmem:[#allocation23 + $0x1448] sm:$0xff]  ;;  %v5365_v50 = vld [vmem:[#allocation25 + $0x20] sm:$0xff] }
 0xb9f   :  { %v5981_v3 = vld [vmem:[#allocation23 + $0x1468] sm:$0xff] }
 0xba0   :  { %9861 = vmatpush1.bf16.msra.mxu1 %v9860_v8  ;;  %v5912_v8 = vld [vmem:[#allocation23 + $0x1240] sm:$0xff]  ;;  %v9926_v60 = vpack.c.bf16 %v5981_v3, %v5977_v17 }
 0xba1   :  { %9863 = vmatprep.subr.bf16.mxu1 %v9862_v9  ;;  %v5916_v9 = vld [vmem:[#allocation23 + $0x1260] sm:$0xff] }
 0xba2   :  { %v9896_v11 = vpack.c.bf16 %v5916_v9, %v5912_v8  ;;  %v5985_v8 = vld [vmem:[#allocation23 + $0x1488] sm:$0xff]  ;;  %v4827_v17 = vld [vmem:[#allocation25] sm:$0xff] }
 0xba3   :  { %v5989_v9 = vld [vmem:[#allocation23 + $0x14a8] sm:$0xff] }
 0xba4   :  { %9865 = vmatpush1.bf16.msra.mxu1 %v9864_v14  ;;  %v5920_v14 = vld [vmem:[#allocation23 + $0x1280] sm:$0xff] }
 0xba5   :  { %9867 = vmatprep.subr.bf16.mxu1 %v9866_v16  ;;  %v5924_v16 = vld [vmem:[#allocation23 + $0x12a0] sm:$0xff] }
 0xba6   :  { %v9900_v25 = vpack.c.bf16 %v5924_v16, %v5920_v14  ;;  %v9930_v16 = vpack.c.bf16 %v5989_v9, %v5985_v8  ;;  %v5782_v8 = vld [vmem:[#allocation23 + $0xe30] sm:$0xff]  ;;  %v5787_v9 = vld [vmem:[#allocation23 + $0xe58] sm:$0xff] }
 0xba8   :  { %9869 = vmatpush1.bf16.msra.mxu1 %v9868_v63  ;;  %v5928_v63 = vld [vmem:[#allocation23 + $0x12c0] sm:$0xff] }
 0xba9   :  { %9871 = vmatprep.subr.bf16.mxu1 %v9870_v29  ;;  %v5932_v29 = vld [vmem:[#allocation23 + $0x12e0] sm:$0xff] }
 0xbaa   :  { %v9904_v20 = vpack.c.bf16 %v5932_v29, %v5928_v63 }
 0xbac   :  { %9873 = vmatpush1.bf16.msra.mxu1 %v9872_v33  ;;  %v5936_v33 = vld [vmem:[#allocation23 + $0x1300] sm:$0xff] }
 0xbad   :  { %9875 = vmatprep.subr.bf16.mxu1 %v9874_v18  ;;  %v5940_v18 = vld [vmem:[#allocation23 + $0x1320] sm:$0xff] }
 0xbae   :  { %v9908_v59 = vpack.c.bf16 %v5940_v18, %v5936_v33 }
 0xbb0   :  { %9877 = vmatpush1.bf16.msra.mxu1 %v9876_v39  ;;  %v5944_v39 = vld [vmem:[#allocation23 + $0x1340] sm:$0xff] }
 0xbb1   :  { %9879 = vmatprep.subr.bf16.mxu1 %v9878_v40  ;;  %v5948_v40 = vld [vmem:[#allocation23 + $0x1360] sm:$0xff] }
 0xbb2   :  { %v9912_v32 = vpack.c.bf16 %v5948_v40, %v5944_v39  ;;  %v9936_v39 = vpack.c.bf16 %v5996_v36, %v5992_v35 }
 0xbb4   :  { %9881 = vmatpush1.bf16.msra.mxu1 %v9880_v23  ;;  %v5952_v23 = vld [vmem:[#allocation23 + $0x1380] sm:$0xff] }
 0xbb5   :  { %9883 = vmatprep.subr.bf16.mxu1 %v9882_v45  ;;  %v5956_v45 = vld [vmem:[#allocation23 + $0x13a0] sm:$0xff] }
 0xbb6   :  { %v9916_v27 = vpack.c.bf16 %v5956_v45, %v5952_v23 }
 0xbb8   :  { %9885 = vmatpush1.bf16.msra.mxu1 %v9884_v48  ;;  %v5960_v48 = vld [vmem:[#allocation23 + $0x13c0] sm:$0xff] }
 0xbb9   :  { %9887 = vmatprep.subr.bf16.mxu1 %v9886_v49  ;;  %v5964_v49 = vld [vmem:[#allocation23 + $0x13e0] sm:$0xff] }
 0xbba   :  { %v9920_v51 = vpack.c.bf16 %v5964_v49, %v5960_v48 }
 0xbbc   :  { %9889 = vmatpush1.bf16.msra.mxu1 %v9888_v53  ;;  %v5968_v53 = vld [vmem:[#allocation23 + $0x1400] sm:$0xff] }
 0xbbd   :  { %9891 = vmatprep.subr.bf16.mxu1 %v9890_v57  ;;  %v5972_v57 = vld [vmem:[#allocation23 + $0x1420] sm:$0xff] }
 0xbbe   :  { %v9924_v54 = vpack.c.bf16 %v5972_v57, %v5968_v53  ;;  %v5779_v53 = vld [vmem:[#allocation23 + $0xe18] sm:$0xff] }
 0xbbf   :  { %6065 = vmatmul.mubr.f32.vlgmr.msra.gmra.mrb[34].mxu1 %v11416_v34  ;;  %v5783_v57 = vld [vmem:[#allocation23 + $0xe38] sm:$0xff] }
 0xbc0   :  { %6070 = vmatprep.mubr.f32.mxu1 %v11422_v43  ;;  %9893 = vmatpush1.bf16.msra.mxu1 %v9892_v6  ;;  %v5976_v6 = vld [vmem:[#allocation23 + $0x1440] sm:$0xff]  ;;  %v9938_v3 = vpack.c.bf16 %v5783_v57, %v5779_v53  ;;  %v6607_v57 = vld [vmem:[#allocation28 + $0xb0] sm:$0xff] }
 0xbc1   :  { %9895 = vmatprep.subr.bf16.mxu1 %v9894_v7  ;;  %v5980_v7 = vld [vmem:[#allocation23 + $0x1460] sm:$0xff] }
 0xbc3   :  { %6071 = vmatmul.mubr.f32.gmra.mrb[36].mxu1 %v11424_v47 }
 0xbc4   :  { %9897 = vmatpush1.bf16.msra.mxu1 %v9896_v11  ;;  %7797 = vmatprep.mubr.msk.f32.mxu1 %vm4512_vm6, %v11437_v44  ;;  %v9928_v11 = vpack.c.bf16 %v5980_v7, %v5976_v6  ;;  %v11556_v6 = vld [vmem:[#allocation25 + $0x18] sm:$0xf]  ;;  %v5778_v7 = vld [vmem:[#allocation23 + $0xe10] sm:$0xff] }
 0xbc5   :  { %9899 = vmatprep.subr.bf16.mxu1 %v9898_v12 }
 0xbc8   :  { %9901 = vmatpush1.bf16.msra.mxu1 %v9900_v25  ;;  %v5993_v25 = vld [vmem:[#allocation23 + $0x14c8] sm:$0xff] }
 0xbc9   :  { %9903 = vmatprep.subr.bf16.mxu1 %v9902_v28  ;;  %v5997_v28 = vld [vmem:[#allocation23 + $0x14e8] sm:$0xff] }
 0xbca   :  { %v9934_v18 = vpack.c.bf16 %v5997_v28, %v5993_v25  ;;  %v5794_v28 = vld [vmem:[#allocation23 + $0xe90] sm:$0xff] }
 0xbcc   :  { %9905 = vmatpush1.bf16.msra.mxu1 %v9904_v20 }
 0xbcd   :  { %9907 = vmatprep.subr.bf16.mxu1 %v9906_v21 }
 0xbd0   :  { %9909 = vmatpush1.bf16.msra.mxu1 %v9908_v59 }
 0xbd1   :  { %9911 = vmatprep.subr.bf16.mxu1 %v9910_v38 }
 0xbd4   :  { %9913 = vmatpush1.bf16.msra.mxu1 %v9912_v32 }
 0xbd5   :  { %9915 = vmatprep.subr.bf16.mxu1 %v9914_v42 }
 0xbd8   :  { %9917 = vmatpush1.bf16.msra.mxu1 %v9916_v27 }
 0xbd9   :  { %9919 = vmatprep.subr.bf16.mxu1 %v9918_v2 }
 0xbdc   :  { %9921 = vmatpush1.bf16.msra.mxu1 %v9920_v51  ;;  %v5367_v51 = vld [vmem:[#allocation25 + $0x30] sm:$0xff] }
 0xbdd   :  { %9923 = vmatprep.subr.bf16.mxu1 %v9922_v52  ;;  %v5368_v52 = vld [vmem:[#allocation25 + $0x38] sm:$0xf] }
 0xbe0   :  { %9925 = vmatpush1.bf16.msra.mxu1 %v9924_v54  ;;  %v11494_v13 = vpop.f32.mrb[24].mxu0  ;;  %v11496_v10 = vpop.f32.mrb[26].mxu1  ;;  %v4828_v54 = vld [vmem:[#allocation25 + $0x8] sm:$0xff] }
 0xbe1   :  { %v4664_v12 = vpop.f32.mrb[25].mxu0  ;;  %v11498_v14 = vpop.f32.mrb[27].mxu1  ;;  %9927 = vmatprep.subr.bf16.mxu1 %v9926_v60  ;;  %v4829_v60 = vld [vmem:[#allocation25 + $0x10] sm:$0xff] }
 0xbe4   :  { %9929 = vmatpush1.bf16.msra.mxu1 %v9928_v11  ;;  %v4668_v63 = vpop.f32.mrb[26].mxu0  ;;  %v11500_v29 = vpop.f32.mrb[28].mxu1 }
 0xbe5   :  { %v9817_v31 = vpack.c.bf16 %v4668_v63, %v11494_v13  ;;  %v9823_v20 = vpack.c.bf16 %v11500_v29, %v11496_v10  ;;  %v4670_v21 = vpop.f32.mrb[27].mxu0  ;;  %v4824_v33 = vpop.f32.mrb[29].mxu1  ;;  %9931 = vmatprep.subr.bf16.mxu1 %v9930_v16  ;;  %v5791_v13 = vld [vmem:[#allocation23 + $0xe78] sm:$0xff]  ;;  %v9940_v10 = vpack.c.bf16 %v5782_v8, %v5778_v7  ;;  %v5798_v63 = vld [vmem:[#allocation23 + $0xeb0] sm:$0xff] }
 0xbe6   :  { %v9814_v59 = vpack.c.bf16 %v4670_v21, %v4664_v12  ;;  %v9820_v38 = vpack.c.bf16 %v4824_v33, %v11498_v14  ;;  %v9942_v11 = vpack.c.bf16 %v5791_v13, %v5787_v9  ;;  %v5786_v12 = vld [vmem:[#allocation23 + $0xe50] sm:$0xff]  ;;  %v5795_v16 = vld [vmem:[#allocation23 + $0xe98] sm:$0xff]  ;;  %v6601_v21 = vld [vmem:[#allocation28 + $0x80] sm:$0xff]  ;;  %v9948_v35 = vpack.c.bf16 %v5798_v63, %v5794_v28 }
 0xbe7   :  { %v5790_v14 = vld [vmem:[#allocation23 + $0xe70] sm:$0xff]  ;;  %v9946_v25 = vpack.c.bf16 %v5799_v19, %v5795_v16  ;;  %v5803_v29 = vld [vmem:[#allocation23 + $0xed8] sm:$0xff] }
 0xbe8   :  { %9933 = vmatpush1.bf16.msra.mxu1 %v9932_v30  ;;  %v9944_v24 = vpack.c.bf16 %v5790_v14, %v5786_v12  ;;  %v5807_v30 = vld [vmem:[#allocation23 + $0xef8] sm:$0xff]  ;;  %v6602_v33 = vld [vmem:[#allocation28 + $0x88] sm:$0xff]  ;;  %v6609_v14 = vld [vmem:[#allocation28 + $0xc0] sm:$0xff] }
 0xbe9   :  { %9935 = vmatprep.subr.bf16.mxu1 %v9934_v18  ;;  %v6585_v18 = vld [vmem:[#allocation28] sm:$0xff]  ;;  %v10062_v36 = vpack.c.bf16 %v6602_v33, %v6601_v21  ;;  %v5818_v8 = vld [vmem:[#allocation23 + $0xf50] sm:$0xff]  ;;  %v5827_v19 = vld [vmem:[#allocation23 + $0xf98] sm:$0xff] }
 0xbea   :  { %v6591_v13 = vld [vmem:[#allocation28 + $0x30] sm:$0xff]  ;;  %v6610_v16 = vld [vmem:[#allocation28 + $0xc8] sm:$0xff] }
 0xbeb   :  { %v5822_v12 = vld [vmem:[#allocation23 + $0xf70] sm:$0xff]  ;;  %v10078_v28 = vpack.c.bf16 %v6610_v16, %v6609_v14 }
 0xbec   :  { %9937 = vmatpush1.bf16.msra.mxu1 %v9936_v39  ;;  %v6604_v39 = vld [vmem:[#allocation28 + $0x98] sm:$0xff]  ;;  %v5826_v63 = vld [vmem:[#allocation23 + $0xf90] sm:$0xff] }
 0xbed   :  { %10063 = vmatprep.subr.bf16.mxu1 %v10062_v36  ;;  %v5834_v33 = vld [vmem:[#allocation23 + $0xfd0] sm:$0xff]  ;;  %v5847_v36 = vld [vmem:[#allocation23 + $0x1038] sm:$0xff] }
 0xbee   :  { %v5882_v14 = vld [vmem:[#allocation23 + $0x1150] sm:$0xff] }
 0xbef   :  { %6142 = vmatmul.mubr.f32.vlgmr.msra.gmra.mrb[34].mxu1 %v11452_v37  ;;  %v5886_v16 = vld [vmem:[#allocation23 + $0x1170] sm:$0xff] }
 0xbf0   :  { %7798 = vmatprep.mubr.msk.f32.mxu1 %vm4512_vm6, %v11455_v22 }
 0xbf3   :  { %6148 = vmatmul.mubr.f32.gmra.mrb[36].mxu1 %v11463_v46 }
 0xc51   :  { %v5199_v40 = vpop.f32.mrb[28].mxu0 }
 0xc52   :  { %v5353_v41 = vpop.f32.mrb[30].mxu1  ;;  %v5201_v55 = vpop.f32.mrb[29].mxu0 }
 0xc53   :  { %v5355_v32 = vpop.f32.mrb[31].mxu1 }
 0xc55   :  { %v5205_v42 = vpop.f32.mrb[30].mxu0 }
 0xc56   :  { %v9805_v23 = vpack.c.bf16 %v5205_v42, %v5199_v40  ;;  %v5359_v45 = vpop.f32.mrb[32].mxu1  ;;  %v5207_v4 = vpop.f32.mrb[31].mxu0  ;;  %v9950_v40 = vpack.c.bf16 %v5807_v30, %v5803_v29  ;;  %v6587_v42 = vld [vmem:[#allocation28 + $0x10] sm:$0xff] }
 0xc57   :  { %v9811_v27 = vpack.c.bf16 %v5359_v45, %v5353_v41  ;;  %v9802_v2 = vpack.c.bf16 %v5207_v4, %v5201_v55  ;;  %v5361_v48 = vpop.f32.mrb[33].mxu1  ;;  %v5811_v41 = vld [vmem:[#allocation23 + $0xf18] sm:$0xff]  ;;  %v6605_v4 = vld [vmem:[#allocation28 + $0xa0] sm:$0xff]  ;;  %v5830_v29 = vld [vmem:[#allocation23 + $0xfb0] sm:$0xff] }
 0xc58   :  { %v9808_v49 = vpack.c.bf16 %v5361_v48, %v5355_v32  ;;  %v5815_v45 = vld [vmem:[#allocation23 + $0xf38] sm:$0xff] }
 0xc59   :  { %9804 = vmatprep.subr.msk.bf16.mxu0 %vm11511_vm9, %v9802_v2  ;;  %v5835_v30 = vld [vmem:[#allocation23 + $0xfd8] sm:$0xff] }
 0xc5a   :  { %9807 = vmatpush1.bf16.msk.msra.mxu0 %vm11511_vm9, %v9805_v23  ;;  %v6588_v23 = vld [vmem:[#allocation28 + $0x18] sm:$0xff] }
 0xc5b   :  { %9810 = vmatprep.subr.msk.bf16.mxu0 %vm11511_vm9, %v9808_v49  ;;  %v10068_v2 = vpack.c.bf16 %v6588_v23, %v6587_v42  ;;  %v5810_v49 = vld [vmem:[#allocation23 + $0xf10] sm:$0xff] }
 0xc5c   :  { %v5850_v23 = vld [vmem:[#allocation23 + $0x1050] sm:$0xff] }
 0xc5d   :  { %7775 = vmatmul.mubr.msk.f32.vlgmr.msra.gmra.mrb[32].mxu0 %vm5369_vm10, %v5365_v50 }
 0xc5e   :  { %9813 = vmatpush1.bf16.msk.msra.mxu0 %vm11511_vm9, %v9811_v27  ;;  %5465 = vmatprep.mubr.f32.mxu0 %v10882_v1  ;;  %v6606_v27 = vld [vmem:[#allocation28 + $0xa8] sm:$0xff] }
 0xc5f   :  { %9816 = vmatprep.subr.msk.bf16.mxu0 %vm11511_vm9, %v9814_v59  ;;  %v6586_v59 = vld [vmem:[#allocation28 + $0x8] sm:$0xff]  ;;  %v10070_v53 = vpack.c.bf16 %v6606_v27, %v6605_v4  ;;  %v5859_v4 = vld [vmem:[#allocation23 + $0x1098] sm:$0xff] }
 0xc60   :  { %v10064_v55 = vpack.c.bf16 %v6586_v59, %v6585_v18  ;;  %v5838_v18 = vld [vmem:[#allocation23 + $0xff0] sm:$0xff]  ;;  %v5863_v27 = vld [vmem:[#allocation23 + $0x10b8] sm:$0xff] }
 0xc61   :  { %7776 = vmatmul.mubr.msk.f32.gmra.mrb[34].mxu0 %vm5369_vm10, %v5366_v5  ;;  %v9968_v59 = vpack.c.bf16 %v5838_v18, %v5834_v33  ;;  %v5898_v33 = vld [vmem:[#allocation23 + $0x11d0] sm:$0xff] }
 0xc62   :  { %5471 = vmatprep.mubr.f32.mxu0 %v10882_v1  ;;  %10065 = vmatpush3.bf16.msra.mxu1 %v10064_v55  ;;  %v5855_v55 = vld [vmem:[#allocation23 + $0x1078] sm:$0xff]  ;;  %v5902_v18 = vld [vmem:[#allocation23 + $0x11f0] sm:$0xff] }
 0xc65   :  { %7777 = vmatmul.mubr.msk.f32.gmra.mrb[36].mxu0 %vm5369_vm10, %v5367_v51 }
 0xc66   :  { %5477 = vmatprep.mubr.f32.mxu0 %v10882_v1 }
 0xc69   :  { %7778 = vmatmul.mubr.msk.f32.gmra.mrb[38].mxu0 %vm5369_vm10, %v5368_v52 }
 0xc6a   :  { %5548 = vmatprep.mubr.f32.mxu0 %v10882_v1 }
 0xc6d   :  { %7781 = vmatmul.mubr.msk.f32.vlgmr.msra.gmra.mrb[40].mxu0 %vm5369_vm10, %v5365_v50  ;;  %v6589_v50 = vld [vmem:[#allocation28 + $0x20] sm:$0xff] }
 0xc6e   :  { %9819 = vmatpush1.bf16.msk.msra.mxu0 %vm11511_vm9, %v9817_v31  ;;  %5554 = vmatprep.mubr.f32.mxu0 %v10882_v1  ;;  %v5802_v31 = vld [vmem:[#allocation23 + $0xed0] sm:$0xff] }
 0xc6f   :  { %9822 = vmatprep.subr.msk.bf16.mxu0 %vm11511_vm9, %v9820_v38  ;;  %v6603_v38 = vld [vmem:[#allocation28 + $0x90] sm:$0xff] }
 0xc70   :  { %v10066_v32 = vpack.c.bf16 %v6604_v39, %v6603_v38  ;;  %v5842_v39 = vld [vmem:[#allocation23 + $0x1010] sm:$0xff] }
 0xc71   :  { %7782 = vmatmul.mubr.msk.f32.gmra.mrb[42].mxu0 %vm5369_vm10, %v5366_v5  ;;  %v6590_v5 = vld [vmem:[#allocation28 + $0x28] sm:$0xff] }
 0xc72   :  { %5560 = vmatprep.mubr.f32.mxu0 %v10882_v1  ;;  %10067 = vmatprep.subr.bf16.mxu1 %v10066_v32 }
 0xc73   :  { %10069 = vmatpush3.bf16.msra.mxu1 %v10068_v2 }
 0xc74   :  { %10071 = vmatprep.subr.bf16.mxu1 %v10070_v53 }
 0xc75   :  { %7783 = vmatmul.mubr.msk.f32.gmra.mrb[44].mxu0 %vm5369_vm10, %v5367_v51  ;;  %v9954_v51 = vpack.c.bf16 %v5815_v45, %v5811_v41  ;;  %v5851_v41 = vld [vmem:[#allocation23 + $0x1058] sm:$0xff]  ;;  %v5854_v45 = vld [vmem:[#allocation23 + $0x1070] sm:$0xff] }
 0xc76   :  { %5566 = vmatprep.mubr.f32.mxu0 %v10882_v1  ;;  %v9974_v42 = vpack.c.bf16 %v5855_v55, %v5851_v41  ;;  %v9976_v2 = vpack.c.bf16 %v5854_v45, %v5850_v23  ;;  %v5906_v55 = vld [vmem:[#allocation23 + $0x1210] sm:$0xff]  ;;  %v5915_v23 = vld [vmem:[#allocation23 + $0x1258] sm:$0xff] }
 0xc77   :  { %v5919_v45 = vld [vmem:[#allocation23 + $0x1278] sm:$0xff] }
 0xc79   :  { %7784 = vmatmul.mubr.msk.f32.gmra.mrb[46].mxu0 %vm5369_vm10, %v5368_v52  ;;  %v5814_v52 = vld [vmem:[#allocation23 + $0xf30] sm:$0xff] }
 0xc7a   :  { %5661 = vmatprep.mubr.f32.mxu0 %v10882_v1  ;;  %v9956_v7 = vpack.c.bf16 %v5814_v52, %v5810_v49  ;;  %v5858_v49 = vld [vmem:[#allocation23 + $0x1090] sm:$0xff] }
 0xc7d   :  { %7787 = vmatmul.mubr.msk.f32.vlgmr.msra.gmra.mrb[32].mxu0 %vm5369_vm10, %v4827_v17 }
 0xc7e   :  { %9825 = vmatpush1.bf16.msk.msra.mxu0 %vm11511_vm9, %v9823_v20  ;;  %5667 = vmatprep.mubr.f32.mxu0 %v10882_v1  ;;  %v5806_v20 = vld [vmem:[#allocation23 + $0xef0] sm:$0xff] }
 0xc7f   :  { %9939 = vmatprep.subr.bf16.mxu0 %v9938_v3  ;;  %v9952_v48 = vpack.c.bf16 %v5806_v20, %v5802_v31  ;;  %v5819_v3 = vld [vmem:[#allocation23 + $0xf58] sm:$0xff]  ;;  %v9964_v20 = vpack.c.bf16 %v5830_v29, %v5826_v63 }
 0xc80   :  { %v5839_v31 = vld [vmem:[#allocation23 + $0xff8] sm:$0xff] }
 0xc81   :  { %7788 = vmatmul.mubr.msk.f32.gmra.mrb[34].mxu0 %vm5369_vm10, %v4828_v54  ;;  %v9966_v21 = vpack.c.bf16 %v5839_v31, %v5835_v30  ;;  %v5899_v63 = vld [vmem:[#allocation23 + $0x11d8] sm:$0xff] }
 0xc82   :  { %5673 = vmatprep.mubr.f32.mxu0 %v10882_v1  ;;  %v5903_v29 = vld [vmem:[#allocation23 + $0x11f8] sm:$0xff] }
 0xc85   :  { %7789 = vmatmul.mubr.msk.f32.gmra.mrb[36].mxu0 %vm5369_vm10, %v4829_v60 }
 0xc86   :  { %5679 = vmatprep.mubr.f32.mxu0 %v10882_v1 }
 0xc89   :  { %7790 = vmatmul.mubr.msk.f32.gmra.mrb[38].mxu0 %vm5369_vm10, %v11556_v6 }
 0xc8a   :  { %5750 = vmatprep.mubr.f32.mxu0 %v10882_v1 }
 0xc8d   :  { %7793 = vmatmul.mubr.msk.f32.vlgmr.msra.gmra.mrb[40].mxu0 %vm5369_vm10, %v4827_v17  ;;  %v6608_v17 = vld [vmem:[#allocation28 + $0xb8] sm:$0xff] }
 0xc8e   :  { %9941 = vmatpush1.bf16.msra.mxu0 %v9940_v10  ;;  %5756 = vmatprep.mubr.f32.mxu0 %v10882_v1  ;;  %v10074_v9 = vpack.c.bf16 %v6608_v17, %v6607_v57  ;;  %v6592_v10 = vld [vmem:[#allocation28 + $0x38] sm:$0xff]  ;;  %v5866_v57 = vld [vmem:[#allocation23 + $0x10d0] sm:$0xff] }
 0xc8f   :  { %9943 = vmatprep.subr.bf16.mxu0 %v9942_v11  ;;  %v5870_v17 = vld [vmem:[#allocation23 + $0x10f0] sm:$0xff] }
 0xc91   :  { %7794 = vmatmul.mubr.msk.f32.gmra.mrb[42].mxu0 %vm5369_vm10, %v4828_v54  ;;  %v5823_v54 = vld [vmem:[#allocation23 + $0xf78] sm:$0xff] }
 0xc92   :  { %9945 = vmatpush1.bf16.msra.mxu0 %v9944_v24  ;;  %5762 = vmatprep.mubr.f32.mxu0 %v10882_v1  ;;  %v9958_v11 = vpack.c.bf16 %v5823_v54, %v5819_v3  ;;  %v5831_v24 = vld [vmem:[#allocation23 + $0xfb8] sm:$0xff] }
 0xc93   :  { %9947 = vmatprep.subr.bf16.mxu0 %v9946_v25  ;;  %v9960_v25 = vpack.c.bf16 %v5822_v12, %v5818_v8  ;;  %v5875_v3 = vld [vmem:[#allocation23 + $0x1118] sm:$0xff]  ;;  %v5874_v8 = vld [vmem:[#allocation23 + $0x1110] sm:$0xff] }
 0xc94   :  { %v5879_v54 = vld [vmem:[#allocation23 + $0x1138] sm:$0xff] }
 0xc95   :  { %7795 = vmatmul.mubr.msk.f32.gmra.mrb[44].mxu0 %vm5369_vm10, %v4829_v60  ;;  %v10072_v60 = vpack.c.bf16 %v6590_v5, %v6589_v50  ;;  %v5862_v50 = vld [vmem:[#allocation23 + $0x10b0] sm:$0xff]  ;;  %v5867_v5 = vld [vmem:[#allocation23 + $0x10d8] sm:$0xff] }
 0xc96   :  { %9949 = vmatpush1.bf16.msra.mxu0 %v9948_v35  ;;  %5768 = vmatprep.mubr.f32.mxu0 %v10882_v1  ;;  %v5843_v35 = vld [vmem:[#allocation23 + $0x1018] sm:$0xff]  ;;  %v9980_v52 = vpack.c.bf16 %v5862_v50, %v5858_v49 }
 0xc97   :  { %9951 = vmatprep.subr.bf16.mxu0 %v9950_v40  ;;  %10073 = vmatpush3.bf16.msra.mxu1 %v10072_v60  ;;  %v9970_v38 = vpack.c.bf16 %v5847_v36, %v5843_v35  ;;  %v5846_v40 = vld [vmem:[#allocation23 + $0x1030] sm:$0xff]  ;;  %v9984_v60 = vpack.c.bf16 %v5870_v17, %v5866_v57  ;;  %v5907_v35 = vld [vmem:[#allocation23 + $0x1218] sm:$0xff] }
 0xc98   :  { %10075 = vmatprep.subr.bf16.mxu1 %v10074_v9  ;;  %v9972_v32 = vpack.c.bf16 %v5846_v40, %v5842_v39  ;;  %v5878_v9 = vld [vmem:[#allocation23 + $0x1130] sm:$0xff]  ;;  %v5911_v36 = vld [vmem:[#allocation23 + $0x1238] sm:$0xff] }
 0xc99   :  { %7796 = vmatmul.mubr.msk.f32.gmra.mrb[46].mxu0 %vm5369_vm10, %v11556_v6  ;;  %v10076_v6 = vpack.c.bf16 %v6592_v10, %v6591_v13  ;;  %v5883_v13 = vld [vmem:[#allocation23 + $0x1158] sm:$0xff]  ;;  %v10002_v41 = vpack.c.bf16 %v5911_v36, %v5907_v35 }
 0xc9a   :  { %9953 = vmatpush1.bf16.msra.mxu0 %v9952_v48  ;;  %6218 = vmatprep.mubr.f32.mxu0 %v11413_v26  ;;  %v9962_v26 = vpack.c.bf16 %v5831_v24, %v5827_v19  ;;  %v9978_v48 = vpack.c.bf16 %v5863_v27, %v5859_v4  ;;  %v5887_v10 = vld [vmem:[#allocation23 + $0x1178] sm:$0xff]  ;;  %v10006_v27 = vpack.c.bf16 %v5919_v45, %v5915_v23 }
 0xc9b   :  { %9955 = vmatprep.subr.bf16.mxu0 %v9954_v51  ;;  %10077 = vmatpush3.bf16.msra.mxu1 %v10076_v6  ;;  %v5871_v51 = vld [vmem:[#allocation23 + $0x10f8] sm:$0xff]  ;;  %v9990_v12 = vpack.c.bf16 %v5887_v10, %v5883_v13  ;;  %v9992_v6 = vpack.c.bf16 %v5886_v16, %v5882_v14  ;;  %v5938_v13 = vld [vmem:[#allocation23 + $0x1310] sm:$0xff] }
 0xc9c   :  { %10079 = vmatprep.subr.bf16.mxu1 %v10078_v28  ;;  %v9982_v53 = vpack.c.bf16 %v5871_v51, %v5867_v5  ;;  %v5891_v19 = vld [vmem:[#allocation23 + $0x1198] sm:$0xff]  ;;  %v5890_v28 = vld [vmem:[#allocation23 + $0x1190] sm:$0xff] }
 0xc9d   :  { %v5895_v24 = vld [vmem:[#allocation23 + $0x11b8] sm:$0xff]  ;;  %v5942_v10 = vld [vmem:[#allocation23 + $0x1330] sm:$0xff] }
 0xc9e   :  { %9957 = vmatpush1.bf16.msra.mxu0 %v9956_v7  ;;  %v9986_v7 = vpack.c.bf16 %v5879_v54, %v5875_v3  ;;  %v5923_v49 = vld [vmem:[#allocation23 + $0x1298] sm:$0xff]  ;;  %v5950_v16 = vld [vmem:[#allocation23 + $0x1370] sm:$0xff] }
 0xc9f   :  { %9959 = vmatprep.subr.bf16.mxu0 %v9958_v11  ;;  %v9988_v11 = vpack.c.bf16 %v5878_v9, %v5874_v8  ;;  %v5927_v50 = vld [vmem:[#allocation23 + $0x12b8] sm:$0xff] }
 0xca0   :  { %v10010_v51 = vpack.c.bf16 %v5927_v50, %v5923_v49  ;;  %v5931_v57 = vld [vmem:[#allocation23 + $0x12d8] sm:$0xff] }
 0xca1   :  { %v5935_v17 = vld [vmem:[#allocation23 + $0x12f8] sm:$0xff] }
 0xca2   :  { %9961 = vmatpush1.bf16.msra.mxu0 %v9960_v25  ;;  %v9994_v25 = vpack.c.bf16 %v5895_v24, %v5891_v19  ;;  %v10014_v54 = vpack.c.bf16 %v5935_v17, %v5931_v57  ;;  %v5955_v19 = vld [vmem:[#allocation23 + $0x1398] sm:$0xff] }
 0xca3   :  { %9963 = vmatprep.subr.bf16.mxu0 %v9962_v26  ;;  %v5894_v26 = vld [vmem:[#allocation23 + $0x11b0] sm:$0xff]  ;;  %v5959_v24 = vld [vmem:[#allocation23 + $0x13b8] sm:$0xff] }
 0xca4   :  { %v9996_v31 = vpack.c.bf16 %v5894_v26, %v5890_v28  ;;  %v5954_v28 = vld [vmem:[#allocation23 + $0x1390] sm:$0xff]  ;;  %v5971_v35 = vld [vmem:[#allocation23 + $0x1418] sm:$0xff] }
 0xca5   :  { %v5958_v26 = vld [vmem:[#allocation23 + $0x13b0] sm:$0xff]  ;;  %v5975_v36 = vld [vmem:[#allocation23 + $0x1438] sm:$0xff] }
 0xca6   :  { %9965 = vmatpush1.bf16.msra.mxu0 %v9964_v20  ;;  %v5979_v23 = vld [vmem:[#allocation23 + $0x1458] sm:$0xff] }
 0xca7   :  { %9967 = vmatprep.subr.bf16.mxu0 %v9966_v21  ;;  %v9998_v21 = vpack.c.bf16 %v5903_v29, %v5899_v63  ;;  %v5963_v63 = vld [vmem:[#allocation23 + $0x13d8] sm:$0xff] }
 0xca8   :  { %v5967_v29 = vld [vmem:[#allocation23 + $0x13f8] sm:$0xff] }
 0xca9   :  { %v5983_v45 = vld [vmem:[#allocation23 + $0x1478] sm:$0xff] }
 0xcaa   :  { %9969 = vmatpush1.bf16.msra.mxu0 %v9968_v59  ;;  %v5987_v49 = vld [vmem:[#allocation23 + $0x1498] sm:$0xff] }
 0xcab   :  { %9971 = vmatprep.subr.bf16.mxu0 %v9970_v38  ;;  %v10000_v38 = vpack.c.bf16 %v5902_v18, %v5898_v33  ;;  %v5962_v33 = vld [vmem:[#allocation23 + $0x13d0] sm:$0xff]  ;;  %v5991_v50 = vld [vmem:[#allocation23 + $0x14b8] sm:$0xff] }
 0xcac   :  { %v5966_v18 = vld [vmem:[#allocation23 + $0x13f0] sm:$0xff]  ;;  %v5995_v57 = vld [vmem:[#allocation23 + $0x14d8] sm:$0xff] }
 0xcad   :  { %v5999_v17 = vld [vmem:[#allocation23 + $0x14f8] sm:$0xff] }
 0xcae   :  { %9973 = vmatpush1.bf16.msra.mxu0 %v9972_v32  ;;  %v5910_v32 = vld [vmem:[#allocation23 + $0x1230] sm:$0xff] }
 0xcaf   :  { %9975 = vmatprep.subr.bf16.mxu0 %v9974_v42  ;;  %v10004_v4 = vpack.c.bf16 %v5910_v32, %v5906_v55  ;;  %v5970_v55 = vld [vmem:[#allocation23 + $0x1410] sm:$0xff] }
 0xcb0   :  { %v5974_v32 = vld [vmem:[#allocation23 + $0x1430] sm:$0xff] }
 0xcb2   :  { %9977 = vmatpush1.bf16.msra.mxu0 %v9976_v2  ;;  %v5914_v2 = vld [vmem:[#allocation23 + $0x1250] sm:$0xff] }
 0xcb3   :  { %9979 = vmatprep.subr.bf16.mxu0 %v9978_v48  ;;  %v5918_v48 = vld [vmem:[#allocation23 + $0x1270] sm:$0xff] }
 0xcb4   :  { %v10008_v5 = vpack.c.bf16 %v5918_v48, %v5914_v2  ;;  %v5978_v2 = vld [vmem:[#allocation23 + $0x1450] sm:$0xff] }
 0xcb5   :  { %v5982_v48 = vld [vmem:[#allocation23 + $0x1470] sm:$0xff] }
 0xcb6   :  { %9981 = vmatpush1.bf16.msra.mxu0 %v9980_v52  ;;  %v5922_v52 = vld [vmem:[#allocation23 + $0x1290] sm:$0xff] }
 0xcb7   :  { %9983 = vmatprep.subr.bf16.mxu0 %v9982_v53  ;;  %v5926_v53 = vld [vmem:[#allocation23 + $0x12b0] sm:$0xff] }
 0xcb8   :  { %v10012_v3 = vpack.c.bf16 %v5926_v53, %v5922_v52  ;;  %v5986_v52 = vld [vmem:[#allocation23 + $0x1490] sm:$0xff] }
 0xcb9   :  { %v5990_v53 = vld [vmem:[#allocation23 + $0x14b0] sm:$0xff] }
 0xcba   :  { %9985 = vmatpush1.bf16.msra.mxu0 %v9984_v60  ;;  %v5934_v60 = vld [vmem:[#allocation23 + $0x12f0] sm:$0xff] }
 0xcbb   :  { %9987 = vmatprep.subr.bf16.mxu0 %v9986_v7  ;;  %v5943_v7 = vld [vmem:[#allocation23 + $0x1338] sm:$0xff] }
 0xcbe   :  { %9989 = vmatpush1.bf16.msra.mxu0 %v9988_v11  ;;  %v5947_v11 = vld [vmem:[#allocation23 + $0x1358] sm:$0xff] }
 0xcbf   :  { %9991 = vmatprep.subr.bf16.mxu0 %v9990_v12  ;;  %v5951_v12 = vld [vmem:[#allocation23 + $0x1378] sm:$0xff] }
 0xcc0   :  { %v10022_v14 = vpack.c.bf16 %v5951_v12, %v5947_v11  ;;  %v6614_v11 = vld [vmem:[#allocation28 + $0xe8] sm:$0xff] }
 0xcc2   :  { %v11570_v30 = vpop.f32.mrb[34].mxu1  ;;  %9993 = vmatpush1.bf16.msra.mxu0 %v9992_v6 }
 0xcc3   :  { %v11572_v20 = vpop.f32.mrb[35].mxu1  ;;  %9995 = vmatprep.subr.bf16.mxu0 %v9994_v25  ;;  %v10026_v25 = vpack.c.bf16 %v5959_v24, %v5955_v19  ;;  %v6616_v19 = vld [vmem:[#allocation28 + $0xf8] sm:$0xff] }
 0xcc6   :  { %v11574_v59 = vpop.f32.mrb[36].mxu1  ;;  %9997 = vmatpush1.bf16.msra.mxu0 %v9996_v31  ;;  %v10028_v31 = vpack.c.bf16 %v5958_v26, %v5954_v28 }
 0xcc7   :  { %v10053_v39 = vpack.c.bf16 %v11574_v59, %v11570_v30  ;;  %v11578_v40 = vpop.f32.mrb[37].mxu1  ;;  %9999 = vmatprep.subr.bf16.mxu0 %v9998_v21  ;;  %v10030_v21 = vpack.c.bf16 %v5967_v29, %v5963_v63  ;;  %v6593_v30 = vld [vmem:[#allocation28 + $0x40] sm:$0xff]  ;;  %v11623_v29 = vld [vmem:[#allocation26] sm:$0xf] }
 0xcc8   :  { %v10050_v42 = vpack.c.bf16 %v11578_v40, %v11572_v20  ;;  %v6594_v20 = vld [vmem:[#allocation28 + $0x48] sm:$0xff]  ;;  %v6612_v40 = vld [vmem:[#allocation28 + $0xd8] sm:$0xff] }
 0xcc9   :  { %v10080_v59 = vpack.c.bf16 %v6594_v20, %v6593_v30  ;;  %v6619_v30 = vld [vmem:[#allocation28 + $0x110] sm:$0xff]  ;;  %v6620_v20 = vld [vmem:[#allocation28 + $0x118] sm:$0xff] }
 0xcca   :  { %10001 = vmatpush1.bf16.msra.mxu0 %v10000_v38  ;;  %v10032_v38 = vpack.c.bf16 %v5966_v18, %v5962_v33 }
 0xccb   :  { %10003 = vmatprep.subr.bf16.mxu0 %v10002_v41  ;;  %v10034_v41 = vpack.c.bf16 %v5975_v36, %v5971_v35  ;;  %10081 = vmatpush3.bf16.msra.mxu1 %v10080_v59  ;;  %v11627_v36 = vrot.slane %v11623_v29, %v11265_v56 }
 0xccd   :  { %6219 = vmatmul.mubr.f32.vlgmr.msra.gmra.mrb[48].mxu0 %v11416_v34  ;;  %v5930_v34 = vld [vmem:[#allocation23 + $0x12d0] sm:$0xff] }
 0xcce   :  { %6224 = vmatprep.mubr.f32.mxu0 %v11422_v43  ;;  %10005 = vmatpush1.bf16.msra.mxu0 %v10004_v4  ;;  %v5939_v43 = vld [vmem:[#allocation23 + $0x1318] sm:$0xff]  ;;  %v10016_v8 = vpack.c.bf16 %v5934_v60, %v5930_v34  ;;  %v10036_v4 = vpack.c.bf16 %v5974_v32, %v5970_v55  ;;  %v5994_v34 = vld [vmem:[#allocation23 + $0x14d0] sm:$0xff]  ;;  %v6831_v32 = vld [vmem:[#allocation28 + $0x1c0] sm:$0xff] }
 0xccf   :  { %10007 = vmatprep.subr.bf16.mxu0 %v10006_v27  ;;  %v10018_v9 = vpack.c.bf16 %v5943_v7, %v5939_v43  ;;  %v10038_v27 = vpack.c.bf16 %v5983_v45, %v5979_v23  ;;  %v5998_v60 = vld [vmem:[#allocation23 + $0x14f0] sm:$0xff]  ;;  %v11602_v7 = vld [vmem:[#allocation25 + $0x40] sm:$0xff] }
 0xcd0   :  { %v10048_v43 = vpack.c.bf16 %v5998_v60, %v5994_v34  ;;  %v6832_v23 = vld [vmem:[#allocation28 + $0x1c8] sm:$0xff]  ;;  %v6849_v45 = vld [vmem:[#allocation28 + $0x250] sm:$0xff] }
 0xcd1   :  { %6225 = vmatmul.mubr.f32.gmra.mrb[50].mxu0 %v11424_v47  ;;  %v10020_v47 = vpack.c.bf16 %v5942_v10, %v5938_v13  ;;  %v6613_v10 = vld [vmem:[#allocation28 + $0xe0] sm:$0xff]  ;;  %v10132_v56 = vpack.c.bf16 %v6832_v23, %v6831_v32 }
 0xcd2   :  { %10009 = vmatpush1.bf16.msra.mxu0 %v10008_v5  ;;  %7799 = vmatprep.mubr.msk.f32.mxu0 %vm4512_vm6, %v11437_v44  ;;  %v5946_v44 = vld [vmem:[#allocation23 + $0x1350] sm:$0xff]  ;;  %v10040_v5 = vpack.c.bf16 %v5982_v48, %v5978_v2  ;;  %v10086_v12 = vpack.c.bf16 %v6614_v11, %v6613_v10  ;;  %v10098_v10 = vpack.c.bf16 %v6620_v20, %v6619_v30  ;;  %v6862_v30 = vld [vmem:[#allocation28 + $0x2b8] sm:$0xff] }
 0xcd3   :  { %10011 = vmatprep.subr.bf16.mxu0 %v10010_v51  ;;  %v10024_v6 = vpack.c.bf16 %v5950_v16, %v5946_v44  ;;  %v10042_v51 = vpack.c.bf16 %v5991_v50, %v5987_v49  ;;  %v6615_v16 = vld [vmem:[#allocation28 + $0xf0] sm:$0xff]  ;;  %v6617_v49 = vld [vmem:[#allocation28 + $0x100] sm:$0xff]  ;;  %v6618_v50 = vld [vmem:[#allocation28 + $0x108] sm:$0xff] }
 0xcd4   :  { %v10090_v24 = vpack.c.bf16 %v6616_v19, %v6615_v16  ;;  %v6622_v16 = vld [vmem:[#allocation28 + $0x128] sm:$0xff] }
 0xcd6   :  { %10013 = vmatpush1.bf16.msra.mxu0 %v10012_v3  ;;  %v10044_v3 = vpack.c.bf16 %v5990_v53, %v5986_v52  ;;  %v6834_v52 = vld [vmem:[#allocation28 + $0x1d8] sm:$0xff]  ;;  %v6851_v53 = vld [vmem:[#allocation28 + $0x260] sm:$0xff] }
 0xcd7   :  { %10015 = vmatprep.subr.bf16.mxu0 %v10014_v54  ;;  %v10046_v54 = vpack.c.bf16 %v5999_v17, %v5995_v57  ;;  %v6852_v57 = vld [vmem:[#allocation28 + $0x268] sm:$0xff] }
 0xcda   :  { %10017 = vmatpush1.bf16.msra.mxu0 %v10016_v8  ;;  %v6595_v8 = vld [vmem:[#allocation28 + $0x50] sm:$0xff] }
 0xcdb   :  { %10019 = vmatprep.subr.bf16.mxu0 %v10018_v9  ;;  %v6596_v9 = vld [vmem:[#allocation28 + $0x58] sm:$0xff] }
 0xcdc   :  { %v10084_v13 = vpack.c.bf16 %v6596_v9, %v6595_v8  ;;  %v6854_v8 = vld [vmem:[#allocation28 + $0x278] sm:$0xff] }
 0xcde   :  { %10021 = vmatpush1.bf16.msra.mxu0 %v10020_v47  ;;  %v6597_v47 = vld [vmem:[#allocation28 + $0x60] sm:$0xff] }
 0xcdf   :  { %10023 = vmatprep.subr.bf16.mxu0 %v10022_v14  ;;  %v6598_v14 = vld [vmem:[#allocation28 + $0x68] sm:$0xff] }
 0xce0   :  { %v10088_v44 = vpack.c.bf16 %v6598_v14, %v6597_v47 }
 0xce2   :  { %10025 = vmatpush1.bf16.msra.mxu0 %v10024_v6  ;;  %v6599_v6 = vld [vmem:[#allocation28 + $0x70] sm:$0xff] }
 0xce3   :  { %10027 = vmatprep.subr.bf16.mxu0 %v10026_v25  ;;  %v6600_v25 = vld [vmem:[#allocation28 + $0x78] sm:$0xff] }
 0xce4   :  { %v10092_v28 = vpack.c.bf16 %v6600_v25, %v6599_v6  ;;  %v6838_v6 = vld [vmem:[#allocation28 + $0x1f8] sm:$0xff]  ;;  %v6855_v25 = vld [vmem:[#allocation28 + $0x280] sm:$0xff] }
 0xce6   :  { %10029 = vmatpush1.bf16.msra.mxu0 %v10028_v31  ;;  %v6847_v31 = vld [vmem:[#allocation28 + $0x240] sm:$0xff] }
 0xce7   :  { %10031 = vmatprep.subr.bf16.mxu0 %v10030_v21  ;;  %v6848_v21 = vld [vmem:[#allocation28 + $0x248] sm:$0xff] }
 0xce8   :  { %v10130_v55 = vpack.c.bf16 %v6848_v21, %v6847_v31 }
 0xcea   :  { %10033 = vmatpush1.bf16.msra.mxu0 %v10032_v38 }
 0xceb   :  { %10035 = vmatprep.subr.bf16.mxu0 %v10034_v41  ;;  %v11631_v41 = vrot.slane %v11623_v29, %v11268_v58 }
 0xcee   :  { %10037 = vmatpush1.bf16.msra.mxu0 %v10036_v4  ;;  %v6850_v4 = vld [vmem:[#allocation28 + $0x258] sm:$0xff] }
 0xcef   :  { %10039 = vmatprep.subr.bf16.mxu0 %v10038_v27 }
 0xcf2   :  { %10041 = vmatpush1.bf16.msra.mxu0 %v10040_v5  ;;  %v10134_v5 = vpack.c.bf16 %v6850_v4, %v6849_v45  ;;  %v6840_v45 = vld [vmem:[#allocation28 + $0x208] sm:$0xff]  ;;  %v6857_v4 = vld [vmem:[#allocation28 + $0x290] sm:$0xff] }
 0xcf3   :  { %10043 = vmatprep.subr.bf16.mxu0 %v10042_v51  ;;  %v6833_v51 = vld [vmem:[#allocation28 + $0x1d0] sm:$0xff] }
 0xcf6   :  { %10045 = vmatpush1.bf16.msra.mxu0 %v10044_v3 }
 0xcf7   :  { %10047 = vmatprep.subr.bf16.mxu0 %v10046_v54  ;;  %v10095_v54 = vpack.c.bf16 %v6618_v50, %v6617_v49  ;;  %v6626_v49 = vld [vmem:[#allocation28 + $0x148] sm:$0xff] }
 0xcfa   :  { %10049 = vmatpush1.bf16.msra.mxu0 %v10048_v43  ;;  %v10136_v43 = vpack.c.bf16 %v6834_v52, %v6833_v51  ;;  %v6859_v51 = vld [vmem:[#allocation28 + $0x2a0] sm:$0xff] }
 0xcfb   :  { %10052 = vmatprep.subr.msk.bf16.mxu0 %vm11511_vm9, %v10050_v42 }
 0xcfd   :  { %6296 = vmatmul.mubr.f32.vlgmr.msra.gmra.mrb[48].mxu0 %v11452_v37  ;;  %v11607_v37 = vld [vmem:[#allocation25 + $0x48] sm:$0xff] }
 0xcfe   :  { %7800 = vmatprep.mubr.msk.f32.mxu0 %vm4512_vm6, %v11455_v22  ;;  %10055 = vmatpush1.bf16.msk.msra.mxu0 %vm11511_vm9, %v10053_v39  ;;  %v11612_v22 = vld [vmem:[#allocation25 + $0x50] sm:$0xff] }
 0xcff   :  { %v6611_v39 = vld [vmem:[#allocation28 + $0xd0] sm:$0xff] }
 0xd00   :  { %v10082_v42 = vpack.c.bf16 %v6612_v40, %v6611_v39  ;;  %v10138_v39 = vpack.c.bf16 %v6852_v57, %v6851_v53  ;;  %v6835_v40 = vld [vmem:[#allocation28 + $0x1e0] sm:$0xff]  ;;  %v6627_v57 = vld [vmem:[#allocation28 + $0x150] sm:$0xff] }
 0xd01   :  { %6302 = vmatmul.mubr.f32.gmra.mrb[50].mxu0 %v11463_v46  ;;  %v11617_v46 = vld [vmem:[#allocation25 + $0x58] sm:$0xf] }
 0xd02   :  { %6401 = vmatprep.mubr.f32.mxu0 %v10882_v1  ;;  %10083 = vmatprep.subr.bf16.mxu1 %v10082_v42  ;;  %v6853_v42 = vld [vmem:[#allocation28 + $0x270] sm:$0xff] }
 0xd03   :  { %10085 = vmatpush3.bf16.msra.mxu1 %v10084_v13 }
 0xd04   :  { %10087 = vmatprep.subr.bf16.mxu1 %v10086_v12 }
 0xd05   :  { %7803 = vmatmul.mubr.msk.f32.vlgmr.msra.gmra.mrb[32].mxu0 %vm5369_vm10, %v11602_v7 }
 0xd06   :  { %6407 = vmatprep.mubr.f32.mxu0 %v10882_v1 }
 0xd07   :  { %10089 = vmatpush3.bf16.msra.mxu1 %v10088_v44  ;;  %v6621_v44 = vld [vmem:[#allocation28 + $0x120] sm:$0xff] }
 0xd08   :  { %10091 = vmatprep.subr.bf16.mxu1 %v10090_v24  ;;  %v10142_v24 = vpack.c.bf16 %v6854_v8, %v6853_v42  ;;  %v10101_v31 = vpack.c.bf16 %v6622_v16, %v6621_v44  ;;  %v6845_v42 = vld [vmem:[#allocation28 + $0x230] sm:$0xff]  ;;  %v6846_v8 = vld [vmem:[#allocation28 + $0x238] sm:$0xff]  ;;  %v6633_v44 = vld [vmem:[#allocation28 + $0x180] sm:$0xff] }
 0xd09   :  { %7804 = vmatmul.mubr.msk.f32.gmra.mrb[34].mxu0 %vm5369_vm10, %v11607_v37  ;;  %v6634_v16 = vld [vmem:[#allocation28 + $0x188] sm:$0xff] }
 0xd0a   :  { %6413 = vmatprep.mubr.f32.mxu0 %v10882_v1 }
 0xd0b   :  { %10093 = vmatpush3.bf16.msra.mxu1 %v10092_v28  ;;  %v6856_v28 = vld [vmem:[#allocation28 + $0x288] sm:$0xff] }
 0xd0c   :  { %10094 = vmatprep.subr.bf16.mxu1 %v10881_v0  ;;  %v10146_v23 = vpack.c.bf16 %v6856_v28, %v6855_v25  ;;  %v6637_v25 = vld [vmem:[#allocation28 + $0x1a0] sm:$0xff]  ;;  %v6638_v28 = vld [vmem:[#allocation28 + $0x1a8] sm:$0xff] }
 0xd0d   :  { %7805 = vmatmul.mubr.msk.f32.gmra.mrb[36].mxu0 %vm5369_vm10, %v11612_v22 }
 0xd0e   :  { %6419 = vmatprep.mubr.f32.mxu0 %v10882_v1 }
 0xd11   :  { %7806 = vmatmul.mubr.msk.f32.gmra.mrb[38].mxu0 %vm5369_vm10, %v11617_v46 }
 0xd12   :  { %6490 = vmatprep.mubr.f32.mxu0 %v10882_v1 }
 0xdd0   :  { %v6297_v26 = vpop.f32.mrb[48].mxu0 }
 0xdd1   :  { %v6299_v63 = vpop.f32.mrb[49].mxu0 }
 0xdd4   :  { %v6303_v33 = vpop.f32.mrb[50].mxu0 }
 0xdd5   :  { %v10059_v18 = vpack.c.bf16 %v6303_v33, %v6297_v26  ;;  %v6305_v35 = vpop.f32.mrb[51].mxu0 }
 0xdd6   :  { %v10056_v38 = vpack.c.bf16 %v6305_v35, %v6299_v63 }
 0xdd8   :  { %v6403_v27 = vpop.f32.mrb[32].mxu0  ;;  %10058 = vmatprep.subr.msk.bf16.mxu0 %vm11511_vm9, %v10056_v38  ;;  %v6623_v38 = vld [vmem:[#allocation28 + $0x130] sm:$0xff] }
 0xdd9   :  { %v6553_v2 = vadd.f32 %v11627_v36, %v6403_v27  ;;  %v6405_v48 = vpop.f32.mrb[33].mxu0  ;;  %10061 = vmatpush1.bf16.msk.msra.mxu0 %vm11511_vm9, %v10059_v18  ;;  %v6858_v27 = vld [vmem:[#allocation28 + $0x298] sm:$0xff] }
 0xdda   :  { %v6554_v58 = vadd.f32 %v11631_v41, %v6405_v48  ;;  %10131 = vmatprep.subr.bf16.mxu0 %v10130_v55  ;;  %v6624_v55 = vld [vmem:[#allocation28 + $0x138] sm:$0xff]  ;;  %v10150_v50 = vpack.c.bf16 %v6858_v27, %v6857_v4 }
 0xddb   :  { %v11643_v15 = vmax.f32 %v6553_v2, 0.0  ;;  %v10104_v2 = vpack.c.bf16 %v6624_v55, %v6623_v38  ;;  %v6548_v38 = vrot.slane %v11623_v29, %v11342_v62  ;;  %v6866_v62 = vld [vmem:[#allocation28 + $0x2d8] sm:$0xff] }
 0xddc   :  { %v11639_v17 = vmax.f32 %v6554_v58, 0.0  ;;  %v6409_v3 = vpop.f32.mrb[34].mxu0  ;;  %7809 = vmatmul.mubr.msk.f32.vlgmr.msra.gmra.mrb[40].mxu0 %vm5369_vm10, %v11602_v7  ;;  %v6836_v7 = vld [vmem:[#allocation28 + $0x1e8] sm:$0xff]  ;;  %v6841_v58 = vld [vmem:[#allocation28 + $0x210] sm:$0xff] }
 0xddd   :  { %v6557_v34 = vadd.f32 %v11627_v36, %v6409_v3  ;;  %v6411_v60 = vpop.f32.mrb[35].mxu0  ;;  %10133 = vmatpush3.bf16.msra.mxu0 %v10132_v56  ;;  %6496 = vmatprep.mubr.f32.mxu0 %v10882_v1  ;;  %v10140_v14 = vpack.c.bf16 %v6836_v7, %v6835_v40  ;;  %v6625_v56 = vld [vmem:[#allocation28 + $0x140] sm:$0xff]  ;;  %v6628_v3 = vld [vmem:[#allocation28 + $0x158] sm:$0xff]  ;;  %v6630_v40 = vld [vmem:[#allocation28 + $0x168] sm:$0xff] }
 0xdde   :  { %v6558_v59 = vadd.f32 %v11631_v41, %v6411_v60  ;;  %6717 = vmatprep.mubr.f32.mxu1 %v11639_v17  ;;  %10135 = vmatprep.subr.bf16.mxu0 %v10134_v5  ;;  %v6842_v5 = vld [vmem:[#allocation28 + $0x218] sm:$0xff]  ;;  %v10107_v52 = vpack.c.bf16 %v6626_v49, %v6625_v56  ;;  %v6844_v60 = vld [vmem:[#allocation28 + $0x228] sm:$0xff]  ;;  %v10110_v20 = vpack.c.bf16 %v6628_v3, %v6627_v57 }
 0xddf   :  { %6718 = vmatmul.mubr.f32.vlgmr.msra.gmra.mrb[38].mxu1 %v11643_v15  ;;  %v11654_v11 = vmax.f32 %v6557_v34, 0.0  ;;  %v10152_v53 = vpack.c.bf16 %v6842_v5, %v6841_v58  ;;  %v6843_v34 = vld [vmem:[#allocation28 + $0x220] sm:$0xff] }
 0xde0   :  { %v11650_v9 = vmax.f32 %v6558_v59, 0.0  ;;  %v6415_v13 = vpop.f32.mrb[36].mxu0  ;;  %7810 = vmatmul.mubr.msk.f32.gmra.mrb[42].mxu0 %vm5369_vm10, %v11607_v37  ;;  %10096 = vmatpush1.bf16.msra.mxu1 %v10095_v54  ;;  %v6837_v37 = vld [vmem:[#allocation28 + $0x1f0] sm:$0xff]  ;;  %v10156_v59 = vpack.c.bf16 %v6844_v60, %v6843_v34 }
 0xde1   :  { %v6561_v12 = vadd.f32 %v11627_v36, %v6415_v13  ;;  %v6417_v47 = vpop.f32.mrb[37].mxu0  ;;  %10137 = vmatpush3.bf16.msra.mxu0 %v10136_v43  ;;  %6502 = vmatprep.mubr.f32.mxu0 %v10882_v1  ;;  %v10144_v35 = vpack.c.bf16 %v6838_v6, %v6837_v37  ;;  %v6861_v43 = vld [vmem:[#allocation28 + $0x2b0] sm:$0xff]  ;;  %v6636_v37 = vld [vmem:[#allocation28 + $0x198] sm:$0xff] }
 0xde2   :  { %v6562_v19 = vadd.f32 %v11631_v41, %v6417_v47  ;;  %6722 = vmatprep.mubr.f32.mxu1 %v11650_v9  ;;  %10139 = vmatprep.subr.bf16.mxu0 %v10138_v39  ;;  %v6629_v39 = vld [vmem:[#allocation28 + $0x160] sm:$0xff]  ;;  %v10158_v7 = vpack.c.bf16 %v6862_v30, %v6861_v43  ;;  %v6632_v47 = vld [vmem:[#allocation28 + $0x178] sm:$0xff] }
 0xde3   :  { %6723 = vmatmul.mubr.f32.gmra.mrb[40].mxu1 %v11654_v11  ;;  %10097 = vmatprep.subr.bf16.mxu1 %v10881_v0  ;;  %v11666_v21 = vmax.f32 %v6561_v12, 0.0  ;;  %v10113_v13 = vpack.c.bf16 %v6630_v40, %v6629_v39  ;;  %v6631_v12 = vld [vmem:[#allocation28 + $0x170] sm:$0xff]  ;;  %v6867_v30 = vld [vmem:[#allocation28 + $0x2e0] sm:$0xff] }
 0xde4   :  { %v11662_v26 = vmax.f32 %v6562_v19, 0.0  ;;  %v6421_v63 = vpop.f32.mrb[38].mxu0  ;;  %7811 = vmatmul.mubr.msk.f32.gmra.mrb[44].mxu0 %vm5369_vm10, %v11612_v22  ;;  %10099 = vmatpush1.bf16.msra.mxu1 %v10098_v10  ;;  %v6839_v22 = vld [vmem:[#allocation28 + $0x200] sm:$0xff]  ;;  %v10160_v10 = vpack.c.bf16 %v6846_v8, %v6845_v42  ;;  %v10119_v19 = vpack.c.bf16 %v6634_v16, %v6633_v44  ;;  %v6870_v44 = vld [vmem:[#allocation28 + $0x2f8] sm:$0xff] }
 0xde5   :  { %v6565_v33 = vadd.f32 %v11627_v36, %v6421_v63  ;;  %v6423_v18 = vpop.f32.mrb[39].mxu0  ;;  %10141 = vmatpush3.bf16.msra.mxu0 %v10140_v14  ;;  %6508 = vmatprep.mubr.f32.mxu0 %v10882_v1  ;;  %v10148_v48 = vpack.c.bf16 %v6840_v45, %v6839_v22  ;;  %v10116_v14 = vpack.c.bf16 %v6632_v47, %v6631_v12  ;;  %v6863_v22 = vld [vmem:[#allocation28 + $0x2c0] sm:$0xff]  ;;  %v6864_v45 = vld [vmem:[#allocation28 + $0x2c8] sm:$0xff] }
 0xde6   :  { %v6566_v32 = vadd.f32 %v11631_v41, %v6423_v18  ;;  %6727 = vmatprep.mubr.f32.mxu1 %v11662_v26  ;;  %10143 = vmatprep.subr.bf16.mxu0 %v10142_v24  ;;  %v6635_v24 = vld [vmem:[#allocation28 + $0x190] sm:$0xff]  ;;  %v10125_v63 = vpack.c.bf16 %v6638_v28, %v6637_v25  ;;  %v10163_v49 = vpack.c.bf16 %v6864_v45, %v6863_v22  ;;  %v6878_v45 = vld [vmem:[#allocation28 + $0x338] sm:$0xff] }
 0xde7   :  { %6728 = vmatmul.mubr.f32.gmra.mrb[42].mxu1 %v11666_v21  ;;  %10100 = vmatprep.subr.bf16.mxu1 %v10881_v0  ;;  %v11678_v41 = vmax.f32 %v6565_v33, 0.0  ;;  %v10122_v6 = vpack.c.bf16 %v6636_v37, %v6635_v24  ;;  %v6640_v33 = vld [vmem:[#allocation28 + $0x1b8] sm:$0xff]  ;;  %v6877_v22 = vld [vmem:[#allocation28 + $0x330] sm:$0xff] }
 0xde8   :  { %v11674_v36 = vmax.f32 %v6566_v32, 0.0  ;;  %7812 = vmatmul.mubr.msk.f32.gmra.mrb[46].mxu0 %vm5369_vm10, %v11617_v46  ;;  %10102 = vmatpush1.bf16.msra.mxu1 %v10101_v31  ;;  %v6860_v46 = vld [vmem:[#allocation28 + $0x2a8] sm:$0xff]  ;;  %v6639_v31 = vld [vmem:[#allocation28 + $0x1b0] sm:$0xff] }
 0xde9   :  { %10145 = vmatpush3.bf16.msra.mxu0 %v10144_v35  ;;  %6951 = vmatprep.mubr.f32.mxu0 %v11639_v17  ;;  %v10154_v54 = vpack.c.bf16 %v6860_v46, %v6859_v51  ;;  %v10128_v18 = vpack.c.bf16 %v6640_v33, %v6639_v31  ;;  %v6544_v35 = vrot.slane %v11623_v29, %v11339_v61  ;;  %v6865_v51 = vld [vmem:[#allocation28 + $0x2d0] sm:$0xff]  ;;  %v6872_v31 = vld [vmem:[#allocation28 + $0x308] sm:$0xff] }
 0xdea   :  { %6732 = vmatprep.mubr.f32.mxu1 %v11674_v36  ;;  %10147 = vmatprep.subr.bf16.mxu0 %v10146_v23  ;;  %v10166_v3 = vpack.c.bf16 %v6866_v62, %v6865_v51 }
 0xdeb   :  { %6733 = vmatmul.mubr.f32.gmra.mrb[44].mxu1 %v11678_v41  ;;  %10103 = vmatprep.subr.bf16.mxu1 %v10881_v0 }
 0xdec   :  { %10105 = vmatpush1.bf16.msra.mxu1 %v10104_v2 }
 0xded   :  { %10149 = vmatpush3.bf16.msra.mxu0 %v10148_v48  ;;  %10106 = vmatprep.subr.bf16.mxu1 %v10881_v0 }
 0xdee   :  { %10151 = vmatprep.subr.bf16.mxu0 %v10150_v50 }
 0xdf0   :  { %10108 = vmatpush1.bf16.msra.mxu1 %v10107_v52 }
 0xdf1   :  { %10153 = vmatpush3.bf16.msra.mxu0 %v10152_v53  ;;  %10109 = vmatprep.subr.bf16.mxu1 %v10881_v0 }
 0xdf2   :  { %10155 = vmatprep.subr.bf16.mxu0 %v10154_v54 }
 0xdf4   :  { %10111 = vmatpush1.bf16.msra.mxu1 %v10110_v20  ;;  %v6868_v20 = vld [vmem:[#allocation28 + $0x2e8] sm:$0xff] }
 0xdf5   :  { %10157 = vmatpush3.bf16.msra.mxu0 %v10156_v59  ;;  %10112 = vmatprep.subr.bf16.mxu1 %v10881_v0  ;;  %v10169_v8 = vpack.c.bf16 %v6868_v20, %v6867_v30  ;;  %v6884_v30 = vld [vmem:[#allocation28 + $0x368] sm:$0xff] }
 0xdf6   :  { %10159 = vmatprep.subr.bf16.mxu0 %v10158_v7 }
 0xdf8   :  { %10114 = vmatpush1.bf16.msra.mxu1 %v10113_v13 }
 0xdf9   :  { %10161 = vmatpush3.bf16.msra.mxu0 %v10160_v10  ;;  %10115 = vmatprep.subr.bf16.mxu1 %v10881_v0 }
 0xdfa   :  { %10198 = vmatprep.subr.bf16.mxu0 %v10881_v0 }
 0xdfc   :  { %6952 = vmatmul.mubr.f32.vlgmr.msra.gmra.mrb[52].mxu0 %v11643_v15  ;;  %10117 = vmatpush1.bf16.msra.mxu1 %v10116_v14  ;;  %v6869_v14 = vld [vmem:[#allocation28 + $0x2f0] sm:$0xff] }
 0xdfd   :  { %6956 = vmatprep.mubr.f32.mxu0 %v11650_v9  ;;  %10118 = vmatprep.subr.bf16.mxu1 %v10881_v0 }
 0xe00   :  { %6957 = vmatmul.mubr.f32.gmra.mrb[54].mxu0 %v11654_v11  ;;  %10120 = vmatpush1.bf16.msra.mxu1 %v10119_v19 }
 0xe01   :  { %6961 = vmatprep.mubr.f32.mxu0 %v11662_v26  ;;  %10121 = vmatprep.subr.bf16.mxu1 %v10881_v0 }
 0xe04   :  { %6962 = vmatmul.mubr.f32.gmra.mrb[56].mxu0 %v11666_v21  ;;  %10123 = vmatpush1.bf16.msra.mxu1 %v10122_v6  ;;  %v10172_v6 = vpack.c.bf16 %v6870_v44, %v6869_v14  ;;  %v7332_v14 = vld [vmem:[#allocation28 + $0x408] sm:$0xff] }
 0xe05   :  { %6966 = vmatprep.mubr.f32.mxu0 %v11674_v36  ;;  %10124 = vmatprep.subr.bf16.mxu1 %v10881_v0 }
 0xe08   :  { %6967 = vmatmul.mubr.f32.gmra.mrb[58].mxu0 %v11678_v41  ;;  %10126 = vmatpush1.bf16.msra.mxu1 %v10125_v63  ;;  %v6871_v63 = vld [vmem:[#allocation28 + $0x300] sm:$0xff] }
 0xe09   :  { %10127 = vmatprep.subr.bf16.mxu1 %v10881_v0  ;;  %v10175_v33 = vpack.c.bf16 %v6872_v31, %v6871_v63  ;;  %v7334_v63 = vld [vmem:[#allocation28 + $0x418] sm:$0xff]  ;;  %8023 = vmatprep.mubr.msk.f32.mxu0 %vm10885_vm11, %v10882_v1 }
 0xe0c   :  { %10129 = vmatpush1.bf16.msra.mxu1 %v10128_v18  ;;  %v6873_v18 = vld [vmem:[#allocation28 + $0x310] sm:$0xff] }
 0xe0d   :  { %10162 = vmatprep.subr.bf16.mxu1 %v10881_v0 }
 0xeaf   :  { %v6492_v55 = vpop.f32.mrb[40].mxu0 }
 0xeb0   :  { %v6555_v32 = vadd.f32 %v6544_v35, %v6492_v55  ;;  %v6494_v23 = vpop.f32.mrb[41].mxu0  ;;  %v6875_v55 = vld [vmem:[#allocation28 + $0x320] sm:$0xff] }
 0xeb1   :  { %v6556_v4 = vadd.f32 %v6548_v38, %v6494_v23 }
 0xeb2   :  { %v7882_v27 = vpop.f32.mrb[38].mxu1  ;;  %v11707_v50 = vmax.f32 %v6555_v32, 0.0  ;;  %v6876_v32 = vld [vmem:[#allocation28 + $0x328] sm:$0xff] }
 0xeb3   :  { %v11705_v2 = vmax.f32 %v6556_v4, 0.0  ;;  %v6498_v48 = vpop.f32.mrb[42].mxu0  ;;  %v7883_v56 = vpop.f32.mrb[39].mxu1  ;;  %v10181_v23 = vpack.c.bf16 %v6876_v32, %v6875_v55  ;;  %v7336_v55 = vld [vmem:[#allocation28 + $0x428] sm:$0xff] }
 0xeb4   :  { %v6559_v58 = vadd.f32 %v6544_v35, %v6498_v48  ;;  %v11709_v5 = vadd.f32 %v7883_v56, %v7882_v27  ;;  %v6500_v61 = vpop.f32.mrb[43].mxu0  ;;  %v10184_v27 = vpack.c.bf16 %v6878_v45, %v6877_v22  ;;  %v6879_v56 = vld [vmem:[#allocation28 + $0x340] sm:$0xff]  ;;  %v7320_v45 = vld [vmem:[#allocation28 + $0x3a8] sm:$0xff] }
 0xeb5   :  { %v6560_v29 = vadd.f32 %v6548_v38, %v6500_v61  ;;  %7813 = vmatprep.mubr.msk.f32.mxu1 %vm4512_vm6, %v11705_v2  ;;  %v7319_v22 = vld [vmem:[#allocation28 + $0x3a0] sm:$0xff] }
 0xeb6   :  { %v7885_v46 = vpop.f32.mrb[40].mxu1  ;;  %6803 = vmatmul.mubr.f32.vlgmr.msra.gmra.mrb[46].mxu1 %v11707_v50  ;;  %v11716_v54 = vmax.f32 %v6559_v58, 0.0 }
 0xeb7   :  { %v11714_v52 = vmax.f32 %v6560_v29, 0.0  ;;  %10164 = vmatpush1.bf16.msra.mxu1 %v10163_v49  ;;  %v6504_v53 = vpop.f32.mrb[44].mxu0  ;;  %v7886_v57 = vpop.f32.mrb[41].mxu1  ;;  %v6880_v49 = vld [vmem:[#allocation28 + $0x348] sm:$0xff]  ;;  %v6881_v29 = vld [vmem:[#allocation28 + $0x350] sm:$0xff] }
 0xeb8   :  { %v6563_v34 = vadd.f32 %v6544_v35, %v6504_v53  ;;  %v11718_v60 = vadd.f32 %v7886_v57, %v7885_v46  ;;  %v6506_v43 = vpop.f32.mrb[45].mxu0  ;;  %10165 = vmatprep.subr.bf16.mxu1 %v10881_v0  ;;  %v10187_v51 = vpack.c.bf16 %v6880_v49, %v6879_v56  ;;  %v6882_v46 = vld [vmem:[#allocation28 + $0x358] sm:$0xff]  ;;  %v7321_v49 = vld [vmem:[#allocation28 + $0x3b0] sm:$0xff] }
 0xeb9   :  { %v6564_v59 = vadd.f32 %v6548_v38, %v6506_v43  ;;  %7814 = vmatprep.mubr.msk.f32.mxu1 %vm4512_vm6, %v11714_v52  ;;  %v6883_v43 = vld [vmem:[#allocation28 + $0x360] sm:$0xff] }
 0xeba   :  { %v7888_v39 = vpop.f32.mrb[42].mxu1  ;;  %6808 = vmatmul.mubr.f32.gmra.mrb[48].mxu1 %v11716_v54  ;;  %v11726_v13 = vmax.f32 %v6563_v34, 0.0 }
 0xebb   :  { %v11724_v40 = vmax.f32 %v6564_v59, 0.0  ;;  %10167 = vmatpush1.bf16.msra.mxu1 %v10166_v3  ;;  %v6510_v7 = vpop.f32.mrb[46].mxu0  ;;  %v7889_v42 = vpop.f32.mrb[43].mxu1  ;;  %v10190_v3 = vpack.c.bf16 %v6882_v46, %v6881_v29 }
 0xebc   :  { %v6567_v10 = vadd.f32 %v6544_v35, %v6510_v7  ;;  %v11728_v12 = vadd.f32 %v7889_v42, %v7888_v39  ;;  %v6512_v47 = vpop.f32.mrb[47].mxu0  ;;  %10168 = vmatprep.subr.bf16.mxu1 %v10881_v0  ;;  %v6874_v35 = vld [vmem:[#allocation28 + $0x318] sm:$0xff]  ;;  %v10193_v39 = vpack.c.bf16 %v6884_v30, %v6883_v43  ;;  %v6885_v42 = vld [vmem:[#allocation28 + $0x370] sm:$0xff] }
 0xebd   :  { %v6568_v16 = vadd.f32 %v6548_v38, %v6512_v47  ;;  %7815 = vmatprep.mubr.msk.f32.mxu1 %vm4512_vm6, %v11724_v40  ;;  %v10178_v38 = vpack.c.bf16 %v6874_v35, %v6873_v18  ;;  %v7331_v47 = vld [vmem:[#allocation28 + $0x400] sm:$0xff]  ;;  %v7317_v18 = vld [vmem:[#allocation28 + $0x390] sm:$0xff]  ;;  %v7318_v35 = vld [vmem:[#allocation28 + $0x398] sm:$0xff] }
 0xebe   :  { %v7891_v19 = vpop.f32.mrb[44].mxu1  ;;  %6813 = vmatmul.mubr.f32.gmra.mrb[50].mxu1 %v11726_v13  ;;  %v11736_v25 = vmax.f32 %v6567_v10, 0.0  ;;  %v10218_v32 = vpack.c.bf16 %v7318_v35, %v7317_v18  ;;  %v7342_v43 = vld [vmem:[#allocation28 + $0x458] sm:$0xff] }
 0xebf   :  { %v11734_v24 = vmax.f32 %v6568_v16, 0.0  ;;  %10170 = vmatpush1.bf16.msra.mxu1 %v10169_v8  ;;  %v7892_v37 = vpop.f32.mrb[45].mxu1  ;;  %v6886_v8 = vld [vmem:[#allocation28 + $0x378] sm:$0xff]  ;;  %v10212_v16 = vpack.c.bf16 %v7332_v14, %v7331_v47 }
 0xec0   :  { %v11738_v28 = vadd.f32 %v7892_v37, %v7891_v19  ;;  %10171 = vmatprep.subr.bf16.mxu1 %v10881_v0  ;;  %v10196_v44 = vpack.c.bf16 %v6886_v8, %v6885_v42  ;;  %v7315_v19 = vld [vmem:[#allocation28 + $0x380] sm:$0xff]  ;;  %v7316_v37 = vld [vmem:[#allocation28 + $0x388] sm:$0xff] }
 0xec1   :  { %7816 = vmatprep.mubr.msk.f32.mxu1 %vm4512_vm6, %v11734_v24  ;;  %v10214_v31 = vpack.c.bf16 %v7316_v37, %v7315_v19  ;;  %v7343_v42 = vld [vmem:[#allocation28 + $0x460] sm:$0xff]  ;;  %v7344_v8 = vld [vmem:[#allocation28 + $0x468] sm:$0xff]  ;;  %v7345_v19 = vld [vmem:[#allocation28 + $0x470] sm:$0xff] }
 0xec2   :  { %6818 = vmatmul.mubr.f32.gmra.mrb[52].mxu1 %v11736_v25  ;;  %v10236_v14 = vpack.c.bf16 %v7344_v8, %v7343_v42  ;;  %v7346_v37 = vld [vmem:[#allocation28 + $0x478] sm:$0xff] }
 0xec3   :  { %10173 = vmatpush1.bf16.msra.mxu1 %v10172_v6  ;;  %7817 = vmatprep.mubr.msk.f32.mxu1 %vm4512_vm6, %v11705_v2  ;;  %v7333_v6 = vld [vmem:[#allocation28 + $0x410] sm:$0xff] }
 0xec4   :  { %10174 = vmatprep.subr.bf16.mxu1 %v10881_v0 }
 0xec7   :  { %10176 = vmatpush1.bf16.msra.mxu1 %v10175_v33  ;;  %v10216_v33 = vpack.c.bf16 %v7334_v63, %v7333_v6  ;;  %v10240_v63 = vpack.c.bf16 %v7346_v37, %v7345_v19 }
 0xec8   :  { %10177 = vmatprep.subr.bf16.mxu1 %v10881_v0 }
 0xecb   :  { %10179 = vmatpush1.bf16.msra.mxu1 %v10178_v38  ;;  %v7335_v38 = vld [vmem:[#allocation28 + $0x420] sm:$0xff] }
 0xecc   :  { %10180 = vmatprep.subr.bf16.mxu1 %v10881_v0 }
 0xecf   :  { %10182 = vmatpush1.bf16.msra.mxu1 %v10181_v23  ;;  %v7926_v4 = vpop.f32.mrb[52].mxu0  ;;  %v10220_v23 = vpack.c.bf16 %v7336_v55, %v7335_v38 }
 0xed0   :  { %v7927_v48 = vpop.f32.mrb[53].mxu0  ;;  %10183 = vmatprep.subr.bf16.mxu1 %v10881_v0 }
 0xed1   :  { %v11750_v58 = vadd.f32 %v7927_v48, %v7926_v4  ;;  %v7337_v4 = vld [vmem:[#allocation28 + $0x430] sm:$0xff]  ;;  %v10222_v48 = vpack.c.bf16 %v7320_v45, %v7319_v22 }
 0xed3   :  { %10185 = vmatpush1.bf16.msra.mxu1 %v10184_v27  ;;  %v7929_v61 = vpop.f32.mrb[54].mxu0  ;;  %v7338_v27 = vld [vmem:[#allocation28 + $0x438] sm:$0xff] }
 0xed4   :  { %v7930_v62 = vpop.f32.mrb[55].mxu0  ;;  %10186 = vmatprep.subr.bf16.mxu1 %v10881_v0  ;;  %v10224_v56 = vpack.c.bf16 %v7338_v27, %v7337_v4 }
 0xed5   :  { %v11753_v53 = vadd.f32 %v7930_v62, %v7929_v61  ;;  %v7322_v61 = vld [vmem:[#allocation28 + $0x3b8] sm:$0xff]  ;;  %v7340_v62 = vld [vmem:[#allocation28 + $0x448] sm:$0xff] }
 0xed6   :  { %v10226_v29 = vpack.c.bf16 %v7322_v61, %v7321_v49 }
 0xed7   :  { %10188 = vmatpush1.bf16.msra.mxu1 %v10187_v51  ;;  %v7932_v57 = vpop.f32.mrb[56].mxu0  ;;  %v7339_v51 = vld [vmem:[#allocation28 + $0x440] sm:$0xff] }
 0xed8   :  { %v7933_v34 = vpop.f32.mrb[57].mxu0  ;;  %10189 = vmatprep.subr.bf16.mxu1 %v10881_v0  ;;  %v10228_v46 = vpack.c.bf16 %v7340_v62, %v7339_v51 }
 0xed9   :  { %v11756_v20 = vadd.f32 %v7933_v34, %v7932_v57  ;;  %v7323_v57 = vld [vmem:[#allocation28 + $0x3c0] sm:$0xff]  ;;  %v7341_v34 = vld [vmem:[#allocation28 + $0x450] sm:$0xff] }
 0xedb   :  { %10191 = vmatpush1.bf16.msra.mxu1 %v10190_v3  ;;  %v7935_v59 = vpop.f32.mrb[58].mxu0  ;;  %v7324_v3 = vld [vmem:[#allocation28 + $0x3c8] sm:$0xff] }
 0xedc   :  { %v7936_v7 = vpop.f32.mrb[59].mxu0  ;;  %10192 = vmatprep.subr.bf16.mxu1 %v10881_v0  ;;  %v10230_v30 = vpack.c.bf16 %v7324_v3, %v7323_v57 }
 0xedd   :  { %v11759_v10 = vadd.f32 %v7936_v7, %v7935_v59  ;;  %v10232_v59 = vpack.c.bf16 %v7342_v43, %v7341_v34  ;;  %v7326_v7 = vld [vmem:[#allocation28 + $0x3d8] sm:$0xff] }
 0xede   :  { %v7062_v34 = vld [vmem:[#allocation29 + $0x58] sm:$0xff] }
 0xedf   :  { %10194 = vmatpush1.bf16.msra.mxu1 %v10193_v39  ;;  %v7325_v39 = vld [vmem:[#allocation28 + $0x3d0] sm:$0xff] }
 0xee0   :  { %10195 = vmatprep.subr.bf16.mxu1 %v10881_v0  ;;  %v10234_v47 = vpack.c.bf16 %v7326_v7, %v7325_v39  ;;  %v7063_v39 = vld [vmem:[#allocation29 + $0x60] sm:$0xff] }
 0xee3   :  { %10197 = vmatpush1.bf16.msra.mxu1 %v10196_v44  ;;  %v7327_v44 = vld [vmem:[#allocation28 + $0x3e0] sm:$0xff] }
 0xee4   :  { %10213 = vmatprep.subr.bf16.mxu1 %v10212_v16  ;;  %v7328_v16 = vld [vmem:[#allocation28 + $0x3e8] sm:$0xff] }
 0xee5   :  { %v10238_v6 = vpack.c.bf16 %v7328_v16, %v7327_v44  ;;  %v7347_v44 = vld [vmem:[#allocation28 + $0x480] sm:$0xff]  ;;  %v7348_v16 = vld [vmem:[#allocation28 + $0x488] sm:$0xff] }
 0xee6   :  { %7037 = vmatmul.mubr.f32.vlgmr.msra.gmra.mrb[54].mxu1 %v11707_v50 }
 0xee7   :  { %7818 = vmatprep.mubr.msk.f32.mxu1 %vm4512_vm6, %v11714_v52  ;;  %10215 = vmatpush3.bf16.msra.mxu1 %v10214_v31  ;;  %v7330_v31 = vld [vmem:[#allocation28 + $0x3f8] sm:$0xff] }
 0xee8   :  { %10217 = vmatprep.subr.bf16.mxu1 %v10216_v33 }
 0xeea   :  { %7042 = vmatmul.mubr.f32.gmra.mrb[56].mxu1 %v11716_v54 }
 0xeeb   :  { %7819 = vmatprep.mubr.msk.f32.mxu1 %vm4512_vm6, %v11724_v40  ;;  %10219 = vmatpush3.bf16.msra.mxu1 %v10218_v32 }
 0xeec   :  { %10221 = vmatprep.subr.bf16.mxu1 %v10220_v23 }
 0xeee   :  { %7047 = vmatmul.mubr.f32.gmra.mrb[58].mxu1 %v11726_v13 }
 0xeef   :  { %7820 = vmatprep.mubr.msk.f32.mxu1 %vm4512_vm6, %v11734_v24  ;;  %10223 = vmatpush3.bf16.msra.mxu1 %v10222_v48 }
 0xef0   :  { %10225 = vmatprep.subr.bf16.mxu1 %v10224_v56 }
 0xef2   :  { %7052 = vmatmul.mubr.f32.gmra.mrb[60].mxu1 %v11736_v25 }
 0xef3   :  { %10227 = vmatpush3.bf16.msra.mxu1 %v10226_v29  ;;  %7435 = vmatprep.mubr.f32.mxu1 %v11639_v17  ;;  %v7329_v17 = vld [vmem:[#allocation28 + $0x3f0] sm:$0xff]  ;;  %v7058_v29 = vld [vmem:[#allocation29 + $0x38] sm:$0xff] }
 0xef4   :  { %10229 = vmatprep.subr.bf16.mxu1 %v10228_v46  ;;  %v10242_v33 = vpack.c.bf16 %v7330_v31, %v7329_v17  ;;  %v7061_v46 = vld [vmem:[#allocation29 + $0x50] sm:$0xff] }
 0xef5   :  { %v7349_v31 = vld [vmem:[#allocation28 + $0x490] sm:$0xff] }
 0xef7   :  { %10231 = vmatpush3.bf16.msra.mxu1 %v10230_v30 }
 0xef8   :  { %10233 = vmatprep.subr.bf16.mxu1 %v10232_v59 }
 0xefb   :  { %10235 = vmatpush3.bf16.msra.mxu1 %v10234_v47  ;;  %v7064_v47 = vld [vmem:[#allocation29 + $0x68] sm:$0xff] }
 0xefc   :  { %10237 = vmatprep.subr.bf16.mxu1 %v10236_v14 }
 0xeff   :  { %10239 = vmatpush3.bf16.msra.mxu1 %v10238_v6  ;;  %v6823_v6 = vld [vmem:[#allocation29] sm:$0xff] }
 0xf00   :  { %10241 = vmatprep.subr.bf16.mxu1 %v10240_v63  ;;  %v10245_v63 = vpack.c.bf16 %v7348_v16, %v7347_v44 }
 0xf03   :  { %10243 = vmatpush3.bf16.msra.mxu1 %v10242_v33  ;;  %v7350_v33 = vld [vmem:[#allocation28 + $0x498] sm:$0xff] }
 0xf04   :  { %10280 = vmatprep.subr.bf16.mxu1 %v10881_v0 }
 0xf06   :  { %7436 = vmatmul.mubr.f32.vlgmr.msra.gmra.mrb[62].mxu1 %v11643_v15 }
 0xf07   :  { %7440 = vmatprep.mubr.f32.mxu1 %v11650_v9 }
 0xf0a   :  { %7441 = vmatmul.mubr.f32.gmra.mrb[64].mxu1 %v11654_v11 }
 0xf0b   :  { %7445 = vmatprep.mubr.f32.mxu1 %v11662_v26 }
 0xf0e   :  { %7446 = vmatmul.mubr.f32.gmra.mrb[66].mxu1 %v11666_v21 }
 0xf0f   :  { %7450 = vmatprep.mubr.f32.mxu1 %v11674_v36 }
 0xf12   :  { %7451 = vmatmul.mubr.f32.gmra.mrb[68].mxu1 %v11678_v41 }
 0xf13   :  { %8081 = vmatprep.mubr.msk.f32.mxu1 %vm10885_vm11, %v10882_v1 }
 0xf89   :  { %v6804_v15 = vpop.f32.mrb[46].mxu1 }
 0xf8a   :  { %v6805_v9 = vadd.f32 %v11709_v5, %v6804_v15  ;;  %v6806_v18 = vpop.f32.mrb[47].mxu1  ;;  %v6824_v15 = vld [vmem:[#allocation29 + $0x8] sm:$0xff] }
 0xf8b   :  { %v7351_v18 = vld [vmem:[#allocation28 + $0x4a0] sm:$0xff] }
 0xf8d   :  { %v6809_v11 = vpop.f32.mrb[48].mxu1 }
 0xf8e   :  { %v6810_v26 = vadd.f32 %v11718_v60, %v6809_v11  ;;  %v6811_v35 = vpop.f32.mrb[49].mxu1  ;;  %v7352_v11 = vld [vmem:[#allocation28 + $0x4a8] sm:$0xff] }
 0xf8f   :  { %v10251_v35 = vpack.c.bf16 %v7352_v11, %v7351_v18 }
 0xf90   :  { %v10206_v21 = vpack.c.bf16 %v6810_v26, %v6805_v9  ;;  %v10248_v9 = vpack.c.bf16 %v7350_v33, %v7349_v31  ;;  %v6825_v26 = vld [vmem:[#allocation29 + $0x10] sm:$0xff] }
 0xf91   :  { %v6814_v38 = vpop.f32.mrb[50].mxu1 }
 0xf92   :  { %v6815_v36 = vadd.f32 %v11728_v12, %v6814_v38  ;;  %v6816_v41 = vpop.f32.mrb[51].mxu1  ;;  %v7354_v38 = vld [vmem:[#allocation28 + $0x4b8] sm:$0xff] }
 0xf95   :  { %v6819_v55 = vpop.f32.mrb[52].mxu1 }
 0xf96   :  { %v6820_v32 = vadd.f32 %v11738_v28, %v6819_v55  ;;  %v6821_v23 = vpop.f32.mrb[53].mxu1  ;;  %v7355_v55 = vld [vmem:[#allocation28 + $0x4c0] sm:$0xff] }
 0xf97   :  { %v6827_v23 = vld [vmem:[#allocation29 + $0x20] sm:$0xff] }
 0xf98   :  { %v10209_v22 = vpack.c.bf16 %v6820_v32, %v6815_v36  ;;  %v6826_v36 = vld [vmem:[#allocation29 + $0x18] sm:$0xff]  ;;  %v7356_v32 = vld [vmem:[#allocation28 + $0x4c8] sm:$0xff] }
 0xfb9   :  { %v7038_v45 = vpop.f32.mrb[54].mxu1 }
 0xfba   :  { %v7039_v4 = vadd.f32 %v11750_v58, %v7038_v45  ;;  %v7040_v27 = vpop.f32.mrb[55].mxu1  ;;  %v7357_v45 = vld [vmem:[#allocation28 + $0x4d0] sm:$0xff]  ;;  %v7545_v58 = vld [vmem:[#allocation29 + $0x88] sm:$0xff] }
 0xfbb   :  { %v6828_v27 = vld [vmem:[#allocation29 + $0x28] sm:$0xff] }
 0xfbd   :  { %v7043_v5 = vpop.f32.mrb[56].mxu1 }
 0xfbe   :  { %v7044_v48 = vadd.f32 %v11753_v53, %v7043_v5  ;;  %v7045_v56 = vpop.f32.mrb[57].mxu1 }
 0xfbf   :  { %v7360_v56 = vld [vmem:[#allocation28 + $0x4e8] sm:$0xff] }
 0xfc0   :  { %v10199_v60 = vpack.c.bf16 %v7044_v48, %v7039_v4  ;;  %v7358_v4 = vld [vmem:[#allocation28 + $0x4d8] sm:$0xff]  ;;  %v7359_v48 = vld [vmem:[#allocation28 + $0x4e0] sm:$0xff] }
 0xfc1   :  { %v7048_v49 = vpop.f32.mrb[58].mxu1  ;;  %v10260_v5 = vpack.c.bf16 %v7358_v4, %v7357_v45 }
 0xfc2   :  { %v7049_v61 = vadd.f32 %v11756_v20, %v7048_v49  ;;  %v7050_v51 = vpop.f32.mrb[59].mxu1  ;;  %10200 = vmatpush3.bf16.msra.mxu0 %v10199_v60  ;;  %v7059_v20 = vld [vmem:[#allocation29 + $0x40] sm:$0xff]  ;;  %v6829_v60 = vld [vmem:[#allocation29 + $0x30] sm:$0xff]  ;;  %v10263_v49 = vpack.c.bf16 %v7360_v56, %v7359_v48 }
 0xfc3   :  { %10201 = vmatprep.subr.bf16.mxu0 %v10881_v0  ;;  %v7362_v51 = vld [vmem:[#allocation28 + $0x4f8] sm:$0xff] }
 0xfc5   :  { %v7053_v12 = vpop.f32.mrb[60].mxu1 }
 0xfc6   :  { %v7054_v28 = vadd.f32 %v11759_v10, %v7053_v12  ;;  %v7055_v62 = vpop.f32.mrb[61].mxu1  ;;  %v7060_v10 = vld [vmem:[#allocation29 + $0x48] sm:$0xff] }
 0xfc7   :  { %v7364_v62 = vld [vmem:[#allocation28 + $0x508] sm:$0xff] }
 0xfc8   :  { %v10202_v53 = vpack.c.bf16 %v7054_v28, %v7049_v61  ;;  %v7361_v61 = vld [vmem:[#allocation28 + $0x4f0] sm:$0xff]  ;;  %v7363_v28 = vld [vmem:[#allocation28 + $0x500] sm:$0xff] }
 0xfc9   :  { %v10266_v12 = vpack.c.bf16 %v7362_v51, %v7361_v61 }
 0xfca   :  { %10204 = vmatpush3.bf16.msk.msra.mxu0 %vm11796_vm12, %v10202_v53  ;;  %v10269_v53 = vpack.c.bf16 %v7364_v62, %v7363_v28 }
 0xfcb   :  { %10205 = vmatprep.subr.bf16.mxu0 %v10881_v0 }
 0xfcd   :  { %8024 = vmatmul.mubr.msk.f32.vlgmr.msra.gmra.mrb[60].mxu0 %vm7065_vm13, %v7058_v29  ;;  %v7365_v29 = vld [vmem:[#allocation28 + $0x510] sm:$0xff] }
 0xfce   :  { %10207 = vmatpush3.bf16.msra.mxu0 %v10206_v21  ;;  %8026 = vmatprep.mubr.msk.f32.mxu0 %vm10885_vm11, %v10882_v1  ;;  %v7353_v21 = vld [vmem:[#allocation28 + $0x4b0] sm:$0xff] }
 0xfcf   :  { %10208 = vmatprep.subr.bf16.mxu0 %v10881_v0  ;;  %v10254_v41 = vpack.c.bf16 %v7354_v38, %v7353_v21 }
 0xfd1   :  { %8027 = vmatmul.mubr.msk.f32.gmra.mrb[62].mxu0 %vm7065_vm13, %v7059_v20  ;;  %v7366_v20 = vld [vmem:[#allocation28 + $0x518] sm:$0xff] }
 0xfd2   :  { %10211 = vmatpush3.bf16.msk.msra.mxu0 %vm11796_vm12, %v10209_v22  ;;  %8029 = vmatprep.mubr.msk.f32.mxu0 %vm10885_vm11, %v10882_v1  ;;  %v10257_v22 = vpack.c.bf16 %v7356_v32, %v7355_v55 }
 0xfd3   :  { %10244 = vmatprep.subr.bf16.mxu0 %v10881_v0 }
 0xfd5   :  { %8030 = vmatmul.mubr.msk.f32.gmra.mrb[64].mxu0 %vm7065_vm13, %v7060_v10  ;;  %v10272_v10 = vpack.c.bf16 %v7366_v20, %v7365_v29  ;;  %v7548_v20 = vld [vmem:[#allocation29 + $0xa0] sm:$0xff] }
 0xfd6   :  { %8032 = vmatprep.mubr.msk.f32.mxu0 %vm10885_vm11, %v10882_v1 }
 0xfd9   :  { %8033 = vmatmul.mubr.msk.f32.gmra.mrb[66].mxu0 %vm7065_vm13, %v7061_v46  ;;  %v7992_v57 = vpop.f32.mrb[62].mxu1  ;;  %v7367_v46 = vld [vmem:[#allocation28 + $0x520] sm:$0xff] }
 0xfda   :  { %v7993_v3 = vpop.f32.mrb[63].mxu1  ;;  %8035 = vmatprep.mubr.msk.f32.mxu0 %vm10885_vm11, %v10882_v1 }
 0xfdb   :  { %v11819_v43 = vadd.f32 %v7993_v3, %v7992_v57  ;;  %v7368_v57 = vld [vmem:[#allocation28 + $0x528] sm:$0xff] }
 0xfdc   :  { %v10275_v3 = vpack.c.bf16 %v7368_v57, %v7367_v46  ;;  %v7849_v46 = vld [vmem:[%s11963_s19] ss:$0 sm:$0xff]  ;;  %s10886_s19 = smov [#allocation31]  }
 0xfdd   :  { %8036 = vmatmul.mubr.msk.f32.gmra.mrb[68].mxu0 %vm7065_vm13, %v7062_v34  ;;  %v7995_v30 = vpop.f32.mrb[64].mxu1  ;;  %v7370_v34 = vld [vmem:[#allocation28 + $0x538] sm:$0xff]  ;;  %s7706_s1 = sshll.u32 %s10886_s19, 4  ;;  %s7707_s1 = int_to_ptr.vmem [resolvable:$true] %s7706_s1 }
 0xfde   :  { %v7996_v59 = vpop.f32.mrb[65].mxu1  ;;  %8038 = vmatprep.mubr.msk.f32.mxu0 %vm10885_vm11, %v10882_v1  ;;  %s10811_s26 = scalar_lea.vmem %s7707_s1, 896  ;;  %p10816_p5 = scmp.lt.s32.totalorder %s7707_s1, %s7707_s1 }
 0xfdf   :  { %v11824_v7 = vadd.f32 %v7996_v59, %v7995_v30  ;;  %p10812_p4 = scmp.ne.s32.totalorder %s7707_s1, %s10811_s26  ;;  %p10817_p6 = scmp.lt.s32.totalorder %s10811_s26, %s10811_s26 }
 0xfe1   :  { %8039 = vmatmul.mubr.msk.f32.gmra.mrb[70].mxu0 %vm7065_vm13, %v7063_v39  ;;  %v7998_v42 = vpop.f32.mrb[66].mxu1  ;;  %p10818_p7 = por %p10817_p6, %p10816_p5 }
 0xfe2   :  { %v7999_v8 = vpop.f32.mrb[67].mxu1  ;;  %8041 = vmatprep.mubr.msk.f32.mxu0 %vm10885_vm11, %v10882_v1 }
 0xfe3   :  { %v11829_v14 = vadd.f32 %v7999_v8, %v7998_v42  ;;  %p10819_p8 = pnand %p10818_p7, %p10812_p4 }
 0xfe5   :  { %8042 = vmatmul.mubr.msk.f32.gmra.mrb[72].mxu0 %vm7065_vm13, %v7064_v47  ;;  %v8001_v19 = vpop.f32.mrb[68].mxu1 }
 0xfe6   :  { %v8002_v37 = vpop.f32.mrb[69].mxu1  ;;  %8052 = vmatprep.mubr.msk.f32.mxu0 %vm10885_vm11, %v10882_v1 }
 0xfe7   :  { %v11834_v17 = vadd.f32 %v8002_v37, %v8001_v19 }
 0xfe9   :  { %8053 = vmatmul.mubr.msk.f32.vlgmr.msra.gmra.mrb[74].mxu0 %vm7065_vm13, %v6823_v6 }
 0xfea   :  { %10246 = vmatpush1.bf16.msra.mxu0 %v10245_v63  ;;  %8055 = vmatprep.mubr.msk.f32.mxu0 %vm10885_vm11, %v10882_v1 }
 0xfeb   :  { %10247 = vmatprep.subr.bf16.mxu0 %v10881_v0 }
 0xfed   :  { %8056 = vmatmul.mubr.msk.f32.gmra.mrb[76].mxu0 %vm7065_vm13, %v6824_v15 }
 0xfee   :  { %10249 = vmatpush1.bf16.msra.mxu0 %v10248_v9  ;;  %8058 = vmatprep.mubr.msk.f32.mxu0 %vm10885_vm11, %v10882_v1 }
 0xfef   :  { %10250 = vmatprep.subr.bf16.mxu0 %v10881_v0 }
 0xff1   :  { %8059 = vmatmul.mubr.msk.f32.gmra.mrb[78].mxu0 %vm7065_vm13, %v6825_v26 }
 0xff2   :  { %10252 = vmatpush1.bf16.msra.mxu0 %v10251_v35  ;;  %8061 = vmatprep.mubr.msk.f32.mxu0 %vm10885_vm11, %v10882_v1 }
 0xff3   :  { %10253 = vmatprep.subr.bf16.mxu0 %v10881_v0 }
 0xff5   :  { %8062 = vmatmul.mubr.msk.f32.gmra.mrb[80].mxu0 %vm7065_vm13, %v6826_v36 }
 0xff6   :  { %10255 = vmatpush1.bf16.msra.mxu0 %v10254_v41  ;;  %8064 = vmatprep.mubr.msk.f32.mxu0 %vm10885_vm11, %v10882_v1 }
 0xff7   :  { %10256 = vmatprep.subr.bf16.mxu0 %v10881_v0 }
 0xff9   :  { %8065 = vmatmul.mubr.msk.f32.gmra.mrb[82].mxu0 %vm7065_vm13, %v6827_v23 }
 0xffa   :  { %10258 = vmatpush1.bf16.msra.mxu0 %v10257_v22  ;;  %8067 = vmatprep.mubr.msk.f32.mxu0 %vm10885_vm11, %v10882_v1 }
 0xffb   :  { %10259 = vmatprep.subr.bf16.mxu0 %v10881_v0 }
 0xffd   :  { %8068 = vmatmul.mubr.msk.f32.gmra.mrb[84].mxu0 %vm7065_vm13, %v6828_v27 }
 0xffe   :  { %10261 = vmatpush1.bf16.msra.mxu0 %v10260_v5  ;;  %8070 = vmatprep.mubr.msk.f32.mxu0 %vm10885_vm11, %v10882_v1 }
 0xfff   :  { %10262 = vmatprep.subr.bf16.mxu0 %v10881_v0 }
0x1001   :  { %8071 = vmatmul.mubr.msk.f32.gmra.mrb[86].mxu0 %vm7065_vm13, %v6829_v60 }
0x1002   :  { %10264 = vmatpush1.bf16.msra.mxu0 %v10263_v49  ;;  %7837 = vmatprep.mubr.msk.f32.mxu0 %vm4512_vm6, %v11705_v2  ;;  %v7369_v2 = vld [vmem:[#allocation28 + $0x530] sm:$0xff] }
0x1003   :  { %10265 = vmatprep.subr.bf16.mxu0 %v10881_v0  ;;  %v10278_v30 = vpack.c.bf16 %v7370_v34, %v7369_v2 }
0x1006   :  { %10267 = vmatpush1.bf16.msra.mxu0 %v10266_v12 }
0x1007   :  { %10268 = vmatprep.subr.bf16.mxu0 %v10881_v0 }
0x100a   :  { %10270 = vmatpush1.bf16.msra.mxu0 %v10269_v53 }
0x100b   :  { %10271 = vmatprep.subr.bf16.mxu0 %v10881_v0 }
0x100e   :  { %10273 = vmatpush1.bf16.msra.mxu0 %v10272_v10 }
0x100f   :  { %10274 = vmatprep.subr.bf16.mxu0 %v10881_v0 }
0x1012   :  { %10276 = vmatpush1.bf16.msra.mxu0 %v10275_v3 }
0x1013   :  { %10277 = vmatprep.subr.bf16.mxu0 %v10881_v0 }
0x1016   :  { %10279 = vmatpush1.bf16.msra.mxu0 %v10278_v30 }
0x1019   :  { %7521 = vmatmul.mubr.f32.vlgmr.msra.gmra.mrb[88].mxu0 %v11707_v50 }
0x101a   :  { %7838 = vmatprep.mubr.msk.f32.mxu0 %vm4512_vm6, %v11714_v52 }
0x101d   :  { %7526 = vmatmul.mubr.f32.gmra.mrb[90].mxu0 %v11716_v54 }
0x101e   :  { %7839 = vmatprep.mubr.msk.f32.mxu0 %vm4512_vm6, %v11724_v40 }
0x1021   :  { %7531 = vmatmul.mubr.f32.gmra.mrb[92].mxu0 %v11726_v13 }
0x1022   :  { %7840 = vmatprep.mubr.msk.f32.mxu0 %vm4512_vm6, %v11734_v24 }
0x1025   :  { %7536 = vmatmul.mubr.f32.gmra.mrb[94].mxu0 %v11736_v25 }
0x10a0   :  { %v7156_v59 = vpop.f32.mrb[60].mxu0 }
0x10a1   :  { %v8025_v39 = vpop.f32.mrb[61].mxu0 }
0x10a4   :  { %v7161_v42 = vpop.f32.mrb[62].mxu0 }
0x10a5   :  { %v8028_v8 = vpop.f32.mrb[63].mxu0 }
0x10a8   :  { %v7166_v50 = vpop.f32.mrb[64].mxu0 }
0x10a9   :  { %v8031_v47 = vpop.f32.mrb[65].mxu0 }
0x10ac   :  { %v7171_v44 = vpop.f32.mrb[66].mxu0 }
0x10ad   :  { %v8034_v52 = vpop.f32.mrb[67].mxu0 }
0x10b0   :  { %v7176_v16 = vpop.f32.mrb[68].mxu0 }
0x10b1   :  { %v8037_v54 = vpop.f32.mrb[69].mxu0 }
0x10b4   :  { %v7181_v19 = vpop.f32.mrb[70].mxu0 }
0x10b5   :  { %v8040_v37 = vpop.f32.mrb[71].mxu0 }
0x10b8   :  { %v7186_v40 = vpop.f32.mrb[72].mxu0 }
0x10b9   :  { %v8043_v6 = vpop.f32.mrb[73].mxu0 }
0x10bc   :  { %v7280_v13 = vpop.f32.mrb[74].mxu0 }
0x10bd   :  { %v7281_v63 = vadd.f32 %v7280_v13, %v7156_v59  ;;  %v8054_v31 = vpop.f32.mrb[75].mxu0 }
0x10c0   :  { %v7285_v24 = vpop.f32.mrb[76].mxu0 }
0x10c1   :  { %v7286_v33 = vadd.f32 %v7285_v24, %v7161_v42  ;;  %v8057_v25 = vpop.f32.mrb[77].mxu0 }
0x10c4   :  { %v7290_v15 = vpop.f32.mrb[78].mxu0 }
0x10c5   :  { %v11878_v9 = vadd.f32 %v7290_v15, %v7166_v50  ;;  %v8060_v18 = vpop.f32.mrb[79].mxu0 }
0x10c8   :  { %v7295_v11 = vpop.f32.mrb[80].mxu0 }
0x10c9   :  { %v11880_v26 = vadd.f32 %v7295_v11, %v7171_v44  ;;  %v8063_v35 = vpop.f32.mrb[81].mxu0 }
0x10cc   :  { %v7300_v21 = vpop.f32.mrb[82].mxu0 }
0x10cd   :  { %v11882_v38 = vadd.f32 %v7300_v21, %v7176_v16  ;;  %v8066_v36 = vpop.f32.mrb[83].mxu0 }
0x10d0   :  { %v7305_v41 = vpop.f32.mrb[84].mxu0 }
0x10d1   :  { %v11884_v55 = vadd.f32 %v7305_v41, %v7181_v19  ;;  %v8069_v32 = vpop.f32.mrb[85].mxu0 }
0x10d4   :  { %v7310_v23 = vpop.f32.mrb[86].mxu0 }
0x10d5   :  { %v11886_v22 = vadd.f32 %v7310_v23, %v7186_v40  ;;  %v8072_v45 = vpop.f32.mrb[87].mxu0 }
0x10ec   :  { %v7522_v4 = vpop.f32.mrb[88].mxu0 }
0x10ed   :  { %v7523_v27 = vadd.f32 %v11819_v43, %v7522_v4  ;;  %v7524_v5 = vpop.f32.mrb[89].mxu0  ;;  %v7542_v43 = vld [vmem:[#allocation29 + $0x70] sm:$0xff] }
0x10f0   :  { %v7527_v48 = vpop.f32.mrb[90].mxu0 }
0x10f1   :  { %v7528_v56 = vadd.f32 %v11824_v7, %v7527_v48  ;;  %v7529_v60 = vpop.f32.mrb[91].mxu0  ;;  %v7543_v7 = vld [vmem:[#allocation29 + $0x78] sm:$0xff] }
0x10f3   :  { %v10281_v49 = vpack.c.bf16 %v7528_v56, %v7523_v27 }
0x10f4   :  { %v7532_v61 = vpop.f32.mrb[92].mxu0 }
0x10f5   :  { %v7533_v51 = vadd.f32 %v11829_v14, %v7532_v61  ;;  %v7534_v12 = vpop.f32.mrb[93].mxu0  ;;  %10282 = vmatpush3.bf16.msra.mxu1 %v10281_v49  ;;  %v7546_v14 = vld [vmem:[#allocation29 + $0x90] sm:$0xff] }
0x10f6   :  { %10283 = vmatprep.subr.bf16.mxu1 %v10881_v0  ;;  %v7544_v0 = vld [vmem:[#allocation29 + $0x80] sm:$0xff] }
0x10f8   :  { %v7537_v28 = vpop.f32.mrb[94].mxu0 }
0x10f9   :  { %v7538_v62 = vadd.f32 %v11834_v17, %v7537_v28  ;;  %v7539_v53 = vpop.f32.mrb[95].mxu0  ;;  %v7547_v17 = vld [vmem:[#allocation29 + $0x98] sm:$0xff] }
0x10fb   :  { %v10284_v29 = vpack.c.bf16 %v7538_v62, %v7533_v51 }
0x10fd   :  { %10286 = vmatpush3.bf16.msk.msra.mxu1 %vm11796_vm12, %v10284_v29 }
0x1100   :  { %8082 = vmatmul.mubr.msk.f32.vlgmr.msra.gmra.mrb[70].mxu1 %vm7065_vm13, %v7542_v43 }
0x1101   :  { %8084 = vmatprep.mubr.msk.f32.mxu1 %vm10885_vm11, %v10882_v1 }
0x1104   :  { %8085 = vmatmul.mubr.msk.f32.gmra.mrb[72].mxu1 %vm7065_vm13, %v7543_v7 }
0x1105   :  { %8087 = vmatprep.mubr.msk.f32.mxu1 %vm10885_vm11, %v10882_v1 }
0x1108   :  { %8088 = vmatmul.mubr.msk.f32.gmra.mrb[74].mxu1 %vm7065_vm13, %v7544_v0 }
0x1109   :  { %8090 = vmatprep.mubr.msk.f32.mxu1 %vm10885_vm11, %v10882_v1 }
0x110c   :  { %8091 = vmatmul.mubr.msk.f32.gmra.mrb[76].mxu1 %vm7065_vm13, %v7545_v58 }
0x110d   :  { %8093 = vmatprep.mubr.msk.f32.mxu1 %vm10885_vm11, %v10882_v1 }
0x1110   :  { %8094 = vmatmul.mubr.msk.f32.gmra.mrb[78].mxu1 %vm7065_vm13, %v7546_v14 }
0x1111   :  { %8096 = vmatprep.mubr.msk.f32.mxu1 %vm10885_vm11, %v10882_v1 }
0x1114   :  { %8097 = vmatmul.mubr.msk.f32.gmra.mrb[80].mxu1 %vm7065_vm13, %v7547_v17 }
0x1115   :  { %8099 = vmatprep.mubr.msk.f32.mxu1 %vm10885_vm11, %v10882_v1 }
0x1118   :  { %8100 = vmatmul.mubr.msk.f32.gmra.mrb[82].mxu1 %vm7065_vm13, %v7548_v20 }
0x11d3   :  { %v7639_v10 = vpop.f32.mrb[70].mxu1 }
0x11d4   :  { %v7673_v57 = vadd.f32 %v7639_v10, %v7281_v63  ;;  %v8083_v3 = vpop.f32.mrb[71].mxu1 }
0x11d6   :  { %v7687_v2 = vadd.f32 %v7849_v46, %v7673_v57 }
0x11d7   :  { %v7644_v34 = vpop.f32.mrb[72].mxu1 }
0x11d8   :  { %7694 = vst.msk [vmem:[#allocation31] sm:$0xff] %vm7065_vm13, %v7687_v2  ;;  %v7674_v30 = vadd.f32 %v7644_v34, %v7286_v33  ;;  %v8086_v59 = vpop.f32.mrb[73].mxu1 }
0x11da   :  { %v7688_v39 = vadd.f32 %v7849_v46, %v7674_v30 }
0x11db   :  { %v7649_v42 = vpop.f32.mrb[74].mxu1 }
0x11dc   :  { %7695 = vst.msk [vmem:[#allocation31 + $0x8] sm:$0xff] %vm7065_vm13, %v7688_v39  ;;  %v7675_v1 = vadd.f32 %v7649_v42, %v11878_v9  ;;  %v8089_v8 = vpop.f32.mrb[75].mxu1 }
0x11de   :  { %v7689_v50 = vadd.f32 %v7849_v46, %v7675_v1 }
0x11df   :  { %v7654_v47 = vpop.f32.mrb[76].mxu1 }
0x11e0   :  { %7696 = vst.msk [vmem:[#allocation31 + $0x10] sm:$0xff] %vm7065_vm13, %v7689_v50  ;;  %v7676_v44 = vadd.f32 %v7654_v47, %v11880_v26  ;;  %v8092_v52 = vpop.f32.mrb[77].mxu1 }
0x11e2   :  { %v7690_v16 = vadd.f32 %v7849_v46, %v7676_v44 }
0x11e3   :  { %v7659_v54 = vpop.f32.mrb[78].mxu1 }
0x11e4   :  { %7697 = vst.msk [vmem:[#allocation31 + $0x18] sm:$0xff] %vm7065_vm13, %v7690_v16  ;;  %v7677_v19 = vadd.f32 %v7659_v54, %v11882_v38  ;;  %v8095_v37 = vpop.f32.mrb[79].mxu1 }
0x11e6   :  { %v7691_v40 = vadd.f32 %v7849_v46, %v7677_v19 }
0x11e7   :  { %v7664_v6 = vpop.f32.mrb[80].mxu1 }
0x11e8   :  { %7698 = vst.msk [vmem:[#allocation31 + $0x20] sm:$0xff] %vm7065_vm13, %v7691_v40  ;;  %v7678_v13 = vadd.f32 %v7664_v6, %v11884_v55  ;;  %v8098_v63 = vpop.f32.mrb[81].mxu1 }
0x11ea   :  { %v7692_v31 = vadd.f32 %v7849_v46, %v7678_v13 }
0x11eb   :  { %v7669_v24 = vpop.f32.mrb[82].mxu1 }
0x11ec   :  { %7699 = vst.msk [vmem:[#allocation31 + $0x28] sm:$0xff] %vm7065_vm13, %v7692_v31  ;;  %v7679_v33 = vadd.f32 %v7669_v24, %v11886_v22  ;;  %v8101_v25 = vpop.f32.mrb[83].mxu1 }
0x11ee   :  { %v7693_v15 = vadd.f32 %v7849_v46, %v7679_v33 }
0x11f0   :  { %7700 = vst.msk [vmem:[#allocation31 + $0x30] sm:$0xff] %vm7065_vm13, %v7693_v15 }
0x11f1   :  { %10822 = shalt.err (!%p10819_p8)
}
0x11f2   :  { %s10823_s7 = scalar_lea.hbm %s11964_s20, 896 }
0x11f3   :  { %p10824_p9 = scmp.ne.s32.totalorder %s11964_s20, %s10823_s7  ;;  %p10827_p10 = scmp.lt.u32.totalorder %s10823_s7, %s11964_s20 }
0x11f5   :  { %p10829_p11 = pnand %p10827_p10, %p10824_p9 }
0x11f7   :  { %10832 = shalt.err (!%p10829_p11)
}
0x11f8   :  { %7712 = dma.vmem_to_hbm [thread:$0]  %s7707_s1, 896, %s11964_s20, [#allocation4], %s10866_s22, %s10866_s22, %s10867_s4  }
0x11f9   :  { %10853 = dma.done.wait [#allocation4], 896  }
0x11fa   :  { %10854 = vsyncadd [#allocation4], 4294966400 }
0x11fb   :  { %7716 = vsyncpa [#allocation3], 1 }
0x11fc   :  { %7717 = vsyncpa [#allocation6], 1 }
0x11fd   :  { %7718 = vsyncpa [#allocation9], 1 }
0x11fe   :  { %7719 = vsyncpa [#allocation12], 1 }
0x11ff   :  { %7720 = vsyncpa [#allocation15], 1 }
0x1200   :  { %7721 = vsyncpa [#allocation18], 1 }
0x1201   :  { %7722 = vsyncpa [#allocation21], 1 }
0x1202   :  { %7723 = vsyncpa [#allocation24], 1 }
0x1203   :  { %7724 = vsyncpa [#allocation27], 1 }
0x1204   :  { %7725 = vsyncpa [#allocation30], 1 }
0x1205   :  { %7726 = vsyncpa [#allocation4], 1 }

</bundles_post_ra>
